<compile_context>
chip_gen: v5e
topology: v5e:2x2
jax: 0.10.0
libtpu: 0.0.40
codegen_flags: <defaults>
</compile_context>

<pallas_src>
import functools

import jax
import jax.numpy as jnp
from jax.experimental import pallas as pl
from jax.experimental.pallas import tpu as pltpu


# Geometry for the 28x28 Fashion-MNIST input (fc1 = 128*3*3 requires 28x28).
_H1, _W1, _P1 = 28, 28, 32      # conv1 spatial, padded row pitch (multiple of 8)
_H2, _W2, _P2 = 14, 14, 16      # conv2
_H3, _W3, _P3 = 7, 7, 16        # conv3
_POOL3 = 3                      # spatial size after the last pool
_C1, _C2, _C3 = 32, 64, 128
_FC1, _FC2 = 256, 128
_NCP = 128                      # fc3 output padded to a full lane group


# ----------------------------------------------------------------------------
# Fused whole-network kernel (one image per grid step).
# ----------------------------------------------------------------------------
def _fmnist_fused_kernel(x_ref, w1_ref, b1_ref, w2_ref, b2_ref, w3_ref, b3_ref,
                         wf1_ref, bf1_ref, wf2_ref, bf2_ref, wf3_ref, bf3_ref,
                         o_ref,
                         band1, buf2, acc2, buf3, acc3, *, matmul_dtype):
    f32 = jnp.float32

    # Halo buffers must be zero outside the written interior (left/right/top/bottom
    # halos of the "row pitch" layout are simply never written).
    buf2[...] = jnp.zeros_like(buf2)
    buf3[...] = jnp.zeros_like(buf3)

    # ---------------- conv1 (Cin=1 -> VPU) + bias + ReLU + 2x2 max-pool ----------
    # x_ref: (1, 32*32, 32) f32 -- flattened zero-padded 32x32 image, value
    # replicated across the 32 output-channel lanes (no 1-lane column loads).
    w1 = w1_ref[...]                       # (9, 32) f32
    b1 = b1_ref[...]                       # (1, 32) f32
    for band in range(_H1 // 4):           # 4 conv rows -> 2 pooled rows per band
        base = band * 4 * _P1
        acc = None
        for dy in range(3):
            for dx in range(3):
                start = base + (dy + 1) * _P1 + dx - 1
                xt = x_ref[0, pl.ds(start, 4 * _P1), :]          # (128, 32) f32
                contrib = xt * w1[3 * dy + dx:3 * dy + dx + 1, :]
                acc = contrib if acc is None else acc + contrib
        band1[...] = acc                   # single aligned store of the band acc
        for rr in range(2):
            yo = 2 * band + rr
            r0 = rr * 2 * _P1
            pooled = jnp.maximum(
                jnp.maximum(band1[pl.ds(r0, _W2, stride=2), :],
                            band1[pl.ds(r0 + 1, _W2, stride=2), :]),
                jnp.maximum(band1[pl.ds(r0 + _P1, _W2, stride=2), :],
                            band1[pl.ds(r0 + _P1 + 1, _W2, stride=2), :]))
            pooled = jnp.maximum(pooled + b1, 0.0)
            # conv2's halo-padded input, row base (2+yo)*16 (16-aligned store)
            buf2[pl.ds((2 + yo) * _P2, _W2), :] = pooled

    # ---------------- conv2 (MXU) + bias + ReLU + pool ---------------------------
    b2 = b2_ref[...]
    m_ext2 = _H2 * _P2                                            # 224
    acc = None
    for dy in range(3):
        for dx in range(3):
            start = (dy + 1) * _P2 + dx - 1
            xt = buf2[pl.ds(start, m_ext2), :].astype(matmul_dtype)   # (224, 32)
            c = jnp.dot(xt, w2_ref[3 * dy + dx], preferred_element_type=f32)
            acc = c if acc is None else acc + c                   # register accumulate
    acc2[...] = acc                                               # single store
    for yo in range(_H3):
        r0 = 2 * yo * _P2
        pooled = jnp.maximum(
            jnp.maximum(acc2[pl.ds(r0, _W3, stride=2), :],
                        acc2[pl.ds(r0 + 1, _W3, stride=2), :]),
            jnp.maximum(acc2[pl.ds(r0 + _P2, _W3, stride=2), :],
                        acc2[pl.ds(r0 + _P2 + 1, _W3, stride=2), :]))
        pooled = jnp.maximum(pooled + b2, 0.0)
        buf3[pl.ds((2 + yo) * _P3, _W3), :] = pooled

    # ---------------- conv3 (MXU) + bias + ReLU + pool ---------------------------
    b3 = b3_ref[...]
    m_ext3 = _H3 * _P3                                            # 112
    acc = None
    for dy in range(3):
        for dx in range(3):
            start = (dy + 1) * _P3 + dx - 1
            xt = buf3[pl.ds(start, m_ext3), :].astype(matmul_dtype)   # (112, 64)
            c = jnp.dot(xt, w3_ref[3 * dy + dx], preferred_element_type=f32)
            acc = c if acc is None else acc + c
    acc3[...] = acc
    pooled_rows = []
    for yo in range(_POOL3):
        r0 = 2 * yo * _P3
        pooled = jnp.maximum(
            jnp.maximum(acc3[pl.ds(r0, _POOL3, stride=2), :],
                        acc3[pl.ds(r0 + 1, _POOL3, stride=2), :]),
            jnp.maximum(acc3[pl.ds(r0 + _P3, _POOL3, stride=2), :],
                        acc3[pl.ds(r0 + _P3 + 1, _POOL3, stride=2), :]))
        pooled_rows.append(jnp.maximum(pooled + b3, 0.0))         # (3, 128) f32

    # ---------------- fused FC head: fc1 -> ReLU -> fc2 -> ReLU -> fc3 -----------
    # fc1's weight rows were permuted on the host so the (y, x, c) conv3 output can
    # be consumed directly (torch's NCHW flatten is absorbed into the weights).
    # TODO(synk): dropout1 (p=0.25) / dropout2 (p=0.5) are inference-mode identities.
    h1 = bf1_ref[...]                                             # (1, 256) f32
    for yo in range(_POOL3):
        prow = pooled_rows[yo]                                    # (3, 128)
        for xo in range(_POOL3):
            a = prow[xo:xo + 1, :].astype(matmul_dtype)           # (1, 128)
            h1 = h1 + jnp.dot(a, wf1_ref[yo * _POOL3 + xo],
                              preferred_element_type=f32)
    h1 = jnp.maximum(h1, 0.0)
    h2 = jnp.dot(h1.astype(matmul_dtype), wf2_ref[...],
                 preferred_element_type=f32) + bf2_ref[...]
    h2 = jnp.maximum(h2, 0.0)
    logits = jnp.dot(h2.astype(matmul_dtype), wf3_ref[...],
                     preferred_element_type=f32) + bf3_ref[...]   # (1, 128)
    o_ref[0] = logits.astype(o_ref.dtype)


# ----------------------------------------------------------------------------
# Host-side helpers.
# ----------------------------------------------------------------------------
def _prepare_input(x_nchw):
    """(N,1,28,28) -> flattened zero-padded image replicated across 32 lanes."""
    n = x_nchw.shape[0]
    img = x_nchw.reshape(n, _H1, _W1).astype(jnp.float32)
    xpad = jnp.pad(img, ((0, 0), (2, 2), (0, _P1 - _W1)))        # (N, 32, 32)
    xflat = xpad.reshape(n, _P1 * _P1, 1)
    return jnp.broadcast_to(xflat, (n, _P1 * _P1, _C1))          # (N, 1024, 32) f32


def prepare_params(params, num_classes=10, matmul_dtype=jnp.bfloat16):
    """One-time conversion of the model params into the kernel's resident layout."""
    f32 = jnp.float32
    mdt = matmul_dtype
    wf1 = params["fc1_w"].reshape(_C3, _POOL3, _POOL3, _FC1)
    wf1 = jnp.transpose(wf1, (1, 2, 0, 3)).reshape(_POOL3 * _POOL3, _C3, _FC1)
    return {
        "w1": params["conv1_w"].reshape(9, _C1).astype(f32),
        "b1": params["conv1_b"].reshape(1, _C1).astype(f32),
        "w2": params["conv2_w"].reshape(9, _C1, _C2).astype(mdt),
        "b2": params["conv2_b"].reshape(1, _C2).astype(f32),
        "w3": params["conv3_w"].reshape(9, _C2, _C3).astype(mdt),
        "b3": params["conv3_b"].reshape(1, _C3).astype(f32),
        "wf1": wf1.astype(mdt),
        "bf1": params["fc1_b"].reshape(1, _FC1).astype(f32),
        "wf2": params["fc2_w"].astype(mdt),
        "bf2": params["fc2_b"].reshape(1, _FC2).astype(f32),
        "wf3": jnp.pad(params["fc3_w"],
                       ((0, 0), (0, _NCP - num_classes))).astype(mdt),
        "bf3": jnp.pad(params["fc3_b"],
                       (0, _NCP - num_classes)).reshape(1, _NCP).astype(f32),
    }


def fmnist_forward_prepared(x_nchw, kp, *, num_classes=10):
    n = x_nchw.shape[0]
    x_rep = _prepare_input(x_nchw)
    mdt = kp["w2"].dtype

    kernel = functools.partial(_fmnist_fused_kernel, matmul_dtype=mdt)
    out = pl.pallas_call(
        kernel,
        out_shape=jax.ShapeDtypeStruct((n, 1, _NCP), jnp.float32),
        grid_spec=pltpu.PrefetchScalarGridSpec(
            num_scalar_prefetch=0,
            grid=(n,),
            in_specs=[
                pl.BlockSpec((1, _P1 * _P1, _C1), lambda i: (i, 0, 0)),
                pl.BlockSpec((9, _C1), lambda i: (0, 0)),
                pl.BlockSpec((1, _C1), lambda i: (0, 0)),
                pl.BlockSpec((9, _C1, _C2), lambda i: (0, 0, 0)),
                pl.BlockSpec((1, _C2), lambda i: (0, 0)),
                pl.BlockSpec((9, _C2, _C3), lambda i: (0, 0, 0)),
                pl.BlockSpec((1, _C3), lambda i: (0, 0)),
                pl.BlockSpec((9, _C3, _FC1), lambda i: (0, 0, 0)),
                pl.BlockSpec((1, _FC1), lambda i: (0, 0)),
                pl.BlockSpec((_FC1, _FC2), lambda i: (0, 0)),
                pl.BlockSpec((1, _FC2), lambda i: (0, 0)),
                pl.BlockSpec((_FC2, _NCP), lambda i: (0, 0)),
                pl.BlockSpec((1, _NCP), lambda i: (0, 0)),
            ],
            out_specs=pl.BlockSpec((1, 1, _NCP), lambda i: (i, 0, 0)),
            scratch_shapes=[
                pltpu.VMEM((4 * _P1, _C1), jnp.float32),           # conv1 band acc
                pltpu.VMEM(((_H2 + 4) * _P2, _C1), jnp.float32),   # conv2 halo input
                pltpu.VMEM((_H2 * _P2, _C2), jnp.float32),         # conv2 accumulator
                pltpu.VMEM(((_H3 + 4) * _P3, _C2), jnp.float32),   # conv3 halo input
                pltpu.VMEM((_H3 * _P3, _C3), jnp.float32),         # conv3 accumulator
            ],
        ),
        compiler_params=pltpu.CompilerParams(
            dimension_semantics=("parallel",)),
    )(x_rep, kp["w1"], kp["b1"], kp["w2"], kp["b2"], kp["w3"], kp["b3"],
      kp["wf1"], kp["bf1"], kp["wf2"], kp["bf2"], kp["wf3"], kp["bf3"])
    return out.reshape(n, _NCP)[:, :num_classes]


def fmnist_net_forward(x_nchw, params, *, num_classes=10,
                       matmul_dtype=jnp.bfloat16):
    """Convenience wrapper: prepare params every call (use prepare_params + the
    prepared forward if params are reused across calls)."""
    kp = prepare_params(params, num_classes=num_classes, matmul_dtype=matmul_dtype)
    return fmnist_forward_prepared(x_nchw, kp, num_classes=num_classes)


# ----------------------------------------------------------------------------
# Parameter init (same conventions as before: HWIO convs, (in, out) FC matrices;
# fc1 rows are in torch's flatten order c*9 + y*3 + x).
# ----------------------------------------------------------------------------
def init_params(key, num_classes=10):
    def dense(k, shape, fan_in):
        return (jax.random.normal(k, shape, jnp.float32) /
                jnp.sqrt(fan_in)).astype(jnp.float32)

    ks = jax.random.split(key, 6)
    return {
        "conv1_w": dense(ks[0], (3, 3, 1, _C1), 9 * 1),
        "conv1_b": jnp.zeros((_C1,), jnp.float32),
        "conv2_w": dense(ks[1], (3, 3, _C1, _C2), 9 * _C1),
        "conv2_b": jnp.zeros((_C2,), jnp.float32),
        "conv3_w": dense(ks[2], (3, 3, _C2, _C3), 9 * _C2),
        "conv3_b": jnp.zeros((_C3,), jnp.float32),
        "fc1_w": dense(ks[3], (_C3 * 3 * 3, _FC1), _C3 * 3 * 3),
        "fc1_b": jnp.zeros((_FC1,), jnp.float32),
        "fc2_w": dense(ks[4], (_FC1, _FC2), _FC1),
        "fc2_b": jnp.zeros((_FC2,), jnp.float32),
        "fc3_w": dense(ks[5], (_FC2, num_classes), _FC2),
        "fc3_b": jnp.zeros((num_classes,), jnp.float32),
    }


if __name__ == "__main__":
    key = jax.random.PRNGKey(0)
    k_x, k_p = jax.random.split(key)
    # Fashion-MNIST style input: batch=2, 1 channel, 28x28 (required by fc1 = 128*3*3)
    x = jax.random.normal(k_x, (2, 1, 28, 28), jnp.float32)
    params = init_params(k_p, num_classes=10)

    # One-time param preparation (bf16 weights, permuted fc1, padded fc3).
    kparams = prepare_params(params, num_classes=10, matmul_dtype=jnp.bfloat16)

    fwd = jax.jit(functools.partial(fmnist_forward_prepared, num_classes=10))
    logits = fwd(x, kparams)
    jax.block_until_ready(logits)
    assert logits.shape == (2, 10), logits.shape
    print("KERNEL_OK")
</pallas_src>

<mosaic_0001>
module attributes {stable_mosaic.version = 11 : i64} {
  func.func @_fmnist_fused_kernel(%arg0: i32, %arg1: memref<1x1024x32xf32, #tpu.memory_space<vmem>>, %arg2: memref<9x32xf32, #tpu.memory_space<vmem>>, %arg3: memref<1x32xf32, #tpu.memory_space<vmem>>, %arg4: memref<9x32x64xbf16, #tpu.memory_space<vmem>>, %arg5: memref<1x64xf32, #tpu.memory_space<vmem>>, %arg6: memref<9x64x128xbf16, #tpu.memory_space<vmem>>, %arg7: memref<1x128xf32, #tpu.memory_space<vmem>>, %arg8: memref<9x128x256xbf16, #tpu.memory_space<vmem>>, %arg9: memref<1x256xf32, #tpu.memory_space<vmem>>, %arg10: memref<256x128xbf16, #tpu.memory_space<vmem>>, %arg11: memref<1x128xf32, #tpu.memory_space<vmem>>, %arg12: memref<128x128xbf16, #tpu.memory_space<vmem>>, %arg13: memref<1x128xf32, #tpu.memory_space<vmem>>, %arg14: memref<1x1x128xf32, #tpu.memory_space<vmem>>, %arg15: memref<128x32xf32, #tpu.memory_space<vmem>>, %arg16: memref<288x32xf32, #tpu.memory_space<vmem>>, %arg17: memref<224x64xf32, #tpu.memory_space<vmem>>, %arg18: memref<176x64xf32, #tpu.memory_space<vmem>>, %arg19: memref<112x128xf32, #tpu.memory_space<vmem>>) attributes {dimension_semantics = [#tpu.dimension_semantics<parallel>], iteration_bounds = array<i64: 2>, scalar_prefetch = 0 : i64, scratch_operands = 5 : i64, tpu.core_type = #tpu.core_type<tc>, window_params = [{transform_indices = @transform_0, window_bounds = array<i64: 1, 1024, 32>}, {pipeline_mode = #tpu.pipeline_mode<synchronous>, transform_indices = @transform_1, window_bounds = array<i64: 9, 32>}, {pipeline_mode = #tpu.pipeline_mode<synchronous>, transform_indices = @transform_2, window_bounds = array<i64: 1, 32>}, {pipeline_mode = #tpu.pipeline_mode<synchronous>, transform_indices = @transform_3, window_bounds = array<i64: 9, 32, 64>}, {pipeline_mode = #tpu.pipeline_mode<synchronous>, transform_indices = @transform_4, window_bounds = array<i64: 1, 64>}, {pipeline_mode = #tpu.pipeline_mode<synchronous>, transform_indices = @transform_5, window_bounds = array<i64: 9, 64, 128>}, {pipeline_mode = #tpu.pipeline_mode<synchronous>, transform_indices = @transform_6, window_bounds = array<i64: 1, 128>}, {pipeline_mode = #tpu.pipeline_mode<synchronous>, transform_indices = @transform_7, window_bounds = array<i64: 9, 128, 256>}, {pipeline_mode = #tpu.pipeline_mode<synchronous>, transform_indices = @transform_8, window_bounds = array<i64: 1, 256>}, {pipeline_mode = #tpu.pipeline_mode<synchronous>, transform_indices = @transform_9, window_bounds = array<i64: 256, 128>}, {pipeline_mode = #tpu.pipeline_mode<synchronous>, transform_indices = @transform_10, window_bounds = array<i64: 1, 128>}, {pipeline_mode = #tpu.pipeline_mode<synchronous>, transform_indices = @transform_11, window_bounds = array<i64: 128, 128>}, {pipeline_mode = #tpu.pipeline_mode<synchronous>, transform_indices = @transform_12, window_bounds = array<i64: 1, 128>}, {transform_indices = @transform_13, window_bounds = array<i64: 1, 1, 128>}]} {
    %cst = arith.constant 0.000000e+00 : f32
    %0 = vector.broadcast %cst : f32 to vector<288x32xf32>
    %c0 = arith.constant 0 : index
    %c0_0 = arith.constant 0 : index
    %1 = vector.load %arg16[%c0, %c0_0] : memref<288x32xf32, #tpu.memory_space<vmem>>, vector<288x32xf32>
    tpu.vector_store %arg16[%c0, %c0_0], %0 {strides = array<i32>} : memref<288x32xf32, #tpu.memory_space<vmem>>, vector<288x32xf32>,
    %cst_1 = arith.constant 0.000000e+00 : f32
    %2 = vector.broadcast %cst_1 : f32 to vector<176x64xf32>
    %c0_2 = arith.constant 0 : index
    %c0_3 = arith.constant 0 : index
    %3 = vector.load %arg18[%c0_2, %c0_3] : memref<176x64xf32, #tpu.memory_space<vmem>>, vector<176x64xf32>
    tpu.vector_store %arg18[%c0_2, %c0_3], %2 {strides = array<i32>} : memref<176x64xf32, #tpu.memory_space<vmem>>, vector<176x64xf32>,
    %c0_4 = arith.constant 0 : index
    %c0_5 = arith.constant 0 : index
    %4 = vector.load %arg2[%c0_4, %c0_5] : memref<9x32xf32, #tpu.memory_space<vmem>>, vector<9x32xf32>
    %c0_6 = arith.constant 0 : index
    %c0_7 = arith.constant 0 : index
    %5 = vector.load %arg3[%c0_6, %c0_7] : memref<1x32xf32, #tpu.memory_space<vmem>>, vector<1x32xf32>
    %c0_8 = arith.constant 0 : index
    %c31 = arith.constant 31 : index
    %c0_9 = arith.constant 0 : index
    %6 = vector.load %arg1[%c0_8, %c31, %c0_9] : memref<1x1024x32xf32, #tpu.memory_space<vmem>>, vector<1x128x32xf32>
    %7 = vector.shape_cast %6 : vector<1x128x32xf32> to vector<128x32xf32>
    %8 = vector.extract_strided_slice %4 {offsets = [0, 0], sizes = [1, 32], strides = [1, 1]} : vector<9x32xf32> to vector<1x32xf32>
    %9 = vector.broadcast %8 : vector<1x32xf32> to vector<128x32xf32>
    %10 = arith.mulf %7, %9 : vector<128x32xf32>
    %c0_10 = arith.constant 0 : index
    %c32 = arith.constant 32 : index
    %c0_11 = arith.constant 0 : index
    %11 = vector.load %arg1[%c0_10, %c32, %c0_11] : memref<1x1024x32xf32, #tpu.memory_space<vmem>>, vector<1x128x32xf32>
    %12 = vector.shape_cast %11 : vector<1x128x32xf32> to vector<128x32xf32>
    %13 = vector.extract_strided_slice %4 {offsets = [1, 0], sizes = [1, 32], strides = [1, 1]} : vector<9x32xf32> to vector<1x32xf32>
    %14 = vector.broadcast %13 : vector<1x32xf32> to vector<128x32xf32>
    %15 = arith.mulf %12, %14 : vector<128x32xf32>
    %16 = arith.addf %10, %15 : vector<128x32xf32>
    %c0_12 = arith.constant 0 : index
    %c33 = arith.constant 33 : index
    %c0_13 = arith.constant 0 : index
    %17 = vector.load %arg1[%c0_12, %c33, %c0_13] : memref<1x1024x32xf32, #tpu.memory_space<vmem>>, vector<1x128x32xf32>
    %18 = vector.shape_cast %17 : vector<1x128x32xf32> to vector<128x32xf32>
    %19 = vector.extract_strided_slice %4 {offsets = [2, 0], sizes = [1, 32], strides = [1, 1]} : vector<9x32xf32> to vector<1x32xf32>
    %20 = vector.broadcast %19 : vector<1x32xf32> to vector<128x32xf32>
    %21 = arith.mulf %18, %20 : vector<128x32xf32>
    %22 = arith.addf %16, %21 : vector<128x32xf32>
    %c0_14 = arith.constant 0 : index
    %c63 = arith.constant 63 : index
    %c0_15 = arith.constant 0 : index
    %23 = vector.load %arg1[%c0_14, %c63, %c0_15] : memref<1x1024x32xf32, #tpu.memory_space<vmem>>, vector<1x128x32xf32>
    %24 = vector.shape_cast %23 : vector<1x128x32xf32> to vector<128x32xf32>
    %25 = vector.extract_strided_slice %4 {offsets = [3, 0], sizes = [1, 32], strides = [1, 1]} : vector<9x32xf32> to vector<1x32xf32>
    %26 = vector.broadcast %25 : vector<1x32xf32> to vector<128x32xf32>
    %27 = arith.mulf %24, %26 : vector<128x32xf32>
    %28 = arith.addf %22, %27 : vector<128x32xf32>
    %c0_16 = arith.constant 0 : index
    %c64 = arith.constant 64 : index
    %c0_17 = arith.constant 0 : index
    %29 = vector.load %arg1[%c0_16, %c64, %c0_17] : memref<1x1024x32xf32, #tpu.memory_space<vmem>>, vector<1x128x32xf32>
    %30 = vector.shape_cast %29 : vector<1x128x32xf32> to vector<128x32xf32>
    %31 = vector.extract_strided_slice %4 {offsets = [4, 0], sizes = [1, 32], strides = [1, 1]} : vector<9x32xf32> to vector<1x32xf32>
    %32 = vector.broadcast %31 : vector<1x32xf32> to vector<128x32xf32>
    %33 = arith.mulf %30, %32 : vector<128x32xf32>
    %34 = arith.addf %28, %33 : vector<128x32xf32>
    %c0_18 = arith.constant 0 : index
    %c65 = arith.constant 65 : index
    %c0_19 = arith.constant 0 : index
    %35 = vector.load %arg1[%c0_18, %c65, %c0_19] : memref<1x1024x32xf32, #tpu.memory_space<vmem>>, vector<1x128x32xf32>
    %36 = vector.shape_cast %35 : vector<1x128x32xf32> to vector<128x32xf32>
    %37 = vector.extract_strided_slice %4 {offsets = [5, 0], sizes = [1, 32], strides = [1, 1]} : vector<9x32xf32> to vector<1x32xf32>
    %38 = vector.broadcast %37 : vector<1x32xf32> to vector<128x32xf32>
    %39 = arith.mulf %36, %38 : vector<128x32xf32>
    %40 = arith.addf %34, %39 : vector<128x32xf32>
    %c0_20 = arith.constant 0 : index
    %c95 = arith.constant 95 : index
    %c0_21 = arith.constant 0 : index
    %41 = vector.load %arg1[%c0_20, %c95, %c0_21] : memref<1x1024x32xf32, #tpu.memory_space<vmem>>, vector<1x128x32xf32>
    %42 = vector.shape_cast %41 : vector<1x128x32xf32> to vector<128x32xf32>
    %43 = vector.extract_strided_slice %4 {offsets = [6, 0], sizes = [1, 32], strides = [1, 1]} : vector<9x32xf32> to vector<1x32xf32>
    %44 = vector.broadcast %43 : vector<1x32xf32> to vector<128x32xf32>
    %45 = arith.mulf %42, %44 : vector<128x32xf32>
    %46 = arith.addf %40, %45 : vector<128x32xf32>
    %c0_22 = arith.constant 0 : index
    %c96 = arith.constant 96 : index
    %c0_23 = arith.constant 0 : index
    %47 = vector.load %arg1[%c0_22, %c96, %c0_23] : memref<1x1024x32xf32, #tpu.memory_space<vmem>>, vector<1x128x32xf32>
    %48 = vector.shape_cast %47 : vector<1x128x32xf32> to vector<128x32xf32>
    %49 = vector.extract_strided_slice %4 {offsets = [7, 0], sizes = [1, 32], strides = [1, 1]} : vector<9x32xf32> to vector<1x32xf32>
    %50 = vector.broadcast %49 : vector<1x32xf32> to vector<128x32xf32>
    %51 = arith.mulf %48, %50 : vector<128x32xf32>
    %52 = arith.addf %46, %51 : vector<128x32xf32>
    %c0_24 = arith.constant 0 : index
    %c97 = arith.constant 97 : index
    %c0_25 = arith.constant 0 : index
    %53 = vector.load %arg1[%c0_24, %c97, %c0_25] : memref<1x1024x32xf32, #tpu.memory_space<vmem>>, vector<1x128x32xf32>
    %54 = vector.shape_cast %53 : vector<1x128x32xf32> to vector<128x32xf32>
    %55 = vector.extract_strided_slice %4 {offsets = [8, 0], sizes = [1, 32], strides = [1, 1]} : vector<9x32xf32> to vector<1x32xf32>
    %56 = vector.broadcast %55 : vector<1x32xf32> to vector<128x32xf32>
    %57 = arith.mulf %54, %56 : vector<128x32xf32>
    %58 = arith.addf %52, %57 : vector<128x32xf32>
    %c0_26 = arith.constant 0 : index
    %c0_27 = arith.constant 0 : index
    %59 = vector.load %arg15[%c0_26, %c0_27] : memref<128x32xf32, #tpu.memory_space<vmem>>, vector<128x32xf32>
    tpu.vector_store %arg15[%c0_26, %c0_27], %58 {strides = array<i32>} : memref<128x32xf32, #tpu.memory_space<vmem>>, vector<128x32xf32>,
    %c0_28 = arith.constant 0 : index
    %c0_29 = arith.constant 0 : index
    %60 = tpu.strided_load %arg15[%c0_28, %c0_29] {strides = array<i32: 2, 1>} : memref<128x32xf32, #tpu.memory_space<vmem>>, vector<14x32xf32>
    %c1 = arith.constant 1 : index
    %c0_30 = arith.constant 0 : index
    %61 = tpu.strided_load %arg15[%c1, %c0_30] {strides = array<i32: 2, 1>} : memref<128x32xf32, #tpu.memory_space<vmem>>, vector<14x32xf32>
    %62 = arith.maximumf %60, %61 : vector<14x32xf32>
    %c32_31 = arith.constant 32 : index
    %c0_32 = arith.constant 0 : index
    %63 = tpu.strided_load %arg15[%c32_31, %c0_32] {strides = array<i32: 2, 1>} : memref<128x32xf32, #tpu.memory_space<vmem>>, vector<14x32xf32>
    %c33_33 = arith.constant 33 : index
    %c0_34 = arith.constant 0 : index
    %64 = tpu.strided_load %arg15[%c33_33, %c0_34] {strides = array<i32: 2, 1>} : memref<128x32xf32, #tpu.memory_space<vmem>>, vector<14x32xf32>
    %65 = arith.maximumf %63, %64 : vector<14x32xf32>
    %66 = arith.maximumf %62, %65 : vector<14x32xf32>
    %67 = vector.broadcast %5 : vector<1x32xf32> to vector<14x32xf32>
    %68 = arith.addf %66, %67 : vector<14x32xf32>
    %cst_35 = arith.constant 0.000000e+00 : f32
    %69 = vector.broadcast %cst_35 : f32 to vector<14x32xf32>
    %70 = arith.maximumf %68, %69 : vector<14x32xf32>
    %c32_36 = arith.constant 32 : index
    %c0_37 = arith.constant 0 : index
    %71 = vector.load %arg16[%c32_36, %c0_37] : memref<288x32xf32, #tpu.memory_space<vmem>>, vector<14x32xf32>
    tpu.vector_store %arg16[%c32_36, %c0_37], %70 {strides = array<i32>} : memref<288x32xf32, #tpu.memory_space<vmem>>, vector<14x32xf32>,
    %c64_38 = arith.constant 64 : index
    %c0_39 = arith.constant 0 : index
    %72 = tpu.strided_load %arg15[%c64_38, %c0_39] {strides = array<i32: 2, 1>} : memref<128x32xf32, #tpu.memory_space<vmem>>, vector<14x32xf32>
    %c65_40 = arith.constant 65 : index
    %c0_41 = arith.constant 0 : index
    %73 = tpu.strided_load %arg15[%c65_40, %c0_41] {strides = array<i32: 2, 1>} : memref<128x32xf32, #tpu.memory_space<vmem>>, vector<14x32xf32>
    %74 = arith.maximumf %72, %73 : vector<14x32xf32>
    %c96_42 = arith.constant 96 : index
    %c0_43 = arith.constant 0 : index
    %75 = tpu.strided_load %arg15[%c96_42, %c0_43] {strides = array<i32: 2, 1>} : memref<128x32xf32, #tpu.memory_space<vmem>>, vector<14x32xf32>
    %c97_44 = arith.constant 97 : index
    %c0_45 = arith.constant 0 : index
    %76 = tpu.strided_load %arg15[%c97_44, %c0_45] {strides = array<i32: 2, 1>} : memref<128x32xf32, #tpu.memory_space<vmem>>, vector<14x32xf32>
    %77 = arith.maximumf %75, %76 : vector<14x32xf32>
    %78 = arith.maximumf %74, %77 : vector<14x32xf32>
    %79 = vector.broadcast %5 : vector<1x32xf32> to vector<14x32xf32>
    %80 = arith.addf %78, %79 : vector<14x32xf32>
    %cst_46 = arith.constant 0.000000e+00 : f32
    %81 = vector.broadcast %cst_46 : f32 to vector<14x32xf32>
    %82 = arith.maximumf %80, %81 : vector<14x32xf32>
    %c48 = arith.constant 48 : index
    %c0_47 = arith.constant 0 : index
    %83 = vector.load %arg16[%c48, %c0_47] : memref<288x32xf32, #tpu.memory_space<vmem>>, vector<14x32xf32>
    tpu.vector_store %arg16[%c48, %c0_47], %82 {strides = array<i32>} : memref<288x32xf32, #tpu.memory_space<vmem>>, vector<14x32xf32>,
    %c0_48 = arith.constant 0 : index
    %c159 = arith.constant 159 : index
    %c0_49 = arith.constant 0 : index
    %84 = vector.load %arg1[%c0_48, %c159, %c0_49] : memref<1x1024x32xf32, #tpu.memory_space<vmem>>, vector<1x128x32xf32>
    %85 = vector.shape_cast %84 : vector<1x128x32xf32> to vector<128x32xf32>
    %86 = vector.extract_strided_slice %4 {offsets = [0, 0], sizes = [1, 32], strides = [1, 1]} : vector<9x32xf32> to vector<1x32xf32>
    %87 = vector.broadcast %86 : vector<1x32xf32> to vector<128x32xf32>
    %88 = arith.mulf %85, %87 : vector<128x32xf32>
    %c0_50 = arith.constant 0 : index
    %c160 = arith.constant 160 : index
    %c0_51 = arith.constant 0 : index
    %89 = vector.load %arg1[%c0_50, %c160, %c0_51] : memref<1x1024x32xf32, #tpu.memory_space<vmem>>, vector<1x128x32xf32>
    %90 = vector.shape_cast %89 : vector<1x128x32xf32> to vector<128x32xf32>
    %91 = vector.extract_strided_slice %4 {offsets = [1, 0], sizes = [1, 32], strides = [1, 1]} : vector<9x32xf32> to vector<1x32xf32>
    %92 = vector.broadcast %91 : vector<1x32xf32> to vector<128x32xf32>
    %93 = arith.mulf %90, %92 : vector<128x32xf32>
    %94 = arith.addf %88, %93 : vector<128x32xf32>
    %c0_52 = arith.constant 0 : index
    %c161 = arith.constant 161 : index
    %c0_53 = arith.constant 0 : index
    %95 = vector.load %arg1[%c0_52, %c161, %c0_53] : memref<1x1024x32xf32, #tpu.memory_space<vmem>>, vector<1x128x32xf32>
    %96 = vector.shape_cast %95 : vector<1x128x32xf32> to vector<128x32xf32>
    %97 = vector.extract_strided_slice %4 {offsets = [2, 0], sizes = [1, 32], strides = [1, 1]} : vector<9x32xf32> to vector<1x32xf32>
    %98 = vector.broadcast %97 : vector<1x32xf32> to vector<128x32xf32>
    %99 = arith.mulf %96, %98 : vector<128x32xf32>
    %100 = arith.addf %94, %99 : vector<128x32xf32>
    %c0_54 = arith.constant 0 : index
    %c191 = arith.constant 191 : index
    %c0_55 = arith.constant 0 : index
    %101 = vector.load %arg1[%c0_54, %c191, %c0_55] : memref<1x1024x32xf32, #tpu.memory_space<vmem>>, vector<1x128x32xf32>
    %102 = vector.shape_cast %101 : vector<1x128x32xf32> to vector<128x32xf32>
    %103 = vector.extract_strided_slice %4 {offsets = [3, 0], sizes = [1, 32], strides = [1, 1]} : vector<9x32xf32> to vector<1x32xf32>
    %104 = vector.broadcast %103 : vector<1x32xf32> to vector<128x32xf32>
    %105 = arith.mulf %102, %104 : vector<128x32xf32>
    %106 = arith.addf %100, %105 : vector<128x32xf32>
    %c0_56 = arith.constant 0 : index
    %c192 = arith.constant 192 : index
    %c0_57 = arith.constant 0 : index
    %107 = vector.load %arg1[%c0_56, %c192, %c0_57] : memref<1x1024x32xf32, #tpu.memory_space<vmem>>, vector<1x128x32xf32>
    %108 = vector.shape_cast %107 : vector<1x128x32xf32> to vector<128x32xf32>
    %109 = vector.extract_strided_slice %4 {offsets = [4, 0], sizes = [1, 32], strides = [1, 1]} : vector<9x32xf32> to vector<1x32xf32>
    %110 = vector.broadcast %109 : vector<1x32xf32> to vector<128x32xf32>
    %111 = arith.mulf %108, %110 : vector<128x32xf32>
    %112 = arith.addf %106, %111 : vector<128x32xf32>
    %c0_58 = arith.constant 0 : index
    %c193 = arith.constant 193 : index
    %c0_59 = arith.constant 0 : index
    %113 = vector.load %arg1[%c0_58, %c193, %c0_59] : memref<1x1024x32xf32, #tpu.memory_space<vmem>>, vector<1x128x32xf32>
    %114 = vector.shape_cast %113 : vector<1x128x32xf32> to vector<128x32xf32>
    %115 = vector.extract_strided_slice %4 {offsets = [5, 0], sizes = [1, 32], strides = [1, 1]} : vector<9x32xf32> to vector<1x32xf32>
    %116 = vector.broadcast %115 : vector<1x32xf32> to vector<128x32xf32>
    %117 = arith.mulf %114, %116 : vector<128x32xf32>
    %118 = arith.addf %112, %117 : vector<128x32xf32>
    %c0_60 = arith.constant 0 : index
    %c223 = arith.constant 223 : index
    %c0_61 = arith.constant 0 : index
    %119 = vector.load %arg1[%c0_60, %c223, %c0_61] : memref<1x1024x32xf32, #tpu.memory_space<vmem>>, vector<1x128x32xf32>
    %120 = vector.shape_cast %119 : vector<1x128x32xf32> to vector<128x32xf32>
    %121 = vector.extract_strided_slice %4 {offsets = [6, 0], sizes = [1, 32], strides = [1, 1]} : vector<9x32xf32> to vector<1x32xf32>
    %122 = vector.broadcast %121 : vector<1x32xf32> to vector<128x32xf32>
    %123 = arith.mulf %120, %122 : vector<128x32xf32>
    %124 = arith.addf %118, %123 : vector<128x32xf32>
    %c0_62 = arith.constant 0 : index
    %c224 = arith.constant 224 : index
    %c0_63 = arith.constant 0 : index
    %125 = vector.load %arg1[%c0_62, %c224, %c0_63] : memref<1x1024x32xf32, #tpu.memory_space<vmem>>, vector<1x128x32xf32>
    %126 = vector.shape_cast %125 : vector<1x128x32xf32> to vector<128x32xf32>
    %127 = vector.extract_strided_slice %4 {offsets = [7, 0], sizes = [1, 32], strides = [1, 1]} : vector<9x32xf32> to vector<1x32xf32>
    %128 = vector.broadcast %127 : vector<1x32xf32> to vector<128x32xf32>
    %129 = arith.mulf %126, %128 : vector<128x32xf32>
    %130 = arith.addf %124, %129 : vector<128x32xf32>
    %c0_64 = arith.constant 0 : index
    %c225 = arith.constant 225 : index
    %c0_65 = arith.constant 0 : index
    %131 = vector.load %arg1[%c0_64, %c225, %c0_65] : memref<1x1024x32xf32, #tpu.memory_space<vmem>>, vector<1x128x32xf32>
    %132 = vector.shape_cast %131 : vector<1x128x32xf32> to vector<128x32xf32>
    %133 = vector.extract_strided_slice %4 {offsets = [8, 0], sizes = [1, 32], strides = [1, 1]} : vector<9x32xf32> to vector<1x32xf32>
    %134 = vector.broadcast %133 : vector<1x32xf32> to vector<128x32xf32>
    %135 = arith.mulf %132, %134 : vector<128x32xf32>
    %136 = arith.addf %130, %135 : vector<128x32xf32>
    %c0_66 = arith.constant 0 : index
    %c0_67 = arith.constant 0 : index
    %137 = vector.load %arg15[%c0_66, %c0_67] : memref<128x32xf32, #tpu.memory_space<vmem>>, vector<128x32xf32>
    tpu.vector_store %arg15[%c0_66, %c0_67], %136 {strides = array<i32>} : memref<128x32xf32, #tpu.memory_space<vmem>>, vector<128x32xf32>,
    %c0_68 = arith.constant 0 : index
    %c0_69 = arith.constant 0 : index
    %138 = tpu.strided_load %arg15[%c0_68, %c0_69] {strides = array<i32: 2, 1>} : memref<128x32xf32, #tpu.memory_space<vmem>>, vector<14x32xf32>
    %c1_70 = arith.constant 1 : index
    %c0_71 = arith.constant 0 : index
    %139 = tpu.strided_load %arg15[%c1_70, %c0_71] {strides = array<i32: 2, 1>} : memref<128x32xf32, #tpu.memory_space<vmem>>, vector<14x32xf32>
    %140 = arith.maximumf %138, %139 : vector<14x32xf32>
    %c32_72 = arith.constant 32 : index
    %c0_73 = arith.constant 0 : index
    %141 = tpu.strided_load %arg15[%c32_72, %c0_73] {strides = array<i32: 2, 1>} : memref<128x32xf32, #tpu.memory_space<vmem>>, vector<14x32xf32>
    %c33_74 = arith.constant 33 : index
    %c0_75 = arith.constant 0 : index
    %142 = tpu.strided_load %arg15[%c33_74, %c0_75] {strides = array<i32: 2, 1>} : memref<128x32xf32, #tpu.memory_space<vmem>>, vector<14x32xf32>
    %143 = arith.maximumf %141, %142 : vector<14x32xf32>
    %144 = arith.maximumf %140, %143 : vector<14x32xf32>
    %145 = vector.broadcast %5 : vector<1x32xf32> to vector<14x32xf32>
    %146 = arith.addf %144, %145 : vector<14x32xf32>
    %cst_76 = arith.constant 0.000000e+00 : f32
    %147 = vector.broadcast %cst_76 : f32 to vector<14x32xf32>
    %148 = arith.maximumf %146, %147 : vector<14x32xf32>
    %c64_77 = arith.constant 64 : index
    %c0_78 = arith.constant 0 : index
    %149 = vector.load %arg16[%c64_77, %c0_78] : memref<288x32xf32, #tpu.memory_space<vmem>>, vector<14x32xf32>
    tpu.vector_store %arg16[%c64_77, %c0_78], %148 {strides = array<i32>} : memref<288x32xf32, #tpu.memory_space<vmem>>, vector<14x32xf32>,
    %c64_79 = arith.constant 64 : index
    %c0_80 = arith.constant 0 : index
    %150 = tpu.strided_load %arg15[%c64_79, %c0_80] {strides = array<i32: 2, 1>} : memref<128x32xf32, #tpu.memory_space<vmem>>, vector<14x32xf32>
    %c65_81 = arith.constant 65 : index
    %c0_82 = arith.constant 0 : index
    %151 = tpu.strided_load %arg15[%c65_81, %c0_82] {strides = array<i32: 2, 1>} : memref<128x32xf32, #tpu.memory_space<vmem>>, vector<14x32xf32>
    %152 = arith.maximumf %150, %151 : vector<14x32xf32>
    %c96_83 = arith.constant 96 : index
    %c0_84 = arith.constant 0 : index
    %153 = tpu.strided_load %arg15[%c96_83, %c0_84] {strides = array<i32: 2, 1>} : memref<128x32xf32, #tpu.memory_space<vmem>>, vector<14x32xf32>
    %c97_85 = arith.constant 97 : index
    %c0_86 = arith.constant 0 : index
    %154 = tpu.strided_load %arg15[%c97_85, %c0_86] {strides = array<i32: 2, 1>} : memref<128x32xf32, #tpu.memory_space<vmem>>, vector<14x32xf32>
    %155 = arith.maximumf %153, %154 : vector<14x32xf32>
    %156 = arith.maximumf %152, %155 : vector<14x32xf32>
    %157 = vector.broadcast %5 : vector<1x32xf32> to vector<14x32xf32>
    %158 = arith.addf %156, %157 : vector<14x32xf32>
    %cst_87 = arith.constant 0.000000e+00 : f32
    %159 = vector.broadcast %cst_87 : f32 to vector<14x32xf32>
    %160 = arith.maximumf %158, %159 : vector<14x32xf32>
    %c80 = arith.constant 80 : index
    %c0_88 = arith.constant 0 : index
    %161 = vector.load %arg16[%c80, %c0_88] : memref<288x32xf32, #tpu.memory_space<vmem>>, vector<14x32xf32>
    tpu.vector_store %arg16[%c80, %c0_88], %160 {strides = array<i32>} : memref<288x32xf32, #tpu.memory_space<vmem>>, vector<14x32xf32>,
    %c0_89 = arith.constant 0 : index
    %c287 = arith.constant 287 : index
    %c0_90 = arith.constant 0 : index
    %162 = vector.load %arg1[%c0_89, %c287, %c0_90] : memref<1x1024x32xf32, #tpu.memory_space<vmem>>, vector<1x128x32xf32>
    %163 = vector.shape_cast %162 : vector<1x128x32xf32> to vector<128x32xf32>
    %164 = vector.extract_strided_slice %4 {offsets = [0, 0], sizes = [1, 32], strides = [1, 1]} : vector<9x32xf32> to vector<1x32xf32>
    %165 = vector.broadcast %164 : vector<1x32xf32> to vector<128x32xf32>
    %166 = arith.mulf %163, %165 : vector<128x32xf32>
    %c0_91 = arith.constant 0 : index
    %c288 = arith.constant 288 : index
    %c0_92 = arith.constant 0 : index
    %167 = vector.load %arg1[%c0_91, %c288, %c0_92] : memref<1x1024x32xf32, #tpu.memory_space<vmem>>, vector<1x128x32xf32>
    %168 = vector.shape_cast %167 : vector<1x128x32xf32> to vector<128x32xf32>
    %169 = vector.extract_strided_slice %4 {offsets = [1, 0], sizes = [1, 32], strides = [1, 1]} : vector<9x32xf32> to vector<1x32xf32>
    %170 = vector.broadcast %169 : vector<1x32xf32> to vector<128x32xf32>
    %171 = arith.mulf %168, %170 : vector<128x32xf32>
    %172 = arith.addf %166, %171 : vector<128x32xf32>
    %c0_93 = arith.constant 0 : index
    %c289 = arith.constant 289 : index
    %c0_94 = arith.constant 0 : index
    %173 = vector.load %arg1[%c0_93, %c289, %c0_94] : memref<1x1024x32xf32, #tpu.memory_space<vmem>>, vector<1x128x32xf32>
    %174 = vector.shape_cast %173 : vector<1x128x32xf32> to vector<128x32xf32>
    %175 = vector.extract_strided_slice %4 {offsets = [2, 0], sizes = [1, 32], strides = [1, 1]} : vector<9x32xf32> to vector<1x32xf32>
    %176 = vector.broadcast %175 : vector<1x32xf32> to vector<128x32xf32>
    %177 = arith.mulf %174, %176 : vector<128x32xf32>
    %178 = arith.addf %172, %177 : vector<128x32xf32>
    %c0_95 = arith.constant 0 : index
    %c319 = arith.constant 319 : index
    %c0_96 = arith.constant 0 : index
    %179 = vector.load %arg1[%c0_95, %c319, %c0_96] : memref<1x1024x32xf32, #tpu.memory_space<vmem>>, vector<1x128x32xf32>
    %180 = vector.shape_cast %179 : vector<1x128x32xf32> to vector<128x32xf32>
    %181 = vector.extract_strided_slice %4 {offsets = [3, 0], sizes = [1, 32], strides = [1, 1]} : vector<9x32xf32> to vector<1x32xf32>
    %182 = vector.broadcast %181 : vector<1x32xf32> to vector<128x32xf32>
    %183 = arith.mulf %180, %182 : vector<128x32xf32>
    %184 = arith.addf %178, %183 : vector<128x32xf32>
    %c0_97 = arith.constant 0 : index
    %c320 = arith.constant 320 : index
    %c0_98 = arith.constant 0 : index
    %185 = vector.load %arg1[%c0_97, %c320, %c0_98] : memref<1x1024x32xf32, #tpu.memory_space<vmem>>, vector<1x128x32xf32>
    %186 = vector.shape_cast %185 : vector<1x128x32xf32> to vector<128x32xf32>
    %187 = vector.extract_strided_slice %4 {offsets = [4, 0], sizes = [1, 32], strides = [1, 1]} : vector<9x32xf32> to vector<1x32xf32>
    %188 = vector.broadcast %187 : vector<1x32xf32> to vector<128x32xf32>
    %189 = arith.mulf %186, %188 : vector<128x32xf32>
    %190 = arith.addf %184, %189 : vector<128x32xf32>
    %c0_99 = arith.constant 0 : index
    %c321 = arith.constant 321 : index
    %c0_100 = arith.constant 0 : index
    %191 = vector.load %arg1[%c0_99, %c321, %c0_100] : memref<1x1024x32xf32, #tpu.memory_space<vmem>>, vector<1x128x32xf32>
    %192 = vector.shape_cast %191 : vector<1x128x32xf32> to vector<128x32xf32>
    %193 = vector.extract_strided_slice %4 {offsets = [5, 0], sizes = [1, 32], strides = [1, 1]} : vector<9x32xf32> to vector<1x32xf32>
    %194 = vector.broadcast %193 : vector<1x32xf32> to vector<128x32xf32>
    %195 = arith.mulf %192, %194 : vector<128x32xf32>
    %196 = arith.addf %190, %195 : vector<128x32xf32>
    %c0_101 = arith.constant 0 : index
    %c351 = arith.constant 351 : index
    %c0_102 = arith.constant 0 : index
    %197 = vector.load %arg1[%c0_101, %c351, %c0_102] : memref<1x1024x32xf32, #tpu.memory_space<vmem>>, vector<1x128x32xf32>
    %198 = vector.shape_cast %197 : vector<1x128x32xf32> to vector<128x32xf32>
    %199 = vector.extract_strided_slice %4 {offsets = [6, 0], sizes = [1, 32], strides = [1, 1]} : vector<9x32xf32> to vector<1x32xf32>
    %200 = vector.broadcast %199 : vector<1x32xf32> to vector<128x32xf32>
    %201 = arith.mulf %198, %200 : vector<128x32xf32>
    %202 = arith.addf %196, %201 : vector<128x32xf32>
    %c0_103 = arith.constant 0 : index
    %c352 = arith.constant 352 : index
    %c0_104 = arith.constant 0 : index
    %203 = vector.load %arg1[%c0_103, %c352, %c0_104] : memref<1x1024x32xf32, #tpu.memory_space<vmem>>, vector<1x128x32xf32>
    %204 = vector.shape_cast %203 : vector<1x128x32xf32> to vector<128x32xf32>
    %205 = vector.extract_strided_slice %4 {offsets = [7, 0], sizes = [1, 32], strides = [1, 1]} : vector<9x32xf32> to vector<1x32xf32>
    %206 = vector.broadcast %205 : vector<1x32xf32> to vector<128x32xf32>
    %207 = arith.mulf %204, %206 : vector<128x32xf32>
    %208 = arith.addf %202, %207 : vector<128x32xf32>
    %c0_105 = arith.constant 0 : index
    %c353 = arith.constant 353 : index
    %c0_106 = arith.constant 0 : index
    %209 = vector.load %arg1[%c0_105, %c353, %c0_106] : memref<1x1024x32xf32, #tpu.memory_space<vmem>>, vector<1x128x32xf32>
    %210 = vector.shape_cast %209 : vector<1x128x32xf32> to vector<128x32xf32>
    %211 = vector.extract_strided_slice %4 {offsets = [8, 0], sizes = [1, 32], strides = [1, 1]} : vector<9x32xf32> to vector<1x32xf32>
    %212 = vector.broadcast %211 : vector<1x32xf32> to vector<128x32xf32>
    %213 = arith.mulf %210, %212 : vector<128x32xf32>
    %214 = arith.addf %208, %213 : vector<128x32xf32>
    %c0_107 = arith.constant 0 : index
    %c0_108 = arith.constant 0 : index
    %215 = vector.load %arg15[%c0_107, %c0_108] : memref<128x32xf32, #tpu.memory_space<vmem>>, vector<128x32xf32>
    tpu.vector_store %arg15[%c0_107, %c0_108], %214 {strides = array<i32>} : memref<128x32xf32, #tpu.memory_space<vmem>>, vector<128x32xf32>,
    %c0_109 = arith.constant 0 : index
    %c0_110 = arith.constant 0 : index
    %216 = tpu.strided_load %arg15[%c0_109, %c0_110] {strides = array<i32: 2, 1>} : memref<128x32xf32, #tpu.memory_space<vmem>>, vector<14x32xf32>
    %c1_111 = arith.constant 1 : index
    %c0_112 = arith.constant 0 : index
    %217 = tpu.strided_load %arg15[%c1_111, %c0_112] {strides = array<i32: 2, 1>} : memref<128x32xf32, #tpu.memory_space<vmem>>, vector<14x32xf32>
    %218 = arith.maximumf %216, %217 : vector<14x32xf32>
    %c32_113 = arith.constant 32 : index
    %c0_114 = arith.constant 0 : index
    %219 = tpu.strided_load %arg15[%c32_113, %c0_114] {strides = array<i32: 2, 1>} : memref<128x32xf32, #tpu.memory_space<vmem>>, vector<14x32xf32>
    %c33_115 = arith.constant 33 : index
    %c0_116 = arith.constant 0 : index
    %220 = tpu.strided_load %arg15[%c33_115, %c0_116] {strides = array<i32: 2, 1>} : memref<128x32xf32, #tpu.memory_space<vmem>>, vector<14x32xf32>
    %221 = arith.maximumf %219, %220 : vector<14x32xf32>
    %222 = arith.maximumf %218, %221 : vector<14x32xf32>
    %223 = vector.broadcast %5 : vector<1x32xf32> to vector<14x32xf32>
    %224 = arith.addf %222, %223 : vector<14x32xf32>
    %cst_117 = arith.constant 0.000000e+00 : f32
    %225 = vector.broadcast %cst_117 : f32 to vector<14x32xf32>
    %226 = arith.maximumf %224, %225 : vector<14x32xf32>
    %c96_118 = arith.constant 96 : index
    %c0_119 = arith.constant 0 : index
    %227 = vector.load %arg16[%c96_118, %c0_119] : memref<288x32xf32, #tpu.memory_space<vmem>>, vector<14x32xf32>
    tpu.vector_store %arg16[%c96_118, %c0_119], %226 {strides = array<i32>} : memref<288x32xf32, #tpu.memory_space<vmem>>, vector<14x32xf32>,
    %c64_120 = arith.constant 64 : index
    %c0_121 = arith.constant 0 : index
    %228 = tpu.strided_load %arg15[%c64_120, %c0_121] {strides = array<i32: 2, 1>} : memref<128x32xf32, #tpu.memory_space<vmem>>, vector<14x32xf32>
    %c65_122 = arith.constant 65 : index
    %c0_123 = arith.constant 0 : index
    %229 = tpu.strided_load %arg15[%c65_122, %c0_123] {strides = array<i32: 2, 1>} : memref<128x32xf32, #tpu.memory_space<vmem>>, vector<14x32xf32>
    %230 = arith.maximumf %228, %229 : vector<14x32xf32>
    %c96_124 = arith.constant 96 : index
    %c0_125 = arith.constant 0 : index
    %231 = tpu.strided_load %arg15[%c96_124, %c0_125] {strides = array<i32: 2, 1>} : memref<128x32xf32, #tpu.memory_space<vmem>>, vector<14x32xf32>
    %c97_126 = arith.constant 97 : index
    %c0_127 = arith.constant 0 : index
    %232 = tpu.strided_load %arg15[%c97_126, %c0_127] {strides = array<i32: 2, 1>} : memref<128x32xf32, #tpu.memory_space<vmem>>, vector<14x32xf32>
    %233 = arith.maximumf %231, %232 : vector<14x32xf32>
    %234 = arith.maximumf %230, %233 : vector<14x32xf32>
    %235 = vector.broadcast %5 : vector<1x32xf32> to vector<14x32xf32>
    %236 = arith.addf %234, %235 : vector<14x32xf32>
    %cst_128 = arith.constant 0.000000e+00 : f32
    %237 = vector.broadcast %cst_128 : f32 to vector<14x32xf32>
    %238 = arith.maximumf %236, %237 : vector<14x32xf32>
    %c112 = arith.constant 112 : index
    %c0_129 = arith.constant 0 : index
    %239 = vector.load %arg16[%c112, %c0_129] : memref<288x32xf32, #tpu.memory_space<vmem>>, vector<14x32xf32>
    tpu.vector_store %arg16[%c112, %c0_129], %238 {strides = array<i32>} : memref<288x32xf32, #tpu.memory_space<vmem>>, vector<14x32xf32>,
    %c0_130 = arith.constant 0 : index
    %c415 = arith.constant 415 : index
    %c0_131 = arith.constant 0 : index
    %240 = vector.load %arg1[%c0_130, %c415, %c0_131] : memref<1x1024x32xf32, #tpu.memory_space<vmem>>, vector<1x128x32xf32>
    %241 = vector.shape_cast %240 : vector<1x128x32xf32> to vector<128x32xf32>
    %242 = vector.extract_strided_slice %4 {offsets = [0, 0], sizes = [1, 32], strides = [1, 1]} : vector<9x32xf32> to vector<1x32xf32>
    %243 = vector.broadcast %242 : vector<1x32xf32> to vector<128x32xf32>
    %244 = arith.mulf %241, %243 : vector<128x32xf32>
    %c0_132 = arith.constant 0 : index
    %c416 = arith.constant 416 : index
    %c0_133 = arith.constant 0 : index
    %245 = vector.load %arg1[%c0_132, %c416, %c0_133] : memref<1x1024x32xf32, #tpu.memory_space<vmem>>, vector<1x128x32xf32>
    %246 = vector.shape_cast %245 : vector<1x128x32xf32> to vector<128x32xf32>
    %247 = vector.extract_strided_slice %4 {offsets = [1, 0], sizes = [1, 32], strides = [1, 1]} : vector<9x32xf32> to vector<1x32xf32>
    %248 = vector.broadcast %247 : vector<1x32xf32> to vector<128x32xf32>
    %249 = arith.mulf %246, %248 : vector<128x32xf32>
    %250 = arith.addf %244, %249 : vector<128x32xf32>
    %c0_134 = arith.constant 0 : index
    %c417 = arith.constant 417 : index
    %c0_135 = arith.constant 0 : index
    %251 = vector.load %arg1[%c0_134, %c417, %c0_135] : memref<1x1024x32xf32, #tpu.memory_space<vmem>>, vector<1x128x32xf32>
    %252 = vector.shape_cast %251 : vector<1x128x32xf32> to vector<128x32xf32>
    %253 = vector.extract_strided_slice %4 {offsets = [2, 0], sizes = [1, 32], strides = [1, 1]} : vector<9x32xf32> to vector<1x32xf32>
    %254 = vector.broadcast %253 : vector<1x32xf32> to vector<128x32xf32>
    %255 = arith.mulf %252, %254 : vector<128x32xf32>
    %256 = arith.addf %250, %255 : vector<128x32xf32>
    %c0_136 = arith.constant 0 : index
    %c447 = arith.constant 447 : index
    %c0_137 = arith.constant 0 : index
    %257 = vector.load %arg1[%c0_136, %c447, %c0_137] : memref<1x1024x32xf32, #tpu.memory_space<vmem>>, vector<1x128x32xf32>
    %258 = vector.shape_cast %257 : vector<1x128x32xf32> to vector<128x32xf32>
    %259 = vector.extract_strided_slice %4 {offsets = [3, 0], sizes = [1, 32], strides = [1, 1]} : vector<9x32xf32> to vector<1x32xf32>
    %260 = vector.broadcast %259 : vector<1x32xf32> to vector<128x32xf32>
    %261 = arith.mulf %258, %260 : vector<128x32xf32>
    %262 = arith.addf %256, %261 : vector<128x32xf32>
    %c0_138 = arith.constant 0 : index
    %c448 = arith.constant 448 : index
    %c0_139 = arith.constant 0 : index
    %263 = vector.load %arg1[%c0_138, %c448, %c0_139] : memref<1x1024x32xf32, #tpu.memory_space<vmem>>, vector<1x128x32xf32>
    %264 = vector.shape_cast %263 : vector<1x128x32xf32> to vector<128x32xf32>
    %265 = vector.extract_strided_slice %4 {offsets = [4, 0], sizes = [1, 32], strides = [1, 1]} : vector<9x32xf32> to vector<1x32xf32>
    %266 = vector.broadcast %265 : vector<1x32xf32> to vector<128x32xf32>
    %267 = arith.mulf %264, %266 : vector<128x32xf32>
    %268 = arith.addf %262, %267 : vector<128x32xf32>
    %c0_140 = arith.constant 0 : index
    %c449 = arith.constant 449 : index
    %c0_141 = arith.constant 0 : index
    %269 = vector.load %arg1[%c0_140, %c449, %c0_141] : memref<1x1024x32xf32, #tpu.memory_space<vmem>>, vector<1x128x32xf32>
    %270 = vector.shape_cast %269 : vector<1x128x32xf32> to vector<128x32xf32>
    %271 = vector.extract_strided_slice %4 {offsets = [5, 0], sizes = [1, 32], strides = [1, 1]} : vector<9x32xf32> to vector<1x32xf32>
    %272 = vector.broadcast %271 : vector<1x32xf32> to vector<128x32xf32>
    %273 = arith.mulf %270, %272 : vector<128x32xf32>
    %274 = arith.addf %268, %273 : vector<128x32xf32>
    %c0_142 = arith.constant 0 : index
    %c479 = arith.constant 479 : index
    %c0_143 = arith.constant 0 : index
    %275 = vector.load %arg1[%c0_142, %c479, %c0_143] : memref<1x1024x32xf32, #tpu.memory_space<vmem>>, vector<1x128x32xf32>
    %276 = vector.shape_cast %275 : vector<1x128x32xf32> to vector<128x32xf32>
    %277 = vector.extract_strided_slice %4 {offsets = [6, 0], sizes = [1, 32], strides = [1, 1]} : vector<9x32xf32> to vector<1x32xf32>
    %278 = vector.broadcast %277 : vector<1x32xf32> to vector<128x32xf32>
    %279 = arith.mulf %276, %278 : vector<128x32xf32>
    %280 = arith.addf %274, %279 : vector<128x32xf32>
    %c0_144 = arith.constant 0 : index
    %c480 = arith.constant 480 : index
    %c0_145 = arith.constant 0 : index
    %281 = vector.load %arg1[%c0_144, %c480, %c0_145] : memref<1x1024x32xf32, #tpu.memory_space<vmem>>, vector<1x128x32xf32>
    %282 = vector.shape_cast %281 : vector<1x128x32xf32> to vector<128x32xf32>
    %283 = vector.extract_strided_slice %4 {offsets = [7, 0], sizes = [1, 32], strides = [1, 1]} : vector<9x32xf32> to vector<1x32xf32>
    %284 = vector.broadcast %283 : vector<1x32xf32> to vector<128x32xf32>
    %285 = arith.mulf %282, %284 : vector<128x32xf32>
    %286 = arith.addf %280, %285 : vector<128x32xf32>
    %c0_146 = arith.constant 0 : index
    %c481 = arith.constant 481 : index
    %c0_147 = arith.constant 0 : index
    %287 = vector.load %arg1[%c0_146, %c481, %c0_147] : memref<1x1024x32xf32, #tpu.memory_space<vmem>>, vector<1x128x32xf32>
    %288 = vector.shape_cast %287 : vector<1x128x32xf32> to vector<128x32xf32>
    %289 = vector.extract_strided_slice %4 {offsets = [8, 0], sizes = [1, 32], strides = [1, 1]} : vector<9x32xf32> to vector<1x32xf32>
    %290 = vector.broadcast %289 : vector<1x32xf32> to vector<128x32xf32>
    %291 = arith.mulf %288, %290 : vector<128x32xf32>
    %292 = arith.addf %286, %291 : vector<128x32xf32>
    %c0_148 = arith.constant 0 : index
    %c0_149 = arith.constant 0 : index
    %293 = vector.load %arg15[%c0_148, %c0_149] : memref<128x32xf32, #tpu.memory_space<vmem>>, vector<128x32xf32>
    tpu.vector_store %arg15[%c0_148, %c0_149], %292 {strides = array<i32>} : memref<128x32xf32, #tpu.memory_space<vmem>>, vector<128x32xf32>,
    %c0_150 = arith.constant 0 : index
    %c0_151 = arith.constant 0 : index
    %294 = tpu.strided_load %arg15[%c0_150, %c0_151] {strides = array<i32: 2, 1>} : memref<128x32xf32, #tpu.memory_space<vmem>>, vector<14x32xf32>
    %c1_152 = arith.constant 1 : index
    %c0_153 = arith.constant 0 : index
    %295 = tpu.strided_load %arg15[%c1_152, %c0_153] {strides = array<i32: 2, 1>} : memref<128x32xf32, #tpu.memory_space<vmem>>, vector<14x32xf32>
    %296 = arith.maximumf %294, %295 : vector<14x32xf32>
    %c32_154 = arith.constant 32 : index
    %c0_155 = arith.constant 0 : index
    %297 = tpu.strided_load %arg15[%c32_154, %c0_155] {strides = array<i32: 2, 1>} : memref<128x32xf32, #tpu.memory_space<vmem>>, vector<14x32xf32>
    %c33_156 = arith.constant 33 : index
    %c0_157 = arith.constant 0 : index
    %298 = tpu.strided_load %arg15[%c33_156, %c0_157] {strides = array<i32: 2, 1>} : memref<128x32xf32, #tpu.memory_space<vmem>>, vector<14x32xf32>
    %299 = arith.maximumf %297, %298 : vector<14x32xf32>
    %300 = arith.maximumf %296, %299 : vector<14x32xf32>
    %301 = vector.broadcast %5 : vector<1x32xf32> to vector<14x32xf32>
    %302 = arith.addf %300, %301 : vector<14x32xf32>
    %cst_158 = arith.constant 0.000000e+00 : f32
    %303 = vector.broadcast %cst_158 : f32 to vector<14x32xf32>
    %304 = arith.maximumf %302, %303 : vector<14x32xf32>
    %c128 = arith.constant 128 : index
    %c0_159 = arith.constant 0 : index
    %305 = vector.load %arg16[%c128, %c0_159] : memref<288x32xf32, #tpu.memory_space<vmem>>, vector<14x32xf32>
    tpu.vector_store %arg16[%c128, %c0_159], %304 {strides = array<i32>} : memref<288x32xf32, #tpu.memory_space<vmem>>, vector<14x32xf32>,
    %c64_160 = arith.constant 64 : index
    %c0_161 = arith.constant 0 : index
    %306 = tpu.strided_load %arg15[%c64_160, %c0_161] {strides = array<i32: 2, 1>} : memref<128x32xf32, #tpu.memory_space<vmem>>, vector<14x32xf32>
    %c65_162 = arith.constant 65 : index
    %c0_163 = arith.constant 0 : index
    %307 = tpu.strided_load %arg15[%c65_162, %c0_163] {strides = array<i32: 2, 1>} : memref<128x32xf32, #tpu.memory_space<vmem>>, vector<14x32xf32>
    %308 = arith.maximumf %306, %307 : vector<14x32xf32>
    %c96_164 = arith.constant 96 : index
    %c0_165 = arith.constant 0 : index
    %309 = tpu.strided_load %arg15[%c96_164, %c0_165] {strides = array<i32: 2, 1>} : memref<128x32xf32, #tpu.memory_space<vmem>>, vector<14x32xf32>
    %c97_166 = arith.constant 97 : index
    %c0_167 = arith.constant 0 : index
    %310 = tpu.strided_load %arg15[%c97_166, %c0_167] {strides = array<i32: 2, 1>} : memref<128x32xf32, #tpu.memory_space<vmem>>, vector<14x32xf32>
    %311 = arith.maximumf %309, %310 : vector<14x32xf32>
    %312 = arith.maximumf %308, %311 : vector<14x32xf32>
    %313 = vector.broadcast %5 : vector<1x32xf32> to vector<14x32xf32>
    %314 = arith.addf %312, %313 : vector<14x32xf32>
    %cst_168 = arith.constant 0.000000e+00 : f32
    %315 = vector.broadcast %cst_168 : f32 to vector<14x32xf32>
    %316 = arith.maximumf %314, %315 : vector<14x32xf32>
    %c144 = arith.constant 144 : index
    %c0_169 = arith.constant 0 : index
    %317 = vector.load %arg16[%c144, %c0_169] : memref<288x32xf32, #tpu.memory_space<vmem>>, vector<14x32xf32>
    tpu.vector_store %arg16[%c144, %c0_169], %316 {strides = array<i32>} : memref<288x32xf32, #tpu.memory_space<vmem>>, vector<14x32xf32>,
    %c0_170 = arith.constant 0 : index
    %c543 = arith.constant 543 : index
    %c0_171 = arith.constant 0 : index
    %318 = vector.load %arg1[%c0_170, %c543, %c0_171] : memref<1x1024x32xf32, #tpu.memory_space<vmem>>, vector<1x128x32xf32>
    %319 = vector.shape_cast %318 : vector<1x128x32xf32> to vector<128x32xf32>
    %320 = vector.extract_strided_slice %4 {offsets = [0, 0], sizes = [1, 32], strides = [1, 1]} : vector<9x32xf32> to vector<1x32xf32>
    %321 = vector.broadcast %320 : vector<1x32xf32> to vector<128x32xf32>
    %322 = arith.mulf %319, %321 : vector<128x32xf32>
    %c0_172 = arith.constant 0 : index
    %c544 = arith.constant 544 : index
    %c0_173 = arith.constant 0 : index
    %323 = vector.load %arg1[%c0_172, %c544, %c0_173] : memref<1x1024x32xf32, #tpu.memory_space<vmem>>, vector<1x128x32xf32>
    %324 = vector.shape_cast %323 : vector<1x128x32xf32> to vector<128x32xf32>
    %325 = vector.extract_strided_slice %4 {offsets = [1, 0], sizes = [1, 32], strides = [1, 1]} : vector<9x32xf32> to vector<1x32xf32>
    %326 = vector.broadcast %325 : vector<1x32xf32> to vector<128x32xf32>
    %327 = arith.mulf %324, %326 : vector<128x32xf32>
    %328 = arith.addf %322, %327 : vector<128x32xf32>
    %c0_174 = arith.constant 0 : index
    %c545 = arith.constant 545 : index
    %c0_175 = arith.constant 0 : index
    %329 = vector.load %arg1[%c0_174, %c545, %c0_175] : memref<1x1024x32xf32, #tpu.memory_space<vmem>>, vector<1x128x32xf32>
    %330 = vector.shape_cast %329 : vector<1x128x32xf32> to vector<128x32xf32>
    %331 = vector.extract_strided_slice %4 {offsets = [2, 0], sizes = [1, 32], strides = [1, 1]} : vector<9x32xf32> to vector<1x32xf32>
    %332 = vector.broadcast %331 : vector<1x32xf32> to vector<128x32xf32>
    %333 = arith.mulf %330, %332 : vector<128x32xf32>
    %334 = arith.addf %328, %333 : vector<128x32xf32>
    %c0_176 = arith.constant 0 : index
    %c575 = arith.constant 575 : index
    %c0_177 = arith.constant 0 : index
    %335 = vector.load %arg1[%c0_176, %c575, %c0_177] : memref<1x1024x32xf32, #tpu.memory_space<vmem>>, vector<1x128x32xf32>
    %336 = vector.shape_cast %335 : vector<1x128x32xf32> to vector<128x32xf32>
    %337 = vector.extract_strided_slice %4 {offsets = [3, 0], sizes = [1, 32], strides = [1, 1]} : vector<9x32xf32> to vector<1x32xf32>
    %338 = vector.broadcast %337 : vector<1x32xf32> to vector<128x32xf32>
    %339 = arith.mulf %336, %338 : vector<128x32xf32>
    %340 = arith.addf %334, %339 : vector<128x32xf32>
    %c0_178 = arith.constant 0 : index
    %c576 = arith.constant 576 : index
    %c0_179 = arith.constant 0 : index
    %341 = vector.load %arg1[%c0_178, %c576, %c0_179] : memref<1x1024x32xf32, #tpu.memory_space<vmem>>, vector<1x128x32xf32>
    %342 = vector.shape_cast %341 : vector<1x128x32xf32> to vector<128x32xf32>
    %343 = vector.extract_strided_slice %4 {offsets = [4, 0], sizes = [1, 32], strides = [1, 1]} : vector<9x32xf32> to vector<1x32xf32>
    %344 = vector.broadcast %343 : vector<1x32xf32> to vector<128x32xf32>
    %345 = arith.mulf %342, %344 : vector<128x32xf32>
    %346 = arith.addf %340, %345 : vector<128x32xf32>
    %c0_180 = arith.constant 0 : index
    %c577 = arith.constant 577 : index
    %c0_181 = arith.constant 0 : index
    %347 = vector.load %arg1[%c0_180, %c577, %c0_181] : memref<1x1024x32xf32, #tpu.memory_space<vmem>>, vector<1x128x32xf32>
    %348 = vector.shape_cast %347 : vector<1x128x32xf32> to vector<128x32xf32>
    %349 = vector.extract_strided_slice %4 {offsets = [5, 0], sizes = [1, 32], strides = [1, 1]} : vector<9x32xf32> to vector<1x32xf32>
    %350 = vector.broadcast %349 : vector<1x32xf32> to vector<128x32xf32>
    %351 = arith.mulf %348, %350 : vector<128x32xf32>
    %352 = arith.addf %346, %351 : vector<128x32xf32>
    %c0_182 = arith.constant 0 : index
    %c607 = arith.constant 607 : index
    %c0_183 = arith.constant 0 : index
    %353 = vector.load %arg1[%c0_182, %c607, %c0_183] : memref<1x1024x32xf32, #tpu.memory_space<vmem>>, vector<1x128x32xf32>
    %354 = vector.shape_cast %353 : vector<1x128x32xf32> to vector<128x32xf32>
    %355 = vector.extract_strided_slice %4 {offsets = [6, 0], sizes = [1, 32], strides = [1, 1]} : vector<9x32xf32> to vector<1x32xf32>
    %356 = vector.broadcast %355 : vector<1x32xf32> to vector<128x32xf32>
    %357 = arith.mulf %354, %356 : vector<128x32xf32>
    %358 = arith.addf %352, %357 : vector<128x32xf32>
    %c0_184 = arith.constant 0 : index
    %c608 = arith.constant 608 : index
    %c0_185 = arith.constant 0 : index
    %359 = vector.load %arg1[%c0_184, %c608, %c0_185] : memref<1x1024x32xf32, #tpu.memory_space<vmem>>, vector<1x128x32xf32>
    %360 = vector.shape_cast %359 : vector<1x128x32xf32> to vector<128x32xf32>
    %361 = vector.extract_strided_slice %4 {offsets = [7, 0], sizes = [1, 32], strides = [1, 1]} : vector<9x32xf32> to vector<1x32xf32>
    %362 = vector.broadcast %361 : vector<1x32xf32> to vector<128x32xf32>
    %363 = arith.mulf %360, %362 : vector<128x32xf32>
    %364 = arith.addf %358, %363 : vector<128x32xf32>
    %c0_186 = arith.constant 0 : index
    %c609 = arith.constant 609 : index
    %c0_187 = arith.constant 0 : index
    %365 = vector.load %arg1[%c0_186, %c609, %c0_187] : memref<1x1024x32xf32, #tpu.memory_space<vmem>>, vector<1x128x32xf32>
    %366 = vector.shape_cast %365 : vector<1x128x32xf32> to vector<128x32xf32>
    %367 = vector.extract_strided_slice %4 {offsets = [8, 0], sizes = [1, 32], strides = [1, 1]} : vector<9x32xf32> to vector<1x32xf32>
    %368 = vector.broadcast %367 : vector<1x32xf32> to vector<128x32xf32>
    %369 = arith.mulf %366, %368 : vector<128x32xf32>
    %370 = arith.addf %364, %369 : vector<128x32xf32>
    %c0_188 = arith.constant 0 : index
    %c0_189 = arith.constant 0 : index
    %371 = vector.load %arg15[%c0_188, %c0_189] : memref<128x32xf32, #tpu.memory_space<vmem>>, vector<128x32xf32>
    tpu.vector_store %arg15[%c0_188, %c0_189], %370 {strides = array<i32>} : memref<128x32xf32, #tpu.memory_space<vmem>>, vector<128x32xf32>,
    %c0_190 = arith.constant 0 : index
    %c0_191 = arith.constant 0 : index
    %372 = tpu.strided_load %arg15[%c0_190, %c0_191] {strides = array<i32: 2, 1>} : memref<128x32xf32, #tpu.memory_space<vmem>>, vector<14x32xf32>
    %c1_192 = arith.constant 1 : index
    %c0_193 = arith.constant 0 : index
    %373 = tpu.strided_load %arg15[%c1_192, %c0_193] {strides = array<i32: 2, 1>} : memref<128x32xf32, #tpu.memory_space<vmem>>, vector<14x32xf32>
    %374 = arith.maximumf %372, %373 : vector<14x32xf32>
    %c32_194 = arith.constant 32 : index
    %c0_195 = arith.constant 0 : index
    %375 = tpu.strided_load %arg15[%c32_194, %c0_195] {strides = array<i32: 2, 1>} : memref<128x32xf32, #tpu.memory_space<vmem>>, vector<14x32xf32>
    %c33_196 = arith.constant 33 : index
    %c0_197 = arith.constant 0 : index
    %376 = tpu.strided_load %arg15[%c33_196, %c0_197] {strides = array<i32: 2, 1>} : memref<128x32xf32, #tpu.memory_space<vmem>>, vector<14x32xf32>
    %377 = arith.maximumf %375, %376 : vector<14x32xf32>
    %378 = arith.maximumf %374, %377 : vector<14x32xf32>
    %379 = vector.broadcast %5 : vector<1x32xf32> to vector<14x32xf32>
    %380 = arith.addf %378, %379 : vector<14x32xf32>
    %cst_198 = arith.constant 0.000000e+00 : f32
    %381 = vector.broadcast %cst_198 : f32 to vector<14x32xf32>
    %382 = arith.maximumf %380, %381 : vector<14x32xf32>
    %c160_199 = arith.constant 160 : index
    %c0_200 = arith.constant 0 : index
    %383 = vector.load %arg16[%c160_199, %c0_200] : memref<288x32xf32, #tpu.memory_space<vmem>>, vector<14x32xf32>
    tpu.vector_store %arg16[%c160_199, %c0_200], %382 {strides = array<i32>} : memref<288x32xf32, #tpu.memory_space<vmem>>, vector<14x32xf32>,
    %c64_201 = arith.constant 64 : index
    %c0_202 = arith.constant 0 : index
    %384 = tpu.strided_load %arg15[%c64_201, %c0_202] {strides = array<i32: 2, 1>} : memref<128x32xf32, #tpu.memory_space<vmem>>, vector<14x32xf32>
    %c65_203 = arith.constant 65 : index
    %c0_204 = arith.constant 0 : index
    %385 = tpu.strided_load %arg15[%c65_203, %c0_204] {strides = array<i32: 2, 1>} : memref<128x32xf32, #tpu.memory_space<vmem>>, vector<14x32xf32>
    %386 = arith.maximumf %384, %385 : vector<14x32xf32>
    %c96_205 = arith.constant 96 : index
    %c0_206 = arith.constant 0 : index
    %387 = tpu.strided_load %arg15[%c96_205, %c0_206] {strides = array<i32: 2, 1>} : memref<128x32xf32, #tpu.memory_space<vmem>>, vector<14x32xf32>
    %c97_207 = arith.constant 97 : index
    %c0_208 = arith.constant 0 : index
    %388 = tpu.strided_load %arg15[%c97_207, %c0_208] {strides = array<i32: 2, 1>} : memref<128x32xf32, #tpu.memory_space<vmem>>, vector<14x32xf32>
    %389 = arith.maximumf %387, %388 : vector<14x32xf32>
    %390 = arith.maximumf %386, %389 : vector<14x32xf32>
    %391 = vector.broadcast %5 : vector<1x32xf32> to vector<14x32xf32>
    %392 = arith.addf %390, %391 : vector<14x32xf32>
    %cst_209 = arith.constant 0.000000e+00 : f32
    %393 = vector.broadcast %cst_209 : f32 to vector<14x32xf32>
    %394 = arith.maximumf %392, %393 : vector<14x32xf32>
    %c176 = arith.constant 176 : index
    %c0_210 = arith.constant 0 : index
    %395 = vector.load %arg16[%c176, %c0_210] : memref<288x32xf32, #tpu.memory_space<vmem>>, vector<14x32xf32>
    tpu.vector_store %arg16[%c176, %c0_210], %394 {strides = array<i32>} : memref<288x32xf32, #tpu.memory_space<vmem>>, vector<14x32xf32>,
    %c0_211 = arith.constant 0 : index
    %c671 = arith.constant 671 : index
    %c0_212 = arith.constant 0 : index
    %396 = vector.load %arg1[%c0_211, %c671, %c0_212] : memref<1x1024x32xf32, #tpu.memory_space<vmem>>, vector<1x128x32xf32>
    %397 = vector.shape_cast %396 : vector<1x128x32xf32> to vector<128x32xf32>
    %398 = vector.extract_strided_slice %4 {offsets = [0, 0], sizes = [1, 32], strides = [1, 1]} : vector<9x32xf32> to vector<1x32xf32>
    %399 = vector.broadcast %398 : vector<1x32xf32> to vector<128x32xf32>
    %400 = arith.mulf %397, %399 : vector<128x32xf32>
    %c0_213 = arith.constant 0 : index
    %c672 = arith.constant 672 : index
    %c0_214 = arith.constant 0 : index
    %401 = vector.load %arg1[%c0_213, %c672, %c0_214] : memref<1x1024x32xf32, #tpu.memory_space<vmem>>, vector<1x128x32xf32>
    %402 = vector.shape_cast %401 : vector<1x128x32xf32> to vector<128x32xf32>
    %403 = vector.extract_strided_slice %4 {offsets = [1, 0], sizes = [1, 32], strides = [1, 1]} : vector<9x32xf32> to vector<1x32xf32>
    %404 = vector.broadcast %403 : vector<1x32xf32> to vector<128x32xf32>
    %405 = arith.mulf %402, %404 : vector<128x32xf32>
    %406 = arith.addf %400, %405 : vector<128x32xf32>
    %c0_215 = arith.constant 0 : index
    %c673 = arith.constant 673 : index
    %c0_216 = arith.constant 0 : index
    %407 = vector.load %arg1[%c0_215, %c673, %c0_216] : memref<1x1024x32xf32, #tpu.memory_space<vmem>>, vector<1x128x32xf32>
    %408 = vector.shape_cast %407 : vector<1x128x32xf32> to vector<128x32xf32>
    %409 = vector.extract_strided_slice %4 {offsets = [2, 0], sizes = [1, 32], strides = [1, 1]} : vector<9x32xf32> to vector<1x32xf32>
    %410 = vector.broadcast %409 : vector<1x32xf32> to vector<128x32xf32>
    %411 = arith.mulf %408, %410 : vector<128x32xf32>
    %412 = arith.addf %406, %411 : vector<128x32xf32>
    %c0_217 = arith.constant 0 : index
    %c703 = arith.constant 703 : index
    %c0_218 = arith.constant 0 : index
    %413 = vector.load %arg1[%c0_217, %c703, %c0_218] : memref<1x1024x32xf32, #tpu.memory_space<vmem>>, vector<1x128x32xf32>
    %414 = vector.shape_cast %413 : vector<1x128x32xf32> to vector<128x32xf32>
    %415 = vector.extract_strided_slice %4 {offsets = [3, 0], sizes = [1, 32], strides = [1, 1]} : vector<9x32xf32> to vector<1x32xf32>
    %416 = vector.broadcast %415 : vector<1x32xf32> to vector<128x32xf32>
    %417 = arith.mulf %414, %416 : vector<128x32xf32>
    %418 = arith.addf %412, %417 : vector<128x32xf32>
    %c0_219 = arith.constant 0 : index
    %c704 = arith.constant 704 : index
    %c0_220 = arith.constant 0 : index
    %419 = vector.load %arg1[%c0_219, %c704, %c0_220] : memref<1x1024x32xf32, #tpu.memory_space<vmem>>, vector<1x128x32xf32>
    %420 = vector.shape_cast %419 : vector<1x128x32xf32> to vector<128x32xf32>
    %421 = vector.extract_strided_slice %4 {offsets = [4, 0], sizes = [1, 32], strides = [1, 1]} : vector<9x32xf32> to vector<1x32xf32>
    %422 = vector.broadcast %421 : vector<1x32xf32> to vector<128x32xf32>
    %423 = arith.mulf %420, %422 : vector<128x32xf32>
    %424 = arith.addf %418, %423 : vector<128x32xf32>
    %c0_221 = arith.constant 0 : index
    %c705 = arith.constant 705 : index
    %c0_222 = arith.constant 0 : index
    %425 = vector.load %arg1[%c0_221, %c705, %c0_222] : memref<1x1024x32xf32, #tpu.memory_space<vmem>>, vector<1x128x32xf32>
    %426 = vector.shape_cast %425 : vector<1x128x32xf32> to vector<128x32xf32>
    %427 = vector.extract_strided_slice %4 {offsets = [5, 0], sizes = [1, 32], strides = [1, 1]} : vector<9x32xf32> to vector<1x32xf32>
    %428 = vector.broadcast %427 : vector<1x32xf32> to vector<128x32xf32>
    %429 = arith.mulf %426, %428 : vector<128x32xf32>
    %430 = arith.addf %424, %429 : vector<128x32xf32>
    %c0_223 = arith.constant 0 : index
    %c735 = arith.constant 735 : index
    %c0_224 = arith.constant 0 : index
    %431 = vector.load %arg1[%c0_223, %c735, %c0_224] : memref<1x1024x32xf32, #tpu.memory_space<vmem>>, vector<1x128x32xf32>
    %432 = vector.shape_cast %431 : vector<1x128x32xf32> to vector<128x32xf32>
    %433 = vector.extract_strided_slice %4 {offsets = [6, 0], sizes = [1, 32], strides = [1, 1]} : vector<9x32xf32> to vector<1x32xf32>
    %434 = vector.broadcast %433 : vector<1x32xf32> to vector<128x32xf32>
    %435 = arith.mulf %432, %434 : vector<128x32xf32>
    %436 = arith.addf %430, %435 : vector<128x32xf32>
    %c0_225 = arith.constant 0 : index
    %c736 = arith.constant 736 : index
    %c0_226 = arith.constant 0 : index
    %437 = vector.load %arg1[%c0_225, %c736, %c0_226] : memref<1x1024x32xf32, #tpu.memory_space<vmem>>, vector<1x128x32xf32>
    %438 = vector.shape_cast %437 : vector<1x128x32xf32> to vector<128x32xf32>
    %439 = vector.extract_strided_slice %4 {offsets = [7, 0], sizes = [1, 32], strides = [1, 1]} : vector<9x32xf32> to vector<1x32xf32>
    %440 = vector.broadcast %439 : vector<1x32xf32> to vector<128x32xf32>
    %441 = arith.mulf %438, %440 : vector<128x32xf32>
    %442 = arith.addf %436, %441 : vector<128x32xf32>
    %c0_227 = arith.constant 0 : index
    %c737 = arith.constant 737 : index
    %c0_228 = arith.constant 0 : index
    %443 = vector.load %arg1[%c0_227, %c737, %c0_228] : memref<1x1024x32xf32, #tpu.memory_space<vmem>>, vector<1x128x32xf32>
    %444 = vector.shape_cast %443 : vector<1x128x32xf32> to vector<128x32xf32>
    %445 = vector.extract_strided_slice %4 {offsets = [8, 0], sizes = [1, 32], strides = [1, 1]} : vector<9x32xf32> to vector<1x32xf32>
    %446 = vector.broadcast %445 : vector<1x32xf32> to vector<128x32xf32>
    %447 = arith.mulf %444, %446 : vector<128x32xf32>
    %448 = arith.addf %442, %447 : vector<128x32xf32>
    %c0_229 = arith.constant 0 : index
    %c0_230 = arith.constant 0 : index
    %449 = vector.load %arg15[%c0_229, %c0_230] : memref<128x32xf32, #tpu.memory_space<vmem>>, vector<128x32xf32>
    tpu.vector_store %arg15[%c0_229, %c0_230], %448 {strides = array<i32>} : memref<128x32xf32, #tpu.memory_space<vmem>>, vector<128x32xf32>,
    %c0_231 = arith.constant 0 : index
    %c0_232 = arith.constant 0 : index
    %450 = tpu.strided_load %arg15[%c0_231, %c0_232] {strides = array<i32: 2, 1>} : memref<128x32xf32, #tpu.memory_space<vmem>>, vector<14x32xf32>
    %c1_233 = arith.constant 1 : index
    %c0_234 = arith.constant 0 : index
    %451 = tpu.strided_load %arg15[%c1_233, %c0_234] {strides = array<i32: 2, 1>} : memref<128x32xf32, #tpu.memory_space<vmem>>, vector<14x32xf32>
    %452 = arith.maximumf %450, %451 : vector<14x32xf32>
    %c32_235 = arith.constant 32 : index
    %c0_236 = arith.constant 0 : index
    %453 = tpu.strided_load %arg15[%c32_235, %c0_236] {strides = array<i32: 2, 1>} : memref<128x32xf32, #tpu.memory_space<vmem>>, vector<14x32xf32>
    %c33_237 = arith.constant 33 : index
    %c0_238 = arith.constant 0 : index
    %454 = tpu.strided_load %arg15[%c33_237, %c0_238] {strides = array<i32: 2, 1>} : memref<128x32xf32, #tpu.memory_space<vmem>>, vector<14x32xf32>
    %455 = arith.maximumf %453, %454 : vector<14x32xf32>
    %456 = arith.maximumf %452, %455 : vector<14x32xf32>
    %457 = vector.broadcast %5 : vector<1x32xf32> to vector<14x32xf32>
    %458 = arith.addf %456, %457 : vector<14x32xf32>
    %cst_239 = arith.constant 0.000000e+00 : f32
    %459 = vector.broadcast %cst_239 : f32 to vector<14x32xf32>
    %460 = arith.maximumf %458, %459 : vector<14x32xf32>
    %c192_240 = arith.constant 192 : index
    %c0_241 = arith.constant 0 : index
    %461 = vector.load %arg16[%c192_240, %c0_241] : memref<288x32xf32, #tpu.memory_space<vmem>>, vector<14x32xf32>
    tpu.vector_store %arg16[%c192_240, %c0_241], %460 {strides = array<i32>} : memref<288x32xf32, #tpu.memory_space<vmem>>, vector<14x32xf32>,
    %c64_242 = arith.constant 64 : index
    %c0_243 = arith.constant 0 : index
    %462 = tpu.strided_load %arg15[%c64_242, %c0_243] {strides = array<i32: 2, 1>} : memref<128x32xf32, #tpu.memory_space<vmem>>, vector<14x32xf32>
    %c65_244 = arith.constant 65 : index
    %c0_245 = arith.constant 0 : index
    %463 = tpu.strided_load %arg15[%c65_244, %c0_245] {strides = array<i32: 2, 1>} : memref<128x32xf32, #tpu.memory_space<vmem>>, vector<14x32xf32>
    %464 = arith.maximumf %462, %463 : vector<14x32xf32>
    %c96_246 = arith.constant 96 : index
    %c0_247 = arith.constant 0 : index
    %465 = tpu.strided_load %arg15[%c96_246, %c0_247] {strides = array<i32: 2, 1>} : memref<128x32xf32, #tpu.memory_space<vmem>>, vector<14x32xf32>
    %c97_248 = arith.constant 97 : index
    %c0_249 = arith.constant 0 : index
    %466 = tpu.strided_load %arg15[%c97_248, %c0_249] {strides = array<i32: 2, 1>} : memref<128x32xf32, #tpu.memory_space<vmem>>, vector<14x32xf32>
    %467 = arith.maximumf %465, %466 : vector<14x32xf32>
    %468 = arith.maximumf %464, %467 : vector<14x32xf32>
    %469 = vector.broadcast %5 : vector<1x32xf32> to vector<14x32xf32>
    %470 = arith.addf %468, %469 : vector<14x32xf32>
    %cst_250 = arith.constant 0.000000e+00 : f32
    %471 = vector.broadcast %cst_250 : f32 to vector<14x32xf32>
    %472 = arith.maximumf %470, %471 : vector<14x32xf32>
    %c208 = arith.constant 208 : index
    %c0_251 = arith.constant 0 : index
    %473 = vector.load %arg16[%c208, %c0_251] : memref<288x32xf32, #tpu.memory_space<vmem>>, vector<14x32xf32>
    tpu.vector_store %arg16[%c208, %c0_251], %472 {strides = array<i32>} : memref<288x32xf32, #tpu.memory_space<vmem>>, vector<14x32xf32>,
    %c0_252 = arith.constant 0 : index
    %c799 = arith.constant 799 : index
    %c0_253 = arith.constant 0 : index
    %474 = vector.load %arg1[%c0_252, %c799, %c0_253] : memref<1x1024x32xf32, #tpu.memory_space<vmem>>, vector<1x128x32xf32>
    %475 = vector.shape_cast %474 : vector<1x128x32xf32> to vector<128x32xf32>
    %476 = vector.extract_strided_slice %4 {offsets = [0, 0], sizes = [1, 32], strides = [1, 1]} : vector<9x32xf32> to vector<1x32xf32>
    %477 = vector.broadcast %476 : vector<1x32xf32> to vector<128x32xf32>
    %478 = arith.mulf %475, %477 : vector<128x32xf32>
    %c0_254 = arith.constant 0 : index
    %c800 = arith.constant 800 : index
    %c0_255 = arith.constant 0 : index
    %479 = vector.load %arg1[%c0_254, %c800, %c0_255] : memref<1x1024x32xf32, #tpu.memory_space<vmem>>, vector<1x128x32xf32>
    %480 = vector.shape_cast %479 : vector<1x128x32xf32> to vector<128x32xf32>
    %481 = vector.extract_strided_slice %4 {offsets = [1, 0], sizes = [1, 32], strides = [1, 1]} : vector<9x32xf32> to vector<1x32xf32>
    %482 = vector.broadcast %481 : vector<1x32xf32> to vector<128x32xf32>
    %483 = arith.mulf %480, %482 : vector<128x32xf32>
    %484 = arith.addf %478, %483 : vector<128x32xf32>
    %c0_256 = arith.constant 0 : index
    %c801 = arith.constant 801 : index
    %c0_257 = arith.constant 0 : index
    %485 = vector.load %arg1[%c0_256, %c801, %c0_257] : memref<1x1024x32xf32, #tpu.memory_space<vmem>>, vector<1x128x32xf32>
    %486 = vector.shape_cast %485 : vector<1x128x32xf32> to vector<128x32xf32>
    %487 = vector.extract_strided_slice %4 {offsets = [2, 0], sizes = [1, 32], strides = [1, 1]} : vector<9x32xf32> to vector<1x32xf32>
    %488 = vector.broadcast %487 : vector<1x32xf32> to vector<128x32xf32>
    %489 = arith.mulf %486, %488 : vector<128x32xf32>
    %490 = arith.addf %484, %489 : vector<128x32xf32>
    %c0_258 = arith.constant 0 : index
    %c831 = arith.constant 831 : index
    %c0_259 = arith.constant 0 : index
    %491 = vector.load %arg1[%c0_258, %c831, %c0_259] : memref<1x1024x32xf32, #tpu.memory_space<vmem>>, vector<1x128x32xf32>
    %492 = vector.shape_cast %491 : vector<1x128x32xf32> to vector<128x32xf32>
    %493 = vector.extract_strided_slice %4 {offsets = [3, 0], sizes = [1, 32], strides = [1, 1]} : vector<9x32xf32> to vector<1x32xf32>
    %494 = vector.broadcast %493 : vector<1x32xf32> to vector<128x32xf32>
    %495 = arith.mulf %492, %494 : vector<128x32xf32>
    %496 = arith.addf %490, %495 : vector<128x32xf32>
    %c0_260 = arith.constant 0 : index
    %c832 = arith.constant 832 : index
    %c0_261 = arith.constant 0 : index
    %497 = vector.load %arg1[%c0_260, %c832, %c0_261] : memref<1x1024x32xf32, #tpu.memory_space<vmem>>, vector<1x128x32xf32>
    %498 = vector.shape_cast %497 : vector<1x128x32xf32> to vector<128x32xf32>
    %499 = vector.extract_strided_slice %4 {offsets = [4, 0], sizes = [1, 32], strides = [1, 1]} : vector<9x32xf32> to vector<1x32xf32>
    %500 = vector.broadcast %499 : vector<1x32xf32> to vector<128x32xf32>
    %501 = arith.mulf %498, %500 : vector<128x32xf32>
    %502 = arith.addf %496, %501 : vector<128x32xf32>
    %c0_262 = arith.constant 0 : index
    %c833 = arith.constant 833 : index
    %c0_263 = arith.constant 0 : index
    %503 = vector.load %arg1[%c0_262, %c833, %c0_263] : memref<1x1024x32xf32, #tpu.memory_space<vmem>>, vector<1x128x32xf32>
    %504 = vector.shape_cast %503 : vector<1x128x32xf32> to vector<128x32xf32>
    %505 = vector.extract_strided_slice %4 {offsets = [5, 0], sizes = [1, 32], strides = [1, 1]} : vector<9x32xf32> to vector<1x32xf32>
    %506 = vector.broadcast %505 : vector<1x32xf32> to vector<128x32xf32>
    %507 = arith.mulf %504, %506 : vector<128x32xf32>
    %508 = arith.addf %502, %507 : vector<128x32xf32>
    %c0_264 = arith.constant 0 : index
    %c863 = arith.constant 863 : index
    %c0_265 = arith.constant 0 : index
    %509 = vector.load %arg1[%c0_264, %c863, %c0_265] : memref<1x1024x32xf32, #tpu.memory_space<vmem>>, vector<1x128x32xf32>
    %510 = vector.shape_cast %509 : vector<1x128x32xf32> to vector<128x32xf32>
    %511 = vector.extract_strided_slice %4 {offsets = [6, 0], sizes = [1, 32], strides = [1, 1]} : vector<9x32xf32> to vector<1x32xf32>
    %512 = vector.broadcast %511 : vector<1x32xf32> to vector<128x32xf32>
    %513 = arith.mulf %510, %512 : vector<128x32xf32>
    %514 = arith.addf %508, %513 : vector<128x32xf32>
    %c0_266 = arith.constant 0 : index
    %c864 = arith.constant 864 : index
    %c0_267 = arith.constant 0 : index
    %515 = vector.load %arg1[%c0_266, %c864, %c0_267] : memref<1x1024x32xf32, #tpu.memory_space<vmem>>, vector<1x128x32xf32>
    %516 = vector.shape_cast %515 : vector<1x128x32xf32> to vector<128x32xf32>
    %517 = vector.extract_strided_slice %4 {offsets = [7, 0], sizes = [1, 32], strides = [1, 1]} : vector<9x32xf32> to vector<1x32xf32>
    %518 = vector.broadcast %517 : vector<1x32xf32> to vector<128x32xf32>
    %519 = arith.mulf %516, %518 : vector<128x32xf32>
    %520 = arith.addf %514, %519 : vector<128x32xf32>
    %c0_268 = arith.constant 0 : index
    %c865 = arith.constant 865 : index
    %c0_269 = arith.constant 0 : index
    %521 = vector.load %arg1[%c0_268, %c865, %c0_269] : memref<1x1024x32xf32, #tpu.memory_space<vmem>>, vector<1x128x32xf32>
    %522 = vector.shape_cast %521 : vector<1x128x32xf32> to vector<128x32xf32>
    %523 = vector.extract_strided_slice %4 {offsets = [8, 0], sizes = [1, 32], strides = [1, 1]} : vector<9x32xf32> to vector<1x32xf32>
    %524 = vector.broadcast %523 : vector<1x32xf32> to vector<128x32xf32>
    %525 = arith.mulf %522, %524 : vector<128x32xf32>
    %526 = arith.addf %520, %525 : vector<128x32xf32>
    %c0_270 = arith.constant 0 : index
    %c0_271 = arith.constant 0 : index
    %527 = vector.load %arg15[%c0_270, %c0_271] : memref<128x32xf32, #tpu.memory_space<vmem>>, vector<128x32xf32>
    tpu.vector_store %arg15[%c0_270, %c0_271], %526 {strides = array<i32>} : memref<128x32xf32, #tpu.memory_space<vmem>>, vector<128x32xf32>,
    %c0_272 = arith.constant 0 : index
    %c0_273 = arith.constant 0 : index
    %528 = tpu.strided_load %arg15[%c0_272, %c0_273] {strides = array<i32: 2, 1>} : memref<128x32xf32, #tpu.memory_space<vmem>>, vector<14x32xf32>
    %c1_274 = arith.constant 1 : index
    %c0_275 = arith.constant 0 : index
    %529 = tpu.strided_load %arg15[%c1_274, %c0_275] {strides = array<i32: 2, 1>} : memref<128x32xf32, #tpu.memory_space<vmem>>, vector<14x32xf32>
    %530 = arith.maximumf %528, %529 : vector<14x32xf32>
    %c32_276 = arith.constant 32 : index
    %c0_277 = arith.constant 0 : index
    %531 = tpu.strided_load %arg15[%c32_276, %c0_277] {strides = array<i32: 2, 1>} : memref<128x32xf32, #tpu.memory_space<vmem>>, vector<14x32xf32>
    %c33_278 = arith.constant 33 : index
    %c0_279 = arith.constant 0 : index
    %532 = tpu.strided_load %arg15[%c33_278, %c0_279] {strides = array<i32: 2, 1>} : memref<128x32xf32, #tpu.memory_space<vmem>>, vector<14x32xf32>
    %533 = arith.maximumf %531, %532 : vector<14x32xf32>
    %534 = arith.maximumf %530, %533 : vector<14x32xf32>
    %535 = vector.broadcast %5 : vector<1x32xf32> to vector<14x32xf32>
    %536 = arith.addf %534, %535 : vector<14x32xf32>
    %cst_280 = arith.constant 0.000000e+00 : f32
    %537 = vector.broadcast %cst_280 : f32 to vector<14x32xf32>
    %538 = arith.maximumf %536, %537 : vector<14x32xf32>
    %c224_281 = arith.constant 224 : index
    %c0_282 = arith.constant 0 : index
    %539 = vector.load %arg16[%c224_281, %c0_282] : memref<288x32xf32, #tpu.memory_space<vmem>>, vector<14x32xf32>
    tpu.vector_store %arg16[%c224_281, %c0_282], %538 {strides = array<i32>} : memref<288x32xf32, #tpu.memory_space<vmem>>, vector<14x32xf32>,
    %c64_283 = arith.constant 64 : index
    %c0_284 = arith.constant 0 : index
    %540 = tpu.strided_load %arg15[%c64_283, %c0_284] {strides = array<i32: 2, 1>} : memref<128x32xf32, #tpu.memory_space<vmem>>, vector<14x32xf32>
    %c65_285 = arith.constant 65 : index
    %c0_286 = arith.constant 0 : index
    %541 = tpu.strided_load %arg15[%c65_285, %c0_286] {strides = array<i32: 2, 1>} : memref<128x32xf32, #tpu.memory_space<vmem>>, vector<14x32xf32>
    %542 = arith.maximumf %540, %541 : vector<14x32xf32>
    %c96_287 = arith.constant 96 : index
    %c0_288 = arith.constant 0 : index
    %543 = tpu.strided_load %arg15[%c96_287, %c0_288] {strides = array<i32: 2, 1>} : memref<128x32xf32, #tpu.memory_space<vmem>>, vector<14x32xf32>
    %c97_289 = arith.constant 97 : index
    %c0_290 = arith.constant 0 : index
    %544 = tpu.strided_load %arg15[%c97_289, %c0_290] {strides = array<i32: 2, 1>} : memref<128x32xf32, #tpu.memory_space<vmem>>, vector<14x32xf32>
    %545 = arith.maximumf %543, %544 : vector<14x32xf32>
    %546 = arith.maximumf %542, %545 : vector<14x32xf32>
    %547 = vector.broadcast %5 : vector<1x32xf32> to vector<14x32xf32>
    %548 = arith.addf %546, %547 : vector<14x32xf32>
    %cst_291 = arith.constant 0.000000e+00 : f32
    %549 = vector.broadcast %cst_291 : f32 to vector<14x32xf32>
    %550 = arith.maximumf %548, %549 : vector<14x32xf32>
    %c240 = arith.constant 240 : index
    %c0_292 = arith.constant 0 : index
    %551 = vector.load %arg16[%c240, %c0_292] : memref<288x32xf32, #tpu.memory_space<vmem>>, vector<14x32xf32>
    tpu.vector_store %arg16[%c240, %c0_292], %550 {strides = array<i32>} : memref<288x32xf32, #tpu.memory_space<vmem>>, vector<14x32xf32>,
    %c0_293 = arith.constant 0 : index
    %c0_294 = arith.constant 0 : index
    %552 = vector.load %arg5[%c0_293, %c0_294] : memref<1x64xf32, #tpu.memory_space<vmem>>, vector<1x64xf32>
    %c15 = arith.constant 15 : index
    %c0_295 = arith.constant 0 : index
    %553 = vector.load %arg16[%c15, %c0_295] : memref<288x32xf32, #tpu.memory_space<vmem>>, vector<224x32xf32>
    %554 = arith.truncf %553 : vector<224x32xf32> to vector<224x32xbf16>
    %c0_296 = arith.constant 0 : index
    %c0_297 = arith.constant 0 : index
    %c0_298 = arith.constant 0 : index
    %555 = vector.load %arg4[%c0_296, %c0_297, %c0_298] : memref<9x32x64xbf16, #tpu.memory_space<vmem>>, vector<1x32x64xbf16>
    %556 = vector.shape_cast %555 : vector<1x32x64xbf16> to vector<32x64xbf16>
    %cst_299 = arith.constant dense<0.000000e+00> : vector<224x64xf32>
    %557 = tpu.matmul %554, %556, %cst_299 {dimension_numbers = #tpu.dot_dimension_numbers<[1], [0], [0], [1], [0, 0, 1, 1], [], []>} : vector<224x32xbf16>, vector<32x64xbf16>, vector<224x64xf32> -> vector<224x64xf32>
    %c16 = arith.constant 16 : index
    %c0_300 = arith.constant 0 : index
    %558 = vector.load %arg16[%c16, %c0_300] : memref<288x32xf32, #tpu.memory_space<vmem>>, vector<224x32xf32>
    %559 = arith.truncf %558 : vector<224x32xf32> to vector<224x32xbf16>
    %c1_301 = arith.constant 1 : index
    %c0_302 = arith.constant 0 : index
    %c0_303 = arith.constant 0 : index
    %560 = vector.load %arg4[%c1_301, %c0_302, %c0_303] : memref<9x32x64xbf16, #tpu.memory_space<vmem>>, vector<1x32x64xbf16>
    %561 = vector.shape_cast %560 : vector<1x32x64xbf16> to vector<32x64xbf16>
    %cst_304 = arith.constant dense<0.000000e+00> : vector<224x64xf32>
    %562 = tpu.matmul %559, %561, %cst_304 {dimension_numbers = #tpu.dot_dimension_numbers<[1], [0], [0], [1], [0, 0, 1, 1], [], []>} : vector<224x32xbf16>, vector<32x64xbf16>, vector<224x64xf32> -> vector<224x64xf32>
    %563 = arith.addf %557, %562 : vector<224x64xf32>
    %c17 = arith.constant 17 : index
    %c0_305 = arith.constant 0 : index
    %564 = vector.load %arg16[%c17, %c0_305] : memref<288x32xf32, #tpu.memory_space<vmem>>, vector<224x32xf32>
    %565 = arith.truncf %564 : vector<224x32xf32> to vector<224x32xbf16>
    %c2 = arith.constant 2 : index
    %c0_306 = arith.constant 0 : index
    %c0_307 = arith.constant 0 : index
    %566 = vector.load %arg4[%c2, %c0_306, %c0_307] : memref<9x32x64xbf16, #tpu.memory_space<vmem>>, vector<1x32x64xbf16>
    %567 = vector.shape_cast %566 : vector<1x32x64xbf16> to vector<32x64xbf16>
    %cst_308 = arith.constant dense<0.000000e+00> : vector<224x64xf32>
    %568 = tpu.matmul %565, %567, %cst_308 {dimension_numbers = #tpu.dot_dimension_numbers<[1], [0], [0], [1], [0, 0, 1, 1], [], []>} : vector<224x32xbf16>, vector<32x64xbf16>, vector<224x64xf32> -> vector<224x64xf32>
    %569 = arith.addf %563, %568 : vector<224x64xf32>
    %c31_309 = arith.constant 31 : index
    %c0_310 = arith.constant 0 : index
    %570 = vector.load %arg16[%c31_309, %c0_310] : memref<288x32xf32, #tpu.memory_space<vmem>>, vector<224x32xf32>
    %571 = arith.truncf %570 : vector<224x32xf32> to vector<224x32xbf16>
    %c3 = arith.constant 3 : index
    %c0_311 = arith.constant 0 : index
    %c0_312 = arith.constant 0 : index
    %572 = vector.load %arg4[%c3, %c0_311, %c0_312] : memref<9x32x64xbf16, #tpu.memory_space<vmem>>, vector<1x32x64xbf16>
    %573 = vector.shape_cast %572 : vector<1x32x64xbf16> to vector<32x64xbf16>
    %cst_313 = arith.constant dense<0.000000e+00> : vector<224x64xf32>
    %574 = tpu.matmul %571, %573, %cst_313 {dimension_numbers = #tpu.dot_dimension_numbers<[1], [0], [0], [1], [0, 0, 1, 1], [], []>} : vector<224x32xbf16>, vector<32x64xbf16>, vector<224x64xf32> -> vector<224x64xf32>
    %575 = arith.addf %569, %574 : vector<224x64xf32>
    %c32_314 = arith.constant 32 : index
    %c0_315 = arith.constant 0 : index
    %576 = vector.load %arg16[%c32_314, %c0_315] : memref<288x32xf32, #tpu.memory_space<vmem>>, vector<224x32xf32>
    %577 = arith.truncf %576 : vector<224x32xf32> to vector<224x32xbf16>
    %c4 = arith.constant 4 : index
    %c0_316 = arith.constant 0 : index
    %c0_317 = arith.constant 0 : index
    %578 = vector.load %arg4[%c4, %c0_316, %c0_317] : memref<9x32x64xbf16, #tpu.memory_space<vmem>>, vector<1x32x64xbf16>
    %579 = vector.shape_cast %578 : vector<1x32x64xbf16> to vector<32x64xbf16>
    %cst_318 = arith.constant dense<0.000000e+00> : vector<224x64xf32>
    %580 = tpu.matmul %577, %579, %cst_318 {dimension_numbers = #tpu.dot_dimension_numbers<[1], [0], [0], [1], [0, 0, 1, 1], [], []>} : vector<224x32xbf16>, vector<32x64xbf16>, vector<224x64xf32> -> vector<224x64xf32>
    %581 = arith.addf %575, %580 : vector<224x64xf32>
    %c33_319 = arith.constant 33 : index
    %c0_320 = arith.constant 0 : index
    %582 = vector.load %arg16[%c33_319, %c0_320] : memref<288x32xf32, #tpu.memory_space<vmem>>, vector<224x32xf32>
    %583 = arith.truncf %582 : vector<224x32xf32> to vector<224x32xbf16>
    %c5 = arith.constant 5 : index
    %c0_321 = arith.constant 0 : index
    %c0_322 = arith.constant 0 : index
    %584 = vector.load %arg4[%c5, %c0_321, %c0_322] : memref<9x32x64xbf16, #tpu.memory_space<vmem>>, vector<1x32x64xbf16>
    %585 = vector.shape_cast %584 : vector<1x32x64xbf16> to vector<32x64xbf16>
    %cst_323 = arith.constant dense<0.000000e+00> : vector<224x64xf32>
    %586 = tpu.matmul %583, %585, %cst_323 {dimension_numbers = #tpu.dot_dimension_numbers<[1], [0], [0], [1], [0, 0, 1, 1], [], []>} : vector<224x32xbf16>, vector<32x64xbf16>, vector<224x64xf32> -> vector<224x64xf32>
    %587 = arith.addf %581, %586 : vector<224x64xf32>
    %c47 = arith.constant 47 : index
    %c0_324 = arith.constant 0 : index
    %588 = vector.load %arg16[%c47, %c0_324] : memref<288x32xf32, #tpu.memory_space<vmem>>, vector<224x32xf32>
    %589 = arith.truncf %588 : vector<224x32xf32> to vector<224x32xbf16>
    %c6 = arith.constant 6 : index
    %c0_325 = arith.constant 0 : index
    %c0_326 = arith.constant 0 : index
    %590 = vector.load %arg4[%c6, %c0_325, %c0_326] : memref<9x32x64xbf16, #tpu.memory_space<vmem>>, vector<1x32x64xbf16>
    %591 = vector.shape_cast %590 : vector<1x32x64xbf16> to vector<32x64xbf16>
    %cst_327 = arith.constant dense<0.000000e+00> : vector<224x64xf32>
    %592 = tpu.matmul %589, %591, %cst_327 {dimension_numbers = #tpu.dot_dimension_numbers<[1], [0], [0], [1], [0, 0, 1, 1], [], []>} : vector<224x32xbf16>, vector<32x64xbf16>, vector<224x64xf32> -> vector<224x64xf32>
    %593 = arith.addf %587, %592 : vector<224x64xf32>
    %c48_328 = arith.constant 48 : index
    %c0_329 = arith.constant 0 : index
    %594 = vector.load %arg16[%c48_328, %c0_329] : memref<288x32xf32, #tpu.memory_space<vmem>>, vector<224x32xf32>
    %595 = arith.truncf %594 : vector<224x32xf32> to vector<224x32xbf16>
    %c7 = arith.constant 7 : index
    %c0_330 = arith.constant 0 : index
    %c0_331 = arith.constant 0 : index
    %596 = vector.load %arg4[%c7, %c0_330, %c0_331] : memref<9x32x64xbf16, #tpu.memory_space<vmem>>, vector<1x32x64xbf16>
    %597 = vector.shape_cast %596 : vector<1x32x64xbf16> to vector<32x64xbf16>
    %cst_332 = arith.constant dense<0.000000e+00> : vector<224x64xf32>
    %598 = tpu.matmul %595, %597, %cst_332 {dimension_numbers = #tpu.dot_dimension_numbers<[1], [0], [0], [1], [0, 0, 1, 1], [], []>} : vector<224x32xbf16>, vector<32x64xbf16>, vector<224x64xf32> -> vector<224x64xf32>
    %599 = arith.addf %593, %598 : vector<224x64xf32>
    %c49 = arith.constant 49 : index
    %c0_333 = arith.constant 0 : index
    %600 = vector.load %arg16[%c49, %c0_333] : memref<288x32xf32, #tpu.memory_space<vmem>>, vector<224x32xf32>
    %601 = arith.truncf %600 : vector<224x32xf32> to vector<224x32xbf16>
    %c8 = arith.constant 8 : index
    %c0_334 = arith.constant 0 : index
    %c0_335 = arith.constant 0 : index
    %602 = vector.load %arg4[%c8, %c0_334, %c0_335] : memref<9x32x64xbf16, #tpu.memory_space<vmem>>, vector<1x32x64xbf16>
    %603 = vector.shape_cast %602 : vector<1x32x64xbf16> to vector<32x64xbf16>
    %cst_336 = arith.constant dense<0.000000e+00> : vector<224x64xf32>
    %604 = tpu.matmul %601, %603, %cst_336 {dimension_numbers = #tpu.dot_dimension_numbers<[1], [0], [0], [1], [0, 0, 1, 1], [], []>} : vector<224x32xbf16>, vector<32x64xbf16>, vector<224x64xf32> -> vector<224x64xf32>
    %605 = arith.addf %599, %604 : vector<224x64xf32>
    %c0_337 = arith.constant 0 : index
    %c0_338 = arith.constant 0 : index
    %606 = vector.load %arg17[%c0_337, %c0_338] : memref<224x64xf32, #tpu.memory_space<vmem>>, vector<224x64xf32>
    tpu.vector_store %arg17[%c0_337, %c0_338], %605 {strides = array<i32>} : memref<224x64xf32, #tpu.memory_space<vmem>>, vector<224x64xf32>,
    %c0_339 = arith.constant 0 : index
    %c0_340 = arith.constant 0 : index
    %607 = tpu.strided_load %arg17[%c0_339, %c0_340] {strides = array<i32: 2, 1>} : memref<224x64xf32, #tpu.memory_space<vmem>>, vector<7x64xf32>
    %c1_341 = arith.constant 1 : index
    %c0_342 = arith.constant 0 : index
    %608 = tpu.strided_load %arg17[%c1_341, %c0_342] {strides = array<i32: 2, 1>} : memref<224x64xf32, #tpu.memory_space<vmem>>, vector<7x64xf32>
    %609 = arith.maximumf %607, %608 : vector<7x64xf32>
    %c16_343 = arith.constant 16 : index
    %c0_344 = arith.constant 0 : index
    %610 = tpu.strided_load %arg17[%c16_343, %c0_344] {strides = array<i32: 2, 1>} : memref<224x64xf32, #tpu.memory_space<vmem>>, vector<7x64xf32>
    %c17_345 = arith.constant 17 : index
    %c0_346 = arith.constant 0 : index
    %611 = tpu.strided_load %arg17[%c17_345, %c0_346] {strides = array<i32: 2, 1>} : memref<224x64xf32, #tpu.memory_space<vmem>>, vector<7x64xf32>
    %612 = arith.maximumf %610, %611 : vector<7x64xf32>
    %613 = arith.maximumf %609, %612 : vector<7x64xf32>
    %614 = vector.broadcast %552 : vector<1x64xf32> to vector<7x64xf32>
    %615 = arith.addf %613, %614 : vector<7x64xf32>
    %cst_347 = arith.constant 0.000000e+00 : f32
    %616 = vector.broadcast %cst_347 : f32 to vector<7x64xf32>
    %617 = arith.maximumf %615, %616 : vector<7x64xf32>
    %c32_348 = arith.constant 32 : index
    %c0_349 = arith.constant 0 : index
    %618 = vector.load %arg18[%c32_348, %c0_349] : memref<176x64xf32, #tpu.memory_space<vmem>>, vector<7x64xf32>
    tpu.vector_store %arg18[%c32_348, %c0_349], %617 {strides = array<i32>} : memref<176x64xf32, #tpu.memory_space<vmem>>, vector<7x64xf32>,
    %c32_350 = arith.constant 32 : index
    %c0_351 = arith.constant 0 : index
    %619 = tpu.strided_load %arg17[%c32_350, %c0_351] {strides = array<i32: 2, 1>} : memref<224x64xf32, #tpu.memory_space<vmem>>, vector<7x64xf32>
    %c33_352 = arith.constant 33 : index
    %c0_353 = arith.constant 0 : index
    %620 = tpu.strided_load %arg17[%c33_352, %c0_353] {strides = array<i32: 2, 1>} : memref<224x64xf32, #tpu.memory_space<vmem>>, vector<7x64xf32>
    %621 = arith.maximumf %619, %620 : vector<7x64xf32>
    %c48_354 = arith.constant 48 : index
    %c0_355 = arith.constant 0 : index
    %622 = tpu.strided_load %arg17[%c48_354, %c0_355] {strides = array<i32: 2, 1>} : memref<224x64xf32, #tpu.memory_space<vmem>>, vector<7x64xf32>
    %c49_356 = arith.constant 49 : index
    %c0_357 = arith.constant 0 : index
    %623 = tpu.strided_load %arg17[%c49_356, %c0_357] {strides = array<i32: 2, 1>} : memref<224x64xf32, #tpu.memory_space<vmem>>, vector<7x64xf32>
    %624 = arith.maximumf %622, %623 : vector<7x64xf32>
    %625 = arith.maximumf %621, %624 : vector<7x64xf32>
    %626 = vector.broadcast %552 : vector<1x64xf32> to vector<7x64xf32>
    %627 = arith.addf %625, %626 : vector<7x64xf32>
    %cst_358 = arith.constant 0.000000e+00 : f32
    %628 = vector.broadcast %cst_358 : f32 to vector<7x64xf32>
    %629 = arith.maximumf %627, %628 : vector<7x64xf32>
    %c48_359 = arith.constant 48 : index
    %c0_360 = arith.constant 0 : index
    %630 = vector.load %arg18[%c48_359, %c0_360] : memref<176x64xf32, #tpu.memory_space<vmem>>, vector<7x64xf32>
    tpu.vector_store %arg18[%c48_359, %c0_360], %629 {strides = array<i32>} : memref<176x64xf32, #tpu.memory_space<vmem>>, vector<7x64xf32>,
    %c64_361 = arith.constant 64 : index
    %c0_362 = arith.constant 0 : index
    %631 = tpu.strided_load %arg17[%c64_361, %c0_362] {strides = array<i32: 2, 1>} : memref<224x64xf32, #tpu.memory_space<vmem>>, vector<7x64xf32>
    %c65_363 = arith.constant 65 : index
    %c0_364 = arith.constant 0 : index
    %632 = tpu.strided_load %arg17[%c65_363, %c0_364] {strides = array<i32: 2, 1>} : memref<224x64xf32, #tpu.memory_space<vmem>>, vector<7x64xf32>
    %633 = arith.maximumf %631, %632 : vector<7x64xf32>
    %c80_365 = arith.constant 80 : index
    %c0_366 = arith.constant 0 : index
    %634 = tpu.strided_load %arg17[%c80_365, %c0_366] {strides = array<i32: 2, 1>} : memref<224x64xf32, #tpu.memory_space<vmem>>, vector<7x64xf32>
    %c81 = arith.constant 81 : index
    %c0_367 = arith.constant 0 : index
    %635 = tpu.strided_load %arg17[%c81, %c0_367] {strides = array<i32: 2, 1>} : memref<224x64xf32, #tpu.memory_space<vmem>>, vector<7x64xf32>
    %636 = arith.maximumf %634, %635 : vector<7x64xf32>
    %637 = arith.maximumf %633, %636 : vector<7x64xf32>
    %638 = vector.broadcast %552 : vector<1x64xf32> to vector<7x64xf32>
    %639 = arith.addf %637, %638 : vector<7x64xf32>
    %cst_368 = arith.constant 0.000000e+00 : f32
    %640 = vector.broadcast %cst_368 : f32 to vector<7x64xf32>
    %641 = arith.maximumf %639, %640 : vector<7x64xf32>
    %c64_369 = arith.constant 64 : index
    %c0_370 = arith.constant 0 : index
    %642 = vector.load %arg18[%c64_369, %c0_370] : memref<176x64xf32, #tpu.memory_space<vmem>>, vector<7x64xf32>
    tpu.vector_store %arg18[%c64_369, %c0_370], %641 {strides = array<i32>} : memref<176x64xf32, #tpu.memory_space<vmem>>, vector<7x64xf32>,
    %c96_371 = arith.constant 96 : index
    %c0_372 = arith.constant 0 : index
    %643 = tpu.strided_load %arg17[%c96_371, %c0_372] {strides = array<i32: 2, 1>} : memref<224x64xf32, #tpu.memory_space<vmem>>, vector<7x64xf32>
    %c97_373 = arith.constant 97 : index
    %c0_374 = arith.constant 0 : index
    %644 = tpu.strided_load %arg17[%c97_373, %c0_374] {strides = array<i32: 2, 1>} : memref<224x64xf32, #tpu.memory_space<vmem>>, vector<7x64xf32>
    %645 = arith.maximumf %643, %644 : vector<7x64xf32>
    %c112_375 = arith.constant 112 : index
    %c0_376 = arith.constant 0 : index
    %646 = tpu.strided_load %arg17[%c112_375, %c0_376] {strides = array<i32: 2, 1>} : memref<224x64xf32, #tpu.memory_space<vmem>>, vector<7x64xf32>
    %c113 = arith.constant 113 : index
    %c0_377 = arith.constant 0 : index
    %647 = tpu.strided_load %arg17[%c113, %c0_377] {strides = array<i32: 2, 1>} : memref<224x64xf32, #tpu.memory_space<vmem>>, vector<7x64xf32>
    %648 = arith.maximumf %646, %647 : vector<7x64xf32>
    %649 = arith.maximumf %645, %648 : vector<7x64xf32>
    %650 = vector.broadcast %552 : vector<1x64xf32> to vector<7x64xf32>
    %651 = arith.addf %649, %650 : vector<7x64xf32>
    %cst_378 = arith.constant 0.000000e+00 : f32
    %652 = vector.broadcast %cst_378 : f32 to vector<7x64xf32>
    %653 = arith.maximumf %651, %652 : vector<7x64xf32>
    %c80_379 = arith.constant 80 : index
    %c0_380 = arith.constant 0 : index
    %654 = vector.load %arg18[%c80_379, %c0_380] : memref<176x64xf32, #tpu.memory_space<vmem>>, vector<7x64xf32>
    tpu.vector_store %arg18[%c80_379, %c0_380], %653 {strides = array<i32>} : memref<176x64xf32, #tpu.memory_space<vmem>>, vector<7x64xf32>,
    %c128_381 = arith.constant 128 : index
    %c0_382 = arith.constant 0 : index
    %655 = tpu.strided_load %arg17[%c128_381, %c0_382] {strides = array<i32: 2, 1>} : memref<224x64xf32, #tpu.memory_space<vmem>>, vector<7x64xf32>
    %c129 = arith.constant 129 : index
    %c0_383 = arith.constant 0 : index
    %656 = tpu.strided_load %arg17[%c129, %c0_383] {strides = array<i32: 2, 1>} : memref<224x64xf32, #tpu.memory_space<vmem>>, vector<7x64xf32>
    %657 = arith.maximumf %655, %656 : vector<7x64xf32>
    %c144_384 = arith.constant 144 : index
    %c0_385 = arith.constant 0 : index
    %658 = tpu.strided_load %arg17[%c144_384, %c0_385] {strides = array<i32: 2, 1>} : memref<224x64xf32, #tpu.memory_space<vmem>>, vector<7x64xf32>
    %c145 = arith.constant 145 : index
    %c0_386 = arith.constant 0 : index
    %659 = tpu.strided_load %arg17[%c145, %c0_386] {strides = array<i32: 2, 1>} : memref<224x64xf32, #tpu.memory_space<vmem>>, vector<7x64xf32>
    %660 = arith.maximumf %658, %659 : vector<7x64xf32>
    %661 = arith.maximumf %657, %660 : vector<7x64xf32>
    %662 = vector.broadcast %552 : vector<1x64xf32> to vector<7x64xf32>
    %663 = arith.addf %661, %662 : vector<7x64xf32>
    %cst_387 = arith.constant 0.000000e+00 : f32
    %664 = vector.broadcast %cst_387 : f32 to vector<7x64xf32>
    %665 = arith.maximumf %663, %664 : vector<7x64xf32>
    %c96_388 = arith.constant 96 : index
    %c0_389 = arith.constant 0 : index
    %666 = vector.load %arg18[%c96_388, %c0_389] : memref<176x64xf32, #tpu.memory_space<vmem>>, vector<7x64xf32>
    tpu.vector_store %arg18[%c96_388, %c0_389], %665 {strides = array<i32>} : memref<176x64xf32, #tpu.memory_space<vmem>>, vector<7x64xf32>,
    %c160_390 = arith.constant 160 : index
    %c0_391 = arith.constant 0 : index
    %667 = tpu.strided_load %arg17[%c160_390, %c0_391] {strides = array<i32: 2, 1>} : memref<224x64xf32, #tpu.memory_space<vmem>>, vector<7x64xf32>
    %c161_392 = arith.constant 161 : index
    %c0_393 = arith.constant 0 : index
    %668 = tpu.strided_load %arg17[%c161_392, %c0_393] {strides = array<i32: 2, 1>} : memref<224x64xf32, #tpu.memory_space<vmem>>, vector<7x64xf32>
    %669 = arith.maximumf %667, %668 : vector<7x64xf32>
    %c176_394 = arith.constant 176 : index
    %c0_395 = arith.constant 0 : index
    %670 = tpu.strided_load %arg17[%c176_394, %c0_395] {strides = array<i32: 2, 1>} : memref<224x64xf32, #tpu.memory_space<vmem>>, vector<7x64xf32>
    %c177 = arith.constant 177 : index
    %c0_396 = arith.constant 0 : index
    %671 = tpu.strided_load %arg17[%c177, %c0_396] {strides = array<i32: 2, 1>} : memref<224x64xf32, #tpu.memory_space<vmem>>, vector<7x64xf32>
    %672 = arith.maximumf %670, %671 : vector<7x64xf32>
    %673 = arith.maximumf %669, %672 : vector<7x64xf32>
    %674 = vector.broadcast %552 : vector<1x64xf32> to vector<7x64xf32>
    %675 = arith.addf %673, %674 : vector<7x64xf32>
    %cst_397 = arith.constant 0.000000e+00 : f32
    %676 = vector.broadcast %cst_397 : f32 to vector<7x64xf32>
    %677 = arith.maximumf %675, %676 : vector<7x64xf32>
    %c112_398 = arith.constant 112 : index
    %c0_399 = arith.constant 0 : index
    %678 = vector.load %arg18[%c112_398, %c0_399] : memref<176x64xf32, #tpu.memory_space<vmem>>, vector<7x64xf32>
    tpu.vector_store %arg18[%c112_398, %c0_399], %677 {strides = array<i32>} : memref<176x64xf32, #tpu.memory_space<vmem>>, vector<7x64xf32>,
    %c192_400 = arith.constant 192 : index
    %c0_401 = arith.constant 0 : index
    %679 = tpu.strided_load %arg17[%c192_400, %c0_401] {strides = array<i32: 2, 1>} : memref<224x64xf32, #tpu.memory_space<vmem>>, vector<7x64xf32>
    %c193_402 = arith.constant 193 : index
    %c0_403 = arith.constant 0 : index
    %680 = tpu.strided_load %arg17[%c193_402, %c0_403] {strides = array<i32: 2, 1>} : memref<224x64xf32, #tpu.memory_space<vmem>>, vector<7x64xf32>
    %681 = arith.maximumf %679, %680 : vector<7x64xf32>
    %c208_404 = arith.constant 208 : index
    %c0_405 = arith.constant 0 : index
    %682 = tpu.strided_load %arg17[%c208_404, %c0_405] {strides = array<i32: 2, 1>} : memref<224x64xf32, #tpu.memory_space<vmem>>, vector<7x64xf32>
    %c209 = arith.constant 209 : index
    %c0_406 = arith.constant 0 : index
    %683 = tpu.strided_load %arg17[%c209, %c0_406] {strides = array<i32: 2, 1>} : memref<224x64xf32, #tpu.memory_space<vmem>>, vector<7x64xf32>
    %684 = arith.maximumf %682, %683 : vector<7x64xf32>
    %685 = arith.maximumf %681, %684 : vector<7x64xf32>
    %686 = vector.broadcast %552 : vector<1x64xf32> to vector<7x64xf32>
    %687 = arith.addf %685, %686 : vector<7x64xf32>
    %cst_407 = arith.constant 0.000000e+00 : f32
    %688 = vector.broadcast %cst_407 : f32 to vector<7x64xf32>
    %689 = arith.maximumf %687, %688 : vector<7x64xf32>
    %c128_408 = arith.constant 128 : index
    %c0_409 = arith.constant 0 : index
    %690 = vector.load %arg18[%c128_408, %c0_409] : memref<176x64xf32, #tpu.memory_space<vmem>>, vector<7x64xf32>
    tpu.vector_store %arg18[%c128_408, %c0_409], %689 {strides = array<i32>} : memref<176x64xf32, #tpu.memory_space<vmem>>, vector<7x64xf32>,
    %c0_410 = arith.constant 0 : index
    %c0_411 = arith.constant 0 : index
    %691 = vector.load %arg7[%c0_410, %c0_411] : memref<1x128xf32, #tpu.memory_space<vmem>>, vector<1x128xf32>
    %c15_412 = arith.constant 15 : index
    %c0_413 = arith.constant 0 : index
    %692 = vector.load %arg18[%c15_412, %c0_413] : memref<176x64xf32, #tpu.memory_space<vmem>>, vector<112x64xf32>
    %693 = arith.truncf %692 : vector<112x64xf32> to vector<112x64xbf16>
    %c0_414 = arith.constant 0 : index
    %c0_415 = arith.constant 0 : index
    %c0_416 = arith.constant 0 : index
    %694 = vector.load %arg6[%c0_414, %c0_415, %c0_416] : memref<9x64x128xbf16, #tpu.memory_space<vmem>>, vector<1x64x128xbf16>
    %695 = vector.shape_cast %694 : vector<1x64x128xbf16> to vector<64x128xbf16>
    %cst_417 = arith.constant dense<0.000000e+00> : vector<112x128xf32>
    %696 = tpu.matmul %693, %695, %cst_417 {dimension_numbers = #tpu.dot_dimension_numbers<[1], [0], [0], [1], [0, 0, 1, 1], [], []>} : vector<112x64xbf16>, vector<64x128xbf16>, vector<112x128xf32> -> vector<112x128xf32>
    %c16_418 = arith.constant 16 : index
    %c0_419 = arith.constant 0 : index
    %697 = vector.load %arg18[%c16_418, %c0_419] : memref<176x64xf32, #tpu.memory_space<vmem>>, vector<112x64xf32>
    %698 = arith.truncf %697 : vector<112x64xf32> to vector<112x64xbf16>
    %c1_420 = arith.constant 1 : index
    %c0_421 = arith.constant 0 : index
    %c0_422 = arith.constant 0 : index
    %699 = vector.load %arg6[%c1_420, %c0_421, %c0_422] : memref<9x64x128xbf16, #tpu.memory_space<vmem>>, vector<1x64x128xbf16>
    %700 = vector.shape_cast %699 : vector<1x64x128xbf16> to vector<64x128xbf16>
    %cst_423 = arith.constant dense<0.000000e+00> : vector<112x128xf32>
    %701 = tpu.matmul %698, %700, %cst_423 {dimension_numbers = #tpu.dot_dimension_numbers<[1], [0], [0], [1], [0, 0, 1, 1], [], []>} : vector<112x64xbf16>, vector<64x128xbf16>, vector<112x128xf32> -> vector<112x128xf32>
    %702 = arith.addf %696, %701 : vector<112x128xf32>
    %c17_424 = arith.constant 17 : index
    %c0_425 = arith.constant 0 : index
    %703 = vector.load %arg18[%c17_424, %c0_425] : memref<176x64xf32, #tpu.memory_space<vmem>>, vector<112x64xf32>
    %704 = arith.truncf %703 : vector<112x64xf32> to vector<112x64xbf16>
    %c2_426 = arith.constant 2 : index
    %c0_427 = arith.constant 0 : index
    %c0_428 = arith.constant 0 : index
    %705 = vector.load %arg6[%c2_426, %c0_427, %c0_428] : memref<9x64x128xbf16, #tpu.memory_space<vmem>>, vector<1x64x128xbf16>
    %706 = vector.shape_cast %705 : vector<1x64x128xbf16> to vector<64x128xbf16>
    %cst_429 = arith.constant dense<0.000000e+00> : vector<112x128xf32>
    %707 = tpu.matmul %704, %706, %cst_429 {dimension_numbers = #tpu.dot_dimension_numbers<[1], [0], [0], [1], [0, 0, 1, 1], [], []>} : vector<112x64xbf16>, vector<64x128xbf16>, vector<112x128xf32> -> vector<112x128xf32>
    %708 = arith.addf %702, %707 : vector<112x128xf32>
    %c31_430 = arith.constant 31 : index
    %c0_431 = arith.constant 0 : index
    %709 = vector.load %arg18[%c31_430, %c0_431] : memref<176x64xf32, #tpu.memory_space<vmem>>, vector<112x64xf32>
    %710 = arith.truncf %709 : vector<112x64xf32> to vector<112x64xbf16>
    %c3_432 = arith.constant 3 : index
    %c0_433 = arith.constant 0 : index
    %c0_434 = arith.constant 0 : index
    %711 = vector.load %arg6[%c3_432, %c0_433, %c0_434] : memref<9x64x128xbf16, #tpu.memory_space<vmem>>, vector<1x64x128xbf16>
    %712 = vector.shape_cast %711 : vector<1x64x128xbf16> to vector<64x128xbf16>
    %cst_435 = arith.constant dense<0.000000e+00> : vector<112x128xf32>
    %713 = tpu.matmul %710, %712, %cst_435 {dimension_numbers = #tpu.dot_dimension_numbers<[1], [0], [0], [1], [0, 0, 1, 1], [], []>} : vector<112x64xbf16>, vector<64x128xbf16>, vector<112x128xf32> -> vector<112x128xf32>
    %714 = arith.addf %708, %713 : vector<112x128xf32>
    %c32_436 = arith.constant 32 : index
    %c0_437 = arith.constant 0 : index
    %715 = vector.load %arg18[%c32_436, %c0_437] : memref<176x64xf32, #tpu.memory_space<vmem>>, vector<112x64xf32>
    %716 = arith.truncf %715 : vector<112x64xf32> to vector<112x64xbf16>
    %c4_438 = arith.constant 4 : index
    %c0_439 = arith.constant 0 : index
    %c0_440 = arith.constant 0 : index
    %717 = vector.load %arg6[%c4_438, %c0_439, %c0_440] : memref<9x64x128xbf16, #tpu.memory_space<vmem>>, vector<1x64x128xbf16>
    %718 = vector.shape_cast %717 : vector<1x64x128xbf16> to vector<64x128xbf16>
    %cst_441 = arith.constant dense<0.000000e+00> : vector<112x128xf32>
    %719 = tpu.matmul %716, %718, %cst_441 {dimension_numbers = #tpu.dot_dimension_numbers<[1], [0], [0], [1], [0, 0, 1, 1], [], []>} : vector<112x64xbf16>, vector<64x128xbf16>, vector<112x128xf32> -> vector<112x128xf32>
    %720 = arith.addf %714, %719 : vector<112x128xf32>
    %c33_442 = arith.constant 33 : index
    %c0_443 = arith.constant 0 : index
    %721 = vector.load %arg18[%c33_442, %c0_443] : memref<176x64xf32, #tpu.memory_space<vmem>>, vector<112x64xf32>
    %722 = arith.truncf %721 : vector<112x64xf32> to vector<112x64xbf16>
    %c5_444 = arith.constant 5 : index
    %c0_445 = arith.constant 0 : index
    %c0_446 = arith.constant 0 : index
    %723 = vector.load %arg6[%c5_444, %c0_445, %c0_446] : memref<9x64x128xbf16, #tpu.memory_space<vmem>>, vector<1x64x128xbf16>
    %724 = vector.shape_cast %723 : vector<1x64x128xbf16> to vector<64x128xbf16>
    %cst_447 = arith.constant dense<0.000000e+00> : vector<112x128xf32>
    %725 = tpu.matmul %722, %724, %cst_447 {dimension_numbers = #tpu.dot_dimension_numbers<[1], [0], [0], [1], [0, 0, 1, 1], [], []>} : vector<112x64xbf16>, vector<64x128xbf16>, vector<112x128xf32> -> vector<112x128xf32>
    %726 = arith.addf %720, %725 : vector<112x128xf32>
    %c47_448 = arith.constant 47 : index
    %c0_449 = arith.constant 0 : index
    %727 = vector.load %arg18[%c47_448, %c0_449] : memref<176x64xf32, #tpu.memory_space<vmem>>, vector<112x64xf32>
    %728 = arith.truncf %727 : vector<112x64xf32> to vector<112x64xbf16>
    %c6_450 = arith.constant 6 : index
    %c0_451 = arith.constant 0 : index
    %c0_452 = arith.constant 0 : index
    %729 = vector.load %arg6[%c6_450, %c0_451, %c0_452] : memref<9x64x128xbf16, #tpu.memory_space<vmem>>, vector<1x64x128xbf16>
    %730 = vector.shape_cast %729 : vector<1x64x128xbf16> to vector<64x128xbf16>
    %cst_453 = arith.constant dense<0.000000e+00> : vector<112x128xf32>
    %731 = tpu.matmul %728, %730, %cst_453 {dimension_numbers = #tpu.dot_dimension_numbers<[1], [0], [0], [1], [0, 0, 1, 1], [], []>} : vector<112x64xbf16>, vector<64x128xbf16>, vector<112x128xf32> -> vector<112x128xf32>
    %732 = arith.addf %726, %731 : vector<112x128xf32>
    %c48_454 = arith.constant 48 : index
    %c0_455 = arith.constant 0 : index
    %733 = vector.load %arg18[%c48_454, %c0_455] : memref<176x64xf32, #tpu.memory_space<vmem>>, vector<112x64xf32>
    %734 = arith.truncf %733 : vector<112x64xf32> to vector<112x64xbf16>
    %c7_456 = arith.constant 7 : index
    %c0_457 = arith.constant 0 : index
    %c0_458 = arith.constant 0 : index
    %735 = vector.load %arg6[%c7_456, %c0_457, %c0_458] : memref<9x64x128xbf16, #tpu.memory_space<vmem>>, vector<1x64x128xbf16>
    %736 = vector.shape_cast %735 : vector<1x64x128xbf16> to vector<64x128xbf16>
    %cst_459 = arith.constant dense<0.000000e+00> : vector<112x128xf32>
    %737 = tpu.matmul %734, %736, %cst_459 {dimension_numbers = #tpu.dot_dimension_numbers<[1], [0], [0], [1], [0, 0, 1, 1], [], []>} : vector<112x64xbf16>, vector<64x128xbf16>, vector<112x128xf32> -> vector<112x128xf32>
    %738 = arith.addf %732, %737 : vector<112x128xf32>
    %c49_460 = arith.constant 49 : index
    %c0_461 = arith.constant 0 : index
    %739 = vector.load %arg18[%c49_460, %c0_461] : memref<176x64xf32, #tpu.memory_space<vmem>>, vector<112x64xf32>
    %740 = arith.truncf %739 : vector<112x64xf32> to vector<112x64xbf16>
    %c8_462 = arith.constant 8 : index
    %c0_463 = arith.constant 0 : index
    %c0_464 = arith.constant 0 : index
    %741 = vector.load %arg6[%c8_462, %c0_463, %c0_464] : memref<9x64x128xbf16, #tpu.memory_space<vmem>>, vector<1x64x128xbf16>
    %742 = vector.shape_cast %741 : vector<1x64x128xbf16> to vector<64x128xbf16>
    %cst_465 = arith.constant dense<0.000000e+00> : vector<112x128xf32>
    %743 = tpu.matmul %740, %742, %cst_465 {dimension_numbers = #tpu.dot_dimension_numbers<[1], [0], [0], [1], [0, 0, 1, 1], [], []>} : vector<112x64xbf16>, vector<64x128xbf16>, vector<112x128xf32> -> vector<112x128xf32>
    %744 = arith.addf %738, %743 : vector<112x128xf32>
    %c0_466 = arith.constant 0 : index
    %c0_467 = arith.constant 0 : index
    %745 = vector.load %arg19[%c0_466, %c0_467] : memref<112x128xf32, #tpu.memory_space<vmem>>, vector<112x128xf32>
    tpu.vector_store %arg19[%c0_466, %c0_467], %744 {strides = array<i32>} : memref<112x128xf32, #tpu.memory_space<vmem>>, vector<112x128xf32>,
    %c0_468 = arith.constant 0 : index
    %c0_469 = arith.constant 0 : index
    %746 = tpu.strided_load %arg19[%c0_468, %c0_469] {strides = array<i32: 2, 1>} : memref<112x128xf32, #tpu.memory_space<vmem>>, vector<3x128xf32>
    %c1_470 = arith.constant 1 : index
    %c0_471 = arith.constant 0 : index
    %747 = tpu.strided_load %arg19[%c1_470, %c0_471] {strides = array<i32: 2, 1>} : memref<112x128xf32, #tpu.memory_space<vmem>>, vector<3x128xf32>
    %748 = arith.maximumf %746, %747 : vector<3x128xf32>
    %c16_472 = arith.constant 16 : index
    %c0_473 = arith.constant 0 : index
    %749 = tpu.strided_load %arg19[%c16_472, %c0_473] {strides = array<i32: 2, 1>} : memref<112x128xf32, #tpu.memory_space<vmem>>, vector<3x128xf32>
    %c17_474 = arith.constant 17 : index
    %c0_475 = arith.constant 0 : index
    %750 = tpu.strided_load %arg19[%c17_474, %c0_475] {strides = array<i32: 2, 1>} : memref<112x128xf32, #tpu.memory_space<vmem>>, vector<3x128xf32>
    %751 = arith.maximumf %749, %750 : vector<3x128xf32>
    %752 = arith.maximumf %748, %751 : vector<3x128xf32>
    %753 = vector.broadcast %691 : vector<1x128xf32> to vector<3x128xf32>
    %754 = arith.addf %752, %753 : vector<3x128xf32>
    %cst_476 = arith.constant 0.000000e+00 : f32
    %755 = vector.broadcast %cst_476 : f32 to vector<3x128xf32>
    %756 = arith.maximumf %754, %755 : vector<3x128xf32>
    %c32_477 = arith.constant 32 : index
    %c0_478 = arith.constant 0 : index
    %757 = tpu.strided_load %arg19[%c32_477, %c0_478] {strides = array<i32: 2, 1>} : memref<112x128xf32, #tpu.memory_space<vmem>>, vector<3x128xf32>
    %c33_479 = arith.constant 33 : index
    %c0_480 = arith.constant 0 : index
    %758 = tpu.strided_load %arg19[%c33_479, %c0_480] {strides = array<i32: 2, 1>} : memref<112x128xf32, #tpu.memory_space<vmem>>, vector<3x128xf32>
    %759 = arith.maximumf %757, %758 : vector<3x128xf32>
    %c48_481 = arith.constant 48 : index
    %c0_482 = arith.constant 0 : index
    %760 = tpu.strided_load %arg19[%c48_481, %c0_482] {strides = array<i32: 2, 1>} : memref<112x128xf32, #tpu.memory_space<vmem>>, vector<3x128xf32>
    %c49_483 = arith.constant 49 : index
    %c0_484 = arith.constant 0 : index
    %761 = tpu.strided_load %arg19[%c49_483, %c0_484] {strides = array<i32: 2, 1>} : memref<112x128xf32, #tpu.memory_space<vmem>>, vector<3x128xf32>
    %762 = arith.maximumf %760, %761 : vector<3x128xf32>
    %763 = arith.maximumf %759, %762 : vector<3x128xf32>
    %764 = vector.broadcast %691 : vector<1x128xf32> to vector<3x128xf32>
    %765 = arith.addf %763, %764 : vector<3x128xf32>
    %cst_485 = arith.constant 0.000000e+00 : f32
    %766 = vector.broadcast %cst_485 : f32 to vector<3x128xf32>
    %767 = arith.maximumf %765, %766 : vector<3x128xf32>
    %c64_486 = arith.constant 64 : index
    %c0_487 = arith.constant 0 : index
    %768 = tpu.strided_load %arg19[%c64_486, %c0_487] {strides = array<i32: 2, 1>} : memref<112x128xf32, #tpu.memory_space<vmem>>, vector<3x128xf32>
    %c65_488 = arith.constant 65 : index
    %c0_489 = arith.constant 0 : index
    %769 = tpu.strided_load %arg19[%c65_488, %c0_489] {strides = array<i32: 2, 1>} : memref<112x128xf32, #tpu.memory_space<vmem>>, vector<3x128xf32>
    %770 = arith.maximumf %768, %769 : vector<3x128xf32>
    %c80_490 = arith.constant 80 : index
    %c0_491 = arith.constant 0 : index
    %771 = tpu.strided_load %arg19[%c80_490, %c0_491] {strides = array<i32: 2, 1>} : memref<112x128xf32, #tpu.memory_space<vmem>>, vector<3x128xf32>
    %c81_492 = arith.constant 81 : index
    %c0_493 = arith.constant 0 : index
    %772 = tpu.strided_load %arg19[%c81_492, %c0_493] {strides = array<i32: 2, 1>} : memref<112x128xf32, #tpu.memory_space<vmem>>, vector<3x128xf32>
    %773 = arith.maximumf %771, %772 : vector<3x128xf32>
    %774 = arith.maximumf %770, %773 : vector<3x128xf32>
    %775 = vector.broadcast %691 : vector<1x128xf32> to vector<3x128xf32>
    %776 = arith.addf %774, %775 : vector<3x128xf32>
    %cst_494 = arith.constant 0.000000e+00 : f32
    %777 = vector.broadcast %cst_494 : f32 to vector<3x128xf32>
    %778 = arith.maximumf %776, %777 : vector<3x128xf32>
    %c0_495 = arith.constant 0 : index
    %c0_496 = arith.constant 0 : index
    %779 = vector.load %arg9[%c0_495, %c0_496] : memref<1x256xf32, #tpu.memory_space<vmem>>, vector<1x256xf32>
    %780 = vector.extract_strided_slice %756 {offsets = [0, 0], sizes = [1, 128], strides = [1, 1]} : vector<3x128xf32> to vector<1x128xf32>
    %781 = arith.truncf %780 : vector<1x128xf32> to vector<1x128xbf16>
    %c0_497 = arith.constant 0 : index
    %c0_498 = arith.constant 0 : index
    %c0_499 = arith.constant 0 : index
    %782 = vector.load %arg8[%c0_497, %c0_498, %c0_499] : memref<9x128x256xbf16, #tpu.memory_space<vmem>>, vector<1x128x256xbf16>
    %783 = vector.shape_cast %782 : vector<1x128x256xbf16> to vector<128x256xbf16>
    %cst_500 = arith.constant dense<0.000000e+00> : vector<1x256xf32>
    %784 = tpu.matmul %781, %783, %cst_500 {dimension_numbers = #tpu.dot_dimension_numbers<[1], [0], [0], [1], [0, 0, 1, 1], [], []>} : vector<1x128xbf16>, vector<128x256xbf16>, vector<1x256xf32> -> vector<1x256xf32>
    %785 = arith.addf %779, %784 : vector<1x256xf32>
    %786 = vector.extract_strided_slice %756 {offsets = [1, 0], sizes = [1, 128], strides = [1, 1]} : vector<3x128xf32> to vector<1x128xf32>
    %787 = arith.truncf %786 : vector<1x128xf32> to vector<1x128xbf16>
    %c1_501 = arith.constant 1 : index
    %c0_502 = arith.constant 0 : index
    %c0_503 = arith.constant 0 : index
    %788 = vector.load %arg8[%c1_501, %c0_502, %c0_503] : memref<9x128x256xbf16, #tpu.memory_space<vmem>>, vector<1x128x256xbf16>
    %789 = vector.shape_cast %788 : vector<1x128x256xbf16> to vector<128x256xbf16>
    %cst_504 = arith.constant dense<0.000000e+00> : vector<1x256xf32>
    %790 = tpu.matmul %787, %789, %cst_504 {dimension_numbers = #tpu.dot_dimension_numbers<[1], [0], [0], [1], [0, 0, 1, 1], [], []>} : vector<1x128xbf16>, vector<128x256xbf16>, vector<1x256xf32> -> vector<1x256xf32>
    %791 = arith.addf %785, %790 : vector<1x256xf32>
    %792 = vector.extract_strided_slice %756 {offsets = [2, 0], sizes = [1, 128], strides = [1, 1]} : vector<3x128xf32> to vector<1x128xf32>
    %793 = arith.truncf %792 : vector<1x128xf32> to vector<1x128xbf16>
    %c2_505 = arith.constant 2 : index
    %c0_506 = arith.constant 0 : index
    %c0_507 = arith.constant 0 : index
    %794 = vector.load %arg8[%c2_505, %c0_506, %c0_507] : memref<9x128x256xbf16, #tpu.memory_space<vmem>>, vector<1x128x256xbf16>
    %795 = vector.shape_cast %794 : vector<1x128x256xbf16> to vector<128x256xbf16>
    %cst_508 = arith.constant dense<0.000000e+00> : vector<1x256xf32>
    %796 = tpu.matmul %793, %795, %cst_508 {dimension_numbers = #tpu.dot_dimension_numbers<[1], [0], [0], [1], [0, 0, 1, 1], [], []>} : vector<1x128xbf16>, vector<128x256xbf16>, vector<1x256xf32> -> vector<1x256xf32>
    %797 = arith.addf %791, %796 : vector<1x256xf32>
    %798 = vector.extract_strided_slice %767 {offsets = [0, 0], sizes = [1, 128], strides = [1, 1]} : vector<3x128xf32> to vector<1x128xf32>
    %799 = arith.truncf %798 : vector<1x128xf32> to vector<1x128xbf16>
    %c3_509 = arith.constant 3 : index
    %c0_510 = arith.constant 0 : index
    %c0_511 = arith.constant 0 : index
    %800 = vector.load %arg8[%c3_509, %c0_510, %c0_511] : memref<9x128x256xbf16, #tpu.memory_space<vmem>>, vector<1x128x256xbf16>
    %801 = vector.shape_cast %800 : vector<1x128x256xbf16> to vector<128x256xbf16>
    %cst_512 = arith.constant dense<0.000000e+00> : vector<1x256xf32>
    %802 = tpu.matmul %799, %801, %cst_512 {dimension_numbers = #tpu.dot_dimension_numbers<[1], [0], [0], [1], [0, 0, 1, 1], [], []>} : vector<1x128xbf16>, vector<128x256xbf16>, vector<1x256xf32> -> vector<1x256xf32>
    %803 = arith.addf %797, %802 : vector<1x256xf32>
    %804 = vector.extract_strided_slice %767 {offsets = [1, 0], sizes = [1, 128], strides = [1, 1]} : vector<3x128xf32> to vector<1x128xf32>
    %805 = arith.truncf %804 : vector<1x128xf32> to vector<1x128xbf16>
    %c4_513 = arith.constant 4 : index
    %c0_514 = arith.constant 0 : index
    %c0_515 = arith.constant 0 : index
    %806 = vector.load %arg8[%c4_513, %c0_514, %c0_515] : memref<9x128x256xbf16, #tpu.memory_space<vmem>>, vector<1x128x256xbf16>
    %807 = vector.shape_cast %806 : vector<1x128x256xbf16> to vector<128x256xbf16>
    %cst_516 = arith.constant dense<0.000000e+00> : vector<1x256xf32>
    %808 = tpu.matmul %805, %807, %cst_516 {dimension_numbers = #tpu.dot_dimension_numbers<[1], [0], [0], [1], [0, 0, 1, 1], [], []>} : vector<1x128xbf16>, vector<128x256xbf16>, vector<1x256xf32> -> vector<1x256xf32>
    %809 = arith.addf %803, %808 : vector<1x256xf32>
    %810 = vector.extract_strided_slice %767 {offsets = [2, 0], sizes = [1, 128], strides = [1, 1]} : vector<3x128xf32> to vector<1x128xf32>
    %811 = arith.truncf %810 : vector<1x128xf32> to vector<1x128xbf16>
    %c5_517 = arith.constant 5 : index
    %c0_518 = arith.constant 0 : index
    %c0_519 = arith.constant 0 : index
    %812 = vector.load %arg8[%c5_517, %c0_518, %c0_519] : memref<9x128x256xbf16, #tpu.memory_space<vmem>>, vector<1x128x256xbf16>
    %813 = vector.shape_cast %812 : vector<1x128x256xbf16> to vector<128x256xbf16>
    %cst_520 = arith.constant dense<0.000000e+00> : vector<1x256xf32>
    %814 = tpu.matmul %811, %813, %cst_520 {dimension_numbers = #tpu.dot_dimension_numbers<[1], [0], [0], [1], [0, 0, 1, 1], [], []>} : vector<1x128xbf16>, vector<128x256xbf16>, vector<1x256xf32> -> vector<1x256xf32>
    %815 = arith.addf %809, %814 : vector<1x256xf32>
    %816 = vector.extract_strided_slice %778 {offsets = [0, 0], sizes = [1, 128], strides = [1, 1]} : vector<3x128xf32> to vector<1x128xf32>
    %817 = arith.truncf %816 : vector<1x128xf32> to vector<1x128xbf16>
    %c6_521 = arith.constant 6 : index
    %c0_522 = arith.constant 0 : index
    %c0_523 = arith.constant 0 : index
    %818 = vector.load %arg8[%c6_521, %c0_522, %c0_523] : memref<9x128x256xbf16, #tpu.memory_space<vmem>>, vector<1x128x256xbf16>
    %819 = vector.shape_cast %818 : vector<1x128x256xbf16> to vector<128x256xbf16>
    %cst_524 = arith.constant dense<0.000000e+00> : vector<1x256xf32>
    %820 = tpu.matmul %817, %819, %cst_524 {dimension_numbers = #tpu.dot_dimension_numbers<[1], [0], [0], [1], [0, 0, 1, 1], [], []>} : vector<1x128xbf16>, vector<128x256xbf16>, vector<1x256xf32> -> vector<1x256xf32>
    %821 = arith.addf %815, %820 : vector<1x256xf32>
    %822 = vector.extract_strided_slice %778 {offsets = [1, 0], sizes = [1, 128], strides = [1, 1]} : vector<3x128xf32> to vector<1x128xf32>
    %823 = arith.truncf %822 : vector<1x128xf32> to vector<1x128xbf16>
    %c7_525 = arith.constant 7 : index
    %c0_526 = arith.constant 0 : index
    %c0_527 = arith.constant 0 : index
    %824 = vector.load %arg8[%c7_525, %c0_526, %c0_527] : memref<9x128x256xbf16, #tpu.memory_space<vmem>>, vector<1x128x256xbf16>
    %825 = vector.shape_cast %824 : vector<1x128x256xbf16> to vector<128x256xbf16>
    %cst_528 = arith.constant dense<0.000000e+00> : vector<1x256xf32>
    %826 = tpu.matmul %823, %825, %cst_528 {dimension_numbers = #tpu.dot_dimension_numbers<[1], [0], [0], [1], [0, 0, 1, 1], [], []>} : vector<1x128xbf16>, vector<128x256xbf16>, vector<1x256xf32> -> vector<1x256xf32>
    %827 = arith.addf %821, %826 : vector<1x256xf32>
    %828 = vector.extract_strided_slice %778 {offsets = [2, 0], sizes = [1, 128], strides = [1, 1]} : vector<3x128xf32> to vector<1x128xf32>
    %829 = arith.truncf %828 : vector<1x128xf32> to vector<1x128xbf16>
    %c8_529 = arith.constant 8 : index
    %c0_530 = arith.constant 0 : index
    %c0_531 = arith.constant 0 : index
    %830 = vector.load %arg8[%c8_529, %c0_530, %c0_531] : memref<9x128x256xbf16, #tpu.memory_space<vmem>>, vector<1x128x256xbf16>
    %831 = vector.shape_cast %830 : vector<1x128x256xbf16> to vector<128x256xbf16>
    %cst_532 = arith.constant dense<0.000000e+00> : vector<1x256xf32>
    %832 = tpu.matmul %829, %831, %cst_532 {dimension_numbers = #tpu.dot_dimension_numbers<[1], [0], [0], [1], [0, 0, 1, 1], [], []>} : vector<1x128xbf16>, vector<128x256xbf16>, vector<1x256xf32> -> vector<1x256xf32>
    %833 = arith.addf %827, %832 : vector<1x256xf32>
    %cst_533 = arith.constant 0.000000e+00 : f32
    %834 = vector.broadcast %cst_533 : f32 to vector<1x256xf32>
    %835 = arith.maximumf %833, %834 : vector<1x256xf32>
    %836 = arith.truncf %835 : vector<1x256xf32> to vector<1x256xbf16>
    %c0_534 = arith.constant 0 : index
    %c0_535 = arith.constant 0 : index
    %837 = vector.load %arg10[%c0_534, %c0_535] : memref<256x128xbf16, #tpu.memory_space<vmem>>, vector<256x128xbf16>
    %cst_536 = arith.constant dense<0.000000e+00> : vector<1x128xf32>
    %838 = tpu.matmul %836, %837, %cst_536 {dimension_numbers = #tpu.dot_dimension_numbers<[1], [0], [0], [1], [0, 0, 1, 1], [], []>} : vector<1x256xbf16>, vector<256x128xbf16>, vector<1x128xf32> -> vector<1x128xf32>
    %c0_537 = arith.constant 0 : index
    %c0_538 = arith.constant 0 : index
    %839 = vector.load %arg11[%c0_537, %c0_538] : memref<1x128xf32, #tpu.memory_space<vmem>>, vector<1x128xf32>
    %840 = arith.addf %838, %839 : vector<1x128xf32>
    %cst_539 = arith.constant 0.000000e+00 : f32
    %841 = vector.broadcast %cst_539 : f32 to vector<1x128xf32>
    %842 = arith.maximumf %840, %841 : vector<1x128xf32>
    %843 = arith.truncf %842 : vector<1x128xf32> to vector<1x128xbf16>
    %c0_540 = arith.constant 0 : index
    %c0_541 = arith.constant 0 : index
    %844 = vector.load %arg12[%c0_540, %c0_541] : memref<128x128xbf16, #tpu.memory_space<vmem>>, vector<128x128xbf16>
    %cst_542 = arith.constant dense<0.000000e+00> : vector<1x128xf32>
    %845 = tpu.matmul %843, %844, %cst_542 {dimension_numbers = #tpu.dot_dimension_numbers<[1], [0], [0], [1], [0, 0, 1, 1], [], []>} : vector<1x128xbf16>, vector<128x128xbf16>, vector<1x128xf32> -> vector<1x128xf32>
    %c0_543 = arith.constant 0 : index
    %c0_544 = arith.constant 0 : index
    %846 = vector.load %arg13[%c0_543, %c0_544] : memref<1x128xf32, #tpu.memory_space<vmem>>, vector<1x128xf32>
    %847 = arith.addf %845, %846 : vector<1x128xf32>
    %c0_545 = arith.constant 0 : index
    %c0_546 = arith.constant 0 : index
    %c0_547 = arith.constant 0 : index
    %848 = vector.load %arg14[%c0_545, %c0_546, %c0_547] : memref<1x1x128xf32, #tpu.memory_space<vmem>>, vector<1x1x128xf32>
    %849 = vector.shape_cast %848 : vector<1x1x128xf32> to vector<1x128xf32>
    %850 = vector.shape_cast %847 : vector<1x128xf32> to vector<1x1x128xf32>
    tpu.vector_store %arg14[%c0_545, %c0_546, %c0_547], %850 {strides = array<i32>} : memref<1x1x128xf32, #tpu.memory_space<vmem>>, vector<1x1x128xf32>,
    return
  }
  func.func @transform_0(%arg0: i32) -> (i32, i32, i32) {
    %c0_i32 = arith.constant 0 : i32
    %c0_i32_0 = arith.constant 0 : i32
    %c0_i32_1 = arith.constant 0 : i32
    return %arg0, %c0_i32, %c0_i32_0 : i32, i32, i32
  }
  func.func @transform_1(%arg0: i32) -> (i32, i32) {
    %c0_i32 = arith.constant 0 : i32
    %c0_i32_0 = arith.constant 0 : i32
    %c0_i32_1 = arith.constant 0 : i32
    return %c0_i32, %c0_i32_0 : i32, i32
  }
  func.func @transform_2(%arg0: i32) -> (i32, i32) {
    %c0_i32 = arith.constant 0 : i32
    %c0_i32_0 = arith.constant 0 : i32
    %c0_i32_1 = arith.constant 0 : i32
    return %c0_i32, %c0_i32_0 : i32, i32
  }
  func.func @transform_3(%arg0: i32) -> (i32, i32, i32) {
    %c0_i32 = arith.constant 0 : i32
    %c0_i32_0 = arith.constant 0 : i32
    %c0_i32_1 = arith.constant 0 : i32
    %c0_i32_2 = arith.constant 0 : i32
    return %c0_i32, %c0_i32_0, %c0_i32_1 : i32, i32, i32
  }
  func.func @transform_4(%arg0: i32) -> (i32, i32) {
    %c0_i32 = arith.constant 0 : i32
    %c0_i32_0 = arith.constant 0 : i32
    %c0_i32_1 = arith.constant 0 : i32
    return %c0_i32, %c0_i32_0 : i32, i32
  }
  func.func @transform_5(%arg0: i32) -> (i32, i32, i32) {
    %c0_i32 = arith.constant 0 : i32
    %c0_i32_0 = arith.constant 0 : i32
    %c0_i32_1 = arith.constant 0 : i32
    %c0_i32_2 = arith.constant 0 : i32
    return %c0_i32, %c0_i32_0, %c0_i32_1 : i32, i32, i32
  }
  func.func @transform_6(%arg0: i32) -> (i32, i32) {
    %c0_i32 = arith.constant 0 : i32
    %c0_i32_0 = arith.constant 0 : i32
    %c0_i32_1 = arith.constant 0 : i32
    return %c0_i32, %c0_i32_0 : i32, i32
  }
  func.func @transform_7(%arg0: i32) -> (i32, i32, i32) {
    %c0_i32 = arith.constant 0 : i32
    %c0_i32_0 = arith.constant 0 : i32
    %c0_i32_1 = arith.constant 0 : i32
    %c0_i32_2 = arith.constant 0 : i32
    return %c0_i32, %c0_i32_0, %c0_i32_1 : i32, i32, i32
  }
  func.func @transform_8(%arg0: i32) -> (i32, i32) {
    %c0_i32 = arith.constant 0 : i32
    %c0_i32_0 = arith.constant 0 : i32
    %c0_i32_1 = arith.constant 0 : i32
    return %c0_i32, %c0_i32_0 : i32, i32
  }
  func.func @transform_9(%arg0: i32) -> (i32, i32) {
    %c0_i32 = arith.constant 0 : i32
    %c0_i32_0 = arith.constant 0 : i32
    %c0_i32_1 = arith.constant 0 : i32
    return %c0_i32, %c0_i32_0 : i32, i32
  }
  func.func @transform_10(%arg0: i32) -> (i32, i32) {
    %c0_i32 = arith.constant 0 : i32
    %c0_i32_0 = arith.constant 0 : i32
    %c0_i32_1 = arith.constant 0 : i32
    return %c0_i32, %c0_i32_0 : i32, i32
  }
  func.func @transform_11(%arg0: i32) -> (i32, i32) {
    %c0_i32 = arith.constant 0 : i32
    %c0_i32_0 = arith.constant 0 : i32
    %c0_i32_1 = arith.constant 0 : i32
    return %c0_i32, %c0_i32_0 : i32, i32
  }
  func.func @transform_12(%arg0: i32) -> (i32, i32) {
    %c0_i32 = arith.constant 0 : i32
    %c0_i32_0 = arith.constant 0 : i32
    %c0_i32_1 = arith.constant 0 : i32
    return %c0_i32, %c0_i32_0 : i32, i32
  }
  func.func @transform_13(%arg0: i32) -> (i32, i32, i32) {
    %c0_i32 = arith.constant 0 : i32
    %c0_i32_0 = arith.constant 0 : i32
    %c0_i32_1 = arith.constant 0 : i32
    return %arg0, %c0_i32, %c0_i32_0 : i32, i32, i32
  }
}

</mosaic_0001>

<bundles_post_ra>
// kernel: fmnist_forward_prepared.1
= control target key start
LH: loop header
LB: loop body
LE: loop exit
PB: predicated region body
PF: predicated region fallthrough
CT: control target
= control target key end

     0   :  { %s15796_s0 = inlined_call_operand.vmem [shape: f32[2,1024,32], index: 0, kind: input, shape index: {}]   ;;  %s15797_s1 = inlined_call_operand.vmem [shape: f32[9,32], index: 1, kind: input, shape index: {}]   ;;  %s15798_s2 = inlined_call_operand.vmem [shape: f32[1,32], index: 2, kind: input, shape index: {}]   ;;  %s15799_s3 = inlined_call_operand.vmem [shape: bf16[9,32,64], index: 3, kind: input, shape index: {}]   ;;  %s15800_s4 = inlined_call_operand.vmem [shape: f32[1,64], index: 4, kind: input, shape index: {}]   ;;  %s15801_s5 = inlined_call_operand.vmem [shape: bf16[9,64,128], index: 5, kind: input, shape index: {}]   ;;  %s15802_s6 = inlined_call_operand.vmem [shape: f32[1,128], index: 6, kind: input, shape index: {}]   ;;  %s15803_s7 = inlined_call_operand.vmem [shape: bf16[9,128,256], index: 7, kind: input, shape index: {}]   ;;  %s15804_s8 = inlined_call_operand.vmem [shape: f32[1,256], index: 8, kind: input, shape index: {}]   ;;  %s15805_s9 = inlined_call_operand.vmem [shape: bf16[256,128], index: 9, kind: input, shape index: {}]   ;;  %s15806_s10 = inlined_call_operand.vmem [shape: f32[1,128], index: 10, kind: input, shape index: {}]   ;;  %s15807_s11 = inlined_call_operand.vmem [shape: bf16[128,128], index: 11, kind: input, shape index: {}]   ;;  %s15808_s12 = inlined_call_operand.vmem [shape: f32[1,128], index: 12, kind: input, shape index: {}]   ;;  %s15809_s13 = inlined_call_operand.hbm [shape: f32[2,1,128], index: 13, kind: output, shape index: {}]  }
   0x1   :  { %15957 = sst [smem:[#allocation68_spill]] %s15796_s0 }
   0x2   :  { %15958 = sst [smem:[#allocation69_spill]] %s15797_s1 }
   0x3   :  { %15959 = sst [smem:[#allocation70_spill]] %s15798_s2 }
   0x4   :  { %15960 = sst [smem:[#allocation71_spill]] %s15799_s3 }
   0x5   :  { %18 = vsyncpa [#allocation8], 0 }
   0x6   :  { %20 = vsyncpa [#allocation8 + $0x1], 0  ;;  %s9808_s25 = smov 0   ;;  %s9810_s26 = smov 0  }
   0x7   :  { %s9812_s27 = smov 0   ;;  %s9814_s28 = smov 0  }
   0x8 LB: > { %s9829_s29 = sadd.s32 4294967295, %s9735_s28   ;;  %s7997_s30 = sadd.s32 4294967294, %s9735_s28   ;;  %s9735_s28 = sphi %s9814_s28, %s16281_s28   ;;  %s9731_s27 = sphi %s9812_s27, %s16280_s27   ;;  %s9727_s26 = sphi %s9810_s26, %s16279_s26   ;;  %s9723_s25 = sphi %s9808_s25, %s16278_s25  }
   0x9   : > { %s9833_s14 = sadd.s32 1, %s9735_s28   ;;  %s311_s15 = sadd.s32 1, %s9731_s27 }
   0xa   : > { %s308_s16 = ssub.s32 %s9735_s28, %s9833_s14  ;;  %p321_p0 = scmp.ne.s32.totalorder %s9731_s27, %s9727_s26 }
   0xb   : > { %p309_p1 = scmp.eq.s32.totalorder %s308_s16, 0  ;;  %p322_p2 = scmp.eq.s32.totalorder %s9829_s29, 1 }
   0xc   : > { %p327_p3 = scmp.ne.s32.totalorder %s9727_s26, %s9723_s25  ;;  %p328_p4 = scmp.eq.s32.totalorder %s7997_s30, 1 }
   0xd   : > { %s9844_s17 = scalar_select %p309_p1, %s9731_s27, %s311_s15  }
   0xe   : > { %p9846_p5 = por %p322_p2, %p321_p0  ;;  %p9850_p6 = por %p328_p4, %p327_p3 }
   0xf   : > { %p8000_p7 = scmp.ge.s32.totalorder %s9735_s28, 1  ;;  %p390_p8 = scmp.lt.s32.totalorder %s9735_s28, 3 }
  0x11   : > { %p391_p9 = pnand %p8000_p7, %p390_p8 }
  0x13   : > { %394 = sbr.rel (%p391_p9) target bundleno = 2055 (0x807), region = 72 }
  0x18   : > { %s15963_s3 = sld [smem:[#allocation71_spill]]  ;;  %vm439_vm0 = vcmask 261120   ;;  %p433_p10 = scmp.lt.s32.totalorder %s9829_s29, 1  ;;  %v15852_v2 = vmov 0.0   ;;  %vm900_vm1 = vcmask 259072   ;;  %vm476_vm2 = vcmask 523264  }
  0x19   : > { %s15964_s1 = sld [smem:[#allocation69_spill]]  ;;  %442 = vst.msk [vmem:[#allocation3 + $0x10] sm:$0xff] %vm439_vm0, %v15852_v2  ;;  %vm5189_vm3 = vcmask 522240   ;;  %vm6626_vm4 = vcmask 1040384   ;;  %s9693_s30 = scalar_lea.hbm %s15809_s13, 2 }
  0x1a   : > { %443 = vst.msk [vmem:[#allocation3 + $0x18] sm:$0xff] %vm439_vm0, %v15852_v2  ;;  %s434_s15 = scalar_select %p433_p10, %s9829_s29, 1 }
  0x1b   : > { %441 = vst.msk [vmem:[#allocation3 + $0x8] sm:$0xff] %vm439_vm0, %v15852_v2  ;;  %s15968_s0 = sld [smem:[#allocation68_spill]] }
  0x1c   : > { %s9306_s16 = sshll.u32 %s434_s15, 10  ;;  %444 = vst.msk [vmem:[#allocation3 + $0x20] sm:$0xff] %vm439_vm0, %v15852_v2  ;;  %s16029_s2 = sld [smem:[#allocation70_spill]] }
  0x1d   : > { %445 = vst.msk [vmem:[#allocation3 + $0x28] sm:$0xff] %vm439_vm0, %v15852_v2  ;;  %s7938_s15 = scalar_lea.hbm %s15809_s13, %s9829_s29 }
  0x1e   : > { %v9310_v0 = vld [vmem:[%s15963_s3 + $0x18] sm:$0xff]  ;;  %v9309_v3 = vld [vmem:[%s15963_s3 + $0x10] sm:$0xff]  ;;  %446 = vst.msk [vmem:[#allocation3 + $0x30] sm:$0xff] %vm439_vm0, %v15852_v2 }
  0x1f   : > { %v9863_v1 = vld [vmem:[%s15964_s1] sm:$0xff]  ;;  %3484 = vmatpush.bf16.msra.mxu0 %v9310_v0  ;;  %9529 = vmatpush.bf16.msra.mxu1 %v9310_v0  ;;  %447 = vst.msk [vmem:[#allocation3 + $0x38] sm:$0xff] %vm439_vm0, %v15852_v2 }
  0x20   : > { %15965 = vst [vmem:[#allocation10_spill] sm:$0xff] %v9863_v1  ;;  %v9874_v4 = vperm.slane %v9863_v1, 0  ;;  %v9879_v5 = vperm.slane %v9863_v1, 3  ;;  %v9894_v9 = vperm.slane %v9863_v1, 1  ;;  %v9897_v10 = vperm.slane %v9863_v1, 2  ;;  %v3377_v18 = vld [vmem:[#allocation3 + $0x10] sm:$0xff] }
  0x21   : > { %s9886_s22 = scalar_lea.vmem %s15968_s0, %s9306_s16  ;;  %v9914_v17 = vperm.slane %v9863_v1, 4  ;;  %v3378_v25 = vld [vmem:[#allocation3 + $0x18] sm:$0xff]  ;;  %448 = vst.msk [vmem:[#allocation3 + $0x40] sm:$0xff] %vm439_vm0, %v15852_v2  ;;  %v10020_v52 = vperm.slane %v9863_v1, 5  ;;  %v10035_v59 = vperm.slane %v9863_v1, 6 }
  0x22   : > { %15966 = vst [vmem:[#allocation11_spill] sm:$0xff] %v9874_v4  ;;  %v502_v6 = vld [vmem:[%s9886_s22 + $0x1f] sm:$0xff]  ;;  %v503_v7 = vld [vmem:[%s9886_s22 + $0x27] sm:$0xff]  ;;  %v504_v8 = vld [vmem:[%s9886_s22 + $0x2f] sm:$0xff]  ;;  %v3405_v32 = vpack.c.bf16 %v3378_v25, %v3377_v18 }
  0x23   : > { %15967 = vst [vmem:[#allocation12_spill] sm:$0xff] %v9879_v5  ;;  %3485 = vmatpush.bf16.msra.mxu0 %v9309_v3  ;;  %9530 = vmatpush.bf16.msra.mxu1 %v9309_v3  ;;  %v505_v11 = vld [vmem:[%s9886_s22 + $0x37] sm:$0xff]  ;;  %v506_v12 = vld [vmem:[%s9886_s22 + $0x3f] sm:$0xff]  ;;  %v507_v13 = vld [vmem:[%s9886_s22 + $0x47] sm:$0xff]  ;;  %v9905_v14 = vmul.f32 %v9874_v4, %v502_v6  ;;  %v9908_v15 = vmul.f32 %v9874_v4, %v503_v7 }
  0x24   : > { %15969 = vst [vmem:[#allocation13_spill] sm:$0xff] %v9894_v9  ;;  %v9911_v16 = vmul.f32 %v9874_v4, %v504_v8  ;;  %v508_v19 = vld [vmem:[%s9886_s22 + $0x4f] sm:$0xff]  ;;  %v509_v20 = vld [vmem:[%s9886_s22 + $0x57] sm:$0xff]  ;;  %v9921_v21 = vmul.f32 %v9874_v4, %v505_v11  ;;  %v9924_v22 = vmul.f32 %v9874_v4, %v506_v12  ;;  %v9927_v23 = vmul.f32 %v9874_v4, %v507_v13  ;;  %v9935_v26 = vld [vmem:[%s9886_s22 + $0x5f] sm:$0xff] }
  0x25   : > { %15970 = vst [vmem:[#allocation14_spill] sm:$0xff] %v9897_v10  ;;  %v9930_v24 = vmul.f32 %v9879_v5, %v506_v12  ;;  %v9938_v27 = vld [vmem:[%s9886_s22 + $0x67] sm:$0xff]  ;;  %v9941_v28 = vmul.f32 %v9874_v4, %v508_v19  ;;  %v9944_v29 = vmul.f32 %v9874_v4, %v509_v20  ;;  %v9947_v30 = vmul.f32 %v9879_v5, %v507_v13  ;;  %v9955_v33 = vld [vmem:[%s9886_s22 + $0x6f] sm:$0xff]  ;;  %v9958_v34 = vld [vmem:[%s9886_s22 + $0x77] sm:$0xff] }
  0x26   : > { %15971 = vst [vmem:[#allocation15_spill] sm:$0xff] %v9914_v17  ;;  %v9950_v31 = vmul.f32 %v9879_v5, %v508_v19  ;;  %v9961_v35 = vld [vmem:[%s9886_s22 + $0x7f] sm:$0xff]  ;;  %v9965_v36 = vmul.f32 %v9874_v4, %v9935_v26  ;;  %v9969_v37 = vmul.f32 %v9874_v4, %v9938_v27  ;;  %v9972_v38 = vmul.f32 %v9879_v5, %v509_v20  ;;  %v9977_v39 = vld [vmem:[%s9886_s22 + $0x87] sm:$0xff]  ;;  %v9980_v40 = vld [vmem:[%s9886_s22 + $0x8f] sm:$0xff] }
  0x27   : > { %15972 = vst [vmem:[#allocation16_spill] sm:$0xff] %v9935_v26  ;;  %v9983_v41 = vld [vmem:[%s9886_s22 + $0x97] sm:$0xff]  ;;  %v9987_v42 = vmul.f32 %v9874_v4, %v9955_v33  ;;  %v9991_v43 = vmul.f32 %v9874_v4, %v9958_v34  ;;  %v9995_v44 = vmul.f32 %v9874_v4, %v9961_v35  ;;  %v9999_v45 = vmul.f32 %v9879_v5, %v9935_v26  ;;  %v535_v49 = vld [vmem:[%s9886_s22 + $0x20] sm:$0xff]  ;;  %v536_v50 = vld [vmem:[%s9886_s22 + $0x28] sm:$0xff] }
  0x28   : > { %15973 = vst [vmem:[#allocation17_spill] sm:$0xff] %v9938_v27  ;;  %8015 = vmatmul.msk.bf16.vlgmr.msra.gmra.mxu0 %vm439_vm0, %v3405_v32  ;;  %v10006_v46 = vmul.f32 %v9874_v4, %v9977_v39  ;;  %v10010_v47 = vmul.f32 %v9874_v4, %v9980_v40  ;;  %v10014_v48 = vmul.f32 %v9874_v4, %v9983_v41  ;;  %v537_v51 = vld [vmem:[%s9886_s22 + $0x30] sm:$0xff]  ;;  %v538_v53 = vld [vmem:[%s9886_s22 + $0x38] sm:$0xff]  ;;  %v10026_v54 = vld [vmem:[%s9886_s22 + $0x40] sm:$0xff] }
  0x29   : > { %449 = vst.msk [vmem:[#allocation3 + $0x48] sm:$0xff] %vm439_vm0, %v15852_v2  ;;  %v10029_v55 = vld [vmem:[%s9886_s22 + $0x48] sm:$0xff]  ;;  %v552_v56 = vmul.f32 %v9894_v9, %v535_v49  ;;  %v553_v57 = vmul.f32 %v9894_v9, %v536_v50  ;;  %v554_v58 = vmul.f32 %v9894_v9, %v537_v51  ;;  %v10040_v60 = vld [vmem:[%s9886_s22 + $0x50] sm:$0xff]  ;;  %v10043_v61 = vld [vmem:[%s9886_s22 + $0x58] sm:$0xff]  ;;  %v555_v63 = vmul.f32 %v9894_v9, %v538_v53 }
  0x2a   : > { %15974 = vst [vmem:[#allocation18_spill] sm:$0xff] %v9955_v33  ;;  %v10046_v62 = vld [vmem:[%s9886_s22 + $0x60] sm:$0xff]  ;;  %v556_v0 = vmul.f32 %v9894_v9, %v10026_v54  ;;  %v557_v3 = vmul.f32 %v9894_v9, %v10029_v55  ;;  %v10055_v6 = vmul.f32 %v9879_v5, %v9938_v27  ;;  %v10060_v7 = vld [vmem:[%s9886_s22 + $0x68] sm:$0xff]  ;;  %v10063_v8 = vld [vmem:[%s9886_s22 + $0x70] sm:$0xff]  ;;  %v558_v12 = vmul.f32 %v9894_v9, %v10040_v60 }
  0x2b   : > { %450 = vst.msk [vmem:[#allocation3 + $0x50] sm:$0xff] %vm439_vm0, %v15852_v2  ;;  %v10066_v11 = vld [vmem:[%s9886_s22 + $0x78] sm:$0xff]  ;;  %v559_v13 = vmul.f32 %v9894_v9, %v10043_v61  ;;  %v560_v18 = vmul.f32 %v9894_v9, %v10046_v62  ;;  %v10076_v19 = vmul.f32 %v9879_v5, %v9955_v33  ;;  %v10081_v20 = vld [vmem:[%s9886_s22 + $0x80] sm:$0xff]  ;;  %v10084_v25 = vld [vmem:[%s9886_s22 + $0x88] sm:$0xff]  ;;  %v561_v49 = vmul.f32 %v9894_v9, %v10060_v7 }
  0x2c   : > { %451 = vst.msk [vmem:[#allocation3 + $0x58] sm:$0xff] %vm439_vm0, %v15852_v2  ;;  %v10087_v32 = vld [vmem:[%s9886_s22 + $0x90] sm:$0xff]  ;;  %v562_v50 = vmul.f32 %v9894_v9, %v10063_v8  ;;  %v563_v51 = vmul.f32 %v9894_v9, %v10066_v11  ;;  %v568_v53 = vadd.f32 %v552_v56, %v9905_v14  ;;  %v10099_v4 = vld [vmem:[%s9886_s22 + $0x98] sm:$0xff]  ;;  %v564_v1 = vmul.f32 %v9894_v9, %v10081_v20 }
  0x2d   : > { %15975 = vst [vmem:[#allocation19_spill] sm:$0xff] %v10020_v52  ;;  %v565_v33 = vmul.f32 %v9894_v9, %v10084_v25  ;;  %v566_v27 = vmul.f32 %v9894_v9, %v10087_v32  ;;  %v567_v14 = vmul.f32 %v9894_v9, %v10099_v4  ;;  %v570_v56 = vadd.f32 %v554_v58, %v9911_v16  ;;  %v586_v58 = vld [vmem:[%s9886_s22 + $0x31] sm:$0xff] }
  0x2e   : > { %452 = vst.msk [vmem:[#allocation3 + $0x60] sm:$0xff] %vm439_vm0, %v15852_v2  ;;  %v571_v26 = vadd.f32 %v555_v63, %v9921_v21  ;;  %v572_v52 = vadd.f32 %v556_v0, %v9924_v22  ;;  %v575_v9 = vadd.f32 %v559_v13, %v9944_v29  ;;  %v576_v16 = vadd.f32 %v560_v18, %v9965_v36  ;;  %v587_v21 = vld [vmem:[%s9886_s22 + $0x39] sm:$0xff]  ;;  %v10126_v22 = vld [vmem:[%s9886_s22 + $0x41] sm:$0xff]  ;;  %v10135_v29 = vld [vmem:[%s9886_s22 + $0x49] sm:$0xff] }
  0x2f   : > { %15976 = vst [vmem:[#allocation20_spill] sm:$0xff] %v10035_v59  ;;  %v569_v59 = vadd.f32 %v553_v57, %v9908_v15  ;;  %v573_v15 = vadd.f32 %v557_v3, %v9927_v23  ;;  %v574_v57 = vadd.f32 %v558_v12, %v9941_v28  ;;  %v577_v63 = vadd.f32 %v561_v49, %v9969_v37  ;;  %v10138_v36 = vld [vmem:[%s9886_s22 + $0x51] sm:$0xff]  ;;  %v10141_v3 = vld [vmem:[%s9886_s22 + $0x59] sm:$0xff]  ;;  %v10155_v12 = vld [vmem:[%s9886_s22 + $0x69] sm:$0xff] }
  0x30   : > { %453 = vst.msk [vmem:[#allocation3 + $0x68] sm:$0xff] %vm439_vm0, %v15852_v2  ;;  %v578_v0 = vadd.f32 %v562_v50, %v9987_v42  ;;  %v579_v23 = vadd.f32 %v563_v51, %v9991_v43  ;;  %v580_v28 = vadd.f32 %v564_v1, %v9995_v44  ;;  %v581_v37 = vadd.f32 %v565_v33, %v10006_v46  ;;  %v10152_v44 = vld [vmem:[%s9886_s22 + $0x61] sm:$0xff]  ;;  %v10184_v51 = vld [vmem:[%s9886_s22 + $0x89] sm:$0xff] }
  0x31   : > { %454 = vst.msk [vmem:[#allocation3 + $0x70] sm:$0xff] %vm439_vm0, %v15852_v2  ;;  %v582_v42 = vadd.f32 %v566_v27, %v10010_v47  ;;  %v583_v43 = vadd.f32 %v567_v14, %v10014_v48  ;;  %v603_v33 = vmul.f32 %v9897_v10, %v586_v58  ;;  %v604_v27 = vmul.f32 %v9897_v10, %v587_v21  ;;  %v10165_v47 = vld [vmem:[%s9886_s22 + $0x71] sm:$0xff]  ;;  %v10168_v48 = vld [vmem:[%s9886_s22 + $0x79] sm:$0xff]  ;;  %v10171_v18 = vld [vmem:[%s9886_s22 + $0x81] sm:$0xff] }
  0x32   : > { %15977 = vst [vmem:[#allocation21_spill] sm:$0xff] %v10060_v7  ;;  %v605_v46 = vmul.f32 %v9897_v10, %v10126_v22  ;;  %v608_v49 = vmul.f32 %v9897_v10, %v10141_v3  ;;  %v609_v50 = vmul.f32 %v9897_v10, %v10152_v44  ;;  %v10187_v14 = vld [vmem:[%s9886_s22 + $0x91] sm:$0xff]  ;;  %v10190_v58 = vld [vmem:[%s9886_s22 + $0x99] sm:$0xff]  ;;  %v610_v21 = vmul.f32 %v9897_v10, %v10155_v12 }
  0x33   : > { %15978 = vst [vmem:[#allocation22_spill] sm:$0xff] %v10063_v8 }
  0x34   : > { %15979 = vst [vmem:[#allocation23_spill] sm:$0xff] %v10066_v11  ;;  %v10212_v7 = vadd.f32 %v609_v50, %v576_v16 }
  0x35   : > { %455 = vst.msk [vmem:[#allocation3 + $0x78] sm:$0xff] %vm439_vm0, %v15852_v2 }
  0x36   : > { %15980 = vst [vmem:[#allocation24_spill] sm:$0xff] %v10081_v20  ;;  %v585_v20 = vld [vmem:[%s9886_s22 + $0x29] sm:$0xff] }
  0x37   : > { %15981 = vst [vmem:[#allocation25_spill] sm:$0xff] %v10084_v25  ;;  %v584_v25 = vld [vmem:[%s9886_s22 + $0x21] sm:$0xff]  ;;  %v602_v13 = vmul.f32 %v9897_v10, %v585_v20  ;;  %v607_v20 = vmul.f32 %v9897_v10, %v10138_v36 }
  0x38   : > { %15982 = vst [vmem:[#allocation26_spill] sm:$0xff] %v10087_v32  ;;  %v601_v1 = vmul.f32 %v9897_v10, %v584_v25  ;;  %v606_v25 = vmul.f32 %v9897_v10, %v10135_v29  ;;  %v620_v32 = vadd.f32 %v604_v27, %v571_v26 }
  0x39   : > { %456 = vst.msk [vmem:[#allocation3 + $0x80] sm:$0xff] %vm439_vm0, %v15852_v2  ;;  %v623_v8 = vadd.f32 %v607_v20, %v574_v57  ;;  %v10246_v57 = vmul.f32 %v9879_v5, %v9980_v40 }
  0x3a   : > { %15983 = vst [vmem:[#allocation27_spill] sm:$0xff] %v10099_v4  ;;  %v611_v4 = vmul.f32 %v9897_v10, %v10165_v47  ;;  %v622_v11 = vadd.f32 %v606_v25, %v573_v15  ;;  %v10242_v15 = vmul.f32 %v9879_v5, %v9977_v39  ;;  %v16007_v25 = vld [vmem:[#allocation19_spill] sm:$0xff] }
  0x3b   : > { %457 = vst.msk [vmem:[#allocation3 + $0x88] sm:$0xff] %vm439_vm0, %v15852_v2 }
  0x3c   : > { %458 = vst.msk [vmem:[#allocation3 + $0x90] sm:$0xff] %vm439_vm0, %v15852_v2 }
  0x3d   : > { %15984 = vst [vmem:[#allocation28_spill] sm:$0xff] %v10126_v22  ;;  %v617_v22 = vadd.f32 %v601_v1, %v568_v53  ;;  %v10218_v53 = vadd.f32 %v611_v4, %v578_v0  ;;  %v10238_v4 = vmul.f32 %v9879_v5, %v9961_v35 }
  0x3e   : > { %459 = vst.msk [vmem:[#allocation3 + $0x98] sm:$0xff] %vm439_vm0, %v15852_v2 }
  0x3f   : > { %15985 = vst [vmem:[#allocation29_spill] sm:$0xff] %v10135_v29  ;;  %v615_v29 = vmul.f32 %v9897_v10, %v10187_v14  ;;  %v654_v16 = vadd.f32 %v9930_v24, %v617_v22  ;;  %v675_v24 = vmul.f32 %v9914_v17, %v10026_v54  ;;  %v10275_v54 = vmul.f32 %v9879_v5, %v9983_v41  ;;  %v16002_v22 = vld [vmem:[#allocation25_spill] sm:$0xff] }
  0x40   : > { %15986 = vst [vmem:[#allocation30_spill] sm:$0xff] %v10138_v36  ;;  %v614_v36 = vmul.f32 %v9897_v10, %v10184_v51 }
  0x41   : > { %15987 = vst [vmem:[#allocation31_spill] sm:$0xff] %v10141_v3  ;;  %v612_v3 = vmul.f32 %v9897_v10, %v10168_v48 }
  0x42   : > { %460 = vst.msk [vmem:[#allocation3 + $0xa0] sm:$0xff] %vm439_vm0, %v15852_v2  ;;  %v10226_v26 = vadd.f32 %v614_v36, %v581_v37  ;;  %v660_v36 = vadd.f32 %v10076_v19, %v623_v8  ;;  %v10291_v37 = vmul.f32 %v9914_v17, %v16002_v22 }
  0x43   : > { %461 = vst.msk [vmem:[#allocation3 + $0xa8] sm:$0xff] %vm439_vm0, %v15852_v2  ;;  %v10220_v1 = vadd.f32 %v612_v3, %v579_v23  ;;  %v657_v23 = vadd.f32 %v9972_v38, %v620_v32  ;;  %v678_v38 = vmul.f32 %v9914_v17, %v10043_v61  ;;  %v16000_v61 = vld [vmem:[#allocation24_spill] sm:$0xff] }
  0x44   : > { %15988 = vst [vmem:[#allocation32_spill] sm:$0xff] %v10152_v44  ;;  %v613_v44 = vmul.f32 %v9897_v10, %v10171_v18  ;;  %v10287_v32 = vmul.f32 %v9914_v17, %v16000_v61 }
  0x45   : > { %15989 = vst [vmem:[#allocation33_spill] sm:$0xff] %v10155_v12  ;;  %v616_v12 = vmul.f32 %v9897_v10, %v10190_v58  ;;  %v10216_v10 = vadd.f32 %v610_v21, %v577_v63 }
  0x46   : > { %462 = vst.msk [vmem:[#allocation3 + $0xb0] sm:$0xff] %vm439_vm0, %v15852_v2 }
  0x47   : > { %15990 = vst [vmem:[#allocation34_spill] sm:$0xff] %v10165_v47  ;;  %v619_v47 = vadd.f32 %v603_v33, %v570_v56  ;;  %v645_v56 = vmul.f32 %v9879_v5, %v9958_v34  ;;  %v694_v33 = vadd.f32 %v678_v38, %v657_v23 }
  0x48   : > { %15991 = vst [vmem:[#allocation35_spill] sm:$0xff] %v10168_v48  ;;  %v618_v48 = vadd.f32 %v602_v13, %v569_v59  ;;  %v10222_v59 = vadd.f32 %v613_v44, %v580_v28  ;;  %v691_v44 = vadd.f32 %v675_v24, %v654_v16 }
  0x49   : > { %15992 = vst [vmem:[#allocation36_spill] sm:$0xff] %v10171_v18  ;;  %v621_v18 = vadd.f32 %v605_v46, %v572_v52  ;;  %v10228_v52 = vadd.f32 %v615_v29, %v582_v42  ;;  %v656_v0 = vadd.f32 %v9950_v31, %v619_v47  ;;  %v659_v29 = vadd.f32 %v10055_v6, %v622_v11  ;;  %v15997_v6 = vld [vmem:[#allocation21_spill] sm:$0xff]  ;;  %v16004_v42 = vld [vmem:[#allocation26_spill] sm:$0xff] }
  0x4a   : > { %463 = vst.msk [vmem:[#allocation3 + $0xb8] sm:$0xff] %vm439_vm0, %v15852_v2  ;;  %v655_v63 = vadd.f32 %v9947_v30, %v618_v48  ;;  %v676_v30 = vmul.f32 %v9914_v17, %v10029_v55  ;;  %v677_v31 = vmul.f32 %v9914_v17, %v10040_v60  ;;  %v680_v8 = vmul.f32 %v9914_v17, %v15997_v6  ;;  %v15998_v55 = vld [vmem:[#allocation22_spill] sm:$0xff]  ;;  %v15999_v60 = vld [vmem:[#allocation23_spill] sm:$0xff] }
  0x4b   : > { %15993 = vst [vmem:[#allocation37_spill] sm:$0xff] %v10184_v51  ;;  %v624_v51 = vadd.f32 %v608_v49, %v575_v9  ;;  %v10230_v9 = vadd.f32 %v616_v12, %v583_v43  ;;  %v658_v28 = vadd.f32 %v9999_v45, %v621_v18  ;;  %v679_v45 = vmul.f32 %v9914_v17, %v10046_v62  ;;  %v16006_v18 = vld [vmem:[#allocation28_spill] sm:$0xff]  ;;  %v16008_v49 = vld [vmem:[#allocation29_spill] sm:$0xff] }
  0x4c   : > { %464 = vst.msk [vmem:[#allocation3 + $0xc0] sm:$0xff] %vm439_vm0, %v15852_v2  ;;  %v681_v11 = vmul.f32 %v9914_v17, %v15998_v55  ;;  %v682_v19 = vmul.f32 %v9914_v17, %v15999_v60  ;;  %v10295_v43 = vmul.f32 %v9914_v17, %v16004_v42  ;;  %v692_v12 = vadd.f32 %v676_v30, %v655_v63  ;;  %v16011_v16 = vld [vmem:[#allocation32_spill] sm:$0xff] }
  0x4d   : > { %465 = vst.msk [vmem:[#allocation3 + $0xc8] sm:$0xff] %vm439_vm0, %v15852_v2  ;;  %v661_v3 = vadd.f32 %v645_v56, %v624_v51  ;;  %v693_v13 = vadd.f32 %v677_v31, %v656_v0  ;;  %v695_v27 = vadd.f32 %v679_v45, %v658_v28  ;;  %v696_v46 = vadd.f32 %v680_v8, %v659_v29  ;;  %v16009_v51 = vld [vmem:[#allocation30_spill] sm:$0xff]  ;;  %v16010_v56 = vld [vmem:[#allocation31_spill] sm:$0xff]  ;;  %v16014_v28 = vld [vmem:[#allocation33_spill] sm:$0xff] }
  0x4e   : > { %466 = vst.msk [vmem:[#allocation3 + $0xd0] sm:$0xff] %vm439_vm0, %v15852_v2  ;;  %v697_v47 = vadd.f32 %v681_v11, %v660_v36  ;;  %v712_v20 = vmul.f32 %v16007_v25, %v16006_v18  ;;  %v713_v50 = vmul.f32 %v16007_v25, %v16008_v49  ;;  %v714_v21 = vmul.f32 %v16007_v25, %v16009_v51  ;;  %v16012_v0 = vld [vmem:[#allocation27_spill] sm:$0xff]  ;;  %v16015_v36 = vld [vmem:[#allocation34_spill] sm:$0xff] }
  0x4f   : > { %467 = vst.msk [vmem:[#allocation3 + $0xd8] sm:$0xff] %vm439_vm0, %v15852_v2  ;;  %v698_v48 = vadd.f32 %v682_v19, %v661_v3  ;;  %v716_v63 = vmul.f32 %v16007_v25, %v16011_v16  ;;  %v10309_v23 = vmul.f32 %v9914_v17, %v16012_v0  ;;  %v717_v29 = vmul.f32 %v16007_v25, %v16014_v28  ;;  %v16016_v24 = vld [vmem:[#allocation35_spill] sm:$0xff]  ;;  %v16023_v17 = vld [vmem:[#allocation20_spill] sm:$0xff] }
  0x50   : > { %468 = vst.msk [vmem:[#allocation3 + $0xe0] sm:$0xff] %vm439_vm0, %v15852_v2  ;;  %v718_v3 = vmul.f32 %v16007_v25, %v16015_v36  ;;  %v719_v30 = vmul.f32 %v16007_v25, %v16016_v24  ;;  %v16017_v31 = vld [vmem:[#allocation36_spill] sm:$0xff]  ;;  %v10327_v11 = vmul.f32 %v16007_v25, %v10187_v14  ;;  %v728_v19 = vadd.f32 %v712_v20, %v691_v44  ;;  %v16027_v20 = vld [vmem:[#allocation10_spill] sm:$0xff] }
  0x51   : > { %15994 = vst [vmem:[#allocation38_spill] sm:$0xff] %v10226_v26  ;;  %v10319_v38 = vmul.f32 %v16007_v25, %v16017_v31  ;;  %v729_v18 = vadd.f32 %v713_v50, %v692_v12  ;;  %v730_v49 = vadd.f32 %v714_v21, %v693_v13  ;;  %v16025_v26 = vld [vmem:[#allocation18_spill] sm:$0xff]  ;;  %v753_v44 = vmul.f32 %v16023_v17, %v9961_v35 }
  0x52   : > { %15995 = vst [vmem:[#allocation39_spill] sm:$0xff] %v10228_v52  ;;  %v16019_v45 = vld [vmem:[#allocation37_spill] sm:$0xff]  ;;  %v755_v12 = vmul.f32 %v16023_v17, %v9980_v40  ;;  %v10351_v50 = vperm.slane %v16027_v20, 7 }
  0x53   : > { %15996 = vst [vmem:[#allocation40_spill] sm:$0xff] %v10230_v9  ;;  %v10323_v8 = vmul.f32 %v16007_v25, %v16019_v45 }
  0x54   : > { %469 = vst.msk [vmem:[#allocation3 + $0xe8] sm:$0xff] %vm439_vm0, %v15852_v2  ;;  %v789_v21 = vmul.f32 %v10351_v50, %v15999_v60 }
  0x55   : > { %470 = vst.msk [vmem:[#allocation3 + $0xf0] sm:$0xff] %vm439_vm0, %v15852_v2 }
  0x56   : > { %471 = vst.msk [vmem:[#allocation3 + $0xf8] sm:$0xff] %vm439_vm0, %v15852_v2 }
  0x57   : > { %472 = vst.msk [vmem:[#allocation3 + $0x100] sm:$0xff] %vm439_vm0, %v15852_v2 }
  0x58   : > { %473 = vst.msk [vmem:[#allocation3 + $0x108] sm:$0xff] %vm439_vm0, %v15852_v2 }
  0x59   : > { %474 = vst.msk [vmem:[#allocation3 + $0x110] sm:$0xff] %vm439_vm0, %v15852_v2  ;;  %v715_v2 = vmul.f32 %v16007_v25, %v16010_v56  ;;  %v732_v56 = vadd.f32 %v716_v63, %v695_v27  ;;  %v791_v63 = vmul.f32 %v10351_v50, %v16002_v22 }
  0x5a   : > { %16001 = vst [vmem:[#allocation21_spill] sm:$0xff] %v10287_v32  ;;  %v16022_v32 = vld [vmem:[#allocation16_spill] sm:$0xff] }
  0x5b   : > { %16003 = vst [vmem:[#allocation22_spill] sm:$0xff] %v10291_v37  ;;  %v731_v51 = vadd.f32 %v715_v2, %v694_v33  ;;  %v735_v37 = vadd.f32 %v719_v30, %v698_v48  ;;  %v749_v9 = vmul.f32 %v16023_v17, %v16022_v32  ;;  %v10342_v2 = vld [vmem:[%s15964_s1 + $0x8] ss:$0 sm:$0xff]  ;;  %v754_v32 = vmul.f32 %v16023_v17, %v9977_v39 }
  0x5c   : > { %16005 = vst [vmem:[#allocation23_spill] sm:$0xff] %v10295_v43  ;;  %v734_v43 = vadd.f32 %v718_v3, %v697_v47  ;;  %v823_v39 = vmul.f32 %v10342_v2, %v16011_v16  ;;  %v824_v40 = vmul.f32 %v10342_v2, %v16014_v28  ;;  %v790_v16 = vmul.f32 %v10351_v50, %v16000_v61  ;;  %v501_v61 = vld [vmem:[%s16029_s2] sm:$0x1] }
  0x5d   : > { %16013 = vst [vmem:[#allocation24_spill] sm:$0xff] %v10309_v23  ;;  %v733_v23 = vadd.f32 %v717_v29, %v696_v46  ;;  %v765_v13 = vadd.f32 %v749_v9, %v728_v19  ;;  %v769_v46 = vadd.f32 %v753_v44, %v732_v56  ;;  %v786_v9 = vmul.f32 %v10351_v50, %v10046_v62  ;;  %v10396_v56 = vld [vmem:[%s9886_s22 + $0xa7] sm:$0xff] }
  0x5e   : > { %16018 = vst [vmem:[#allocation25_spill] sm:$0xff] %v10319_v38  ;;  %v16024_v38 = vld [vmem:[#allocation17_spill] sm:$0xff]  ;;  %v771_v47 = vadd.f32 %v755_v12, %v734_v43  ;;  %v788_v43 = vmul.f32 %v10351_v50, %v15998_v55  ;;  %v793_v62 = vmul.f32 %v10351_v50, %v16012_v0  ;;  %v827_v22 = vmul.f32 %v10342_v2, %v16017_v31 }
  0x5f   : > { %16020 = vst [vmem:[#allocation26_spill] sm:$0xff] %v10323_v8  ;;  %v750_v52 = vmul.f32 %v16023_v17, %v16024_v38  ;;  %v751_v8 = vmul.f32 %v16023_v17, %v16025_v26  ;;  %v756_v26 = vmul.f32 %v16023_v17, %v9983_v41  ;;  %v770_v35 = vadd.f32 %v754_v32, %v733_v23  ;;  %v10405_v32 = vld [vmem:[%s9886_s22 + $0xb7] sm:$0xff] }
  0x60   : > { %16021 = vst [vmem:[#allocation28_spill] sm:$0xff] %v10327_v11  ;;  %v752_v11 = vmul.f32 %v16023_v17, %v9958_v34  ;;  %v825_v41 = vmul.f32 %v10342_v2, %v16015_v36  ;;  %v792_v23 = vmul.f32 %v10351_v50, %v16004_v42  ;;  %v802_v28 = vadd.f32 %v786_v9, %v765_v13 }
  0x61   : > { %16026 = vst [vmem:[#allocation29_spill] sm:$0xff] %v10342_v2  ;;  %v766_v33 = vadd.f32 %v750_v52, %v729_v18  ;;  %v767_v34 = vadd.f32 %v751_v8, %v730_v49  ;;  %v772_v48 = vadd.f32 %v756_v26, %v735_v37  ;;  %v826_v52 = vmul.f32 %v10342_v2, %v16016_v24  ;;  %v16035_v9 = vld [vmem:[#allocation21_spill] sm:$0xff] }
  0x62   : > { %v768_v27 = vadd.f32 %v752_v11, %v731_v51  ;;  %16028 = vst [vmem:[#allocation30_spill] sm:$0xff] %v10351_v50  ;;  %v787_v37 = vmul.f32 %v10351_v50, %v15997_v6  ;;  %v806_v55 = vadd.f32 %v790_v16, %v769_v46  ;;  %v807_v3 = vadd.f32 %v791_v63, %v770_v35 }
  0x63   : > { %v804_v29 = vadd.f32 %v788_v43, %v767_v34  ;;  %v808_v60 = vadd.f32 %v792_v23, %v771_v47  ;;  %v809_v24 = vadd.f32 %v793_v62, %v772_v48  ;;  %v828_v42 = vmul.f32 %v10342_v2, %v16019_v45  ;;  %v10393_v45 = vld [vmem:[%s9886_s22 + $0x9f] sm:$0xff]  ;;  %v16037_v16 = vld [vmem:[#allocation23_spill] sm:$0xff] }
  0x64   : > { %v803_v6 = vadd.f32 %v787_v37, %v766_v33  ;;  %v805_v36 = vadd.f32 %v789_v21, %v768_v27  ;;  %v829_v0 = vmul.f32 %v10342_v2, %v10187_v14  ;;  %v830_v30 = vmul.f32 %v10342_v2, %v10190_v58  ;;  %v16031_v48 = vld [vmem:[#allocation38_spill] sm:$0xff]  ;;  %v16038_v23 = vld [vmem:[#allocation24_spill] sm:$0xff] }
  0x65   : > { %v10390_v38 = vmul.f32 %v16007_v25, %v10190_v58  ;;  %v839_v8 = vadd.f32 %v823_v39, %v802_v28  ;;  %v841_v19 = vadd.f32 %v825_v41, %v804_v29  ;;  %v843_v31 = vadd.f32 %v827_v22, %v806_v55  ;;  %v10402_v58 = vld [vmem:[%s9886_s22 + $0xaf] sm:$0xff]  ;;  %v10428_v39 = vld [vmem:[%s9886_s22 + $0xa0] sm:$0xff] }
  0x66   : > { %v840_v11 = vadd.f32 %v824_v40, %v803_v6  ;;  %v842_v18 = vadd.f32 %v826_v52, %v805_v36  ;;  %v844_v49 = vadd.f32 %v828_v42, %v807_v3  ;;  %v845_v51 = vadd.f32 %v829_v0, %v808_v60  ;;  %v10431_v40 = vld [vmem:[%s9886_s22 + $0xa8] sm:$0xff]  ;;  %v10464_v60 = vld [vmem:[%s9886_s22 + $0xb1] sm:$0xff] }
  0x67   : > { %v846_v14 = vadd.f32 %v830_v30, %v809_v24  ;;  %855 = vst.msk [vmem:[#allocation2] sm:$0xff] %vm439_vm0, %v839_v8  ;;  %v10399_v44 = vperm.slane %v501_v61, 0  ;;  %v650_v12 = vmul.f32 %v9879_v5, %v10393_v45  ;;  %v651_v26 = vmul.f32 %v9879_v5, %v10396_v56  ;;  %v16036_v43 = vld [vmem:[#allocation22_spill] sm:$0xff]  ;;  %v10467_v24 = vld [vmem:[%s9886_s22 + $0xb9] sm:$0xff] }
  0x68   : > { %856 = vst.msk [vmem:[#allocation2 + $0x8] sm:$0xff] %vm439_vm0, %v840_v11  ;;  %v652_v13 = vmul.f32 %v9879_v5, %v10402_v58  ;;  %v653_v33 = vmul.f32 %v9879_v5, %v10405_v32  ;;  %v662_v34 = vadd.f32 %v10238_v4, %v10212_v7  ;;  %v663_v27 = vadd.f32 %v10242_v15, %v10216_v10  ;;  %v16032_v7 = vld [vmem:[#allocation39_spill] sm:$0xff]  ;;  %v16033_v4 = vld [vmem:[#allocation40_spill] sm:$0xff]  ;;  %v10457_v29 = vld [vmem:[%s9886_s22 + $0xa1] sm:$0xff] }
  0x69   : > { %16030 = vst [vmem:[#allocation31_spill] sm:$0xff] %v10399_v44  ;;  %v664_v46 = vadd.f32 %v10246_v57, %v10218_v53  ;;  %v665_v35 = vadd.f32 %v10275_v54, %v10220_v1  ;;  %v666_v47 = vadd.f32 %v650_v12, %v10222_v59  ;;  %v667_v20 = vadd.f32 %v651_v26, %v16031_v48  ;;  %v10437_v53 = vld [vmem:[%s9886_s22 + $0xb0] sm:$0xff]  ;;  %v10440_v57 = vld [vmem:[%s9886_s22 + $0xb8] sm:$0xff]  ;;  %v16040_v11 = vld [vmem:[#allocation26_spill] sm:$0xff] }
  0x6a   : > { %857 = vst.msk [vmem:[#allocation2 + $0x10] sm:$0xff] %vm439_vm0, %v841_v19  ;;  %v668_v10 = vadd.f32 %v652_v13, %v16032_v7  ;;  %v669_v15 = vadd.f32 %v653_v33, %v16033_v4  ;;  %v16034_v1 = vld [vmem:[#allocation15_spill] sm:$0xff]  ;;  %v699_v37 = vadd.f32 %v16035_v9, %v662_v34  ;;  %v700_v21 = vadd.f32 %v16036_v43, %v663_v27  ;;  %v16039_v30 = vld [vmem:[#allocation25_spill] sm:$0xff] }
  0x6b   : > { %858 = vst.msk [vmem:[#allocation2 + $0x18] sm:$0xff] %vm439_vm0, %v842_v18  ;;  %v687_v59 = vmul.f32 %v16034_v1, %v10428_v39  ;;  %v688_v54 = vmul.f32 %v16034_v1, %v10431_v40  ;;  %v689_v41 = vmul.f32 %v16034_v1, %v10437_v53  ;;  %v690_v52 = vmul.f32 %v16034_v1, %v10440_v57  ;;  %v10460_v36 = vld [vmem:[%s9886_s22 + $0xa9] sm:$0xff]  ;;  %v10483_v13 = vld [vmem:[%s9886_s22 + $0xbf] sm:$0xff] }
  0x6c   : > { %859 = vst.msk [vmem:[#allocation2 + $0x20] sm:$0xff] %vm439_vm0, %v843_v31  ;;  %v701_v63 = vadd.f32 %v16037_v16, %v664_v46  ;;  %v702_v62 = vadd.f32 %v16038_v23, %v665_v35  ;;  %v724_v61 = vmul.f32 %v16007_v25, %v10457_v29  ;;  %v725_v22 = vmul.f32 %v16007_v25, %v10460_v36  ;;  %v10486_v46 = vld [vmem:[%s9886_s22 + $0xc7] sm:$0xff]  ;;  %v10489_v35 = vld [vmem:[%s9886_s22 + $0xcf] sm:$0xff] }
  0x6d   : > { %860 = vst.msk [vmem:[#allocation2 + $0x28] sm:$0xff] %vm439_vm0, %v844_v49  ;;  %v703_v28 = vadd.f32 %v687_v59, %v666_v47  ;;  %v704_v6 = vadd.f32 %v688_v54, %v667_v20  ;;  %v705_v55 = vadd.f32 %v689_v41, %v668_v10  ;;  %v706_v3 = vadd.f32 %v690_v52, %v669_v15  ;;  %v16041_v49 = vld [vmem:[#allocation28_spill] sm:$0xff] }
  0x6e   : > { %861 = vst.msk [vmem:[#allocation2 + $0x30] sm:$0xff] %vm439_vm0, %v845_v51  ;;  %v726_v42 = vmul.f32 %v16007_v25, %v10464_v60  ;;  %v727_v0 = vmul.f32 %v16007_v25, %v10467_v24  ;;  %v736_v8 = vadd.f32 %v16039_v30, %v699_v37  ;;  %v737_v19 = vadd.f32 %v16040_v11, %v700_v21  ;;  %v10492_v47 = vld [vmem:[%s9886_s22 + $0xd7] sm:$0xff] }
  0x6f   : > { %862 = vst.msk [vmem:[#allocation2 + $0x38] sm:$0xff] %vm439_vm0, %v846_v14  ;;  %v871_v18 = vld [vmem:[#allocation2] ss:$2 sm:$0xff]  ;;  %v875_v31 = vld [vmem:[#allocation2 + $0x1] ss:$2 sm:$0xff]  ;;  %v738_v51 = vadd.f32 %v16041_v49, %v701_v63  ;;  %v739_v12 = vadd.f32 %v10390_v38, %v702_v62  ;;  %v740_v26 = vadd.f32 %v724_v61, %v703_v28  ;;  %v741_v14 = vadd.f32 %v725_v22, %v704_v6 }
  0x70   : > { %v878_v33 = vmax.f32 %v871_v18, %v875_v31  ;;  %v742_v34 = vadd.f32 %v726_v42, %v705_v55  ;;  %v743_v27 = vadd.f32 %v727_v0, %v706_v3  ;;  %16042 = vst [vmem:[#allocation32_spill] sm:$0xff] %v10492_v47  ;;  %v757_v48 = vmul.f32 %v16023_v17, %v10393_v45  ;;  %v10511_v55 = vld [vmem:[%s9886_s22 + $0xc0] sm:$0xff]  ;;  %v10523_v18 = vld [vmem:[%s9886_s22 + $0xd0] sm:$0xff]  ;;  %v10526_v31 = vld [vmem:[%s9886_s22 + $0xd8] sm:$0xff] }
  0x71   : > { %v758_v38 = vmul.f32 %v16023_v17, %v10396_v56  ;;  %v759_v10 = vmul.f32 %v16023_v17, %v10402_v58  ;;  %v760_v4 = vmul.f32 %v16023_v17, %v10405_v32  ;;  %v761_v15 = vmul.f32 %v16023_v17, %v10483_v13  ;;  %16043 = vst [vmem:[#allocation27_spill] sm:$0xff] %v10511_v55 }
  0x72   : > { %v873_v20 = vld [vmem:[#allocation2 + $0x10] ss:$2 sm:$0x3f]  ;;  %v877_v7 = vld [vmem:[#allocation2 + $0x11] ss:$2 sm:$0x3f]  ;;  %v762_v54 = vmul.f32 %v16023_v17, %v10486_v46  ;;  %v763_v41 = vmul.f32 %v16023_v17, %v10489_v35  ;;  %v764_v52 = vmul.f32 %v16023_v17, %v10492_v47  ;;  %v773_v43 = vadd.f32 %v757_v48, %v736_v8 }
  0x73   : > { %v879_v59 = vmax.f32 %v873_v20, %v877_v7  ;;  %v774_v21 = vadd.f32 %v758_v38, %v737_v19  ;;  %v775_v16 = vadd.f32 %v759_v10, %v738_v51  ;;  %v776_v63 = vadd.f32 %v760_v4, %v739_v12  ;;  %v10520_v19 = vld [vmem:[%s9886_s22 + $0xc8] sm:$0xff]  ;;  %16045 = vst [vmem:[#allocation34_spill] sm:$0xff] %v10523_v18  ;;  %v10668_v17 = vld [vmem:[%s9886_s22 + $0x110] sm:$0xff] }
  0x74   : > { %v881_v9 = vld [vmem:[#allocation2 + $0x20] ss:$2 sm:$0xff]  ;;  %v885_v37 = vld [vmem:[#allocation2 + $0x21] ss:$2 sm:$0xff]  ;;  %v777_v62 = vadd.f32 %v761_v15, %v740_v26  ;;  %v778_v28 = vadd.f32 %v762_v54, %v741_v14  ;;  %v779_v6 = vadd.f32 %v763_v41, %v742_v34  ;;  %v780_v22 = vadd.f32 %v764_v52, %v743_v27  ;;  %16044 = vst [vmem:[#allocation33_spill] sm:$0xff] %v10520_v19 }
  0x75   : > { %v888_v23 = vmax.f32 %v881_v9, %v885_v37  ;;  %v794_v42 = vmul.f32 %v10351_v50, %v10428_v39  ;;  %v795_v0 = vmul.f32 %v10351_v50, %v10431_v40  ;;  %v796_v30 = vmul.f32 %v10351_v50, %v10437_v53  ;;  %16046 = vst [vmem:[#allocation35_spill] sm:$0xff] %v10526_v31  ;;  %v10541_v52 = vld [vmem:[%s9886_s22 + $0xc1] sm:$0xff]  ;;  %v10546_v37 = vld [vmem:[%s9886_s22 + $0xc9] sm:$0xff] }
  0x76   : > { %v883_v3 = vld [vmem:[#allocation2 + $0x30] ss:$2 sm:$0x3f]  ;;  %v887_v61 = vld [vmem:[#allocation2 + $0x31] ss:$2 sm:$0x3f]  ;;  %v797_v49 = vmul.f32 %v10351_v50, %v10440_v57  ;;  %v798_v51 = vmul.f32 %v10351_v50, %v10511_v55  ;;  %v799_v12 = vmul.f32 %v10351_v50, %v10520_v19  ;;  %v800_v26 = vmul.f32 %v10351_v50, %v10523_v18 }
  0x77   : > { %v889_v8 = vmax.f32 %v883_v3, %v887_v61  ;;  %v890_v11 = vmax.f32 %v878_v33, %v888_v23  ;;  %v801_v14 = vmul.f32 %v10351_v50, %v10526_v31  ;;  %v810_v33 = vadd.f32 %v794_v42, %v773_v43  ;;  %v10552_v43 = vld [vmem:[%s9886_s22 + $0xd9] sm:$0xff]  ;;  %v10665_v50 = vld [vmem:[%s9886_s22 + $0x108] sm:$0xff]  ;;  %16063 = vst [vmem:[#allocation26_spill] sm:$0xff] %v10668_v17 }
  0x78   : > { %v811_v48 = vadd.f32 %v795_v0, %v774_v21  ;;  %v812_v20 = vadd.f32 %v796_v30, %v775_v16  ;;  %v813_v7 = vadd.f32 %v797_v49, %v776_v63  ;;  %v814_v38 = vadd.f32 %v798_v51, %v777_v62  ;;  %v10572_v51 = vld [vmem:[%s9886_s22 + $0xdf] sm:$0xff]  ;;  %16062 = vst [vmem:[#allocation25_spill] sm:$0xff] %v10665_v50 }
  0x79   : > { %v891_v34 = vmax.f32 %v879_v59, %v889_v8  ;;  %v895_v27 = vadd.f32 %v10399_v44, %v890_v11  ;;  %v815_v10 = vadd.f32 %v799_v12, %v778_v28  ;;  %v816_v4 = vadd.f32 %v800_v26, %v779_v6  ;;  %v10549_v59 = vld [vmem:[%s9886_s22 + $0xd1] sm:$0xff]  ;;  %16047 = vst [vmem:[#allocation36_spill] sm:$0xff] %v10572_v51  ;;  %v10575_v12 = vld [vmem:[%s9886_s22 + $0xe7] sm:$0xff] }
  0x7a   : > { %v817_v41 = vadd.f32 %v801_v14, %v780_v22  ;;  %v831_v9 = vmul.f32 %v10342_v2, %v10457_v29  ;;  %v832_v21 = vmul.f32 %v10342_v2, %v10460_v36  ;;  %v833_v16 = vmul.f32 %v10342_v2, %v10464_v60  ;;  %16048 = vst [vmem:[#allocation37_spill] sm:$0xff] %v10575_v12  ;;  %v16049_v26 = vld [vmem:[#allocation11_spill] sm:$0xff] }
  0x7b   : > { %v896_v15 = vadd.f32 %v10399_v44, %v891_v34  ;;  %v897_v54 = vmax.f32 %v895_v27, 0.0  ;;  %v834_v63 = vmul.f32 %v10342_v2, %v10467_v24  ;;  %v835_v23 = vmul.f32 %v10342_v2, %v10541_v52 }
  0x7c   : > { %v836_v28 = vmul.f32 %v10342_v2, %v10546_v37  ;;  %v837_v6 = vmul.f32 %v10342_v2, %v10549_v59  ;;  %v838_v3 = vmul.f32 %v10342_v2, %v10552_v43  ;;  %v847_v61 = vadd.f32 %v831_v9, %v810_v33  ;;  %v10653_v2 = vld [vmem:[%s9886_s22 + $0x100] sm:$0xff] }
  0x7d   : > { %v898_v62 = vmax.f32 %v896_v15, 0.0  ;;  %899 = vst.msk [vmem:[#allocation3 + $0x20] sm:$0xff] %vm439_vm0, %v897_v54  ;;  %v848_v22 = vadd.f32 %v832_v21, %v811_v48  ;;  %v849_v42 = vadd.f32 %v833_v16, %v812_v20  ;;  %v850_v0 = vadd.f32 %v834_v63, %v813_v7  ;;  %v10587_v48 = vld [vmem:[%s9886_s22 + $0xef] sm:$0xff]  ;;  %v10590_v20 = vld [vmem:[%s9886_s22 + $0xf7] sm:$0xff]  ;;  %v10593_v7 = vld [vmem:[%s9886_s22 + $0xff] sm:$0xff] }
  0x7e   : > { %v851_v30 = vadd.f32 %v835_v23, %v814_v38  ;;  %v852_v8 = vadd.f32 %v836_v28, %v815_v10  ;;  %v853_v11 = vadd.f32 %v837_v6, %v816_v4  ;;  %v854_v49 = vadd.f32 %v838_v3, %v817_v41  ;;  %863 = vst.msk [vmem:[#allocation2 + $0x40] sm:$0xff] %vm439_vm0, %v847_v61  ;;  %v10605_v38 = vld [vmem:[%s9886_s22 + $0x107] sm:$0xff]  ;;  %v10608_v10 = vld [vmem:[%s9886_s22 + $0x10f] sm:$0xff]  ;;  %v10611_v4 = vld [vmem:[%s9886_s22 + $0x117] sm:$0xff] }
  0x7f   : > { %901 = vst.msk [vmem:[#allocation3 + $0x28] sm:$0x3f] %vm900_vm1, %v898_v62  ;;  %v946_v14 = vmul.f32 %v10393_v45, %v16049_v26  ;;  %v947_v33 = vmul.f32 %v10396_v56, %v16049_v26  ;;  %v948_v34 = vmul.f32 %v10402_v58, %v16049_v26  ;;  %v949_v27 = vmul.f32 %v10405_v32, %v16049_v26  ;;  %v10632_v28 = vld [vmem:[%s9886_s22 + $0xe0] sm:$0xff]  ;;  %v10635_v6 = vld [vmem:[%s9886_s22 + $0xe8] sm:$0xff] }
  0x80   : > { %864 = vst.msk [vmem:[#allocation2 + $0x48] sm:$0xff] %vm439_vm0, %v848_v22  ;;  %v950_v45 = vmul.f32 %v10483_v13, %v16049_v26  ;;  %v951_v56 = vmul.f32 %v10486_v46, %v16049_v26  ;;  %v952_v58 = vmul.f32 %v10489_v35, %v16049_v26  ;;  %v953_v32 = vmul.f32 %v10492_v47, %v16049_v26  ;;  %v16058_v3 = vld [vmem:[#allocation13_spill] sm:$0xff] }
  0x81   : > { %16050 = vst [vmem:[#allocation16_spill] sm:$0xff] %v10587_v48  ;;  %v954_v15 = vmul.f32 %v10572_v51, %v16049_v26  ;;  %v955_v54 = vmul.f32 %v10575_v12, %v16049_v26  ;;  %v956_v41 = vmul.f32 %v10587_v48, %v16049_v26  ;;  %v957_v9 = vmul.f32 %v10590_v20, %v16049_v26 }
  0x82   : > { %16051 = vst [vmem:[#allocation17_spill] sm:$0xff] %v10590_v20  ;;  %v958_v21 = vmul.f32 %v10593_v7, %v16049_v26  ;;  %v959_v16 = vmul.f32 %v10605_v38, %v16049_v26  ;;  %v960_v63 = vmul.f32 %v10608_v10, %v16049_v26  ;;  %v961_v23 = vmul.f32 %v10611_v4, %v16049_v26  ;;  %v10650_v26 = vld [vmem:[%s9886_s22 + $0xf8] sm:$0xff] }
  0x83   : > { %16052 = vst [vmem:[#allocation18_spill] sm:$0xff] %v10593_v7  ;;  %v978_v61 = vmul.f32 %v10428_v39, %v16058_v3  ;;  %v979_v22 = vmul.f32 %v10431_v40, %v16058_v3  ;;  %v982_v39 = vmul.f32 %v10511_v55, %v16058_v3  ;;  %v983_v40 = vmul.f32 %v10520_v19, %v16058_v3 }
  0x84   : > { %865 = vst.msk [vmem:[#allocation2 + $0x50] sm:$0xff] %vm439_vm0, %v849_v42  ;;  %v3379_v62 = vld [vmem:[#allocation3 + $0x20] sm:$0xff]  ;;  %v980_v42 = vmul.f32 %v10437_v53, %v16058_v3  ;;  %v984_v53 = vmul.f32 %v10523_v18, %v16058_v3  ;;  %v986_v25 = vmul.f32 %v10632_v28, %v16058_v3  ;;  %v987_v55 = vmul.f32 %v10635_v6, %v16058_v3 }
  0x85   : > { %16053 = vst [vmem:[#allocation10_spill] sm:$0xff] %v10605_v38  ;;  %v989_v18 = vmul.f32 %v10650_v26, %v16058_v3  ;;  %v990_v1 = vmul.f32 %v10653_v2, %v16058_v3  ;;  %v998_v7 = vadd.f32 %v982_v39, %v950_v45  ;;  %v16064_v45 = vld [vmem:[#allocation14_spill] sm:$0xff] }
  0x86   : > { %16054 = vst [vmem:[#allocation38_spill] sm:$0xff] %v10608_v10  ;;  %v1002_v12 = vadd.f32 %v986_v25, %v954_v15  ;;  %v1003_v51 = vadd.f32 %v987_v55, %v955_v54  ;;  %v10697_v25 = vld [vmem:[%s9886_s22 + $0xe9] sm:$0xff]  ;;  %v10700_v55 = vld [vmem:[%s9886_s22 + $0xf1] sm:$0xff]  ;;  %v1032_v15 = vmul.f32 %v10549_v59, %v16064_v45 }
  0x87   : > { %16055 = vst [vmem:[#allocation39_spill] sm:$0xff] %v10611_v4  ;;  %v903_v4 = vld [vmem:[#allocation2 + $0x40] ss:$2 sm:$0xff]  ;;  %v907_v10 = vld [vmem:[#allocation2 + $0x41] ss:$2 sm:$0xff] }
  0x88   : > { %866 = vst.msk [vmem:[#allocation2 + $0x58] sm:$0xff] %vm439_vm0, %v850_v0  ;;  %v981_v0 = vmul.f32 %v10440_v57, %v16058_v3  ;;  %v985_v57 = vmul.f32 %v10526_v31, %v16058_v3 }
  0x89   : > { %867 = vst.msk [vmem:[#allocation2 + $0x60] sm:$0xff] %vm439_vm0, %v851_v30  ;;  %v10647_v30 = vld [vmem:[%s9886_s22 + $0xf0] sm:$0xff] }
  0x8a   : > { %16056 = vst [vmem:[#allocation40_spill] sm:$0xff] %v10632_v28  ;;  %v988_v19 = vmul.f32 %v10647_v30, %v16058_v3  ;;  %v991_v28 = vmul.f32 %v10665_v50, %v16058_v3  ;;  %v997_v38 = vadd.f32 %v981_v0, %v949_v27  ;;  %v1000_v50 = vadd.f32 %v984_v53, %v952_v58  ;;  %v10694_v58 = vld [vmem:[%s9886_s22 + $0xe1] sm:$0xff] }
  0x8b   : > { %16057 = vst [vmem:[#allocation21_spill] sm:$0xff] %v10635_v6  ;;  %v992_v6 = vmul.f32 %v10668_v17, %v16058_v3  ;;  %v1001_v17 = vadd.f32 %v985_v57, %v953_v32  ;;  %v1031_v32 = vmul.f32 %v10546_v37, %v16064_v45 }
  0x8c   : > { %868 = vst.msk [vmem:[#allocation2 + $0x68] sm:$0xff] %vm439_vm0, %v852_v8  ;;  %v3380_v8 = vld [vmem:[#allocation3 + $0x28] sm:$0xff] }
  0x8d   : > { %16059 = vst [vmem:[#allocation22_spill] sm:$0xff] %v10647_v30  ;;  %v3406_v31 = vpack.c.bf16 %v3380_v8, %v3379_v62  ;;  %v995_v62 = vadd.f32 %v979_v22, %v947_v33  ;;  %v996_v8 = vadd.f32 %v980_v42, %v948_v34  ;;  %v1006_v33 = vadd.f32 %v990_v1, %v958_v21 }
  0x8e   : > { %16060 = vst [vmem:[#allocation23_spill] sm:$0xff] %v10650_v26  ;;  %v994_v26 = vadd.f32 %v978_v61, %v946_v14  ;;  %v1005_v14 = vadd.f32 %v989_v18, %v957_v9  ;;  %v1027_v1 = vmul.f32 %v10460_v36, %v16064_v45  ;;  %v1033_v36 = vmul.f32 %v10552_v43, %v16064_v45  ;;  %v10720_v9 = vld [vmem:[%s9886_s22 + $0x101] sm:$0xff] }
  0x8f   : > { %16061 = vst [vmem:[#allocation24_spill] sm:$0xff] %v10653_v2  ;;  %8016 = vmatmul.msk.bf16.gmra.mxu0 %vm439_vm0, %v3406_v31  ;;  %v999_v2 = vadd.f32 %v983_v40, %v951_v56  ;;  %v905_v20 = vld [vmem:[#allocation2 + $0x50] ss:$2 sm:$0x3f]  ;;  %v1007_v31 = vadd.f32 %v991_v28, %v959_v16  ;;  %v1026_v56 = vmul.f32 %v10457_v29, %v16064_v45 }
  0x90   : > { %869 = vst.msk [vmem:[#allocation2 + $0x70] sm:$0xff] %vm439_vm0, %v853_v11  ;;  %v10680_v11 = vld [vmem:[%s9886_s22 + $0x118] sm:$0xff]  ;;  %v1029_v29 = vmul.f32 %v10467_v24, %v16064_v45  ;;  %v10723_v24 = vld [vmem:[%s9886_s22 + $0x109] sm:$0xff]  ;;  %v1034_v21 = vmul.f32 %v10694_v58, %v16064_v45  ;;  %v1035_v16 = vmul.f32 %v10697_v25, %v16064_v45  ;;  %v1036_v28 = vmul.f32 %v10700_v55, %v16064_v45 }
  0x91   : > { %870 = vst.msk [vmem:[#allocation2 + $0x78] sm:$0xff] %vm439_vm0, %v854_v49  ;;  %v993_v30 = vmul.f32 %v10680_v11, %v16058_v3  ;;  %v910_v49 = vmax.f32 %v903_v4, %v907_v10  ;;  %v909_v48 = vld [vmem:[#allocation2 + $0x51] ss:$2 sm:$0x3f]  ;;  %v1004_v3 = vadd.f32 %v988_v19, %v956_v41  ;;  %v1008_v10 = vadd.f32 %v992_v6, %v960_v63 }
  0x92   : > { %v911_v47 = vmax.f32 %v905_v20, %v909_v48  ;;  %v1028_v19 = vmul.f32 %v10464_v60, %v16064_v45  ;;  %v1030_v20 = vmul.f32 %v10541_v52, %v16064_v45  ;;  %v10717_v41 = vld [vmem:[%s9886_s22 + $0xf9] sm:$0xff]  ;;  %16065 = vst [vmem:[#allocation28_spill] sm:$0xff] %v10720_v9  ;;  %v10730_v63 = vld [vmem:[%s9886_s22 + $0x111] sm:$0xff]  ;;  %v1038_v22 = vmul.f32 %v10720_v9, %v16064_v45 }
  0x93   : > { %v913_v34 = vld [vmem:[#allocation2 + $0x60] ss:$2 sm:$0xff]  ;;  %v917_v61 = vld [vmem:[#allocation2 + $0x61] ss:$2 sm:$0xff]  ;;  %v1009_v27 = vadd.f32 %v993_v30, %v961_v23  ;;  %16066 = vst [vmem:[#allocation41_spill] sm:$0xff] %v10723_v24  ;;  %v1037_v6 = vmul.f32 %v10717_v41, %v16064_v45  ;;  %v1039_v42 = vmul.f32 %v10723_v24, %v16064_v45  ;;  %v1040_v39 = vmul.f32 %v10730_v63, %v16064_v45 }
  0x94   : > { %v920_v4 = vmax.f32 %v913_v34, %v917_v61  ;;  %16067 = vst [vmem:[#allocation42_spill] sm:$0xff] %v10730_v63  ;;  %v10733_v23 = vld [vmem:[%s9886_s22 + $0x119] sm:$0xff]  ;;  %v1042_v53 = vadd.f32 %v1026_v56, %v994_v26  ;;  %v1043_v57 = vadd.f32 %v1027_v1, %v995_v62  ;;  %v1045_v34 = vadd.f32 %v1029_v29, %v997_v38  ;;  %v16081_v29 = vld [vmem:[#allocation38_spill] sm:$0xff] }
  0x95   : > { %v1041_v40 = vmul.f32 %v10733_v23, %v16064_v45  ;;  %v1048_v9 = vadd.f32 %v1032_v15, %v1000_v50  ;;  %v1049_v24 = vadd.f32 %v1033_v36, %v1001_v17  ;;  %v10754_v63 = vadd.f32 %v1036_v28, %v1004_v3  ;;  %v16075_v3 = vld [vmem:[#allocation36_spill] sm:$0xff] }
  0x96   : > { %v922_v60 = vmax.f32 %v910_v49, %v920_v4  ;;  %v1044_v49 = vadd.f32 %v1028_v19, %v996_v8  ;;  %v10756_v26 = vadd.f32 %v1037_v6, %v1005_v14  ;;  %v10758_v62 = vadd.f32 %v1038_v22, %v1006_v33  ;;  %v16076_v33 = vld [vmem:[#allocation37_spill] sm:$0xff] }
  0x97   : > { %16068 = vst [vmem:[#allocation43_spill] sm:$0xff] %v10754_v63  ;;  %v10760_v38 = vadd.f32 %v1039_v42, %v1007_v31  ;;  %v10762_v8 = vadd.f32 %v1040_v39, %v1008_v10  ;;  %v1062_v17 = vmul.f32 %v10483_v13, %v9879_v5  ;;  %v1063_v50 = vmul.f32 %v10486_v46, %v9879_v5  ;;  %v16077_v10 = vld [vmem:[#allocation16_spill] sm:$0xff]  ;;  %v16079_v46 = vld [vmem:[#allocation18_spill] sm:$0xff]  ;;  %v16086_v39 = vld [vmem:[#allocation27_spill] sm:$0xff] }
  0x98   : > { %v915_v18 = vld [vmem:[#allocation2 + $0x70] ss:$2 sm:$0x3f]  ;;  %v919_v48 = vld [vmem:[#allocation2 + $0x71] ss:$2 sm:$0x3f]  ;;  %v924_v30 = vadd.f32 %v922_v60, %v10399_v44  ;;  %v1066_v14 = vmul.f32 %v16075_v3, %v9879_v5  ;;  %v1067_v31 = vmul.f32 %v16076_v33, %v9879_v5  ;;  %v1068_v13 = vmul.f32 %v16077_v10, %v9879_v5 }
  0x99   : > { %v921_v54 = vmax.f32 %v915_v18, %v919_v48  ;;  %v1046_v18 = vadd.f32 %v1030_v20, %v998_v7  ;;  %v1047_v48 = vadd.f32 %v1031_v32, %v999_v2  ;;  %16069 = vst [vmem:[#allocation44_spill] sm:$0xff] %v10756_v26  ;;  %v10764_v2 = vadd.f32 %v1041_v40, %v1009_v27  ;;  %v16078_v27 = vld [vmem:[#allocation17_spill] sm:$0xff]  ;;  %v16083_v32 = vld [vmem:[#allocation39_spill] sm:$0xff] }
  0x9a   : > { %v926_v4 = vmax.f32 %v924_v30, 0.0  ;;  %16070 = vst [vmem:[#allocation45_spill] sm:$0xff] %v10758_v62  ;;  %v1069_v56 = vmul.f32 %v16078_v27, %v9879_v5  ;;  %v10785_v1 = vmul.f32 %v16079_v46, %v9879_v5  ;;  %v10793_v20 = vmul.f32 %v16081_v29, %v9879_v5  ;;  %v16085_v30 = vld [vmem:[#allocation15_spill] sm:$0xff] }
  0x9b   : > { %v923_v0 = vmax.f32 %v911_v47, %v921_v54  ;;  %v10749_v47 = vadd.f32 %v1034_v21, %v1002_v12  ;;  %v10751_v54 = vadd.f32 %v1035_v16, %v1003_v51  ;;  %16071 = vst [vmem:[#allocation46_spill] sm:$0xff] %v10760_v38  ;;  %v1064_v51 = vmul.f32 %v10489_v35, %v9879_v5  ;;  %v16074_v12 = vld [vmem:[#allocation32_spill] sm:$0xff]  ;;  %v16080_v35 = vld [vmem:[#allocation10_spill] sm:$0xff] }
  0x9c   : > { %928 = vst.msk [vmem:[#allocation3 + $0x30] sm:$0xff] %vm439_vm0, %v926_v4  ;;  %v1065_v7 = vmul.f32 %v16074_v12, %v9879_v5  ;;  %v10789_v19 = vmul.f32 %v16080_v35, %v9879_v5  ;;  %v10797_v15 = vmul.f32 %v16083_v32, %v9879_v5  ;;  %v1078_v36 = vadd.f32 %v1062_v17, %v1042_v53  ;;  %v16087_v4 = vld [vmem:[#allocation33_spill] sm:$0xff]  ;;  %v16088_v12 = vld [vmem:[#allocation34_spill] sm:$0xff] }
  0x9d   : > { %v925_v61 = vadd.f32 %v923_v0, %v10399_v44  ;;  %16072 = vst [vmem:[#allocation47_spill] sm:$0xff] %v10762_v8  ;;  %v1079_v21 = vadd.f32 %v1063_v50, %v1043_v57  ;;  %v1080_v16 = vadd.f32 %v1064_v51, %v1044_v49  ;;  %v1082_v6 = vadd.f32 %v1066_v14, %v1046_v18  ;;  %v16089_v8 = vld [vmem:[#allocation35_spill] sm:$0xff]  ;;  %v16090_v57 = vld [vmem:[#allocation40_spill] sm:$0xff]  ;;  %v16096_v14 = vld [vmem:[#allocation25_spill] sm:$0xff] }
  0x9e   : > { %16073 = vst [vmem:[#allocation48_spill] sm:$0xff] %v10764_v2  ;;  %v1081_v28 = vadd.f32 %v1065_v7, %v1045_v34  ;;  %v1083_v22 = vadd.f32 %v1067_v31, %v1047_v48  ;;  %v1084_v42 = vadd.f32 %v1068_v13, %v1048_v9  ;;  %v1085_v0 = vadd.f32 %v1069_v56, %v1049_v24  ;;  %v16091_v34 = vld [vmem:[#allocation21_spill] sm:$0xff]  ;;  %v16092_v24 = vld [vmem:[#allocation22_spill] sm:$0xff]  ;;  %v16093_v48 = vld [vmem:[#allocation23_spill] sm:$0xff] }
  0x9f   : > { %v927_v60 = vmax.f32 %v925_v61, 0.0  ;;  %16082 = vst [vmem:[#allocation32_spill] sm:$0xff] %v10793_v20  ;;  %v1098_v40 = vmul.f32 %v16086_v39, %v16085_v30  ;;  %v1100_v2 = vmul.f32 %v16088_v12, %v16085_v30  ;;  %v1101_v53 = vmul.f32 %v16089_v8, %v16085_v30  ;;  %v16094_v50 = vld [vmem:[#allocation24_spill] sm:$0xff]  ;;  %v16098_v31 = vld [vmem:[#allocation26_spill] sm:$0xff] }
  0xa0   : > { %16084 = vst [vmem:[#allocation36_spill] sm:$0xff] %v10797_v15  ;;  %v1102_v49 = vmul.f32 %v16090_v57, %v16085_v30  ;;  %v1103_v9 = vmul.f32 %v16091_v34, %v16085_v30  ;;  %v1104_v18 = vmul.f32 %v16092_v24, %v16085_v30  ;;  %v1105_v17 = vmul.f32 %v16093_v48, %v16085_v30 }
  0xa1   : > { %929 = vst.msk [vmem:[#allocation3 + $0x38] sm:$0x3f] %vm900_vm1, %v927_v60  ;;  %v1099_v60 = vmul.f32 %v16087_v4, %v16085_v30  ;;  %v10817_v51 = vmul.f32 %v16094_v50, %v16085_v30  ;;  %v10821_v8 = vmul.f32 %v16096_v14, %v16085_v30  ;;  %v10825_v13 = vmul.f32 %v16098_v31, %v16085_v30 }
  0xa2   : > { %v10829_v56 = vmul.f32 %v10680_v11, %v16085_v30  ;;  %v1114_v39 = vadd.f32 %v1098_v40, %v1078_v36  ;;  %v1116_v38 = vadd.f32 %v1100_v2, %v1080_v16  ;;  %v1117_v62 = vadd.f32 %v1101_v53, %v1081_v28 }
  0xa3   : > { %v3381_v61 = vld [vmem:[#allocation3 + $0x30] sm:$0xff]  ;;  %16095 = vst [vmem:[#allocation37_spill] sm:$0xff] %v10817_v51  ;;  %v1115_v12 = vadd.f32 %v1099_v60, %v1079_v21  ;;  %v1118_v15 = vadd.f32 %v1102_v49, %v1082_v6  ;;  %v1119_v51 = vadd.f32 %v1103_v9, %v1083_v22  ;;  %v1120_v26 = vadd.f32 %v1104_v18, %v1084_v42 }
  0xa4   : > { %16097 = vst [vmem:[#allocation16_spill] sm:$0xff] %v10821_v8  ;;  %v1121_v20 = vadd.f32 %v1105_v17, %v1085_v0  ;;  %v16101_v8 = vld [vmem:[#allocation19_spill] sm:$0xff]  ;;  %v16107_v17 = vld [vmem:[#allocation20_spill] sm:$0xff] }
  0xa5   : > { %16099 = vst [vmem:[#allocation17_spill] sm:$0xff] %v10825_v13  ;;  %v1134_v63 = vmul.f32 %v10541_v52, %v16101_v8  ;;  %v1135_v13 = vmul.f32 %v10546_v37, %v16101_v8  ;;  %v1137_v36 = vmul.f32 %v10552_v43, %v16101_v8  ;;  %v1138_v2 = vmul.f32 %v10694_v58, %v16101_v8  ;;  %v16102_v37 = vld [vmem:[#allocation28_spill] sm:$0xff]  ;;  %v16104_v43 = vld [vmem:[#allocation42_spill] sm:$0xff] }
  0xa6   : > { %16100 = vst [vmem:[#allocation18_spill] sm:$0xff] %v10829_v56  ;;  %v1136_v56 = vmul.f32 %v10549_v59, %v16101_v8  ;;  %v1139_v21 = vmul.f32 %v10697_v25, %v16101_v8  ;;  %v1140_v16 = vmul.f32 %v10700_v55, %v16101_v8  ;;  %v1141_v52 = vmul.f32 %v10717_v41, %v16101_v8  ;;  %v16103_v59 = vld [vmem:[#allocation41_spill] sm:$0xff] }
  0xa7   : > { %v10850_v28 = vmul.f32 %v16102_v37, %v16101_v8  ;;  %v10854_v6 = vmul.f32 %v16103_v59, %v16101_v8  ;;  %v10858_v22 = vmul.f32 %v16104_v43, %v16101_v8  ;;  %v10862_v42 = vmul.f32 %v10733_v23, %v16101_v8 }
  0xa8   : > { %v3382_v7 = vld [vmem:[#allocation3 + $0x38] sm:$0xff]  ;;  %v1150_v0 = vadd.f32 %v1134_v63, %v1114_v39  ;;  %v1151_v40 = vadd.f32 %v1135_v13, %v1115_v12  ;;  %v1153_v60 = vadd.f32 %v1137_v36, %v1117_v62  ;;  %v1154_v53 = vadd.f32 %v1138_v2, %v1118_v15 }
  0xa9   : > { %v3407_v4 = vpack.c.bf16 %v3382_v7, %v3381_v61  ;;  %16105 = vst [vmem:[#allocation10_spill] sm:$0xff] %v10858_v22  ;;  %v1152_v61 = vadd.f32 %v1136_v56, %v1116_v38  ;;  %v1155_v49 = vadd.f32 %v1139_v21, %v1119_v51  ;;  %v1156_v9 = vadd.f32 %v1140_v16, %v1120_v26  ;;  %v16108_v56 = vld [vmem:[#allocation30_spill] sm:$0xff] }
  0xaa   : > { %16106 = vst [vmem:[#allocation38_spill] sm:$0xff] %v10862_v42  ;;  %v1157_v18 = vadd.f32 %v1141_v52, %v1121_v20  ;;  %v1170_v7 = vmul.f32 %v16075_v3, %v16107_v17  ;;  %v1172_v22 = vmul.f32 %v16077_v10, %v16107_v17  ;;  %v1173_v42 = vmul.f32 %v16078_v27, %v16107_v17  ;;  %v1330_v52 = vld [vmem:[%s9886_s22 + $0x11f] sm:$0xff] }
  0xab   : > { %8017 = vmatmul.msk.bf16.gmra.mxu0 %vm439_vm0, %v3407_v4  ;;  %v1171_v4 = vmul.f32 %v16076_v33, %v16107_v17  ;;  %v1174_v63 = vmul.f32 %v16079_v46, %v16107_v17  ;;  %v1175_v62 = vmul.f32 %v16080_v35, %v16107_v17  ;;  %v1176_v26 = vmul.f32 %v16081_v29, %v16107_v17 }
  0xac   : > { %v1177_v38 = vmul.f32 %v16083_v32, %v16107_v17  ;;  %v1186_v3 = vadd.f32 %v1170_v7, %v1150_v0  ;;  %v1188_v20 = vadd.f32 %v1172_v22, %v1152_v61  ;;  %v1189_v15 = vadd.f32 %v1173_v42, %v1153_v60  ;;  %v16109_v22 = vld [vmem:[#allocation29_spill] sm:$0xff]  ;;  %v1332_v61 = vld [vmem:[%s9886_s22 + $0x12f] sm:$0xff] }
  0xad   : > { %v1187_v33 = vadd.f32 %v1171_v4, %v1151_v40  ;;  %v1190_v10 = vadd.f32 %v1174_v63, %v1154_v53  ;;  %v1191_v51 = vadd.f32 %v1175_v62, %v1155_v49  ;;  %v1192_v13 = vadd.f32 %v1176_v26, %v1156_v9  ;;  %v1331_v40 = vld [vmem:[%s9886_s22 + $0x127] sm:$0xff]  ;;  %v1333_v60 = vld [vmem:[%s9886_s22 + $0x137] sm:$0xff]  ;;  %v10923_v9 = vld [vmem:[%s9886_s22 + $0x14f] sm:$0xff] }
  0xae   : > { %v1193_v27 = vadd.f32 %v1177_v38, %v1157_v18  ;;  %v1206_v46 = vmul.f32 %v16090_v57, %v16108_v56  ;;  %v1207_v35 = vmul.f32 %v16091_v34, %v16108_v56  ;;  %v1208_v29 = vmul.f32 %v16092_v24, %v16108_v56  ;;  %v10920_v49 = vld [vmem:[%s9886_s22 + $0x147] sm:$0xff] }
  0xaf   : > { %v1209_v32 = vmul.f32 %v16093_v48, %v16108_v56  ;;  %v1210_v39 = vmul.f32 %v16094_v50, %v16108_v56  ;;  %v1211_v12 = vmul.f32 %v16096_v14, %v16108_v56  ;;  %v1212_v57 = vmul.f32 %v16098_v31, %v16108_v56  ;;  %v1363_v63 = vld [vmem:[%s9886_s22 + $0x128] sm:$0xff] }
  0xb0   : > { %v1213_v34 = vmul.f32 %v10680_v11, %v16108_v56  ;;  %v1222_v36 = vadd.f32 %v1206_v46, %v1186_v3  ;;  %v1223_v24 = vadd.f32 %v1207_v35, %v1187_v33  ;;  %v1224_v2 = vadd.f32 %v1208_v29, %v1188_v20  ;;  %v1364_v3 = vld [vmem:[%s9886_s22 + $0x130] sm:$0xff]  ;;  %v1365_v33 = vld [vmem:[%s9886_s22 + $0x138] sm:$0xff]  ;;  %v10933_v20 = vld [vmem:[%s9886_s22 + $0x140] sm:$0xff] }
  0xb1   : > { %v1225_v21 = vadd.f32 %v1209_v32, %v1189_v15  ;;  %v1226_v48 = vadd.f32 %v1210_v39, %v1190_v10  ;;  %v1227_v16 = vadd.f32 %v1211_v12, %v1191_v51  ;;  %v1228_v50 = vadd.f32 %v1212_v57, %v1192_v13  ;;  %v16110_v15 = vld [vmem:[#allocation11_spill] sm:$0xff]  ;;  %v10947_v29 = vld [vmem:[%s9886_s22 + $0x158] sm:$0xff] }
  0xb2   : > { %v1229_v14 = vadd.f32 %v1213_v34, %v1193_v27  ;;  %v1242_v31 = vmul.f32 %v16109_v22, %v10694_v58  ;;  %v1243_v42 = vmul.f32 %v16109_v22, %v10697_v25  ;;  %v1244_v11 = vmul.f32 %v16109_v22, %v10700_v55  ;;  %v10941_v46 = vld [vmem:[%s9886_s22 + $0x148] sm:$0xff]  ;;  %v10944_v35 = vld [vmem:[%s9886_s22 + $0x150] sm:$0xff]  ;;  %v16111_v34 = vld [vmem:[#allocation13_spill] sm:$0xff] }
  0xb3   : > { %v1245_v0 = vmul.f32 %v16109_v22, %v10717_v41  ;;  %v1246_v53 = vmul.f32 %v16109_v22, %v16102_v37  ;;  %v1247_v58 = vmul.f32 %v16109_v22, %v16103_v59  ;;  %v1248_v25 = vmul.f32 %v16109_v22, %v16104_v43  ;;  %v10917_v41 = vld [vmem:[%s9886_s22 + $0x13f] sm:$0xff]  ;;  %v10926_v59 = vld [vmem:[%s9886_s22 + $0x157] sm:$0xff] }
  0xb4   : > { %v1249_v55 = vmul.f32 %v16109_v22, %v10733_v23  ;;  %v1258_v18 = vadd.f32 %v1242_v31, %v1222_v36  ;;  %v1259_v37 = vadd.f32 %v1243_v42, %v1223_v24  ;;  %v1260_v7 = vadd.f32 %v1244_v11, %v1224_v2  ;;  %v1362_v43 = vld [vmem:[%s9886_s22 + $0x120] sm:$0xff]  ;;  %v1412_v31 = vld [vmem:[%s9886_s22 + $0x131] sm:$0xff] }
  0xb5   : > { %v1261_v4 = vadd.f32 %v1245_v0, %v1225_v21  ;;  %v1262_v23 = vadd.f32 %v1246_v53, %v1226_v48  ;;  %v1263_v62 = vadd.f32 %v1247_v58, %v1227_v16  ;;  %v1264_v26 = vadd.f32 %v1248_v25, %v1228_v50  ;;  %v1410_v48 = vld [vmem:[%s9886_s22 + $0x121] sm:$0xff]  ;;  %v1411_v16 = vld [vmem:[%s9886_s22 + $0x129] sm:$0xff]  ;;  %v1413_v42 = vld [vmem:[%s9886_s22 + $0x139] sm:$0xff] }
  0xb6   : > { %v1265_v38 = vadd.f32 %v1249_v55, %v1229_v14  ;;  %1274 = vst.msk [vmem:[#allocation2] sm:$0xff] %vm439_vm0, %v1258_v18  ;;  %v1346_v10 = vmul.f32 %v1330_v52, %v16110_v15  ;;  %v1347_v51 = vmul.f32 %v1331_v40, %v16110_v15  ;;  %v1348_v13 = vmul.f32 %v1332_v61, %v16110_v15  ;;  %v10977_v11 = vld [vmem:[%s9886_s22 + $0x141] sm:$0xff]  ;;  %v10981_v53 = vld [vmem:[%s9886_s22 + $0x149] sm:$0xff]  ;;  %v10984_v58 = vld [vmem:[%s9886_s22 + $0x151] sm:$0xff] }
  0xb7   : > { %v1349_v27 = vmul.f32 %v1333_v60, %v16110_v15  ;;  %1275 = vst.msk [vmem:[#allocation2 + $0x8] sm:$0xff] %vm439_vm0, %v1259_v37  ;;  %v1350_v32 = vmul.f32 %v10917_v41, %v16110_v15  ;;  %v1351_v39 = vmul.f32 %v10920_v49, %v16110_v15  ;;  %v1352_v12 = vmul.f32 %v10923_v9, %v16110_v15  ;;  %v10987_v25 = vld [vmem:[%s9886_s22 + $0x159] sm:$0xff] }
  0xb8   : > { %v1353_v57 = vmul.f32 %v10926_v59, %v16110_v15  ;;  %1276 = vst.msk [vmem:[#allocation2 + $0x10] sm:$0xff] %vm439_vm0, %v1260_v7  ;;  %v1378_v36 = vmul.f32 %v1362_v43, %v16111_v34  ;;  %v1379_v24 = vmul.f32 %v1363_v63, %v16111_v34  ;;  %v1380_v2 = vmul.f32 %v1364_v3, %v16111_v34 }
  0xb9   : > { %v1381_v21 = vmul.f32 %v1365_v33, %v16111_v34  ;;  %1277 = vst.msk [vmem:[#allocation2 + $0x18] sm:$0xff] %vm439_vm0, %v1261_v4  ;;  %v1382_v50 = vmul.f32 %v10933_v20, %v16111_v34  ;;  %v1383_v14 = vmul.f32 %v10941_v46, %v16111_v34  ;;  %v1384_v52 = vmul.f32 %v10944_v35, %v16111_v34 }
  0xba   : > { %v1385_v22 = vmul.f32 %v10947_v29, %v16111_v34  ;;  %1278 = vst.msk [vmem:[#allocation2 + $0x20] sm:$0xff] %vm439_vm0, %v1262_v23  ;;  %v1394_v0 = vadd.f32 %v1378_v36, %v1346_v10  ;;  %v1395_v40 = vadd.f32 %v1379_v24, %v1347_v51  ;;  %v1396_v61 = vadd.f32 %v1380_v2, %v1348_v13  ;;  %v11011_v36 = vld [vmem:[%s9886_s22 + $0x16f] sm:$0xff]  ;;  %v11014_v24 = vld [vmem:[%s9886_s22 + $0x177] sm:$0xff] }
  0xbb   : > { %v1397_v60 = vadd.f32 %v1381_v21, %v1349_v27  ;;  %1279 = vst.msk [vmem:[#allocation2 + $0x28] sm:$0xff] %vm439_vm0, %v1263_v62  ;;  %v1398_v55 = vadd.f32 %v1382_v50, %v1350_v32  ;;  %v1399_v18 = vadd.f32 %v1383_v14, %v1351_v39  ;;  %v1400_v37 = vadd.f32 %v1384_v52, %v1352_v12  ;;  %v10997_v62 = vld [vmem:[%s9886_s22 + $0x15f] sm:$0xff]  ;;  %v11008_v27 = vld [vmem:[%s9886_s22 + $0x167] sm:$0xff] }
  0xbc   : > { %v1401_v7 = vadd.f32 %v1385_v22, %v1353_v57  ;;  %1280 = vst.msk [vmem:[#allocation2 + $0x30] sm:$0xff] %vm439_vm0, %v1264_v26  ;;  %v1426_v4 = vmul.f32 %v1410_v48, %v16064_v45  ;;  %v1427_v43 = vmul.f32 %v1411_v16, %v16064_v45  ;;  %v1428_v63 = vmul.f32 %v1412_v31, %v16064_v45 }
  0xbd   : > { %v1429_v23 = vmul.f32 %v1413_v42, %v16064_v45  ;;  %1281 = vst.msk [vmem:[#allocation2 + $0x38] sm:$0xff] %vm439_vm0, %v1265_v38  ;;  %v1430_v3 = vmul.f32 %v10977_v11, %v16064_v45  ;;  %v1431_v26 = vmul.f32 %v10981_v53, %v16064_v45  ;;  %v1432_v33 = vmul.f32 %v10984_v58, %v16064_v45 }
  0xbe   : > { %v1433_v10 = vmul.f32 %v10987_v25, %v16064_v45  ;;  %v1290_v51 = vld [vmem:[#allocation2] ss:$2 sm:$0xff]  ;;  %v1292_v13 = vld [vmem:[#allocation2 + $0x1] ss:$2 sm:$0xff]  ;;  %v1442_v32 = vadd.f32 %v1426_v4, %v1394_v0  ;;  %v1443_v38 = vadd.f32 %v1427_v43, %v1395_v40  ;;  %v1444_v39 = vadd.f32 %v1428_v63, %v1396_v61  ;;  %v11039_v4 = vld [vmem:[%s9886_s22 + $0x170] sm:$0xff] }
  0xbf   : > { %v1445_v12 = vadd.f32 %v1429_v23, %v1397_v60  ;;  %v1294_v57 = vmax.f32 %v1290_v51, %v1292_v13  ;;  %v1446_v2 = vadd.f32 %v1430_v3, %v1398_v55  ;;  %v1447_v21 = vadd.f32 %v1431_v26, %v1399_v18  ;;  %v11029_v55 = vld [vmem:[%s9886_s22 + $0x160] sm:$0xff]  ;;  %v11042_v43 = vld [vmem:[%s9886_s22 + $0x178] sm:$0xff] }
  0xc0   : > { %v1448_v48 = vadd.f32 %v1432_v33, %v1400_v37  ;;  %v1291_v16 = vld [vmem:[#allocation2 + $0x10] ss:$2 sm:$0x3f]  ;;  %v1293_v50 = vld [vmem:[#allocation2 + $0x11] ss:$2 sm:$0x3f]  ;;  %v1449_v14 = vadd.f32 %v1433_v10, %v1401_v7  ;;  %v1462_v52 = vmul.f32 %v10917_v41, %v9879_v5  ;;  %v1463_v22 = vmul.f32 %v10920_v49, %v9879_v5 }
  0xc1   : > { %v1464_v31 = vmul.f32 %v10923_v9, %v9879_v5  ;;  %v1295_v42 = vmax.f32 %v1291_v16, %v1293_v50  ;;  %v1465_v0 = vmul.f32 %v10926_v59, %v9879_v5  ;;  %v1466_v40 = vmul.f32 %v10997_v62, %v9879_v5  ;;  %v11036_v59 = vld [vmem:[%s9886_s22 + $0x168] sm:$0xff] }
  0xc2   : > { %v1467_v61 = vmul.f32 %v11008_v27, %v9879_v5  ;;  %v1296_v60 = vld [vmem:[#allocation2 + $0x20] ss:$2 sm:$0xff]  ;;  %v1298_v41 = vld [vmem:[#allocation2 + $0x21] ss:$2 sm:$0xff]  ;;  %v1468_v49 = vmul.f32 %v11011_v36, %v9879_v5  ;;  %v1469_v9 = vmul.f32 %v11014_v24, %v9879_v5  ;;  %v1478_v18 = vadd.f32 %v1462_v52, %v1442_v32 }
  0xc3   : > { %v1479_v37 = vadd.f32 %v1463_v22, %v1443_v38  ;;  %v1300_v7 = vmax.f32 %v1296_v60, %v1298_v41  ;;  %v1480_v63 = vadd.f32 %v1464_v31, %v1444_v39  ;;  %v1481_v23 = vadd.f32 %v1465_v0, %v1445_v12  ;;  %v11072_v60 = vld [vmem:[%s9886_s22 + $0x179] sm:$0xff] }
  0xc4   : > { %v1482_v3 = vadd.f32 %v1466_v40, %v1446_v2  ;;  %v1297_v26 = vld [vmem:[#allocation2 + $0x30] ss:$2 sm:$0x3f]  ;;  %v1299_v33 = vld [vmem:[#allocation2 + $0x31] ss:$2 sm:$0x3f]  ;;  %v1483_v10 = vadd.f32 %v1467_v61, %v1447_v21  ;;  %v1484_v51 = vadd.f32 %v1468_v49, %v1448_v48  ;;  %v1485_v13 = vadd.f32 %v1469_v9, %v1449_v14 }
  0xc5   : > { %v1498_v32 = vmul.f32 %v10933_v20, %v16085_v30  ;;  %v1301_v38 = vmax.f32 %v1297_v26, %v1299_v33  ;;  %v1302_v16 = vmax.f32 %v1294_v57, %v1300_v7  ;;  %v1499_v50 = vmul.f32 %v10941_v46, %v16085_v30  ;;  %v11062_v14 = vld [vmem:[%s9886_s22 + $0x161] sm:$0xff] }
  0xc6   : > { %v1500_v39 = vmul.f32 %v10944_v35, %v16085_v30  ;;  %v1501_v12 = vmul.f32 %v10947_v29, %v16085_v30  ;;  %v1502_v2 = vmul.f32 %v11029_v55, %v16085_v30  ;;  %v1503_v21 = vmul.f32 %v11036_v59, %v16085_v30  ;;  %v11065_v29 = vld [vmem:[%s9886_s22 + $0x169] sm:$0xff] }
  0xc7   : > { %v1504_v20 = vmul.f32 %v11039_v4, %v16085_v30  ;;  %v1303_v57 = vmax.f32 %v1295_v42, %v1301_v38  ;;  %v1304_v46 = vadd.f32 %v1302_v16, %v10399_v44  ;;  %v1505_v35 = vmul.f32 %v11042_v43, %v16085_v30  ;;  %v11069_v42 = vld [vmem:[%s9886_s22 + $0x171] sm:$0xff]  ;;  %v1343_v33 = vld [vmem:[%s9886_s22 + $0x187] sm:$0xff] }
  0xc8   : > { %v1514_v48 = vadd.f32 %v1498_v32, %v1478_v18  ;;  %v1515_v52 = vadd.f32 %v1499_v50, %v1479_v37  ;;  %v1516_v22 = vadd.f32 %v1500_v39, %v1480_v63  ;;  %v1517_v31 = vadd.f32 %v1501_v12, %v1481_v23 }
  0xc9   : > { %v1518_v0 = vadd.f32 %v1502_v2, %v1482_v3  ;;  %v1305_v40 = vadd.f32 %v1303_v57, %v10399_v44  ;;  %v1306_v61 = vmax.f32 %v1304_v46, 0.0  ;;  %v1519_v41 = vadd.f32 %v1503_v21, %v1483_v10 }
  0xca   : > { %v1520_v49 = vadd.f32 %v1504_v20, %v1484_v51  ;;  %v1521_v9 = vadd.f32 %v1505_v35, %v1485_v13  ;;  %v1534_v18 = vmul.f32 %v10977_v11, %v16101_v8  ;;  %v1535_v37 = vmul.f32 %v10981_v53, %v16101_v8  ;;  %v1342_v11 = vld [vmem:[%s9886_s22 + $0x17f] sm:$0xff]  ;;  %v1345_v13 = vld [vmem:[%s9886_s22 + $0x197] sm:$0xff] }
  0xcb   : > { %v1536_v7 = vmul.f32 %v10984_v58, %v16101_v8  ;;  %v1307_v63 = vmax.f32 %v1305_v40, 0.0  ;;  %1308 = vst.msk [vmem:[#allocation3 + $0x40] sm:$0xff] %vm439_vm0, %v1306_v61  ;;  %v1537_v23 = vmul.f32 %v10987_v25, %v16101_v8  ;;  %v1538_v3 = vmul.f32 %v11062_v14, %v16101_v8  ;;  %v1344_v25 = vld [vmem:[%s9886_s22 + $0x18f] sm:$0xff]  ;;  %v1377_v40 = vld [vmem:[%s9886_s22 + $0x198] sm:$0xff] }
  0xcc   : > { %v1539_v26 = vmul.f32 %v11065_v29, %v16101_v8  ;;  %v1540_v53 = vmul.f32 %v11069_v42, %v16101_v8  ;;  %v1541_v58 = vmul.f32 %v11072_v60, %v16101_v8  ;;  %v1550_v10 = vadd.f32 %v1534_v18, %v1514_v48  ;;  %v1374_v48 = vld [vmem:[%s9886_s22 + $0x180] sm:$0xff] }
  0xcd   : > { %v1551_v51 = vadd.f32 %v1535_v37, %v1515_v52  ;;  %1309 = vst.msk [vmem:[#allocation3 + $0x48] sm:$0x3f] %vm900_vm1, %v1307_v63  ;;  %v1552_v32 = vadd.f32 %v1536_v7, %v1516_v22  ;;  %v1553_v38 = vadd.f32 %v1537_v23, %v1517_v31  ;;  %v1554_v16 = vadd.f32 %v1538_v3, %v1518_v0  ;;  %v1375_v52 = vld [vmem:[%s9886_s22 + $0x188] sm:$0xff] }
  0xce   : > { %v1555_v50 = vadd.f32 %v1539_v26, %v1519_v41  ;;  %v1556_v39 = vadd.f32 %v1540_v53, %v1520_v49  ;;  %v1557_v12 = vadd.f32 %v1541_v58, %v1521_v9  ;;  %v1570_v2 = vmul.f32 %v10997_v62, %v16107_v17  ;;  %v1422_v26 = vld [vmem:[%s9886_s22 + $0x181] sm:$0xff]  ;;  %v1424_v58 = vld [vmem:[%s9886_s22 + $0x191] sm:$0xff] }
  0xcf   : > { %v1571_v21 = vmul.f32 %v11008_v27, %v16107_v17  ;;  %v1572_v20 = vmul.f32 %v11011_v36, %v16107_v17  ;;  %v1573_v57 = vmul.f32 %v11014_v24, %v16107_v17  ;;  %v1574_v46 = vmul.f32 %v1342_v11, %v16107_v17  ;;  %v1376_v27 = vld [vmem:[%s9886_s22 + $0x190] sm:$0xff] }
  0xd0   : > { %v1575_v35 = vmul.f32 %v1343_v33, %v16107_v17  ;;  %v1576_v22 = vmul.f32 %v1344_v25, %v16107_v17  ;;  %v1577_v31 = vmul.f32 %v1345_v13, %v16107_v17  ;;  %v1586_v62 = vadd.f32 %v1570_v2, %v1550_v10  ;;  %v1423_v11 = vld [vmem:[%s9886_s22 + $0x189] sm:$0xff]  ;;  %v1425_v10 = vld [vmem:[%s9886_s22 + $0x199] sm:$0xff] }
  0xd1   : > { %v1587_v0 = vadd.f32 %v1571_v21, %v1551_v51  ;;  %v1588_v36 = vadd.f32 %v1572_v20, %v1552_v32  ;;  %v1589_v61 = vadd.f32 %v1573_v57, %v1553_v38  ;;  %v1590_v41 = vadd.f32 %v1574_v46, %v1554_v16  ;;  %v11131_v38 = vld [vmem:[%s15964_s1 + $0x8] ss:$0 sm:$0xff]  ;;  %v1733_v46 = vld [vmem:[%s9886_s22 + $0x1b7] sm:$0xff] }
  0xd2   : > { %v1591_v24 = vadd.f32 %v1575_v35, %v1555_v50  ;;  %v1592_v49 = vadd.f32 %v1576_v22, %v1556_v39  ;;  %v1593_v9 = vadd.f32 %v1577_v31, %v1557_v12  ;;  %v1606_v18 = vmul.f32 %v11029_v55, %v16108_v56  ;;  %v1730_v39 = vld [vmem:[%s9886_s22 + $0x19f] sm:$0xff]  ;;  %v1731_v12 = vld [vmem:[%s9886_s22 + $0x1a7] sm:$0xff]  ;;  %v11159_v31 = vld [vmem:[%s9886_s22 + $0x1d7] sm:$0xff] }
  0xd3   : > { %v1607_v37 = vmul.f32 %v11036_v59, %v16108_v56  ;;  %v1608_v7 = vmul.f32 %v11039_v4, %v16108_v56  ;;  %v1609_v63 = vmul.f32 %v11042_v43, %v16108_v56  ;;  %v1610_v23 = vmul.f32 %v1374_v48, %v16108_v56  ;;  %v11148_v35 = vld [vmem:[%s9886_s22 + $0x1bf] sm:$0xff]  ;;  %v11153_v22 = vld [vmem:[%s9886_s22 + $0x1c7] sm:$0xff] }
  0xd4   : > { %v1611_v3 = vmul.f32 %v1375_v52, %v16108_v56  ;;  %v1612_v33 = vmul.f32 %v1376_v27, %v16108_v56  ;;  %v1613_v55 = vmul.f32 %v1377_v40, %v16108_v56  ;;  %v1622_v53 = vadd.f32 %v1606_v18, %v1586_v62 }
  0xd5   : > { %v1623_v59 = vadd.f32 %v1607_v37, %v1587_v0  ;;  %v1624_v4 = vadd.f32 %v1608_v7, %v1588_v36  ;;  %v1625_v43 = vadd.f32 %v1609_v63, %v1589_v61  ;;  %v1626_v51 = vadd.f32 %v1610_v23, %v1590_v41  ;;  %v1762_v36 = vld [vmem:[%s9886_s22 + $0x1a0] sm:$0xff]  ;;  %v1763_v61 = vld [vmem:[%s9886_s22 + $0x1a8] sm:$0xff]  ;;  %v1764_v41 = vld [vmem:[%s9886_s22 + $0x1b0] sm:$0xff] }
  0xd6   : > { %v1627_v25 = vadd.f32 %v1611_v3, %v1591_v24  ;;  %v1628_v13 = vadd.f32 %v1612_v33, %v1592_v49  ;;  %v1629_v32 = vadd.f32 %v1613_v55, %v1593_v9  ;;  %v1642_v16 = vmul.f32 %v11131_v38, %v11062_v14  ;;  %v1732_v14 = vld [vmem:[%s9886_s22 + $0x1af] sm:$0xff]  ;;  %v1765_v37 = vld [vmem:[%s9886_s22 + $0x1b8] sm:$0xff]  ;;  %v11169_v7 = vld [vmem:[%s9886_s22 + $0x1c0] sm:$0xff] }
  0xd7   : > { %v1643_v50 = vmul.f32 %v11131_v38, %v11065_v29  ;;  %v1644_v2 = vmul.f32 %v11131_v38, %v11069_v42  ;;  %v1645_v21 = vmul.f32 %v11131_v38, %v11072_v60  ;;  %v1646_v20 = vmul.f32 %v11131_v38, %v1422_v26  ;;  %v11156_v60 = vld [vmem:[%s9886_s22 + $0x1cf] sm:$0xff]  ;;  %v11185_v55 = vld [vmem:[%s9886_s22 + $0x1d8] sm:$0xff] }
  0xd8   : > { %v1647_v57 = vmul.f32 %v11131_v38, %v1423_v11  ;;  %v1648_v29 = vmul.f32 %v11131_v38, %v1424_v58  ;;  %v1649_v48 = vmul.f32 %v11131_v38, %v1425_v10  ;;  %v1658_v52 = vadd.f32 %v1642_v16, %v1622_v53  ;;  %v11172_v63 = vld [vmem:[%s9886_s22 + $0x1c8] sm:$0xff]  ;;  %v11182_v33 = vld [vmem:[%s9886_s22 + $0x1d0] sm:$0xff] }
  0xd9   : > { %v1659_v42 = vadd.f32 %v1643_v50, %v1623_v59  ;;  %v1660_v62 = vadd.f32 %v1644_v2, %v1624_v4  ;;  %v1661_v0 = vadd.f32 %v1645_v21, %v1625_v43  ;;  %v1662_v27 = vadd.f32 %v1646_v20, %v1626_v51  ;;  %v1812_v16 = vld [vmem:[%s9886_s22 + $0x1b1] sm:$0xff]  ;;  %v1813_v21 = vld [vmem:[%s9886_s22 + $0x1b9] sm:$0xff]  ;;  %v11211_v20 = vld [vmem:[%s9886_s22 + $0x1c1] sm:$0xff] }
  0xda   : > { %v1663_v40 = vadd.f32 %v1647_v57, %v1627_v25  ;;  %v1664_v24 = vadd.f32 %v1648_v29, %v1628_v13  ;;  %v1665_v49 = vadd.f32 %v1649_v48, %v1629_v32  ;;  %1674 = vst.msk [vmem:[#allocation2] sm:$0xff] %vm439_vm0, %v1658_v52  ;;  %v1746_v9 = vmul.f32 %v1730_v39, %v16110_v15  ;;  %v1810_v13 = vld [vmem:[%s9886_s22 + $0x1a1] sm:$0xff]  ;;  %v1811_v32 = vld [vmem:[%s9886_s22 + $0x1a9] sm:$0xff]  ;;  %v11218_v52 = vld [vmem:[%s9886_s22 + $0x1d1] sm:$0xff] }
  0xdb   : > { %v1747_v18 = vmul.f32 %v1731_v12, %v16110_v15  ;;  %1675 = vst.msk [vmem:[#allocation2 + $0x8] sm:$0xff] %vm439_vm0, %v1659_v42  ;;  %v1748_v23 = vmul.f32 %v1732_v14, %v16110_v15  ;;  %v1749_v3 = vmul.f32 %v1733_v46, %v16110_v15  ;;  %v1750_v26 = vmul.f32 %v11148_v35, %v16110_v15  ;;  %v11214_v57 = vld [vmem:[%s9886_s22 + $0x1c9] sm:$0xff]  ;;  %v11221_v42 = vld [vmem:[%s9886_s22 + $0x1d9] sm:$0xff] }
  0xdc   : > { %v1751_v11 = vmul.f32 %v11153_v22, %v16110_v15  ;;  %1676 = vst.msk [vmem:[#allocation2 + $0x10] sm:$0xff] %vm439_vm0, %v1660_v62  ;;  %v1752_v53 = vmul.f32 %v11156_v60, %v16110_v15  ;;  %v1753_v59 = vmul.f32 %v11159_v31, %v16110_v15  ;;  %v1778_v58 = vmul.f32 %v1762_v36, %v16111_v34 }
  0xdd   : > { %v1779_v10 = vmul.f32 %v1763_v61, %v16111_v34  ;;  %1677 = vst.msk [vmem:[#allocation2 + $0x18] sm:$0xff] %vm439_vm0, %v1661_v0  ;;  %v1780_v4 = vmul.f32 %v1764_v41, %v16111_v34  ;;  %v1781_v43 = vmul.f32 %v1765_v37, %v16111_v34  ;;  %v1782_v51 = vmul.f32 %v11169_v7, %v16111_v34 }
  0xde   : > { %v1783_v25 = vmul.f32 %v11172_v63, %v16111_v34  ;;  %1678 = vst.msk [vmem:[#allocation2 + $0x20] sm:$0xff] %vm439_vm0, %v1662_v27  ;;  %v1784_v50 = vmul.f32 %v11182_v33, %v16111_v34  ;;  %v1785_v39 = vmul.f32 %v11185_v55, %v16111_v34  ;;  %v1794_v12 = vadd.f32 %v1778_v58, %v1746_v9  ;;  %v11234_v9 = vld [vmem:[%s9886_s22 + $0x1df] sm:$0xff] }
  0xdf   : > { %v1795_v2 = vadd.f32 %v1779_v10, %v1747_v18  ;;  %1679 = vst.msk [vmem:[#allocation2 + $0x28] sm:$0xff] %vm439_vm0, %v1663_v40  ;;  %v1796_v14 = vadd.f32 %v1780_v4, %v1748_v23  ;;  %v1797_v46 = vadd.f32 %v1781_v43, %v1749_v3  ;;  %v1798_v29 = vadd.f32 %v1782_v51, %v1750_v26  ;;  %v11237_v18 = vld [vmem:[%s9886_s22 + $0x1e7] sm:$0xff]  ;;  %v11244_v26 = vld [vmem:[%s9886_s22 + $0x1ef] sm:$0xff] }
  0xe0   : > { %v1799_v48 = vadd.f32 %v1783_v25, %v1751_v11  ;;  %1680 = vst.msk [vmem:[#allocation2 + $0x30] sm:$0xff] %vm439_vm0, %v1664_v24  ;;  %v1800_v62 = vadd.f32 %v1784_v50, %v1752_v53  ;;  %v1801_v0 = vadd.f32 %v1785_v39, %v1753_v59  ;;  %v1826_v27 = vmul.f32 %v1810_v13, %v16064_v45  ;;  %v11247_v11 = vld [vmem:[%s9886_s22 + $0x1f7] sm:$0xff]  ;;  %v11262_v39 = vld [vmem:[%s9886_s22 + $0x1e0] sm:$0xff] }
  0xe1   : > { %v1827_v40 = vmul.f32 %v1811_v32, %v16064_v45  ;;  %1681 = vst.msk [vmem:[#allocation2 + $0x38] sm:$0xff] %vm439_vm0, %v1665_v49  ;;  %v1828_v36 = vmul.f32 %v1812_v16, %v16064_v45  ;;  %v1829_v61 = vmul.f32 %v1813_v21, %v16064_v45  ;;  %v1830_v41 = vmul.f32 %v11211_v20, %v16064_v45  ;;  %v11275_v21 = vld [vmem:[%s9886_s22 + $0x1f8] sm:$0xff] }
  0xe2   : > { %v1831_v24 = vmul.f32 %v11214_v57, %v16064_v45  ;;  %v1832_v37 = vmul.f32 %v11218_v52, %v16064_v45  ;;  %v1833_v49 = vmul.f32 %v11221_v42, %v16064_v45  ;;  %v1842_v23 = vadd.f32 %v1826_v27, %v1794_v12  ;;  %v11265_v12 = vld [vmem:[%s9886_s22 + $0x1e8] sm:$0xff] }
  0xe3   : > { %v1843_v3 = vadd.f32 %v1827_v40, %v1795_v2  ;;  %v1844_v53 = vadd.f32 %v1828_v36, %v1796_v14  ;;  %v1845_v59 = vadd.f32 %v1829_v61, %v1797_v46  ;;  %v1846_v58 = vadd.f32 %v1830_v41, %v1798_v29 }
  0xe4   : > { %v1847_v10 = vadd.f32 %v1831_v24, %v1799_v48  ;;  %v1848_v4 = vadd.f32 %v1832_v37, %v1800_v62  ;;  %v1849_v43 = vadd.f32 %v1833_v49, %v1801_v0  ;;  %v1862_v51 = vmul.f32 %v11148_v35, %v9879_v5  ;;  %v11290_v37 = vld [vmem:[%s9886_s22 + $0x1e1] sm:$0xff]  ;;  %v11293_v49 = vld [vmem:[%s9886_s22 + $0x1e9] sm:$0xff] }
  0xe5   : > { %v1863_v25 = vmul.f32 %v11153_v22, %v9879_v5  ;;  %v1864_v13 = vmul.f32 %v11156_v60, %v9879_v5  ;;  %v1865_v32 = vmul.f32 %v11159_v31, %v9879_v5  ;;  %v1866_v16 = vmul.f32 %v11234_v9, %v9879_v5  ;;  %v11272_v31 = vld [vmem:[%s9886_s22 + $0x1f0] sm:$0xff] }
  0xe6   : > { %v1867_v50 = vmul.f32 %v11237_v18, %v9879_v5  ;;  %v1868_v35 = vmul.f32 %v11244_v26, %v9879_v5  ;;  %v1869_v22 = vmul.f32 %v11247_v11, %v9879_v5  ;;  %v1878_v60 = vadd.f32 %v1862_v51, %v1842_v23 }
  0xe7   : > { %v1879_v2 = vadd.f32 %v1863_v25, %v1843_v3  ;;  %v1880_v14 = vadd.f32 %v1864_v13, %v1844_v53  ;;  %v1881_v46 = vadd.f32 %v1865_v32, %v1845_v59  ;;  %v1882_v29 = vadd.f32 %v1866_v16, %v1846_v58  ;;  %v11303_v3 = vld [vmem:[%s9886_s22 + $0x1f9] sm:$0xff] }
  0xe8   : > { %v1883_v48 = vadd.f32 %v1867_v50, %v1847_v10  ;;  %v1884_v62 = vadd.f32 %v1868_v35, %v1848_v4  ;;  %v1885_v0 = vadd.f32 %v1869_v22, %v1849_v43  ;;  %v1898_v27 = vmul.f32 %v11169_v7, %v16085_v30  ;;  %v1742_v35 = vld [vmem:[%s9886_s22 + $0x1ff] sm:$0xff]  ;;  %v1743_v22 = vld [vmem:[%s9886_s22 + $0x207] sm:$0xff] }
  0xe9   : > { %v1899_v40 = vmul.f32 %v11172_v63, %v16085_v30  ;;  %v1900_v36 = vmul.f32 %v11182_v33, %v16085_v30  ;;  %v1901_v61 = vmul.f32 %v11185_v55, %v16085_v30  ;;  %v1902_v41 = vmul.f32 %v11262_v39, %v16085_v30  ;;  %v11300_v55 = vld [vmem:[%s9886_s22 + $0x1f1] sm:$0xff] }
  0xea   : > { %v1903_v24 = vmul.f32 %v11265_v12, %v16085_v30  ;;  %v1904_v7 = vmul.f32 %v11272_v31, %v16085_v30  ;;  %v1905_v63 = vmul.f32 %v11275_v21, %v16085_v30  ;;  %v1914_v33 = vadd.f32 %v1898_v27, %v1878_v60 }
  0xeb   : > { %v1915_v23 = vadd.f32 %v1899_v40, %v1879_v2  ;;  %v1916_v53 = vadd.f32 %v1900_v36, %v1880_v14  ;;  %v1917_v59 = vadd.f32 %v1901_v61, %v1881_v46  ;;  %v1918_v58 = vadd.f32 %v1902_v41, %v1882_v29  ;;  %v1744_v2 = vld [vmem:[%s9886_s22 + $0x20f] sm:$0xff] }
  0xec   : > { %v1919_v10 = vadd.f32 %v1903_v24, %v1883_v48  ;;  %v1920_v4 = vadd.f32 %v1904_v7, %v1884_v62  ;;  %v1921_v43 = vadd.f32 %v1905_v63, %v1885_v0  ;;  %v1934_v51 = vmul.f32 %v11211_v20, %v16101_v8  ;;  %v1774_v7 = vld [vmem:[%s9886_s22 + $0x200] sm:$0xff]  ;;  %v1775_v63 = vld [vmem:[%s9886_s22 + $0x208] sm:$0xff] }
  0xed   : > { %v1935_v25 = vmul.f32 %v11214_v57, %v16101_v8  ;;  %v1936_v13 = vmul.f32 %v11218_v52, %v16101_v8  ;;  %v1937_v32 = vmul.f32 %v11221_v42, %v16101_v8  ;;  %v1938_v16 = vmul.f32 %v11290_v37, %v16101_v8  ;;  %v1745_v42 = vld [vmem:[%s9886_s22 + $0x217] sm:$0xff] }
  0xee   : > { %v1939_v50 = vmul.f32 %v11293_v49, %v16101_v8  ;;  %v1940_v20 = vmul.f32 %v11300_v55, %v16101_v8  ;;  %v1941_v57 = vmul.f32 %v11303_v3, %v16101_v8  ;;  %v1950_v60 = vadd.f32 %v1934_v51, %v1914_v33 }
  0xef   : > { %v1951_v52 = vadd.f32 %v1935_v25, %v1915_v23  ;;  %v1952_v14 = vadd.f32 %v1936_v13, %v1916_v53  ;;  %v1953_v46 = vadd.f32 %v1937_v32, %v1917_v59  ;;  %v1954_v29 = vadd.f32 %v1938_v16, %v1918_v58 }
  0xf0   : > { %v1955_v48 = vadd.f32 %v1939_v50, %v1919_v10  ;;  %v1956_v62 = vadd.f32 %v1940_v20, %v1920_v4  ;;  %v1957_v0 = vadd.f32 %v1941_v57, %v1921_v43  ;;  %v1970_v27 = vmul.f32 %v11234_v9, %v16107_v17  ;;  %v1824_v20 = vld [vmem:[%s9886_s22 + $0x211] sm:$0xff] }
  0xf1   : > { %v1971_v40 = vmul.f32 %v11237_v18, %v16107_v17  ;;  %v1972_v36 = vmul.f32 %v11244_v26, %v16107_v17  ;;  %v1973_v61 = vmul.f32 %v11247_v11, %v16107_v17  ;;  %v1974_v41 = vmul.f32 %v1742_v35, %v16107_v17  ;;  %v1776_v18 = vld [vmem:[%s9886_s22 + $0x210] sm:$0xff]  ;;  %v1777_v26 = vld [vmem:[%s9886_s22 + $0x218] sm:$0xff]  ;;  %v1822_v35 = vld [vmem:[%s9886_s22 + $0x201] sm:$0xff] }
  0xf2   : > { %v1975_v24 = vmul.f32 %v1743_v22, %v16107_v17  ;;  %v1976_v33 = vmul.f32 %v1744_v2, %v16107_v17  ;;  %v1977_v23 = vmul.f32 %v1745_v42, %v16107_v17  ;;  %v1986_v9 = vadd.f32 %v1970_v27, %v1950_v60  ;;  %v1823_v22 = vld [vmem:[%s9886_s22 + $0x209] sm:$0xff]  ;;  %v1825_v60 = vld [vmem:[%s9886_s22 + $0x219] sm:$0xff] }
  0xf3   : > { %v1987_v53 = vadd.f32 %v1971_v40, %v1951_v52  ;;  %v1988_v59 = vadd.f32 %v1972_v36, %v1952_v14  ;;  %v1989_v58 = vadd.f32 %v1973_v61, %v1953_v46  ;;  %v1990_v11 = vadd.f32 %v1974_v41, %v1954_v29  ;;  %v2130_v14 = vld [vmem:[%s9886_s22 + $0x21f] sm:$0xff]  ;;  %v2131_v46 = vld [vmem:[%s9886_s22 + $0x227] sm:$0xff]  ;;  %v2132_v27 = vld [vmem:[%s9886_s22 + $0x22f] sm:$0xff] }
  0xf4   : > { %v1991_v10 = vadd.f32 %v1975_v24, %v1955_v48  ;;  %v1992_v4 = vadd.f32 %v1976_v33, %v1956_v62  ;;  %v1993_v43 = vadd.f32 %v1977_v23, %v1957_v0  ;;  %v2006_v51 = vmul.f32 %v11262_v39, %v16108_v56  ;;  %v2133_v40 = vld [vmem:[%s9886_s22 + $0x237] sm:$0xff]  ;;  %v11366_v36 = vld [vmem:[%s9886_s22 + $0x23f] sm:$0xff]  ;;  %v11369_v61 = vld [vmem:[%s9886_s22 + $0x247] sm:$0xff] }
  0xf5   : > { %v2007_v25 = vmul.f32 %v11265_v12, %v16108_v56  ;;  %v2008_v13 = vmul.f32 %v11272_v31, %v16108_v56  ;;  %v2009_v32 = vmul.f32 %v11275_v21, %v16108_v56  ;;  %v2010_v16 = vmul.f32 %v1774_v7, %v16108_v56  ;;  %v11371_v41 = vld [vmem:[#allocation2] ss:$2 sm:$0xff]  ;;  %v11373_v24 = vld [vmem:[#allocation2 + $0x1] ss:$2 sm:$0xff]  ;;  %v11385_v23 = vld [vmem:[%s9886_s22 + $0x257] sm:$0xff] }
  0xf6   : > { %v2011_v50 = vmul.f32 %v1775_v63, %v16108_v56  ;;  %v2012_v39 = vmul.f32 %v1776_v18, %v16108_v56  ;;  %v2013_v12 = vmul.f32 %v1777_v26, %v16108_v56  ;;  %v2022_v31 = vadd.f32 %v2006_v51, %v1986_v9  ;;  %16112 = vst [vmem:[#allocation39_spill] sm:$0xff] %v11371_v41  ;;  %v11382_v33 = vld [vmem:[%s9886_s22 + $0x24f] sm:$0xff]  ;;  %v2162_v9 = vld [vmem:[%s9886_s22 + $0x220] sm:$0xff] }
  0xf7   : > { %v2023_v57 = vadd.f32 %v2007_v25, %v1987_v53  ;;  %v2024_v21 = vadd.f32 %v2008_v13, %v1988_v59  ;;  %v2025_v52 = vadd.f32 %v2009_v32, %v1989_v58  ;;  %v2026_v2 = vadd.f32 %v2010_v16, %v1990_v11  ;;  %16113 = vst [vmem:[#allocation27_spill] sm:$0xff] %v11373_v24  ;;  %v2165_v58 = vld [vmem:[%s9886_s22 + $0x238] sm:$0xff] }
  0xf8   : > { %v2027_v42 = vadd.f32 %v2011_v50, %v1991_v10  ;;  %v2028_v29 = vadd.f32 %v2012_v39, %v1992_v4  ;;  %v2029_v48 = vadd.f32 %v2013_v12, %v1993_v43  ;;  %v2042_v62 = vmul.f32 %v11131_v38, %v11290_v37  ;;  %v11393_v11 = vld [vmem:[#allocation2 + $0x10] ss:$2 sm:$0x3f]  ;;  %v11395_v10 = vld [vmem:[#allocation2 + $0x11] ss:$2 sm:$0x3f] }
  0xf9   : > { %v2043_v0 = vmul.f32 %v11131_v38, %v11293_v49  ;;  %v2044_v7 = vmul.f32 %v11131_v38, %v11300_v55  ;;  %v2045_v37 = vmul.f32 %v11131_v38, %v11303_v3  ;;  %v2046_v49 = vmul.f32 %v11131_v38, %v1822_v35  ;;  %v2163_v55 = vld [vmem:[%s9886_s22 + $0x228] sm:$0xff]  ;;  %v2164_v3 = vld [vmem:[%s9886_s22 + $0x230] sm:$0xff]  ;;  %16114 = vst [vmem:[#allocation33_spill] sm:$0xff] %v11393_v11  ;;  %v11401_v35 = vld [vmem:[%s9886_s22 + $0x240] sm:$0xff] }
  0xfa   : > { %v2047_v63 = vmul.f32 %v11131_v38, %v1823_v22  ;;  %v2048_v53 = vmul.f32 %v11131_v38, %v1824_v20  ;;  %v2049_v18 = vmul.f32 %v11131_v38, %v1825_v60  ;;  %v2058_v26 = vadd.f32 %v2042_v62, %v2022_v31  ;;  %16115 = vst [vmem:[#allocation34_spill] sm:$0xff] %v11395_v10  ;;  %v11404_v22 = vld [vmem:[%s9886_s22 + $0x248] sm:$0xff]  ;;  %v11407_v20 = vld [vmem:[%s9886_s22 + $0x250] sm:$0xff] }
  0xfb   : > { %v2059_v59 = vadd.f32 %v2043_v0, %v2023_v57  ;;  %v2060_v4 = vadd.f32 %v2044_v7, %v2024_v21  ;;  %v2061_v43 = vadd.f32 %v2045_v37, %v2025_v52  ;;  %v2062_v51 = vadd.f32 %v2046_v49, %v2026_v2  ;;  %v11409_v39 = vld [vmem:[#allocation2 + $0x20] ss:$2 sm:$0xff]  ;;  %v11411_v12 = vld [vmem:[#allocation2 + $0x21] ss:$2 sm:$0xff]  ;;  %v11421_v52 = vld [vmem:[%s9886_s22 + $0x258] sm:$0xff] }
  0xfc   : > { %v2063_v25 = vadd.f32 %v2047_v63, %v2027_v42  ;;  %v2064_v13 = vadd.f32 %v2048_v53, %v2028_v29  ;;  %v2065_v32 = vadd.f32 %v2049_v18, %v2029_v48  ;;  %2074 = vst.msk [vmem:[#allocation2] sm:$0xff] %vm439_vm0, %v2058_v26  ;;  %v2146_v16 = vmul.f32 %v2130_v14, %v16110_v15  ;;  %v11423_v2 = vld [vmem:[#allocation2 + $0x30] ss:$2 sm:$0x3f]  ;;  %v2210_v48 = vld [vmem:[%s9886_s22 + $0x221] sm:$0xff] }
  0xfd   : > { %v2147_v50 = vmul.f32 %v2131_v46, %v16110_v15  ;;  %16116 = vst [vmem:[#allocation35_spill] sm:$0xff] %v11409_v39  ;;  %v2148_v31 = vmul.f32 %v2132_v27, %v16110_v15  ;;  %v2149_v57 = vmul.f32 %v2133_v40, %v16110_v15  ;;  %v2150_v60 = vmul.f32 %v11366_v36, %v16110_v15  ;;  %v11433_v62 = vld [vmem:[#allocation2 + $0x31] ss:$2 sm:$0x3f]  ;;  %v2211_v37 = vld [vmem:[%s9886_s22 + $0x229] sm:$0xff] }
  0xfe   : > { %16117 = vst [vmem:[#allocation40_spill] sm:$0xff] %v11411_v12  ;;  %v2151_v21 = vmul.f32 %v11369_v61, %v16110_v15  ;;  %v2152_v42 = vmul.f32 %v11382_v33, %v16110_v15  ;;  %v2153_v14 = vmul.f32 %v11385_v23, %v16110_v15  ;;  %v2178_v46 = vmul.f32 %v2162_v9, %v16111_v34  ;;  %v2212_v49 = vld [vmem:[%s9886_s22 + $0x231] sm:$0xff]  ;;  %v2213_v26 = vld [vmem:[%s9886_s22 + $0x239] sm:$0xff] }
  0xff   : > { %2075 = vst.msk [vmem:[#allocation2 + $0x8] sm:$0xff] %vm439_vm0, %v2059_v59  ;;  %v2179_v29 = vmul.f32 %v2163_v55, %v16111_v34  ;;  %v2180_v0 = vmul.f32 %v2164_v3, %v16111_v34  ;;  %v2181_v27 = vmul.f32 %v2165_v58, %v16111_v34  ;;  %v2182_v40 = vmul.f32 %v11401_v35, %v16111_v34  ;;  %v11451_v59 = vld [vmem:[%s9886_s22 + $0x241] sm:$0xff]  ;;  %v11454_v55 = vld [vmem:[%s9886_s22 + $0x249] sm:$0xff] }
 0x100   : > { %16118 = vst [vmem:[#allocation21_spill] sm:$0xff] %v11423_v2  ;;  %v2183_v7 = vmul.f32 %v11404_v22, %v16111_v34  ;;  %v2184_v63 = vmul.f32 %v11407_v20, %v16111_v34  ;;  %v2185_v9 = vmul.f32 %v11421_v52, %v16111_v34  ;;  %v2194_v53 = vadd.f32 %v2178_v46, %v2146_v16  ;;  %v11461_v2 = vld [vmem:[%s9886_s22 + $0x259] sm:$0xff] }
 0x101   : > { %2076 = vst.msk [vmem:[#allocation2 + $0x10] sm:$0xff] %vm439_vm0, %v2060_v4  ;;  %v2195_v18 = vadd.f32 %v2179_v29, %v2147_v50  ;;  %v2196_v3 = vadd.f32 %v2180_v0, %v2148_v31  ;;  %v2197_v58 = vadd.f32 %v2181_v27, %v2149_v57  ;;  %v2198_v4 = vadd.f32 %v2182_v40, %v2150_v60  ;;  %v11484_v0 = vld [vmem:[%s9886_s22 + $0x26f] sm:$0xff]  ;;  %v11487_v27 = vld [vmem:[%s9886_s22 + $0x277] sm:$0xff] }
 0x102   : > { %16119 = vst [vmem:[#allocation22_spill] sm:$0xff] %v11433_v62  ;;  %v2200_v16 = vadd.f32 %v2184_v63, %v2152_v42  ;;  %v2201_v50 = vadd.f32 %v2185_v9, %v2153_v14  ;;  %v2226_v46 = vmul.f32 %v2210_v48, %v16064_v45  ;;  %v2228_v31 = vmul.f32 %v2212_v49, %v16064_v45  ;;  %v11477_v42 = vld [vmem:[%s9886_s22 + $0x267] sm:$0xff] }
 0x103   : > { %2077 = vst.msk [vmem:[#allocation2 + $0x18] sm:$0xff] %vm439_vm0, %v2061_v43  ;;  %v2199_v43 = vadd.f32 %v2183_v7, %v2151_v21  ;;  %v2229_v57 = vmul.f32 %v2213_v26, %v16064_v45  ;;  %v2230_v60 = vmul.f32 %v11451_v59, %v16064_v45  ;;  %v11474_v21 = vld [vmem:[%s9886_s22 + $0x25f] sm:$0xff]  ;;  %v2262_v26 = vmul.f32 %v11366_v36, %v9879_v5 }
 0x104   : > { %2078 = vst.msk [vmem:[#allocation2 + $0x20] sm:$0xff] %vm439_vm0, %v2062_v51  ;;  %v11458_v51 = vld [vmem:[%s9886_s22 + $0x251] sm:$0xff]  ;;  %v2242_v29 = vadd.f32 %v2226_v46, %v2194_v53  ;;  %v2244_v40 = vadd.f32 %v2228_v31, %v2196_v3  ;;  %v2263_v53 = vmul.f32 %v11369_v61, %v9879_v5  ;;  %v2265_v46 = vmul.f32 %v11385_v23, %v9879_v5 }
 0x105   : > { %2079 = vst.msk [vmem:[#allocation2 + $0x28] sm:$0xff] %vm439_vm0, %v2063_v25  ;;  %v2227_v25 = vmul.f32 %v2211_v37, %v16064_v45  ;;  %v2232_v14 = vmul.f32 %v11458_v51, %v16064_v45  ;;  %v2245_v7 = vadd.f32 %v2229_v57, %v2197_v58  ;;  %v2246_v37 = vadd.f32 %v2230_v60, %v2198_v4  ;;  %v11502_v4 = vld [vmem:[%s9886_s22 + $0x260] sm:$0xff]  ;;  %v11512_v23 = vld [vmem:[%s9886_s22 + $0x270] sm:$0xff] }
 0x106   : > { %2080 = vst.msk [vmem:[#allocation2 + $0x30] sm:$0xff] %vm439_vm0, %v2064_v13  ;;  %v2231_v13 = vmul.f32 %v11454_v55, %v16064_v45  ;;  %v2266_v3 = vmul.f32 %v11474_v21, %v9879_v5  ;;  %v2267_v58 = vmul.f32 %v11477_v42, %v9879_v5  ;;  %v2268_v36 = vmul.f32 %v11484_v0, %v9879_v5 }
 0x107   : > { %2081 = vst.msk [vmem:[#allocation2 + $0x38] sm:$0xff] %vm439_vm0, %v2065_v32  ;;  %v2233_v32 = vmul.f32 %v11461_v2, %v16064_v45  ;;  %v2243_v48 = vadd.f32 %v2227_v25, %v2195_v18  ;;  %v2248_v63 = vadd.f32 %v2232_v14, %v2200_v16  ;;  %v2264_v18 = vmul.f32 %v11382_v33, %v9879_v5 }
 0x108   : > { %v2247_v49 = vadd.f32 %v2231_v13, %v2199_v43  ;;  %v11505_v43 = vld [vmem:[%s9886_s22 + $0x268] sm:$0xff]  ;;  %v2269_v61 = vmul.f32 %v11487_v27, %v9879_v5  ;;  %v2278_v33 = vadd.f32 %v2262_v26, %v2242_v29  ;;  %v2281_v31 = vadd.f32 %v2265_v46, %v2245_v7 }
 0x109   : > { %v2249_v9 = vadd.f32 %v2233_v32, %v2201_v50  ;;  %v2279_v16 = vadd.f32 %v2263_v53, %v2243_v48  ;;  %v11515_v50 = vld [vmem:[%s9886_s22 + $0x278] sm:$0xff]  ;;  %v2280_v25 = vadd.f32 %v2264_v18, %v2244_v40  ;;  %v2282_v57 = vadd.f32 %v2266_v3, %v2246_v37  ;;  %v11530_v37 = vld [vmem:[%s9886_s22 + $0x261] sm:$0xff] }
 0x10a   : > { %v2283_v60 = vadd.f32 %v2267_v58, %v2247_v49  ;;  %v2284_v13 = vadd.f32 %v2268_v36, %v2248_v63  ;;  %v2298_v32 = vmul.f32 %v11401_v35, %v16085_v30  ;;  %v2299_v29 = vmul.f32 %v11404_v22, %v16085_v30  ;;  %v11533_v49 = vld [vmem:[%s9886_s22 + $0x269] sm:$0xff] }
 0x10b   : > { %v2285_v14 = vadd.f32 %v2269_v61, %v2249_v9  ;;  %v2300_v48 = vmul.f32 %v11407_v20, %v16085_v30  ;;  %v2301_v26 = vmul.f32 %v11421_v52, %v16085_v30  ;;  %v2302_v40 = vmul.f32 %v11502_v4, %v16085_v30  ;;  %v11540_v52 = vld [vmem:[%s9886_s22 + $0x271] sm:$0xff]  ;;  %v11543_v9 = vld [vmem:[%s9886_s22 + $0x279] sm:$0xff] }
 0x10c   : > { %v2303_v7 = vmul.f32 %v11505_v43, %v16085_v30  ;;  %v2304_v35 = vmul.f32 %v11512_v23, %v16085_v30  ;;  %v2305_v22 = vmul.f32 %v11515_v50, %v16085_v30  ;;  %v2314_v20 = vadd.f32 %v2298_v32, %v2278_v33 }
 0x10d   : > { %v2315_v63 = vadd.f32 %v2299_v29, %v2279_v16  ;;  %v2316_v53 = vadd.f32 %v2300_v48, %v2280_v25  ;;  %v2317_v18 = vadd.f32 %v2301_v26, %v2281_v31  ;;  %v2318_v46 = vadd.f32 %v2302_v40, %v2282_v57  ;;  %v2142_v57 = vld [vmem:[%s9886_s22 + $0x27f] sm:$0xff] }
 0x10e   : > { %v2319_v3 = vadd.f32 %v2303_v7, %v2283_v60  ;;  %v2320_v58 = vadd.f32 %v2304_v35, %v2284_v13  ;;  %v2321_v36 = vadd.f32 %v2305_v22, %v2285_v14  ;;  %v2334_v61 = vmul.f32 %v11451_v59, %v16101_v8  ;;  %v2143_v60 = vld [vmem:[%s9886_s22 + $0x287] sm:$0xff]  ;;  %v2144_v14 = vld [vmem:[%s9886_s22 + $0x28f] sm:$0xff] }
 0x10f   : > { %v2335_v33 = vmul.f32 %v11454_v55, %v16101_v8  ;;  %v2336_v16 = vmul.f32 %v11458_v51, %v16101_v8  ;;  %v2337_v32 = vmul.f32 %v11461_v2, %v16101_v8  ;;  %v2338_v25 = vmul.f32 %v11530_v37, %v16101_v8  ;;  %v2145_v2 = vld [vmem:[%s9886_s22 + $0x297] sm:$0xff] }
 0x110   : > { %v2339_v31 = vmul.f32 %v11533_v49, %v16101_v8  ;;  %v2340_v59 = vmul.f32 %v11540_v52, %v16101_v8  ;;  %v2341_v55 = vmul.f32 %v11543_v9, %v16101_v8  ;;  %v2350_v13 = vadd.f32 %v2334_v61, %v2314_v20 }
 0x111   : > { %v2351_v51 = vadd.f32 %v2335_v33, %v2315_v63  ;;  %v2352_v29 = vadd.f32 %v2336_v16, %v2316_v53  ;;  %v2353_v48 = vadd.f32 %v2337_v32, %v2317_v18  ;;  %v2354_v26 = vadd.f32 %v2338_v25, %v2318_v46  ;;  %v2174_v46 = vld [vmem:[%s9886_s22 + $0x280] sm:$0xff] }
 0x112   : > { %v2355_v40 = vadd.f32 %v2339_v31, %v2319_v3  ;;  %v2356_v7 = vadd.f32 %v2340_v59, %v2320_v58  ;;  %v2357_v35 = vadd.f32 %v2341_v55, %v2321_v36  ;;  %v2370_v22 = vmul.f32 %v11474_v21, %v16107_v17  ;;  %v2175_v3 = vld [vmem:[%s9886_s22 + $0x288] sm:$0xff] }
 0x113   : > { %v2371_v62 = vmul.f32 %v11477_v42, %v16107_v17  ;;  %v2372_v20 = vmul.f32 %v11484_v0, %v16107_v17  ;;  %v2373_v63 = vmul.f32 %v11487_v27, %v16107_v17  ;;  %v2374_v53 = vmul.f32 %v2142_v57, %v16107_v17  ;;  %v2176_v42 = vld [vmem:[%s9886_s22 + $0x290] sm:$0xff]  ;;  %v2177_v0 = vld [vmem:[%s9886_s22 + $0x298] sm:$0xff] }
 0x114   : > { %v2375_v18 = vmul.f32 %v2143_v60, %v16107_v17  ;;  %v2376_v58 = vmul.f32 %v2144_v14, %v16107_v17  ;;  %v2377_v36 = vmul.f32 %v2145_v2, %v16107_v17  ;;  %v2386_v21 = vadd.f32 %v2370_v22, %v2350_v13  ;;  %v2223_v14 = vld [vmem:[%s9886_s22 + $0x289] sm:$0xff]  ;;  %v2224_v2 = vld [vmem:[%s9886_s22 + $0x291] sm:$0xff] }
 0x115   : > { %v2387_v61 = vadd.f32 %v2371_v62, %v2351_v51  ;;  %v2388_v33 = vadd.f32 %v2372_v20, %v2352_v29  ;;  %v2389_v16 = vadd.f32 %v2373_v63, %v2353_v48  ;;  %v2390_v27 = vadd.f32 %v2374_v53, %v2354_v26  ;;  %v2222_v51 = vld [vmem:[%s9886_s22 + $0x281] sm:$0xff]  ;;  %v2225_v48 = vld [vmem:[%s9886_s22 + $0x299] sm:$0xff] }
 0x116   : > { %v2391_v32 = vadd.f32 %v2375_v18, %v2355_v40  ;;  %v2392_v25 = vadd.f32 %v2376_v58, %v2356_v7  ;;  %v2393_v31 = vadd.f32 %v2377_v36, %v2357_v35  ;;  %v2406_v57 = vmul.f32 %v11502_v4, %v16108_v56  ;;  %v2530_v35 = vld [vmem:[%s9886_s22 + $0x29f] sm:$0xff]  ;;  %v2531_v22 = vld [vmem:[%s9886_s22 + $0x2a7] sm:$0xff] }
 0x117   : > { %v2407_v60 = vmul.f32 %v11505_v43, %v16108_v56  ;;  %v2408_v62 = vmul.f32 %v11512_v23, %v16108_v56  ;;  %v2409_v59 = vmul.f32 %v11515_v50, %v16108_v56  ;;  %v2410_v55 = vmul.f32 %v2174_v46, %v16108_v56  ;;  %v2532_v46 = vld [vmem:[%s9886_s22 + $0x2af] sm:$0xff]  ;;  %v11606_v58 = vld [vmem:[%s9886_s22 + $0x2bf] sm:$0xff]  ;;  %v11609_v36 = vld [vmem:[%s9886_s22 + $0x2c7] sm:$0xff] }
 0x118   : > { %v2411_v13 = vmul.f32 %v2175_v3, %v16108_v56  ;;  %v2412_v4 = vmul.f32 %v2176_v42, %v16108_v56  ;;  %v2413_v43 = vmul.f32 %v2177_v0, %v16108_v56  ;;  %v2422_v23 = vadd.f32 %v2406_v57, %v2386_v21  ;;  %v2533_v3 = vld [vmem:[%s9886_s22 + $0x2b7] sm:$0xff]  ;;  %v11611_v21 = vld [vmem:[#allocation2] ss:$2 sm:$0xff] }
 0x119   : > { %v2423_v29 = vadd.f32 %v2407_v60, %v2387_v61  ;;  %v2424_v50 = vadd.f32 %v2408_v62, %v2388_v33  ;;  %v2425_v26 = vadd.f32 %v2409_v59, %v2389_v16  ;;  %v2426_v40 = vadd.f32 %v2410_v55, %v2390_v27  ;;  %16120 = vst [vmem:[#allocation23_spill] sm:$0xff] %v11611_v21  ;;  %v11613_v61 = vld [vmem:[#allocation2 + $0x1] ss:$2 sm:$0xff]  ;;  %v11625_v16 = vld [vmem:[%s9886_s22 + $0x2d7] sm:$0xff] }
 0x11a   : > { %v2427_v7 = vadd.f32 %v2411_v13, %v2391_v32  ;;  %v2428_v20 = vadd.f32 %v2412_v4, %v2392_v25  ;;  %v2429_v63 = vadd.f32 %v2413_v43, %v2393_v31  ;;  %v2442_v53 = vmul.f32 %v11131_v38, %v11530_v37  ;;  %16121 = vst [vmem:[#allocation24_spill] sm:$0xff] %v11613_v61  ;;  %v11622_v33 = vld [vmem:[%s9886_s22 + $0x2cf] sm:$0xff]  ;;  %v2562_v27 = vld [vmem:[%s9886_s22 + $0x2a0] sm:$0xff]  ;;  %v2565_v60 = vld [vmem:[%s9886_s22 + $0x2b8] sm:$0xff] }
 0x11b   : > { %v2443_v18 = vmul.f32 %v11131_v38, %v11533_v49  ;;  %v2444_v42 = vmul.f32 %v11131_v38, %v11540_v52  ;;  %v2445_v37 = vmul.f32 %v11131_v38, %v11543_v9  ;;  %v2446_v49 = vmul.f32 %v11131_v38, %v2222_v51  ;;  %v2563_v52 = vld [vmem:[%s9886_s22 + $0x2a8] sm:$0xff]  ;;  %v2564_v9 = vld [vmem:[%s9886_s22 + $0x2b0] sm:$0xff] }
 0x11c   : > { %v2447_v0 = vmul.f32 %v11131_v38, %v2223_v14  ;;  %v2448_v32 = vmul.f32 %v11131_v38, %v2224_v2  ;;  %v2449_v25 = vmul.f32 %v11131_v38, %v2225_v48  ;;  %v2458_v31 = vadd.f32 %v2442_v53, %v2422_v23  ;;  %v11633_v62 = vld [vmem:[#allocation2 + $0x10] ss:$2 sm:$0x3f]  ;;  %v11635_v59 = vld [vmem:[#allocation2 + $0x11] ss:$2 sm:$0x3f] }
 0x11d   : > { %v2459_v57 = vadd.f32 %v2443_v18, %v2423_v29  ;;  %16122 = vst [vmem:[#allocation25_spill] sm:$0xff] %v11633_v62  ;;  %v2460_v55 = vadd.f32 %v2444_v42, %v2424_v50  ;;  %v2461_v13 = vadd.f32 %v2445_v37, %v2425_v26  ;;  %v2462_v51 = vadd.f32 %v2446_v49, %v2426_v40  ;;  %v11641_v23 = vld [vmem:[%s9886_s22 + $0x2c0] sm:$0xff]  ;;  %v11644_v29 = vld [vmem:[%s9886_s22 + $0x2c8] sm:$0xff]  ;;  %v11647_v48 = vld [vmem:[%s9886_s22 + $0x2d0] sm:$0xff] }
 0x11e   : > { %16123 = vst [vmem:[#allocation26_spill] sm:$0xff] %v11635_v59  ;;  %v2463_v14 = vadd.f32 %v2447_v0, %v2427_v7  ;;  %v2464_v2 = vadd.f32 %v2448_v32, %v2428_v20  ;;  %v2465_v4 = vadd.f32 %v2449_v25, %v2429_v63  ;;  %v2546_v38 = vmul.f32 %v2530_v35, %v16110_v15  ;;  %v11649_v50 = vld [vmem:[#allocation2 + $0x20] ss:$2 sm:$0xff]  ;;  %v11651_v26 = vld [vmem:[#allocation2 + $0x21] ss:$2 sm:$0xff]  ;;  %v11661_v20 = vld [vmem:[%s9886_s22 + $0x2d8] sm:$0xff] }
 0x11f   : > { %2474 = vst.msk [vmem:[#allocation2] sm:$0xff] %vm439_vm0, %v2458_v31  ;;  %v2547_v43 = vmul.f32 %v2531_v22, %v16110_v15  ;;  %v2548_v40 = vmul.f32 %v2532_v46, %v16110_v15  ;;  %v2549_v7 = vmul.f32 %v2533_v3, %v16110_v15  ;;  %v2550_v35 = vmul.f32 %v11606_v58, %v16110_v15  ;;  %v11663_v63 = vld [vmem:[#allocation2 + $0x30] ss:$2 sm:$0x3f]  ;;  %v2610_v42 = vld [vmem:[%s9886_s22 + $0x2a1] sm:$0xff] }
 0x120   : > { %16124 = vst [vmem:[#allocation28_spill] sm:$0xff] %v11649_v50  ;;  %v2551_v22 = vmul.f32 %v11609_v36, %v16110_v15  ;;  %v2552_v53 = vmul.f32 %v11622_v33, %v16110_v15  ;;  %v2553_v18 = vmul.f32 %v11625_v16, %v16110_v15  ;;  %v2578_v46 = vmul.f32 %v2562_v27, %v16111_v34  ;;  %v11673_v37 = vld [vmem:[#allocation2 + $0x31] ss:$2 sm:$0x3f]  ;;  %v2611_v25 = vld [vmem:[%s9886_s22 + $0x2a9] sm:$0xff] }
 0x121   : > { %16125 = vst [vmem:[#allocation41_spill] sm:$0xff] %v11651_v26  ;;  %v2579_v3 = vmul.f32 %v2563_v52, %v16111_v34  ;;  %v2580_v49 = vmul.f32 %v2564_v9, %v16111_v34  ;;  %v2581_v0 = vmul.f32 %v2565_v60, %v16111_v34  ;;  %v2582_v32 = vmul.f32 %v11641_v23, %v16111_v34  ;;  %v2612_v31 = vld [vmem:[%s9886_s22 + $0x2b1] sm:$0xff]  ;;  %v11701_v59 = vld [vmem:[%s9886_s22 + $0x2d9] sm:$0xff] }
 0x122   : > { %2475 = vst.msk [vmem:[#allocation2 + $0x8] sm:$0xff] %vm439_vm0, %v2459_v57  ;;  %v2583_v27 = vmul.f32 %v11644_v29, %v16111_v34  ;;  %v2584_v57 = vmul.f32 %v11647_v48, %v16111_v34  ;;  %v2585_v52 = vmul.f32 %v11661_v20, %v16111_v34  ;;  %v2594_v9 = vadd.f32 %v2578_v46, %v2546_v38  ;;  %v11698_v62 = vld [vmem:[%s9886_s22 + $0x2d1] sm:$0xff] }
 0x123   : > { %16126 = vst [vmem:[#allocation42_spill] sm:$0xff] %v11663_v63  ;;  %v2595_v60 = vadd.f32 %v2579_v3, %v2547_v43  ;;  %v11694_v63 = vld [vmem:[%s9886_s22 + $0x2c9] sm:$0xff]  ;;  %v2597_v50 = vadd.f32 %v2581_v0, %v2549_v7  ;;  %v2626_v46 = vmul.f32 %v2610_v42, %v16064_v45  ;;  %v11727_v0 = vld [vmem:[%s9886_s22 + $0x2f7] sm:$0xff] }
 0x124   : > { %2476 = vst.msk [vmem:[#allocation2 + $0x10] sm:$0xff] %vm439_vm0, %v2460_v55  ;;  %v2613_v55 = vld [vmem:[%s9886_s22 + $0x2b9] sm:$0xff]  ;;  %v2599_v26 = vadd.f32 %v2583_v27, %v2551_v22  ;;  %v2600_v38 = vadd.f32 %v2584_v57, %v2552_v53  ;;  %v2601_v43 = vadd.f32 %v2585_v52, %v2553_v18  ;;  %v11717_v53 = vld [vmem:[%s9886_s22 + $0x2e7] sm:$0xff]  ;;  %v2632_v18 = vmul.f32 %v11698_v62, %v16064_v45 }
 0x125   : > { %16127 = vst [vmem:[#allocation29_spill] sm:$0xff] %v11673_v37  ;;  %v2596_v37 = vadd.f32 %v2580_v49, %v2548_v40  ;;  %v2628_v40 = vmul.f32 %v2612_v31, %v16064_v45  ;;  %v2629_v7 = vmul.f32 %v2613_v55, %v16064_v45  ;;  %v11714_v22 = vld [vmem:[%s9886_s22 + $0x2df] sm:$0xff]  ;;  %v2642_v3 = vadd.f32 %v2626_v46, %v2594_v9  ;;  %v11724_v49 = vld [vmem:[%s9886_s22 + $0x2ef] sm:$0xff] }
 0x126   : > { %2477 = vst.msk [vmem:[#allocation2 + $0x18] sm:$0xff] %vm439_vm0, %v2461_v13  ;;  %v11691_v13 = vld [vmem:[%s9886_s22 + $0x2c1] sm:$0xff]  ;;  %v2648_v52 = vadd.f32 %v2632_v18, %v2600_v38  ;;  %v2662_v9 = vmul.f32 %v11606_v58, %v9879_v5  ;;  %v2668_v58 = vmul.f32 %v11724_v49, %v9879_v5  ;;  %v11755_v46 = vld [vmem:[%s9886_s22 + $0x2f0] sm:$0xff]  ;;  %v2771_v21 = vmul.f32 %v11717_v53, %v16107_v17 }
 0x127   : > { %2478 = vst.msk [vmem:[#allocation2 + $0x20] sm:$0xff] %vm439_vm0, %v2462_v51  ;;  %v2598_v51 = vadd.f32 %v2582_v32, %v2550_v35  ;;  %v2630_v35 = vmul.f32 %v11691_v13, %v16064_v45  ;;  %v2644_v32 = vadd.f32 %v2628_v40, %v2596_v37  ;;  %v2645_v27 = vadd.f32 %v2629_v7, %v2597_v50  ;;  %v9316_v57 = vld [vmem:[%s15963_s3 + $0x48] sm:$0xff]  ;;  %v11745_v38 = vld [vmem:[%s9886_s22 + $0x2e0] sm:$0xff] }
 0x128   : > { %2479 = vst.msk [vmem:[#allocation2 + $0x28] sm:$0xff] %vm439_vm0, %v2463_v14  ;;  %v2627_v14 = vmul.f32 %v2611_v25, %v16064_v45  ;;  %v2664_v37 = vmul.f32 %v11622_v33, %v9879_v5  ;;  %v2665_v50 = vmul.f32 %v11625_v16, %v9879_v5  ;;  %4213 = vmatpush.bf16.msrb.mxu0 %v9316_v57 }
 0x129   : > { %2480 = vst.msk [vmem:[#allocation2 + $0x30] sm:$0xff] %vm439_vm0, %v2464_v2  ;;  %v2631_v2 = vmul.f32 %v11694_v63, %v16064_v45  ;;  %v2646_v25 = vadd.f32 %v2630_v35, %v2598_v51  ;;  %v2667_v51 = vmul.f32 %v11717_v53, %v9879_v5  ;;  %v2678_v33 = vadd.f32 %v2662_v9, %v2642_v3  ;;  %v2576_v53 = vld [vmem:[%s9886_s22 + $0x310] sm:$0xff] }
 0x12a   : > { %2481 = vst.msk [vmem:[#allocation2 + $0x38] sm:$0xff] %vm439_vm0, %v2465_v4  ;;  %v2633_v4 = vmul.f32 %v11701_v59, %v16064_v45  ;;  %v2643_v42 = vadd.f32 %v2627_v14, %v2595_v60  ;;  %v2663_v60 = vmul.f32 %v11609_v36, %v9879_v5  ;;  %v2669_v36 = vmul.f32 %v11727_v0, %v9879_v5  ;;  %v11758_v14 = vld [vmem:[%s9886_s22 + $0x2f8] sm:$0xff] }
 0x12b   : > { %v2647_v31 = vadd.f32 %v2631_v2, %v2599_v26  ;;  %v2666_v26 = vmul.f32 %v11714_v22, %v9879_v5  ;;  %v2680_v40 = vadd.f32 %v2664_v37, %v2644_v32  ;;  %v2681_v7 = vadd.f32 %v2665_v50, %v2645_v27 }
 0x12c   : > { %v2649_v55 = vadd.f32 %v2633_v4, %v2601_v43  ;;  %v11748_v43 = vld [vmem:[%s9886_s22 + $0x2e8] sm:$0xff]  ;;  %v2679_v16 = vadd.f32 %v2663_v60, %v2643_v42  ;;  %v2684_v18 = vadd.f32 %v2668_v58, %v2648_v52  ;;  %v2698_v57 = vmul.f32 %v11641_v23, %v16085_v30 }
 0x12d   : > { %v2682_v35 = vadd.f32 %v2666_v26, %v2646_v25  ;;  %v2683_v2 = vadd.f32 %v2667_v51, %v2647_v31  ;;  %v2699_v3 = vmul.f32 %v11644_v29, %v16085_v30  ;;  %v2700_v42 = vmul.f32 %v11647_v48, %v16085_v30  ;;  %v11773_v25 = vld [vmem:[%s9886_s22 + $0x2e1] sm:$0xff]  ;;  %v11776_v31 = vld [vmem:[%s9886_s22 + $0x2e9] sm:$0xff] }
 0x12e   : > { %v2685_v4 = vadd.f32 %v2669_v36, %v2649_v55  ;;  %v2701_v9 = vmul.f32 %v11661_v20, %v16085_v30  ;;  %v2702_v32 = vmul.f32 %v11745_v38, %v16085_v30  ;;  %v2703_v27 = vmul.f32 %v11748_v43, %v16085_v30  ;;  %v11783_v20 = vld [vmem:[%s9886_s22 + $0x2f1] sm:$0xff]  ;;  %v11786_v55 = vld [vmem:[%s9886_s22 + $0x2f9] sm:$0xff] }
 0x12f   : > { %v2704_v23 = vmul.f32 %v11755_v46, %v16085_v30  ;;  %v2705_v29 = vmul.f32 %v11758_v14, %v16085_v30  ;;  %v2714_v48 = vadd.f32 %v2698_v57, %v2678_v33  ;;  %v2715_v52 = vadd.f32 %v2699_v3, %v2679_v16 }
 0x130   : > { %v2716_v60 = vadd.f32 %v2700_v42, %v2680_v40  ;;  %v2717_v37 = vadd.f32 %v2701_v9, %v2681_v7  ;;  %v2718_v50 = vadd.f32 %v2702_v32, %v2682_v35  ;;  %v2719_v26 = vadd.f32 %v2703_v27, %v2683_v2  ;;  %v2542_v35 = vld [vmem:[%s9886_s22 + $0x2ff] sm:$0xff]  ;;  %v2543_v2 = vld [vmem:[%s9886_s22 + $0x307] sm:$0xff] }
 0x131   : > { %v2720_v51 = vadd.f32 %v2704_v23, %v2684_v18  ;;  %v2721_v58 = vadd.f32 %v2705_v29, %v2685_v4  ;;  %v2734_v36 = vmul.f32 %v11691_v13, %v16101_v8  ;;  %v2735_v33 = vmul.f32 %v11694_v63, %v16101_v8  ;;  %v2544_v4 = vld [vmem:[%s9886_s22 + $0x30f] sm:$0xff] }
 0x132   : > { %v2736_v16 = vmul.f32 %v11698_v62, %v16101_v8  ;;  %v2737_v57 = vmul.f32 %v11701_v59, %v16101_v8  ;;  %v2738_v40 = vmul.f32 %v11773_v25, %v16101_v8  ;;  %v2739_v7 = vmul.f32 %v11776_v31, %v16101_v8  ;;  %v2545_v59 = vld [vmem:[%s9886_s22 + $0x317] sm:$0xff] }
 0x133   : > { %v2740_v13 = vmul.f32 %v11783_v20, %v16101_v8  ;;  %v2741_v63 = vmul.f32 %v11786_v55, %v16101_v8  ;;  %v2750_v18 = vadd.f32 %v2734_v36, %v2714_v48  ;;  %v2751_v62 = vadd.f32 %v2735_v33, %v2715_v52  ;;  %v2577_v33 = vld [vmem:[%s9886_s22 + $0x318] sm:$0xff] }
 0x134   : > { %v2752_v3 = vadd.f32 %v2736_v16, %v2716_v60  ;;  %v2753_v42 = vadd.f32 %v2737_v57, %v2717_v37  ;;  %v2754_v9 = vadd.f32 %v2738_v40, %v2718_v50  ;;  %v2755_v32 = vadd.f32 %v2739_v7, %v2719_v26  ;;  %v2574_v50 = vld [vmem:[%s9886_s22 + $0x300] sm:$0xff]  ;;  %v2575_v26 = vld [vmem:[%s9886_s22 + $0x308] sm:$0xff] }
 0x135   : > { %v2756_v27 = vadd.f32 %v2740_v13, %v2720_v51  ;;  %v2757_v23 = vadd.f32 %v2741_v63, %v2721_v58  ;;  %v2770_v29 = vmul.f32 %v11714_v22, %v16107_v17  ;;  %v2772_v48 = vmul.f32 %v11724_v49, %v16107_v17 }
 0x136   : > { %v2773_v52 = vmul.f32 %v11727_v0, %v16107_v17  ;;  %v2774_v60 = vmul.f32 %v2542_v35, %v16107_v17  ;;  %v2775_v37 = vmul.f32 %v2543_v2, %v16107_v17  ;;  %v2776_v51 = vmul.f32 %v2544_v4, %v16107_v17  ;;  %v2623_v4 = vld [vmem:[%s9886_s22 + $0x309] sm:$0xff] }
 0x137   : > { %v2777_v58 = vmul.f32 %v2545_v59, %v16107_v17  ;;  %v2786_v22 = vadd.f32 %v2770_v29, %v2750_v18  ;;  %v2787_v36 = vadd.f32 %v2771_v21, %v2751_v62  ;;  %v2788_v49 = vadd.f32 %v2772_v48, %v2752_v3  ;;  %v2622_v62 = vld [vmem:[%s9886_s22 + $0x301] sm:$0xff] }
 0x138   : > { %v2789_v16 = vadd.f32 %v2773_v52, %v2753_v42  ;;  %v2790_v57 = vadd.f32 %v2774_v60, %v2754_v9  ;;  %v2791_v0 = vadd.f32 %v2775_v37, %v2755_v32  ;;  %v2792_v40 = vadd.f32 %v2776_v51, %v2756_v27  ;;  %v2625_v9 = vld [vmem:[%s9886_s22 + $0x319] sm:$0xff]  ;;  %v11845_v52 = vld [vmem:[%s15964_s1 + $0x8] ss:$0 sm:$0xff] }
 0x139   : > { %v2793_v7 = vadd.f32 %v2777_v58, %v2757_v23  ;;  %v2806_v35 = vmul.f32 %v11745_v38, %v16108_v56  ;;  %v2807_v2 = vmul.f32 %v11748_v43, %v16108_v56  ;;  %v2808_v21 = vmul.f32 %v11755_v46, %v16108_v56  ;;  %v2624_v43 = vld [vmem:[%s9886_s22 + $0x311] sm:$0xff]  ;;  %16129 = vst [vmem:[#allocation50_spill] sm:$0xff] %v11845_v52 }
 0x13a   : > { %v2809_v13 = vmul.f32 %v11758_v14, %v16108_v56  ;;  %v2810_v63 = vmul.f32 %v2574_v50, %v16108_v56  ;;  %v2811_v18 = vmul.f32 %v2575_v26, %v16108_v56  ;;  %v2812_v59 = vmul.f32 %v2576_v53, %v16108_v56  ;;  %v11840_v14 = vld [vmem:[#allocation2] ss:$2 sm:$0xff]  ;;  %v11854_v26 = vld [vmem:[#allocation2 + $0x1] ss:$2 sm:$0xff] }
 0x13b   : > { %v2813_v38 = vmul.f32 %v2577_v33, %v16108_v56  ;;  %v2822_v3 = vadd.f32 %v2806_v35, %v2786_v22  ;;  %v2823_v42 = vadd.f32 %v2807_v2, %v2787_v36  ;;  %v2824_v32 = vadd.f32 %v2808_v21, %v2788_v49  ;;  %16128 = vst [vmem:[#allocation49_spill] sm:$0xff] %v11840_v14  ;;  %v11852_v50 = vld [vmem:[%s9886_s22 + $0x11f] sm:$0xff]  ;;  %v12129_v14 = vld [vmem:[%s9886_s22 + $0x388] sm:$0xff] }
 0x13c   : > { %v2825_v46 = vadd.f32 %v2809_v13, %v2789_v16  ;;  %v2826_v27 = vadd.f32 %v2810_v63, %v2790_v57  ;;  %v2827_v23 = vadd.f32 %v2811_v18, %v2791_v0  ;;  %v2828_v29 = vadd.f32 %v2812_v59, %v2792_v40  ;;  %16130 = vst [vmem:[#allocation51_spill] sm:$0xff] %v11854_v26  ;;  %v3383_v53 = vld [vmem:[#allocation3 + $0x40] sm:$0xff]  ;;  %v11873_v0 = vld [vmem:[#allocation2 + $0x10] ss:$2 sm:$0x3f]  ;;  %v11884_v59 = vld [vmem:[%s9886_s22 + $0x128] sm:$0xff] }
 0x13d   : > { %v2829_v48 = vadd.f32 %v2813_v38, %v2793_v7  ;;  %v2842_v60 = vmul.f32 %v11845_v52, %v11773_v25  ;;  %v2843_v37 = vmul.f32 %v11845_v52, %v11776_v31  ;;  %v2844_v51 = vmul.f32 %v11845_v52, %v11783_v20  ;;  %v3384_v25 = vld [vmem:[#allocation3 + $0x48] sm:$0xff]  ;;  %16131 = vst [vmem:[#allocation52_spill] sm:$0xff] %v11873_v0  ;;  %v11875_v40 = vld [vmem:[#allocation2 + $0x11] ss:$2 sm:$0x3f] }
 0x13e   : > { %v2845_v58 = vmul.f32 %v11845_v52, %v11786_v55  ;;  %v2846_v22 = vmul.f32 %v11845_v52, %v2622_v62  ;;  %v2847_v36 = vmul.f32 %v11845_v52, %v2623_v4  ;;  %v2848_v33 = vmul.f32 %v11845_v52, %v2624_v43  ;;  %v11865_v57 = vld [vmem:[%s9886_s22 + $0x127] sm:$0xff]  ;;  %v11868_v20 = vld [vmem:[%s9886_s22 + $0x12f] sm:$0xff]  ;;  %v11871_v55 = vld [vmem:[%s9886_s22 + $0x137] sm:$0xff]  ;;  %16132 = vst [vmem:[#allocation53_spill] sm:$0xff] %v11875_v40 }
 0x13f   : > { %v2849_v31 = vmul.f32 %v11845_v52, %v2625_v9  ;;  %v2858_v49 = vadd.f32 %v2842_v60, %v2822_v3  ;;  %v2859_v16 = vadd.f32 %v2843_v37, %v2823_v42  ;;  %v2860_v7 = vadd.f32 %v2844_v51, %v2824_v32  ;;  %v11881_v4 = vld [vmem:[%s9886_s22 + $0x120] sm:$0xff]  ;;  %v11887_v38 = vld [vmem:[%s9886_s22 + $0x130] sm:$0xff] }
 0x140   : > { %v2861_v35 = vadd.f32 %v2845_v58, %v2825_v46  ;;  %v2862_v2 = vadd.f32 %v2846_v22, %v2826_v27  ;;  %v2863_v21 = vadd.f32 %v2847_v36, %v2827_v23  ;;  %v2864_v13 = vadd.f32 %v2848_v33, %v2828_v29  ;;  %v11889_v3 = vld [vmem:[#allocation2 + $0x20] ss:$2 sm:$0xff]  ;;  %v11891_v42 = vld [vmem:[#allocation2 + $0x21] ss:$2 sm:$0xff]  ;;  %v11903_v27 = vld [vmem:[%s9886_s22 + $0x138] sm:$0xff] }
 0x141   : > { %v2865_v63 = vadd.f32 %v2849_v31, %v2829_v48  ;;  %2874 = vst.msk [vmem:[#allocation2] sm:$0xff] %vm439_vm0, %v2858_v49  ;;  %v3408_v18 = vpack.c.bf16 %v3384_v25, %v3383_v53  ;;  %v1074_v62 = vmul.f32 %v11852_v50, %v9879_v5  ;;  %v1075_v43 = vmul.f32 %v11865_v57, %v9879_v5  ;;  %v11905_v23 = vld [vmem:[#allocation2 + $0x30] ss:$2 sm:$0x3f]  ;;  %v16142_v53 = vld [vmem:[#allocation46_spill] sm:$0xff] }
 0x142   : > { %16133 = vst [vmem:[#allocation54_spill] sm:$0xff] %v11889_v3  ;;  %v1076_v9 = vmul.f32 %v11868_v20, %v9879_v5  ;;  %v1077_v32 = vmul.f32 %v11871_v55, %v9879_v5  ;;  %v1086_v46 = vadd.f32 %v10785_v1, %v10749_v47  ;;  %v1087_v29 = vadd.f32 %v10789_v19, %v10751_v54  ;;  %v16136_v48 = vld [vmem:[#allocation43_spill] sm:$0xff]  ;;  %v16137_v60 = vld [vmem:[#allocation32_spill] sm:$0xff]  ;;  %v16141_v22 = vld [vmem:[#allocation45_spill] sm:$0xff] }
 0x143   : > { %16134 = vst [vmem:[#allocation55_spill] sm:$0xff] %v11891_v42  ;;  %8018 = vmatmul.msk.bf16.gmra.mxu0 %vm439_vm0, %v3408_v18  ;;  %v1088_v37 = vadd.f32 %v16137_v60, %v16136_v48  ;;  %v16138_v51 = vld [vmem:[#allocation44_spill] sm:$0xff]  ;;  %v1090_v36 = vadd.f32 %v1074_v62, %v16141_v22  ;;  %v1091_v25 = vadd.f32 %v1075_v43, %v16142_v53  ;;  %v16143_v33 = vld [vmem:[#allocation47_spill] sm:$0xff]  ;;  %v11923_v19 = vld [vmem:[%s9886_s22 + $0x121] sm:$0xff] }
 0x144   : > { %2875 = vst.msk [vmem:[#allocation2 + $0x8] sm:$0xff] %vm439_vm0, %v2859_v16  ;;  %v16139_v58 = vld [vmem:[#allocation36_spill] sm:$0xff]  ;;  %v1092_v31 = vadd.f32 %v1076_v9, %v16143_v33  ;;  %v1110_v16 = vmul.f32 %v11881_v4, %v16085_v30  ;;  %v1113_v18 = vmul.f32 %v11903_v27, %v16085_v30  ;;  %v11935_v62 = vld [vmem:[%s9886_s22 + $0x129] sm:$0xff]  ;;  %v12126_v40 = vld [vmem:[%s9886_s22 + $0x380] sm:$0xff]  ;;  %v2991_v11 = vmul.f32 %v12129_v14, %v16111_v34 }
 0x145   : > { %16135 = vst [vmem:[#allocation56_spill] sm:$0xff] %v11905_v23  ;;  %v1089_v47 = vadd.f32 %v16139_v58, %v16138_v51  ;;  %v11915_v1 = vld [vmem:[#allocation2 + $0x31] ss:$2 sm:$0x3f]  ;;  %v16148_v22 = vld [vmem:[#allocation18_spill] sm:$0xff]  ;;  %v2990_v12 = vmul.f32 %v12126_v40, %v16111_v34 }
 0x146   : > { %2876 = vst.msk [vmem:[#allocation2 + $0x10] sm:$0xff] %vm439_vm0, %v2860_v7  ;;  %v16144_v49 = vld [vmem:[#allocation48_spill] sm:$0xff]  ;;  %v1111_v7 = vmul.f32 %v11884_v59, %v16085_v30  ;;  %v16147_v51 = vld [vmem:[#allocation17_spill] sm:$0xff]  ;;  %v1126_v33 = vadd.f32 %v1110_v16, %v1090_v36  ;;  %v1167_v16 = vld [vmem:[%s9886_s22 + $0x147] sm:$0xff] }
 0x147   : > { %16140 = vst [vmem:[#allocation43_spill] sm:$0xff] %v11915_v1  ;;  %v1093_v54 = vadd.f32 %v1077_v32, %v16144_v49  ;;  %v11938_v43 = vld [vmem:[%s9886_s22 + $0x131] sm:$0xff]  ;;  %v11941_v9 = vld [vmem:[%s9886_s22 + $0x139] sm:$0xff]  ;;  %v1124_v58 = vadd.f32 %v16147_v51, %v1088_v37  ;;  %v1125_v53 = vadd.f32 %v16148_v22, %v1089_v47  ;;  %v1183_v22 = vmul.f32 %v1167_v16, %v16107_v17 }
 0x148   : > { %2877 = vst.msk [vmem:[#allocation2 + $0x18] sm:$0xff] %vm439_vm0, %v2861_v35  ;;  %v1112_v35 = vmul.f32 %v11887_v38, %v16085_v30  ;;  %v16146_v48 = vld [vmem:[#allocation16_spill] sm:$0xff]  ;;  %v1127_v49 = vadd.f32 %v1111_v7, %v1091_v25  ;;  %v1166_v37 = vld [vmem:[%s9886_s22 + $0x13f] sm:$0xff] }
 0x149   : > { %2878 = vst.msk [vmem:[#allocation2 + $0x20] sm:$0xff] %vm439_vm0, %v2862_v2  ;;  %v16145_v2 = vld [vmem:[#allocation37_spill] sm:$0xff]  ;;  %v1123_v60 = vadd.f32 %v16146_v48, %v1087_v29  ;;  %v1129_v1 = vadd.f32 %v1113_v18, %v1093_v54  ;;  %v1148_v29 = vmul.f32 %v11938_v43, %v16101_v8  ;;  %v16149_v25 = vld [vmem:[#allocation10_spill] sm:$0xff]  ;;  %v1168_v7 = vld [vmem:[%s9886_s22 + $0x14f] sm:$0xff] }
 0x14a   : > { %2879 = vst.msk [vmem:[#allocation2 + $0x28] sm:$0xff] %vm439_vm0, %v2863_v21  ;;  %v1122_v32 = vadd.f32 %v16145_v2, %v1086_v46  ;;  %v1128_v23 = vadd.f32 %v1112_v35, %v1092_v31  ;;  %v1146_v21 = vmul.f32 %v11923_v19, %v16101_v8  ;;  %v1147_v46 = vmul.f32 %v11935_v62, %v16101_v8  ;;  %v1169_v35 = vld [vmem:[%s9886_s22 + $0x157] sm:$0xff] }
 0x14b   : > { %2880 = vst.msk [vmem:[#allocation2 + $0x30] sm:$0xff] %vm439_vm0, %v2864_v13  ;;  %v1149_v13 = vmul.f32 %v11941_v9, %v16101_v8  ;;  %v1159_v36 = vadd.f32 %v10854_v6, %v1123_v60  ;;  %v1160_v31 = vadd.f32 %v16149_v25, %v1124_v58  ;;  %v1179_v6 = vmul.f32 %v11865_v57, %v16107_v17  ;;  %v1203_v57 = vld [vmem:[%s9886_s22 + $0x148] sm:$0xff]  ;;  %v12117_v3 = vld [vmem:[%s9886_s22 + $0x370] sm:$0xff] }
 0x14c   : > { %2881 = vst.msk [vmem:[#allocation2 + $0x38] sm:$0xff] %vm439_vm0, %v2865_v63  ;;  %v1158_v47 = vadd.f32 %v10850_v28, %v1122_v32  ;;  %v16150_v63 = vld [vmem:[#allocation38_spill] sm:$0xff]  ;;  %v1162_v18 = vadd.f32 %v1146_v21, %v1126_v33  ;;  %v1163_v2 = vadd.f32 %v1147_v46, %v1127_v49  ;;  %v1164_v48 = vadd.f32 %v1148_v29, %v1128_v23  ;;  %v1204_v46 = vld [vmem:[%s9886_s22 + $0x150] sm:$0xff] }
 0x14d   : > { %v1161_v54 = vadd.f32 %v16150_v63, %v1125_v53  ;;  %v1165_v51 = vadd.f32 %v1149_v13, %v1129_v1  ;;  %v1178_v28 = vmul.f32 %v11852_v50, %v16107_v17  ;;  %v1180_v32 = vmul.f32 %v11868_v20, %v16107_v17  ;;  %v1202_v53 = vld [vmem:[%s9886_s22 + $0x140] sm:$0xff]  ;;  %v1205_v20 = vld [vmem:[%s9886_s22 + $0x158] sm:$0xff]  ;;  %16157 = vst [vmem:[#allocation48_spill] sm:$0xff] %v12117_v3 }
 0x14e   : > { %v1181_v60 = vmul.f32 %v11871_v55, %v16107_v17  ;;  %v1182_v58 = vmul.f32 %v1166_v37, %v16107_v17  ;;  %v1184_v23 = vmul.f32 %v1168_v7, %v16107_v17  ;;  %v1185_v1 = vmul.f32 %v1169_v35, %v16107_v17  ;;  %v1238_v35 = vld [vmem:[%s9886_s22 + $0x141] sm:$0xff]  ;;  %16159 = vst [vmem:[#allocation16_spill] sm:$0xff] %v12126_v40 }
 0x14f   : > { %v1194_v33 = vadd.f32 %v1178_v28, %v1158_v47  ;;  %v1195_v50 = vadd.f32 %v1179_v6, %v1159_v36  ;;  %v1196_v49 = vadd.f32 %v1180_v32, %v1160_v31  ;;  %v1199_v13 = vadd.f32 %v1183_v22, %v1163_v2  ;;  %16160 = vst [vmem:[#allocation17_spill] sm:$0xff] %v12129_v14  ;;  %v3010_v40 = vld [vmem:[%s9886_s22 + $0x321] sm:$0xff] }
 0x150   : > { %v1197_v21 = vadd.f32 %v1181_v60, %v1161_v54  ;;  %v1198_v29 = vadd.f32 %v1182_v58, %v1162_v18  ;;  %v1200_v55 = vadd.f32 %v1184_v23, %v1164_v48  ;;  %v1201_v37 = vadd.f32 %v1185_v1, %v1165_v51  ;;  %v1240_v51 = vld [vmem:[%s9886_s22 + $0x151] sm:$0xff] }
 0x151   : > { %v1214_v25 = vmul.f32 %v11881_v4, %v16108_v56  ;;  %v1215_v47 = vmul.f32 %v11884_v59, %v16108_v56  ;;  %v1216_v36 = vmul.f32 %v11887_v38, %v16108_v56  ;;  %v1217_v31 = vmul.f32 %v11903_v27, %v16108_v56  ;;  %v1239_v59 = vld [vmem:[%s9886_s22 + $0x149] sm:$0xff]  ;;  %v1241_v38 = vld [vmem:[%s9886_s22 + $0x159] sm:$0xff] }
 0x152   : > { %v1218_v63 = vmul.f32 %v1202_v53, %v16108_v56  ;;  %v1219_v54 = vmul.f32 %v1203_v57, %v16108_v56  ;;  %v1220_v16 = vmul.f32 %v1204_v46, %v16108_v56  ;;  %v1221_v7 = vmul.f32 %v1205_v20, %v16108_v56  ;;  %v2932_v57 = vld [vmem:[%s9886_s22 + $0x32f] sm:$0xff]  ;;  %v12015_v20 = vld [vmem:[%s9886_s22 + $0x33f] sm:$0xff] }
 0x153   : > { %v1230_v18 = vadd.f32 %v1214_v25, %v1194_v33  ;;  %v1231_v4 = vadd.f32 %v1215_v47, %v1195_v50  ;;  %v1232_v2 = vadd.f32 %v1216_v36, %v1196_v49  ;;  %v1233_v48 = vadd.f32 %v1217_v31, %v1197_v21  ;;  %v2930_v50 = vld [vmem:[%s9886_s22 + $0x31f] sm:$0xff]  ;;  %v12025_v25 = vld [vmem:[%s9886_s22 + $0x357] sm:$0xff]  ;;  %v12031_v36 = vld [vmem:[%s9886_s22 + $0x367] sm:$0xff] }
 0x154   : > { %v1234_v28 = vadd.f32 %v1218_v63, %v1198_v29  ;;  %v1235_v27 = vadd.f32 %v1219_v54, %v1199_v13  ;;  %v1236_v6 = vadd.f32 %v1220_v16, %v1200_v55  ;;  %v1237_v32 = vadd.f32 %v1221_v7, %v1201_v37  ;;  %v12018_v29 = vld [vmem:[%s9886_s22 + $0x347] sm:$0xff]  ;;  %v12021_v13 = vld [vmem:[%s9886_s22 + $0x34f] sm:$0xff]  ;;  %v12028_v47 = vld [vmem:[%s9886_s22 + $0x35f] sm:$0xff] }
 0x155   : > { %v1250_v60 = vmul.f32 %v11845_v52, %v11923_v19  ;;  %v1251_v58 = vmul.f32 %v11845_v52, %v11935_v62  ;;  %v1252_v22 = vmul.f32 %v11845_v52, %v11938_v43  ;;  %v1253_v23 = vmul.f32 %v11845_v52, %v11941_v9  ;;  %v2931_v43 = vld [vmem:[%s9886_s22 + $0x327] sm:$0xff]  ;;  %v2933_v9 = vld [vmem:[%s9886_s22 + $0x337] sm:$0xff]  ;;  %v12035_v54 = vld [vmem:[%s9886_s22 + $0x36f] sm:$0xff] }
 0x156   : > { %v1254_v1 = vmul.f32 %v11845_v52, %v1238_v35  ;;  %v1255_v53 = vmul.f32 %v11845_v52, %v1239_v59  ;;  %v1256_v33 = vmul.f32 %v11845_v52, %v1240_v51  ;;  %v1257_v19 = vmul.f32 %v11845_v52, %v1241_v38  ;;  %v12038_v16 = vld [vmem:[%s9886_s22 + $0x377] sm:$0xff]  ;;  %v12041_v7 = vld [vmem:[%s9886_s22 + $0x37f] sm:$0xff]  ;;  %v12044_v35 = vld [vmem:[%s9886_s22 + $0x387] sm:$0xff] }
 0x157   : > { %v1266_v62 = vadd.f32 %v1250_v60, %v1230_v18  ;;  %v1267_v49 = vadd.f32 %v1251_v58, %v1231_v4  ;;  %v1268_v21 = vadd.f32 %v1252_v22, %v1232_v2  ;;  %v1269_v46 = vadd.f32 %v1253_v23, %v1233_v48  ;;  %v12050_v2 = vld [vmem:[%s9886_s22 + $0x38f] sm:$0xff]  ;;  %v12053_v48 = vld [vmem:[%s9886_s22 + $0x397] sm:$0xff] }
 0x158   : > { %v1270_v55 = vadd.f32 %v1254_v1, %v1234_v28  ;;  %v1271_v37 = vadd.f32 %v1255_v53, %v1235_v27  ;;  %v1272_v31 = vadd.f32 %v1256_v33, %v1236_v6  ;;  %v1273_v63 = vadd.f32 %v1257_v19, %v1237_v32  ;;  %v2962_v27 = vld [vmem:[%s9886_s22 + $0x320] sm:$0xff]  ;;  %v2963_v6 = vld [vmem:[%s9886_s22 + $0x328] sm:$0xff]  ;;  %v2964_v23 = vld [vmem:[%s9886_s22 + $0x330] sm:$0xff] }
 0x159   : > { %1282 = vst.msk [vmem:[#allocation2 + $0x40] sm:$0xff] %vm439_vm0, %v1266_v62  ;;  %v2946_v18 = vmul.f32 %v2930_v50, %v16110_v15  ;;  %v2947_v4 = vmul.f32 %v2931_v43, %v16110_v15  ;;  %v2948_v59 = vmul.f32 %v2932_v57, %v16110_v15  ;;  %v12057_v51 = vmul.f32 %v2933_v9, %v16110_v15  ;;  %v2965_v1 = vld [vmem:[%s9886_s22 + $0x338] sm:$0xff]  ;;  %v12085_v53 = vld [vmem:[%s9886_s22 + $0x340] sm:$0xff] }
 0x15a   : > { %1283 = vst.msk [vmem:[#allocation2 + $0x48] sm:$0xff] %vm439_vm0, %v1267_v49  ;;  %v12061_v38 = vmul.f32 %v12015_v20, %v16110_v15  ;;  %v12065_v28 = vmul.f32 %v12018_v29, %v16110_v15  ;;  %v12072_v32 = vmul.f32 %v12021_v13, %v16110_v15  ;;  %v12076_v60 = vmul.f32 %v12025_v25, %v16110_v15  ;;  %v12097_v49 = vld [vmem:[%s9886_s22 + $0x348] sm:$0xff]  ;;  %v12103_v43 = vld [vmem:[%s9886_s22 + $0x358] sm:$0xff] }
 0x15b   : > { %1284 = vst.msk [vmem:[#allocation2 + $0x50] sm:$0xff] %vm439_vm0, %v1268_v21  ;;  %v2954_v58 = vmul.f32 %v12028_v47, %v16110_v15  ;;  %v2955_v22 = vmul.f32 %v12031_v36, %v16110_v15  ;;  %v2956_v33 = vmul.f32 %v12035_v54, %v16110_v15  ;;  %v2957_v19 = vmul.f32 %v12038_v16, %v16110_v15  ;;  %v12100_v21 = vld [vmem:[%s9886_s22 + $0x350] sm:$0xff] }
 0x15c   : > { %1285 = vst.msk [vmem:[#allocation2 + $0x58] sm:$0xff] %vm439_vm0, %v1269_v46  ;;  %v2958_v50 = vmul.f32 %v12041_v7, %v16110_v15  ;;  %v2959_v62 = vmul.f32 %v12044_v35, %v16110_v15  ;;  %v2960_v57 = vmul.f32 %v12050_v2, %v16110_v15  ;;  %v2961_v9 = vmul.f32 %v12053_v48, %v16110_v15  ;;  %v12111_v46 = vld [vmem:[%s9886_s22 + $0x360] sm:$0xff] }
 0x15d   : > { %16151 = vst [vmem:[#allocation32_spill] sm:$0xff] %v12085_v53  ;;  %v2978_v42 = vmul.f32 %v2962_v27, %v16111_v34  ;;  %v2979_v0 = vmul.f32 %v2963_v6, %v16111_v34  ;;  %v2980_v26 = vmul.f32 %v2964_v23, %v16111_v34  ;;  %v2986_v61 = vmul.f32 %v12111_v46, %v16111_v34  ;;  %v12143_v6 = vld [vmem:[%s9886_s22 + $0x398] sm:$0xff] }
 0x15e   : > { %1286 = vst.msk [vmem:[#allocation2 + $0x60] sm:$0xff] %vm439_vm0, %v1270_v55  ;;  %v12114_v55 = vld [vmem:[%s9886_s22 + $0x368] sm:$0xff]  ;;  %v2988_v27 = vmul.f32 %v12117_v3, %v16111_v34  ;;  %v2981_v39 = vmul.f32 %v2965_v1, %v16111_v34  ;;  %v2983_v24 = vmul.f32 %v12097_v49, %v16111_v34  ;;  %v2993_v52 = vmul.f32 %v12143_v6, %v16111_v34 }
 0x15f   : > { %16152 = vst [vmem:[#allocation44_spill] sm:$0xff] %v12097_v49  ;;  %v2987_v15 = vmul.f32 %v12114_v55, %v16111_v34  ;;  %v2984_v56 = vmul.f32 %v12100_v21, %v16111_v34  ;;  %v2985_v17 = vmul.f32 %v12103_v43, %v16111_v34  ;;  %v12164_v8 = vadd.f32 %v2978_v42, %v2946_v18  ;;  %v3012_v42 = vld [vmem:[%s9886_s22 + $0x331] sm:$0xff] }
 0x160   : > { %16153 = vst [vmem:[#allocation36_spill] sm:$0xff] %v12100_v21  ;;  %v12166_v14 = vadd.f32 %v2979_v0, %v2947_v4  ;;  %v3007_v30 = vadd.f32 %v2991_v11, %v2959_v62  ;;  %v3013_v0 = vld [vmem:[%s9886_s22 + $0x339] sm:$0xff]  ;;  %v2999_v11 = vadd.f32 %v2983_v24, %v12065_v28 }
 0x161   : > { %16154 = vst [vmem:[#allocation45_spill] sm:$0xff] %v12103_v43  ;;  %v1310_v10 = vld [vmem:[#allocation2 + $0x40] ss:$2 sm:$0xff]  ;;  %v1312_v41 = vld [vmem:[#allocation2 + $0x41] ss:$2 sm:$0xff]  ;;  %v2997_v43 = vadd.f32 %v2981_v39, %v12057_v51  ;;  %v12187_v39 = vld [vmem:[%s9886_s22 + $0x351] sm:$0xff]  ;;  %v3029_v62 = vmul.f32 %v3013_v0, %v16064_v45 }
 0x162   : > { %1287 = vst.msk [vmem:[#allocation2 + $0x68] sm:$0xff] %vm439_vm0, %v1271_v37  ;;  %v12123_v37 = vld [vmem:[%s9886_s22 + $0x378] sm:$0xff]  ;;  %v1314_v49 = vmax.f32 %v1310_v10, %v1312_v41  ;;  %v12190_v51 = vld [vmem:[%s9886_s22 + $0x361] sm:$0xff] }
 0x163   : > { %16155 = vst [vmem:[#allocation46_spill] sm:$0xff] %v12111_v46  ;;  %v2989_v23 = vmul.f32 %v12123_v37, %v16111_v34  ;;  %v1313_v3 = vld [vmem:[#allocation2 + $0x51] ss:$2 sm:$0x3f]  ;;  %v3004_v46 = vadd.f32 %v2988_v27, %v2956_v33  ;;  %v12197_v33 = vld [vmem:[%s9886_s22 + $0x369] sm:$0xff] }
 0x164   : > { %16156 = vst [vmem:[#allocation47_spill] sm:$0xff] %v12114_v55  ;;  %v3002_v55 = vadd.f32 %v2986_v61, %v2954_v58  ;;  %v12184_v58 = vld [vmem:[%s9886_s22 + $0x349] sm:$0xff] }
 0x165   : > { %1288 = vst.msk [vmem:[#allocation2 + $0x70] sm:$0xff] %vm439_vm0, %v1272_v31  ;;  %v12140_v31 = vld [vmem:[%s9886_s22 + $0x390] sm:$0xff]  ;;  %v3005_v21 = vadd.f32 %v2989_v23, %v2957_v19 }
 0x166   : > { %16158 = vst [vmem:[#allocation37_spill] sm:$0xff] %v12123_v37  ;;  %v2992_v1 = vmul.f32 %v12140_v31, %v16111_v34  ;;  %v1311_v37 = vld [vmem:[#allocation2 + $0x50] ss:$2 sm:$0x3f] }
 0x167   : > { %1289 = vst.msk [vmem:[#allocation2 + $0x78] sm:$0xff] %vm439_vm0, %v1273_v63  ;;  %v2982_v63 = vmul.f32 %v12085_v53, %v16111_v34  ;;  %v3006_v53 = vadd.f32 %v2990_v12, %v2958_v50  ;;  %v3011_v34 = vld [vmem:[%s9886_s22 + $0x329] sm:$0xff]  ;;  %v1315_v41 = vmax.f32 %v1311_v37, %v1313_v3  ;;  %v12181_v12 = vadd.f32 %v2984_v56, %v12072_v32  ;;  %v12200_v19 = vld [vmem:[%s9886_s22 + $0x371] sm:$0xff]  ;;  %v12203_v50 = vld [vmem:[%s9886_s22 + $0x379] sm:$0xff] }
 0x168   : > { %16161 = vst [vmem:[#allocation18_spill] sm:$0xff] %v12140_v31  ;;  %v12169_v31 = vadd.f32 %v2980_v26, %v2948_v59  ;;  %v3008_v61 = vadd.f32 %v2992_v1, %v2960_v57  ;;  %v3009_v59 = vadd.f32 %v2993_v52, %v2961_v9  ;;  %v3001_v3 = vadd.f32 %v2985_v17, %v12076_v60  ;;  %v12215_v60 = vld [vmem:[%s9886_s22 + $0x389] sm:$0xff]  ;;  %v12230_v1 = vld [vmem:[%s9886_s22 + $0x399] sm:$0xff] }
 0x169   : > { %16162 = vst [vmem:[#allocation10_spill] sm:$0xff] %v12143_v6  ;;  %v3003_v6 = vadd.f32 %v2987_v15, %v2955_v22  ;;  %v1316_v18 = vld [vmem:[#allocation2 + $0x60] ss:$2 sm:$0xff]  ;;  %v1318_v4 = vld [vmem:[#allocation2 + $0x61] ss:$2 sm:$0xff]  ;;  %v2998_v26 = vadd.f32 %v2982_v63, %v12061_v38  ;;  %v3026_v22 = vmul.f32 %v3010_v40, %v16064_v45  ;;  %v3027_v24 = vmul.f32 %v3011_v34, %v16064_v45  ;;  %v12227_v63 = vld [vmem:[%s9886_s22 + $0x391] sm:$0xff] }
 0x16a   : > { %v12177_v15 = vld [vmem:[%s9886_s22 + $0x341] sm:$0xff]  ;;  %v1320_v10 = vmax.f32 %v1316_v18, %v1318_v4  ;;  %16163 = vst [vmem:[#allocation38_spill] sm:$0xff] %v12190_v51  ;;  %v3028_v56 = vmul.f32 %v3012_v42, %v16064_v45  ;;  %v12209_v40 = vld [vmem:[%s9886_s22 + $0x359] sm:$0xff]  ;;  %v3035_v57 = vmul.f32 %v12197_v33, %v16064_v45  ;;  %v3036_v9 = vmul.f32 %v12200_v19, %v16064_v45 }
 0x16b   : > { %16164 = vst [vmem:[#allocation57_spill] sm:$0xff] %v12197_v33  ;;  %v3030_v17 = vmul.f32 %v12177_v15, %v16064_v45  ;;  %v12212_v34 = vld [vmem:[%s9886_s22 + $0x381] sm:$0xff]  ;;  %v3037_v37 = vmul.f32 %v12203_v50, %v16064_v45  ;;  %v3039_v0 = vmul.f32 %v12215_v60, %v16064_v45  ;;  %v3031_v18 = vmul.f32 %v12184_v58, %v16064_v45 }
 0x16c   : > { %v1322_v32 = vmax.f32 %v1314_v49, %v1320_v10  ;;  %16165 = vst [vmem:[#allocation58_spill] sm:$0xff] %v12200_v19  ;;  %v3034_v49 = vmul.f32 %v12190_v51, %v16064_v45  ;;  %v3038_v42 = vmul.f32 %v12212_v34, %v16064_v45  ;;  %v3032_v4 = vmul.f32 %v12187_v39, %v16064_v45 }
 0x16d   : > { %16166 = vst [vmem:[#allocation59_spill] sm:$0xff] %v12203_v50  ;;  %v3041_v10 = vmul.f32 %v12230_v1, %v16064_v45  ;;  %v3051_v50 = vadd.f32 %v3035_v57, %v3003_v6  ;;  %v3052_v19 = vadd.f32 %v3036_v9, %v3004_v46  ;;  %v3062_v46 = vmul.f32 %v12015_v20, %v9879_v5 }
 0x16e   : > { %v1317_v52 = vld [vmem:[#allocation2 + $0x70] ss:$2 sm:$0x3f]  ;;  %v1319_v38 = vld [vmem:[#allocation2 + $0x71] ss:$2 sm:$0x3f]  ;;  %v1324_v23 = vadd.f32 %v1322_v32, %v10399_v44  ;;  %v3042_v32 = vadd.f32 %v3026_v22, %v12164_v8  ;;  %v12250_v51 = vadd.f32 %v3038_v42, %v3006_v53  ;;  %v3046_v8 = vadd.f32 %v3030_v17, %v2998_v26 }
 0x16f   : > { %v1321_v28 = vmax.f32 %v1317_v52, %v1319_v38  ;;  %16167 = vst [vmem:[#allocation60_spill] sm:$0xff] %v12212_v34  ;;  %v3050_v34 = vadd.f32 %v3034_v49, %v3002_v55  ;;  %v3063_v53 = vmul.f32 %v12018_v29, %v9879_v5  ;;  %v3071_v55 = vmul.f32 %v12044_v35, %v9879_v5  ;;  %v16175_v42 = vld [vmem:[#allocation15_spill] sm:$0xff] }
 0x170   : > { %16168 = vst [vmem:[#allocation61_spill] sm:$0xff] %v12215_v60  ;;  %v1326_v38 = vmax.f32 %v1324_v23, 0.0  ;;  %v3043_v60 = vadd.f32 %v3027_v24, %v12166_v14  ;;  %v3045_v23 = vadd.f32 %v3029_v62, %v2997_v43  ;;  %v3047_v14 = vadd.f32 %v3031_v18, %v2999_v11 }
 0x171   : > { %v1323_v27 = vmax.f32 %v1315_v41, %v1321_v28  ;;  %16169 = vst [vmem:[#allocation62_spill] sm:$0xff] %v12227_v63  ;;  %v3040_v41 = vmul.f32 %v12227_v63, %v16064_v45  ;;  %v3033_v28 = vmul.f32 %v12209_v40, %v16064_v45  ;;  %v3053_v63 = vadd.f32 %v3037_v37, %v3005_v21 }
 0x172   : > { %16170 = vst [vmem:[#allocation63_spill] sm:$0xff] %v12230_v1  ;;  %v12252_v1 = vadd.f32 %v3039_v0, %v3007_v30  ;;  %v12257_v45 = vadd.f32 %v3041_v10, %v3009_v59  ;;  %v3064_v30 = vmul.f32 %v12021_v13, %v9879_v5  ;;  %v3065_v21 = vmul.f32 %v12025_v25, %v9879_v5  ;;  %v16176_v0 = vld [vmem:[#allocation32_spill] sm:$0xff] }
 0x173   : > { %v1325_v52 = vadd.f32 %v1323_v27, %v10399_v44  ;;  %1328 = vst.msk [vmem:[#allocation3 + $0x50] sm:$0xff] %vm439_vm0, %v1326_v38  ;;  %v3044_v27 = vadd.f32 %v3028_v56, %v12169_v31  ;;  %v12255_v44 = vadd.f32 %v3040_v41, %v3008_v61  ;;  %v3070_v43 = vmul.f32 %v12041_v7, %v9879_v5  ;;  %v16180_v38 = vld [vmem:[#allocation46_spill] sm:$0xff] }
 0x174   : > { %16171 = vst [vmem:[#allocation64_spill] sm:$0xff] %v12250_v51  ;;  %v3066_v31 = vmul.f32 %v12028_v47, %v9879_v5  ;;  %v3067_v20 = vmul.f32 %v12031_v36, %v9879_v5  ;;  %v3072_v29 = vmul.f32 %v12050_v2, %v9879_v5  ;;  %v3073_v13 = vmul.f32 %v12053_v48, %v9879_v5  ;;  %v16201_v51 = vld [vmem:[#allocation20_spill] sm:$0xff] }
 0x175   : > { %v1327_v33 = vmax.f32 %v1325_v52, 0.0  ;;  %16172 = vst [vmem:[#allocation65_spill] sm:$0xff] %v12252_v1  ;;  %v3048_v25 = vadd.f32 %v3032_v4, %v12181_v12  ;;  %v3049_v6 = vadd.f32 %v3033_v28, %v3001_v3  ;;  %v3068_v26 = vmul.f32 %v12035_v54, %v9879_v5  ;;  %v16177_v4 = vld [vmem:[#allocation44_spill] sm:$0xff] }
 0x176   : > { %16173 = vst [vmem:[#allocation66_spill] sm:$0xff] %v12255_v44  ;;  %v3069_v61 = vmul.f32 %v12038_v16, %v9879_v5  ;;  %v3078_v59 = vadd.f32 %v3062_v46, %v3042_v32  ;;  %v3079_v11 = vadd.f32 %v3063_v53, %v3043_v60  ;;  %v3080_v24 = vadd.f32 %v3064_v30, %v3044_v27  ;;  %v16178_v60 = vld [vmem:[#allocation36_spill] sm:$0xff]  ;;  %v16185_v53 = vld [vmem:[#allocation17_spill] sm:$0xff] }
 0x177   : > { %16174 = vst [vmem:[#allocation67_spill] sm:$0xff] %v12257_v45  ;;  %v3081_v56 = vadd.f32 %v3065_v21, %v3045_v23  ;;  %v3087_v62 = vadd.f32 %v3071_v55, %v3051_v50  ;;  %v3082_v17 = vadd.f32 %v3066_v31, %v3046_v8  ;;  %v3083_v49 = vadd.f32 %v3067_v20, %v3047_v14  ;;  %v16182_v32 = vld [vmem:[#allocation48_spill] sm:$0xff]  ;;  %v16183_v23 = vld [vmem:[#allocation37_spill] sm:$0xff]  ;;  %v16186_v21 = vld [vmem:[#allocation18_spill] sm:$0xff] }
 0x178   : > { %1329 = vst.msk [vmem:[#allocation3 + $0x58] sm:$0x3f] %vm900_vm1, %v1327_v33  ;;  %v3086_v33 = vadd.f32 %v3070_v43, %v3050_v34  ;;  %v3088_v57 = vadd.f32 %v3072_v29, %v3052_v19  ;;  %v3089_v9 = vadd.f32 %v3073_v13, %v3053_v63  ;;  %v3084_v12 = vadd.f32 %v3068_v26, %v3048_v25  ;;  %v16179_v34 = vld [vmem:[#allocation45_spill] sm:$0xff]  ;;  %v16181_v63 = vld [vmem:[#allocation47_spill] sm:$0xff]  ;;  %v16184_v14 = vld [vmem:[#allocation16_spill] sm:$0xff] }
 0x179   : > { %v3085_v3 = vadd.f32 %v3069_v61, %v3049_v6  ;;  %v3098_v18 = vmul.f32 %v16176_v0, %v16175_v42  ;;  %v3099_v41 = vmul.f32 %v16177_v4, %v16175_v42  ;;  %v3100_v52 = vmul.f32 %v16178_v60, %v16175_v42  ;;  %v16187_v55 = vld [vmem:[#allocation10_spill] sm:$0xff]  ;;  %v16188_v60 = vld [vmem:[#allocation19_spill] sm:$0xff] }
 0x17a   : > { %v3385_v22 = vld [vmem:[#allocation3 + $0x50] sm:$0xff]  ;;  %v3101_v50 = vmul.f32 %v16179_v34, %v16175_v42  ;;  %v3102_v19 = vmul.f32 %v16180_v38, %v16175_v42  ;;  %v3103_v28 = vmul.f32 %v16181_v63, %v16175_v42  ;;  %v3104_v27 = vmul.f32 %v16182_v32, %v16175_v42 }
 0x17b   : > { %v3105_v8 = vmul.f32 %v16183_v23, %v16175_v42  ;;  %v3106_v46 = vmul.f32 %v16184_v14, %v16175_v42  ;;  %v3107_v30 = vmul.f32 %v16185_v53, %v16175_v42  ;;  %v3108_v43 = vmul.f32 %v16186_v21, %v16175_v42 }
 0x17c   : > { %v3109_v31 = vmul.f32 %v16187_v55, %v16175_v42  ;;  %v3114_v20 = vadd.f32 %v3098_v18, %v3078_v59  ;;  %v3115_v29 = vadd.f32 %v3099_v41, %v3079_v11  ;;  %v3116_v13 = vadd.f32 %v3100_v52, %v3080_v24  ;;  %v16189_v24 = vld [vmem:[#allocation38_spill] sm:$0xff]  ;;  %v16196_v18 = vld [vmem:[#allocation63_spill] sm:$0xff] }
 0x17d   : > { %v3117_v25 = vadd.f32 %v3101_v50, %v3081_v56  ;;  %v3118_v6 = vadd.f32 %v3102_v19, %v3082_v17  ;;  %v3119_v26 = vadd.f32 %v3103_v28, %v3083_v49  ;;  %v3120_v61 = vadd.f32 %v3104_v27, %v3084_v12  ;;  %v16191_v17 = vld [vmem:[#allocation58_spill] sm:$0xff] }
 0x17e   : > { %v3123_v0 = vadd.f32 %v3107_v30, %v3087_v62  ;;  %v3124_v4 = vadd.f32 %v3108_v43, %v3088_v57  ;;  %v3134_v34 = vmul.f32 %v12177_v15, %v16188_v60  ;;  %v3135_v45 = vmul.f32 %v12184_v58, %v16188_v60  ;;  %v16192_v15 = vld [vmem:[#allocation59_spill] sm:$0xff]  ;;  %v16193_v58 = vld [vmem:[#allocation60_spill] sm:$0xff] }
 0x17f   : > { %v3386_v37 = vld [vmem:[#allocation3 + $0x58] sm:$0xff]  ;;  %v3136_v59 = vmul.f32 %v12187_v39, %v16188_v60  ;;  %v3137_v11 = vmul.f32 %v12209_v40, %v16188_v60  ;;  %v3138_v56 = vmul.f32 %v16189_v24, %v16188_v60  ;;  %v3140_v49 = vmul.f32 %v16191_v17, %v16188_v60  ;;  %v16195_v40 = vld [vmem:[#allocation62_spill] sm:$0xff] }
 0x180   : > { %v3409_v10 = vpack.c.bf16 %v3386_v37, %v3385_v22  ;;  %v3121_v22 = vadd.f32 %v3105_v8, %v3085_v3  ;;  %v3122_v37 = vadd.f32 %v3106_v46, %v3086_v33  ;;  %v16190_v33 = vld [vmem:[#allocation57_spill] sm:$0xff]  ;;  %v3141_v57 = vmul.f32 %v16192_v15, %v16188_v60 }
 0x181   : > { %v3139_v62 = vmul.f32 %v16190_v33, %v16188_v60  ;;  %v16194_v39 = vld [vmem:[#allocation61_spill] sm:$0xff]  ;;  %v3144_v3 = vmul.f32 %v16195_v40, %v16188_v60  ;;  %v3145_v41 = vmul.f32 %v16196_v18, %v16188_v60  ;;  %v3150_v52 = vadd.f32 %v3134_v34, %v3114_v20 }
 0x182   : > { %8019 = vmatmul.msk.bf16.gmra.mxu0 %vm439_vm0, %v3409_v10  ;;  %v3125_v10 = vadd.f32 %v3109_v31, %v3089_v9  ;;  %v3142_v9 = vmul.f32 %v16193_v58, %v16188_v60  ;;  %v3143_v12 = vmul.f32 %v16194_v39, %v16188_v60  ;;  %v3151_v50 = vadd.f32 %v3135_v45, %v3115_v29 }
 0x183   : > { %v3152_v19 = vadd.f32 %v3136_v59, %v3116_v13  ;;  %v3153_v28 = vadd.f32 %v3137_v11, %v3117_v25  ;;  %v3154_v27 = vadd.f32 %v3138_v56, %v3118_v6  ;;  %v3155_v8 = vadd.f32 %v3139_v62, %v3119_v26 }
 0x184   : > { %v3156_v46 = vadd.f32 %v3140_v49, %v3120_v61  ;;  %v3157_v30 = vadd.f32 %v3141_v57, %v3121_v22  ;;  %v12334_v43 = vadd.f32 %v3142_v9, %v3122_v37  ;;  %v12336_v31 = vadd.f32 %v3143_v12, %v3123_v0  ;;  %v16203_v57 = vld [vmem:[#allocation50_spill] sm:$0xff] }
 0x185   : > { %v12338_v44 = vadd.f32 %v3144_v3, %v3124_v4  ;;  %v12340_v1 = vadd.f32 %v3145_v41, %v3125_v10  ;;  %v3170_v42 = vmul.f32 %v12028_v47, %v16201_v51  ;;  %v3171_v45 = vmul.f32 %v12031_v36, %v16201_v51  ;;  %v16202_v4 = vld [vmem:[#allocation30_spill] sm:$0xff] }
 0x186   : > { %16197 = vst [vmem:[#allocation32_spill] sm:$0xff] %v12334_v43  ;;  %v3172_v20 = vmul.f32 %v12035_v54, %v16201_v51  ;;  %v3173_v29 = vmul.f32 %v12038_v16, %v16201_v51  ;;  %v3174_v13 = vmul.f32 %v12041_v7, %v16201_v51  ;;  %v3175_v25 = vmul.f32 %v12044_v35, %v16201_v51  ;;  %v12376_v9 = vld [vmem:[#allocation2] ss:$2 sm:$0xff] }
 0x187   : > { %16198 = vst [vmem:[#allocation44_spill] sm:$0xff] %v12336_v31  ;;  %v3176_v6 = vmul.f32 %v12050_v2, %v16201_v51  ;;  %v3177_v47 = vmul.f32 %v12053_v48, %v16201_v51  ;;  %v3186_v26 = vadd.f32 %v3170_v42, %v3150_v52  ;;  %v3187_v36 = vadd.f32 %v3171_v45, %v3151_v50 }
 0x188   : > { %16199 = vst [vmem:[#allocation36_spill] sm:$0xff] %v12338_v44  ;;  %v3188_v61 = vadd.f32 %v3172_v20, %v3152_v19  ;;  %v3189_v22 = vadd.f32 %v3173_v29, %v3153_v28  ;;  %v3190_v54 = vadd.f32 %v3174_v13, %v3154_v27  ;;  %v3191_v37 = vadd.f32 %v3175_v25, %v3155_v8  ;;  %v12396_v19 = vld [vmem:[#allocation2 + $0x11] ss:$2 sm:$0x3f]  ;;  %v12398_v8 = vld [vmem:[#allocation2 + $0x20] ss:$2 sm:$0xff] }
 0x189   : > { %16200 = vst [vmem:[#allocation45_spill] sm:$0xff] %v12340_v1  ;;  %v3192_v0 = vadd.f32 %v3176_v6, %v3156_v46  ;;  %v3193_v16 = vadd.f32 %v3177_v47, %v3157_v30  ;;  %v3206_v7 = vmul.f32 %v16180_v38, %v16202_v4  ;;  %v3207_v35 = vmul.f32 %v16181_v63, %v16202_v4  ;;  %v16207_v30 = vld [vmem:[#allocation39_spill] sm:$0xff]  ;;  %v9314_v25 = vld [vmem:[%s15963_s3 + $0x38] sm:$0xff]  ;;  %v16210_v47 = vld [vmem:[#allocation34_spill] sm:$0xff] }
 0x18a   : > { %v3208_v2 = vmul.f32 %v16182_v32, %v16202_v4  ;;  %v3209_v48 = vmul.f32 %v16183_v23, %v16202_v4  ;;  %v3210_v42 = vmul.f32 %v16184_v14, %v16202_v4  ;;  %v3211_v10 = vmul.f32 %v16185_v53, %v16202_v4  ;;  %v12378_v53 = vld [vmem:[#allocation2 + $0x1] ss:$2 sm:$0xff]  ;;  %16204 = vst [vmem:[#allocation46_spill] sm:$0xff] %v12398_v8  ;;  %v12405_v20 = vld [vmem:[#allocation2 + $0x30] ss:$2 sm:$0x3f] }
 0x18b   : > { %v3212_v34 = vmul.f32 %v16186_v21, %v16202_v4  ;;  %v3213_v38 = vmul.f32 %v16187_v55, %v16202_v4  ;;  %v3222_v59 = vadd.f32 %v3206_v7, %v3186_v26  ;;  %v3223_v63 = vadd.f32 %v3207_v35, %v3187_v36  ;;  %16208 = vst [vmem:[#allocation48_spill] sm:$0xff] %v12405_v20  ;;  %v12407_v29 = vld [vmem:[#allocation2 + $0x31] ss:$2 sm:$0x3f]  ;;  %v9312_v13 = vld [vmem:[%s15963_s3 + $0x28] sm:$0xff]  ;;  %v9575_v7 = vld [vmem:[%s9886_s22 + $0x15f] sm:$0xff] }
 0x18c   : > { %v3224_v11 = vadd.f32 %v3208_v2, %v3188_v61  ;;  %v3225_v56 = vadd.f32 %v3209_v48, %v3189_v22  ;;  %v3226_v32 = vadd.f32 %v3210_v42, %v3190_v54  ;;  %v3227_v62 = vadd.f32 %v3211_v10, %v3191_v37  ;;  %16209 = vst [vmem:[#allocation37_spill] sm:$0xff] %v12407_v29  ;;  %v9308_v6 = vld [vmem:[%s15963_s3 + $0x8] sm:$0xff]  ;;  %v16211_v26 = vld [vmem:[#allocation33_spill] sm:$0xff]  ;;  %v16212_v61 = vld [vmem:[#allocation40_spill] sm:$0xff] }
 0x18d   : > { %v3228_v49 = vadd.f32 %v3212_v34, %v3192_v0  ;;  %v3229_v23 = vadd.f32 %v3213_v38, %v3193_v16  ;;  %v3242_v14 = vmul.f32 %v16203_v57, %v16189_v24  ;;  %v3243_v21 = vmul.f32 %v16203_v57, %v16190_v33  ;;  %v12394_v33 = vld [vmem:[#allocation2 + $0x10] ss:$2 sm:$0x3f]  ;;  %v16214_v37 = vld [vmem:[#allocation22_spill] sm:$0xff]  ;;  %3797 = vmatpush.bf16.msra.mxu2 %v9312_v13 }
 0x18e   : > { %v3244_v55 = vmul.f32 %v16203_v57, %v16191_v17  ;;  %v3245_v12 = vmul.f32 %v16203_v57, %v16192_v15  ;;  %v3246_v3 = vmul.f32 %v16203_v57, %v16193_v58  ;;  %v3247_v41 = vmul.f32 %v16203_v57, %v16194_v39  ;;  %v12400_v58 = vld [vmem:[#allocation2 + $0x21] ss:$2 sm:$0xff]  ;;  %v9313_v42 = vld [vmem:[%s15963_s3 + $0x30] sm:$0xff]  ;;  %4005 = vmatpush.bf16.msra.mxu3 %v9314_v25  ;;  %v12587_v8 = vld [vmem:[%s9886_s22 + $0x1b8] sm:$0xff] }
 0x18f   : > { %v3248_v24 = vmul.f32 %v16203_v57, %v16195_v40  ;;  %v3249_v52 = vmul.f32 %v16203_v57, %v16196_v18  ;;  %v3258_v50 = vadd.f32 %v3242_v14, %v3222_v59  ;;  %v3259_v17 = vadd.f32 %v3243_v21, %v3223_v63  ;;  %16205 = vst [vmem:[#allocation47_spill] sm:$0xff] %v12400_v58  ;;  %v16206_v18 = vld [vmem:[#allocation27_spill] sm:$0xff]  ;;  %v16215_v0 = vld [vmem:[#allocation21_spill] sm:$0xff] }
 0x190   : > { %v3260_v28 = vadd.f32 %v3244_v55, %v3224_v11  ;;  %v3261_v15 = vadd.f32 %v3245_v12, %v3225_v56  ;;  %v3262_v27 = vadd.f32 %v3246_v3, %v3226_v32  ;;  %v3263_v39 = vadd.f32 %v3247_v41, %v3227_v62  ;;  %v16213_v22 = vld [vmem:[#allocation35_spill] sm:$0xff]  ;;  %v9311_v48 = vld [vmem:[%s15963_s3 + $0x20] sm:$0xff]  ;;  %v9578_v11 = vld [vmem:[%s9886_s22 + $0x177] sm:$0xff]  ;;  %3617 = vmatpush.bf16.msrb.mxu1 %v9308_v6 }
 0x191   : > { %v3264_v46 = vadd.f32 %v3248_v24, %v3228_v49  ;;  %v3265_v40 = vadd.f32 %v3249_v52, %v3229_v23  ;;  %3274 = vst.msk [vmem:[#allocation2] sm:$0xff] %vm439_vm0, %v3258_v50  ;;  %v1694_v45 = vmax.f32 %v16207_v30, %v16206_v18  ;;  %v1695_v36 = vmax.f32 %v16211_v26, %v16210_v47  ;;  %v16216_v35 = vld [vmem:[#allocation11_spill] sm:$0xff]  ;;  %v12445_v32 = vld [vmem:[%s9886_s22 + $0x17f] sm:$0xff]  ;;  %v12462_v52 = vld [vmem:[#allocation3 + $0x17] sm:$0xff] }
 0x192   : > { %3275 = vst.msk [vmem:[#allocation2 + $0x8] sm:$0xff] %vm439_vm0, %v3259_v17  ;;  %v1700_v54 = vmax.f32 %v16213_v22, %v16212_v61  ;;  %v1701_v16 = vmax.f32 %v16215_v0, %v16214_v37  ;;  %v12427_v2 = vmul.f32 %v9575_v7, %v16216_v35  ;;  %v12436_v10 = vld [vmem:[#allocation3 + $0x11] sm:$0xff]  ;;  %v9576_v34 = vld [vmem:[%s9886_s22 + $0x167] sm:$0xff]  ;;  %v1357_v56 = vmul.f32 %v9578_v11, %v16216_v35  ;;  %v3691_v49 = vld [vmem:[#allocation3 + $0x19] sm:$0xff] }
 0x193   : > { %3276 = vst.msk [vmem:[#allocation2 + $0x10] sm:$0xff] %vm439_vm0, %v3260_v28  ;;  %v1355_v38 = vmul.f32 %v9576_v34, %v16216_v35  ;;  %v9577_v59 = vld [vmem:[%s9886_s22 + $0x16f] sm:$0xff]  ;;  %v1358_v62 = vmul.f32 %v12445_v32, %v16216_v35  ;;  %v9307_v23 = vld [vmem:[%s15963_s3] sm:$0xff]  ;;  %v3718_v3 = vpack.c.bf16 %v3691_v49, %v12436_v10  ;;  %v12470_v28 = vld [vmem:[%s9886_s22 + $0x197] sm:$0xff]  ;;  %3798 = vmatpush.bf16.msra.mxu2 %v9311_v48 }
 0x194   : > { %v1356_v63 = vmul.f32 %v9577_v59, %v16216_v35  ;;  %3277 = vst.msk [vmem:[#allocation2 + $0x18] sm:$0xff] %vm439_vm0, %v3261_v15  ;;  %v3898_v57 = vld [vmem:[#allocation3 + $0x1f] sm:$0xff]  ;;  %v1702_v14 = vmax.f32 %v1694_v45, %v1700_v54  ;;  %v1703_v21 = vmax.f32 %v1695_v36, %v1701_v16  ;;  %v12454_v55 = vld [vmem:[%s9886_s22 + $0x187] sm:$0xff]  ;;  %v12460_v24 = vld [vmem:[#allocation3 + $0xf] sm:$0xff]  ;;  %v1361_v15 = vmul.f32 %v12470_v28, %v16216_v35 }
 0x195   : > { %v1359_v12 = vmul.f32 %v12454_v55, %v16216_v35  ;;  %3278 = vst.msk [vmem:[#allocation2 + $0x20] sm:$0xff] %vm439_vm0, %v3262_v27  ;;  %v3899_v41 = vld [vmem:[#allocation3 + $0x27] sm:$0xff]  ;;  %v12465_v50 = vld [vmem:[%s9886_s22 + $0x18f] sm:$0xff]  ;;  %v16218_v6 = vld [vmem:[#allocation13_spill] sm:$0xff]  ;;  %4006 = vmatpush.bf16.msra.mxu3 %v9313_v42  ;;  %3618 = vmatpush.bf16.msrb.mxu1 %v9307_v23 }
 0x196   : > { %v1360_v17 = vmul.f32 %v12465_v50, %v16216_v35  ;;  %3279 = vst.msk [vmem:[#allocation2 + $0x28] sm:$0xff] %vm439_vm0, %v3263_v39  ;;  %v12475_v27 = vpack.c.bf16 %v3899_v41, %v3898_v57  ;;  %v16217_v18 = vld [vmem:[#allocation31_spill] sm:$0xff]  ;;  %v9583_v25 = vld [vmem:[%s9886_s22 + $0x160] sm:$0xff]  ;;  %v9586_v22 = vld [vmem:[%s9886_s22 + $0x178] sm:$0xff]  ;;  %8063 = vmatmul.msk.bf16.vlgmr.msra.gmra.mxu2 %vm439_vm0, %v3718_v3 }
 0x197   : > { %v1704_v30 = vadd.f32 %v1702_v14, %v16217_v18  ;;  %v1705_v45 = vadd.f32 %v1703_v21, %v16217_v18  ;;  %3280 = vst.msk [vmem:[#allocation2 + $0x30] sm:$0xff] %vm439_vm0, %v3264_v46  ;;  %v1386_v47 = vmul.f32 %v9583_v25, %v16218_v6  ;;  %v9584_v26 = vld [vmem:[%s9886_s22 + $0x168] sm:$0xff]  ;;  %v9585_v39 = vld [vmem:[%s9886_s22 + $0x170] sm:$0xff]  ;;  %v1389_v54 = vmul.f32 %v9586_v22, %v16218_v6  ;;  %v12492_v0 = vld [vmem:[%s9886_s22 + $0x180] sm:$0xff] }
 0x198   : > { %v1387_v36 = vmul.f32 %v9584_v26, %v16218_v6  ;;  %v1388_v61 = vmul.f32 %v9585_v39, %v16218_v6  ;;  %3281 = vst.msk [vmem:[#allocation2 + $0x38] sm:$0xff] %vm439_vm0, %v3265_v40  ;;  %v1390_v16 = vmul.f32 %v12492_v0, %v16218_v6  ;;  %v12497_v7 = vld [vmem:[%s9886_s22 + $0x188] sm:$0xff]  ;;  %v12502_v11 = vld [vmem:[%s9886_s22 + $0x190] sm:$0xff]  ;;  %v12507_v48 = vld [vmem:[%s9886_s22 + $0x198] sm:$0xff]  ;;  %8089 = vmatmul.msk.bf16.vlgmr.msra.gmra.mxu3 %vm439_vm0, %v12475_v27 }
 0x199   : > { %v1706_v46 = vmax.f32 %v1704_v30, 0.0  ;;  %v1707_v37 = vmax.f32 %v1705_v45, 0.0  ;;  %v1391_v10 = vmul.f32 %v12497_v7, %v16218_v6  ;;  %v3290_v34 = vld [vmem:[#allocation2] ss:$2 sm:$0xff]  ;;  %v3292_v59 = vld [vmem:[#allocation2 + $0x1] ss:$2 sm:$0xff]  ;;  %v1392_v40 = vmul.f32 %v12502_v11, %v16218_v6 }
 0x19a   : > { %v1393_v42 = vmul.f32 %v12507_v48, %v16218_v6  ;;  %v1402_v49 = vadd.f32 %v1386_v47, %v12427_v2  ;;  %v1403_v57 = vadd.f32 %v1387_v36, %v1355_v38  ;;  %v3294_v14 = vmax.f32 %v3290_v34, %v3292_v59  ;;  %v9592_v26 = vld [vmem:[%s9886_s22 + $0x169] sm:$0xff]  ;;  %v9593_v3 = vld [vmem:[%s9886_s22 + $0x171] sm:$0xff]  ;;  %v12526_v22 = vld [vmem:[%s9886_s22 + $0x181] sm:$0xff] }
 0x19b   : > { %1708 = vst.msk [vmem:[#allocation3 + $0x60] sm:$0xff] %vm439_vm0, %v1706_v46  ;;  %v1404_v21 = vadd.f32 %v1388_v61, %v1356_v63  ;;  %v1405_v23 = vadd.f32 %v1389_v54, %v1357_v56  ;;  %v1406_v41 = vadd.f32 %v1390_v16, %v1358_v62  ;;  %v3291_v30 = vld [vmem:[#allocation2 + $0x10] ss:$2 sm:$0x3f]  ;;  %v1407_v2 = vadd.f32 %v1391_v10, %v1359_v12  ;;  %v9591_v63 = vld [vmem:[%s9886_s22 + $0x161] sm:$0xff] }
 0x19c   : > { %v3293_v45 = vld [vmem:[#allocation2 + $0x11] ss:$2 sm:$0x3f]  ;;  %v1408_v25 = vadd.f32 %v1392_v40, %v1360_v17  ;;  %v1409_v38 = vadd.f32 %v1393_v42, %v1361_v15  ;;  %1709 = vst.msk [vmem:[#allocation3 + $0x68] sm:$0x3f] %vm900_vm1, %v1707_v37  ;;  %v16219_v56 = vld [vmem:[#allocation14_spill] sm:$0xff] }
 0x19d   : > { %v3295_v47 = vmax.f32 %v3291_v30, %v3293_v45  ;;  %v1434_v62 = vmul.f32 %v9591_v63, %v16219_v56  ;;  %v1435_v36 = vmul.f32 %v9592_v26, %v16219_v56  ;;  %v1436_v39 = vmul.f32 %v9593_v3, %v16219_v56  ;;  %v3296_v61 = vld [vmem:[#allocation2 + $0x20] ss:$2 sm:$0xff]  ;;  %v3298_v12 = vld [vmem:[#allocation2 + $0x21] ss:$2 sm:$0xff]  ;;  %v12536_v16 = vld [vmem:[%s9886_s22 + $0x191] sm:$0xff] }
 0x19e   : > { %v9594_v17 = vld [vmem:[%s9886_s22 + $0x179] sm:$0xff]  ;;  %v1438_v54 = vmul.f32 %v12526_v22, %v16219_v56  ;;  %v12531_v46 = vld [vmem:[%s9886_s22 + $0x189] sm:$0xff]  ;;  %v1440_v10 = vmul.f32 %v12536_v16, %v16219_v56  ;;  %v3300_v34 = vmax.f32 %v3296_v61, %v3298_v12 }
 0x19f   : > { %v1437_v15 = vmul.f32 %v9594_v17, %v16219_v56  ;;  %v1439_v37 = vmul.f32 %v12531_v46, %v16219_v56  ;;  %v12541_v59 = vld [vmem:[%s9886_s22 + $0x199] sm:$0xff]  ;;  %v1450_v42 = vadd.f32 %v1434_v62, %v1402_v49  ;;  %v1451_v30 = vadd.f32 %v1435_v36, %v1403_v57  ;;  %v12549_v63 = vld [vmem:[%s9886_s22 + $0x1a7] sm:$0xff]  ;;  %v12552_v20 = vld [vmem:[%s9886_s22 + $0x1af] sm:$0xff] }
 0x1a0   : > { %v1441_v40 = vmul.f32 %v12541_v59, %v16219_v56  ;;  %v12546_v45 = vld [vmem:[%s9886_s22 + $0x19f] sm:$0xff]  ;;  %v3297_v26 = vld [vmem:[#allocation2 + $0x30] ss:$2 sm:$0x3f]  ;;  %v1452_v17 = vadd.f32 %v1436_v39, %v1404_v21  ;;  %v1454_v1 = vadd.f32 %v1438_v54, %v1406_v41  ;;  %v3302_v12 = vmax.f32 %v3294_v14, %v3300_v34 }
 0x1a1   : > { %v3299_v3 = vld [vmem:[#allocation2 + $0x31] ss:$2 sm:$0x3f]  ;;  %v1453_v13 = vadd.f32 %v1437_v15, %v1405_v23  ;;  %v1455_v44 = vadd.f32 %v1439_v37, %v1407_v2  ;;  %v1456_v31 = vadd.f32 %v1440_v10, %v1408_v25  ;;  %v1470_v57 = vmul.f32 %v12445_v32, %v9879_v5  ;;  %v3692_v2 = vld [vmem:[#allocation3 + $0x21] sm:$0xff]  ;;  %v3693_v25 = vld [vmem:[#allocation3 + $0x29] sm:$0xff] }
 0x1a2   : > { %v3301_v61 = vmax.f32 %v3297_v26, %v3299_v3  ;;  %v1457_v43 = vadd.f32 %v1441_v40, %v1409_v38  ;;  %v12555_v29 = vld [vmem:[%s9886_s22 + $0x1b7] sm:$0xff]  ;;  %v3387_v49 = vld [vmem:[#allocation3 + $0x60] sm:$0xff]  ;;  %v1471_v62 = vmul.f32 %v12454_v55, %v9879_v5  ;;  %v1472_v21 = vmul.f32 %v12465_v50, %v9879_v5  ;;  %v3900_v38 = vld [vmem:[#allocation3 + $0x2f] sm:$0xff] }
 0x1a3   : > { %v1473_v23 = vmul.f32 %v12470_v28, %v9879_v5  ;;  %v3304_v41 = vadd.f32 %v3302_v12, %v16217_v18  ;;  %v1474_v36 = vmul.f32 %v12546_v45, %v9879_v5  ;;  %v1475_v32 = vmul.f32 %v12549_v63, %v9879_v5  ;;  %v3388_v55 = vld [vmem:[#allocation3 + $0x68] sm:$0xff]  ;;  %v3901_v39 = vld [vmem:[#allocation3 + $0x37] sm:$0xff]  ;;  %v12578_v40 = vld [vmem:[%s9886_s22 + $0x1a0] sm:$0xff] }
 0x1a4   : > { %v3303_v14 = vmax.f32 %v3295_v47, %v3301_v61  ;;  %v3719_v50 = vpack.c.bf16 %v3693_v25, %v3692_v2  ;;  %v1476_v28 = vmul.f32 %v12552_v20, %v9879_v5  ;;  %v1477_v47 = vmul.f32 %v12555_v29, %v9879_v5  ;;  %v12581_v2 = vld [vmem:[%s9886_s22 + $0x1a8] sm:$0xff]  ;;  %v12584_v25 = vld [vmem:[%s9886_s22 + $0x1b0] sm:$0xff] }
 0x1a5   : > { %v1486_v15 = vadd.f32 %v1470_v57, %v1450_v42  ;;  %v3306_v37 = vmax.f32 %v3304_v41, 0.0  ;;  %v3410_v10 = vpack.c.bf16 %v3388_v55, %v3387_v49  ;;  %v12575_v34 = vpack.c.bf16 %v3901_v39, %v3900_v38  ;;  %v12618_v55 = vld [vmem:[%s9886_s22 + $0x1b9] sm:$0xff] }
 0x1a6   : > { %v3305_v54 = vadd.f32 %v3303_v14, %v16217_v18  ;;  %v1487_v26 = vadd.f32 %v1471_v62, %v1451_v30  ;;  %v1488_v3 = vadd.f32 %v1472_v21, %v1452_v17  ;;  %v1489_v61 = vadd.f32 %v1473_v23, %v1453_v13  ;;  %v16220_v30 = vld [vmem:[#allocation15_spill] sm:$0xff]  ;;  %8064 = vmatmul.msk.bf16.gmra.mxu2 %vm439_vm0, %v3719_v50 }
 0x1a7   : > { %v1490_v12 = vadd.f32 %v1474_v36, %v1454_v1  ;;  %3308 = vst.msk [vmem:[#allocation3 + $0xe0] sm:$0xff] %vm439_vm0, %v3306_v37  ;;  %8020 = vmatmul.msk.bf16.gmra.mxu0 %vm439_vm0, %v3410_v10  ;;  %v1491_v42 = vadd.f32 %v1475_v32, %v1455_v44  ;;  %v1492_v49 = vadd.f32 %v1476_v28, %v1456_v31  ;;  %v12615_v14 = vld [vmem:[%s9886_s22 + $0x1b1] sm:$0xff] }
 0x1a8   : > { %v3307_v58 = vmax.f32 %v3305_v54, 0.0  ;;  %v1493_v57 = vadd.f32 %v1477_v47, %v1457_v43  ;;  %v1506_v1 = vmul.f32 %v12492_v0, %v16220_v30  ;;  %v1507_v13 = vmul.f32 %v12497_v7, %v16220_v30  ;;  %8090 = vmatmul.msk.bf16.gmra.mxu3 %vm439_vm0, %v12575_v34 }
 0x1a9   : > { %v1508_v17 = vmul.f32 %v12502_v11, %v16220_v30  ;;  %v1509_v62 = vmul.f32 %v12507_v48, %v16220_v30  ;;  %v1510_v44 = vmul.f32 %v12578_v40, %v16220_v30  ;;  %v1511_v43 = vmul.f32 %v12581_v2, %v16220_v30  ;;  %v12609_v48 = vld [vmem:[%s9886_s22 + $0x1a1] sm:$0xff] }
 0x1aa   : > { %3309 = vst.msk [vmem:[#allocation3 + $0xe8] sm:$0x3f] %vm900_vm1, %v3307_v58  ;;  %v1512_v31 = vmul.f32 %v12584_v25, %v16220_v30  ;;  %v1513_v0 = vmul.f32 %v12587_v8, %v16220_v30  ;;  %v1522_v7 = vadd.f32 %v1506_v1, %v1486_v15  ;;  %v1523_v11 = vadd.f32 %v1507_v13, %v1487_v26  ;;  %v12612_v58 = vld [vmem:[%s9886_s22 + $0x1a9] sm:$0xff]  ;;  %v1569_v1 = vld [vmem:[%s9886_s22 + $0x1d7] sm:$0xff] }
 0x1ab   : > { %v1524_v21 = vadd.f32 %v1508_v17, %v1488_v3  ;;  %v1525_v23 = vadd.f32 %v1509_v62, %v1489_v61  ;;  %v1526_v41 = vadd.f32 %v1510_v44, %v1490_v12  ;;  %v1527_v38 = vadd.f32 %v1511_v43, %v1491_v42  ;;  %v1566_v3 = vld [vmem:[%s9886_s22 + $0x1bf] sm:$0xff]  ;;  %v1567_v61 = vld [vmem:[%s9886_s22 + $0x1c7] sm:$0xff] }
 0x1ac   : > { %v1528_v36 = vadd.f32 %v1512_v31, %v1492_v49  ;;  %v1529_v32 = vadd.f32 %v1513_v0, %v1493_v57  ;;  %v1542_v39 = vmul.f32 %v12526_v22, %v16188_v60  ;;  %v1543_v28 = vmul.f32 %v12531_v46, %v16188_v60  ;;  %v1568_v57 = vld [vmem:[%s9886_s22 + $0x1cf] sm:$0xff] }
 0x1ad   : > { %v1544_v47 = vmul.f32 %v12536_v16, %v16188_v60  ;;  %v1545_v15 = vmul.f32 %v12541_v59, %v16188_v60  ;;  %v1546_v50 = vmul.f32 %v12609_v48, %v16188_v60  ;;  %v1547_v54 = vmul.f32 %v12612_v58, %v16188_v60 }
 0x1ae   : > { %v1548_v22 = vmul.f32 %v12615_v14, %v16188_v60  ;;  %v3403_v37 = vld [vmem:[#allocation3 + $0xe0] sm:$0xff]  ;;  %v1549_v46 = vmul.f32 %v12618_v55, %v16188_v60  ;;  %v1558_v10 = vadd.f32 %v1542_v39, %v1522_v7  ;;  %v1559_v16 = vadd.f32 %v1543_v28, %v1523_v11  ;;  %v1605_v28 = vld [vmem:[%s9886_s22 + $0x1d8] sm:$0xff] }
 0x1af   : > { %v1560_v26 = vadd.f32 %v1544_v47, %v1524_v21  ;;  %v1561_v59 = vadd.f32 %v1545_v15, %v1525_v23  ;;  %v1562_v12 = vadd.f32 %v1546_v50, %v1526_v41  ;;  %v1563_v42 = vadd.f32 %v1547_v54, %v1527_v38  ;;  %v1603_v38 = vld [vmem:[%s9886_s22 + $0x1c8] sm:$0xff] }
 0x1b0   : > { %v1564_v49 = vadd.f32 %v1548_v22, %v1528_v36  ;;  %v1565_v17 = vadd.f32 %v1549_v46, %v1529_v32  ;;  %v1578_v62 = vmul.f32 %v12546_v45, %v16201_v51  ;;  %v1579_v44 = vmul.f32 %v12549_v63, %v16201_v51  ;;  %v1602_v63 = vld [vmem:[%s9886_s22 + $0x1c0] sm:$0xff] }
 0x1b1   : > { %v3404_v13 = vld [vmem:[#allocation3 + $0xe8] sm:$0xff]  ;;  %v1580_v43 = vmul.f32 %v12552_v20, %v16201_v51  ;;  %v1581_v0 = vmul.f32 %v12555_v29, %v16201_v51  ;;  %v1582_v7 = vmul.f32 %v1566_v3, %v16201_v51  ;;  %v1583_v11 = vmul.f32 %v1567_v61, %v16201_v51  ;;  %v1604_v29 = vld [vmem:[%s9886_s22 + $0x1d0] sm:$0xff] }
 0x1b2   : > { %v3418_v31 = vpack.c.bf16 %v3404_v13, %v3403_v37  ;;  %v1584_v21 = vmul.f32 %v1568_v57, %v16201_v51  ;;  %v1585_v45 = vmul.f32 %v1569_v1, %v16201_v51  ;;  %v1594_v23 = vadd.f32 %v1578_v62, %v1558_v10  ;;  %v1638_v61 = vld [vmem:[%s9886_s22 + $0x1c1] sm:$0xff]  ;;  %v1641_v57 = vld [vmem:[%s9886_s22 + $0x1d9] sm:$0xff] }
 0x1b3   : > { %v1595_v41 = vadd.f32 %v1579_v44, %v1559_v16  ;;  %v1596_v20 = vadd.f32 %v1580_v43, %v1560_v26  ;;  %v1597_v36 = vadd.f32 %v1581_v0, %v1561_v59  ;;  %v1598_v32 = vadd.f32 %v1582_v7, %v1562_v12  ;;  %v1639_v59 = vld [vmem:[%s9886_s22 + $0x1c9] sm:$0xff]  ;;  %v12679_v13 = vld [vmem:[%s15964_s1 + $0x8] ss:$0 sm:$0xff] }
 0x1b4   : > { %8028 = vmatmul.msk.bf16.vlgmr.msra.gmra.mxu1 %vm439_vm0, %v3418_v31  ;;  %v1599_v39 = vadd.f32 %v1583_v11, %v1563_v42  ;;  %v1600_v47 = vadd.f32 %v1584_v21, %v1564_v49  ;;  %v1601_v15 = vadd.f32 %v1585_v45, %v1565_v17  ;;  %v1614_v50 = vmul.f32 %v12578_v40, %v16202_v4 }
 0x1b5   : > { %v1615_v54 = vmul.f32 %v12581_v2, %v16202_v4  ;;  %v1616_v22 = vmul.f32 %v12584_v25, %v16202_v4  ;;  %v1617_v37 = vmul.f32 %v12587_v8, %v16202_v4  ;;  %v1618_v46 = vmul.f32 %v1602_v63, %v16202_v4  ;;  %v1640_v25 = vld [vmem:[%s9886_s22 + $0x1d1] sm:$0xff]  ;;  %v9600_v63 = vld [vmem:[%s9886_s22 + $0x1df] sm:$0xff] }
 0x1b6   : > { %v1619_v10 = vmul.f32 %v1603_v38, %v16202_v4  ;;  %v1620_v16 = vmul.f32 %v1604_v29, %v16202_v4  ;;  %v1621_v26 = vmul.f32 %v1605_v28, %v16202_v4  ;;  %v1630_v40 = vadd.f32 %v1614_v50, %v1594_v23  ;;  %v9603_v29 = vld [vmem:[%s9886_s22 + $0x1f7] sm:$0xff]  ;;  %v12709_v50 = vld [vmem:[%s9886_s22 + $0x207] sm:$0xff] }
 0x1b7   : > { %v1631_v3 = vadd.f32 %v1615_v54, %v1595_v41  ;;  %v1632_v2 = vadd.f32 %v1616_v22, %v1596_v20  ;;  %v1633_v12 = vadd.f32 %v1617_v37, %v1597_v36  ;;  %v1634_v42 = vadd.f32 %v1618_v46, %v1598_v32  ;;  %v9601_v20 = vld [vmem:[%s9886_s22 + $0x1e7] sm:$0xff]  ;;  %v9602_v32 = vld [vmem:[%s9886_s22 + $0x1ef] sm:$0xff]  ;;  %v12720_v46 = vld [vmem:[%s9886_s22 + $0x217] sm:$0xff] }
 0x1b8   : > { %v1635_v49 = vadd.f32 %v1619_v10, %v1599_v39  ;;  %v1636_v1 = vadd.f32 %v1620_v16, %v1600_v47  ;;  %v1637_v8 = vadd.f32 %v1621_v26, %v1601_v15  ;;  %v1650_v17 = vmul.f32 %v12679_v13, %v12609_v48  ;;  %v12704_v47 = vld [vmem:[%s9886_s22 + $0x1ff] sm:$0xff]  ;;  %v12715_v22 = vld [vmem:[%s9886_s22 + $0x20f] sm:$0xff] }
 0x1b9   : > { %v1651_v62 = vmul.f32 %v12679_v13, %v12612_v58  ;;  %v1652_v44 = vmul.f32 %v12679_v13, %v12615_v14  ;;  %v1653_v43 = vmul.f32 %v12679_v13, %v12618_v55  ;;  %v1654_v31 = vmul.f32 %v12679_v13, %v1638_v61  ;;  %v9608_v16 = vld [vmem:[%s9886_s22 + $0x1e0] sm:$0xff]  ;;  %v9610_v61 = vld [vmem:[%s9886_s22 + $0x1f0] sm:$0xff] }
 0x1ba   : > { %v1655_v0 = vmul.f32 %v12679_v13, %v1639_v59  ;;  %v1656_v7 = vmul.f32 %v12679_v13, %v1640_v25  ;;  %v1657_v48 = vmul.f32 %v12679_v13, %v1641_v57  ;;  %v1666_v11 = vadd.f32 %v1650_v17, %v1630_v40  ;;  %v9609_v40 = vld [vmem:[%s9886_s22 + $0x1e8] sm:$0xff]  ;;  %v12750_v17 = vld [vmem:[%s9886_s22 + $0x218] sm:$0xff] }
 0x1bb   : > { %v1667_v58 = vadd.f32 %v1651_v62, %v1631_v3  ;;  %v1668_v21 = vadd.f32 %v1652_v44, %v1632_v2  ;;  %v1669_v45 = vadd.f32 %v1653_v43, %v1633_v12  ;;  %v1670_v14 = vadd.f32 %v1654_v31, %v1634_v42  ;;  %v9611_v2 = vld [vmem:[%s9886_s22 + $0x1f8] sm:$0xff]  ;;  %v12734_v42 = vld [vmem:[%s9886_s22 + $0x200] sm:$0xff]  ;;  %v12739_v25 = vld [vmem:[%s9886_s22 + $0x208] sm:$0xff] }
 0x1bc   : > { %v1671_v23 = vadd.f32 %v1655_v0, %v1635_v49  ;;  %v1672_v55 = vadd.f32 %v1656_v7, %v1636_v1  ;;  %v1673_v41 = vadd.f32 %v1657_v48, %v1637_v8  ;;  %1682 = vst.msk [vmem:[#allocation2 + $0x40] sm:$0xff] %vm439_vm0, %v1666_v11  ;;  %v1754_v38 = vmul.f32 %v9600_v63, %v16216_v35  ;;  %v12745_v1 = vld [vmem:[%s9886_s22 + $0x210] sm:$0xff] }
 0x1bd   : > { %v1755_v36 = vmul.f32 %v9601_v20, %v16216_v35  ;;  %1683 = vst.msk [vmem:[#allocation2 + $0x48] sm:$0xff] %vm439_vm0, %v1667_v58  ;;  %v1756_v39 = vmul.f32 %v9602_v32, %v16216_v35  ;;  %v1757_v28 = vmul.f32 %v9603_v29, %v16216_v35  ;;  %v1758_v15 = vmul.f32 %v12704_v47, %v16216_v35  ;;  %v9619_v20 = vld [vmem:[%s9886_s22 + $0x1f9] sm:$0xff]  ;;  %v12770_v32 = vld [vmem:[%s9886_s22 + $0x201] sm:$0xff] }
 0x1be   : > { %v1759_v54 = vmul.f32 %v12709_v50, %v16216_v35  ;;  %1684 = vst.msk [vmem:[#allocation2 + $0x50] sm:$0xff] %vm439_vm0, %v1668_v21  ;;  %v1760_v37 = vmul.f32 %v12715_v22, %v16216_v35  ;;  %v1761_v10 = vmul.f32 %v12720_v46, %v16216_v35  ;;  %v1786_v26 = vmul.f32 %v9608_v16, %v16218_v6  ;;  %v9616_v21 = vld [vmem:[%s9886_s22 + $0x1e1] sm:$0xff] }
 0x1bf   : > { %v1787_v3 = vmul.f32 %v9609_v40, %v16218_v6  ;;  %1685 = vst.msk [vmem:[#allocation2 + $0x58] sm:$0xff] %vm439_vm0, %v1669_v45  ;;  %v1788_v59 = vmul.f32 %v9610_v61, %v16218_v6  ;;  %v1789_v12 = vmul.f32 %v9611_v2, %v16218_v6  ;;  %v1790_v49 = vmul.f32 %v12734_v42, %v16218_v6  ;;  %v12790_v16 = vld [vmem:[%s9886_s22 + $0x21f] sm:$0xff]  ;;  %v12796_v2 = vld [vmem:[%s9886_s22 + $0x22f] sm:$0xff] }
 0x1c0   : > { %v1791_v57 = vmul.f32 %v12739_v25, %v16218_v6  ;;  %1686 = vst.msk [vmem:[#allocation2 + $0x60] sm:$0xff] %vm439_vm0, %v1670_v14  ;;  %v1792_v8 = vmul.f32 %v12745_v1, %v16218_v6  ;;  %v1793_v62 = vmul.f32 %v12750_v17, %v16218_v6  ;;  %v1802_v44 = vadd.f32 %v1786_v26, %v1754_v38  ;;  %v9617_v14 = vld [vmem:[%s9886_s22 + $0x1e9] sm:$0xff] }
 0x1c1   : > { %v1803_v43 = vadd.f32 %v1787_v3, %v1755_v36  ;;  %1687 = vst.msk [vmem:[#allocation2 + $0x68] sm:$0xff] %vm439_vm0, %v1671_v23  ;;  %v1804_v31 = vadd.f32 %v1788_v59, %v1756_v39  ;;  %v1805_v0 = vadd.f32 %v1789_v12, %v1757_v28  ;;  %v1806_v7 = vadd.f32 %v1790_v49, %v1758_v15  ;;  %v12780_v28 = vld [vmem:[%s9886_s22 + $0x211] sm:$0xff]  ;;  %v12793_v59 = vld [vmem:[%s9886_s22 + $0x227] sm:$0xff] }
 0x1c2   : > { %v1807_v48 = vadd.f32 %v1791_v57, %v1759_v54  ;;  %1688 = vst.msk [vmem:[#allocation2 + $0x70] sm:$0xff] %vm439_vm0, %v1672_v55  ;;  %v1808_v11 = vadd.f32 %v1792_v8, %v1760_v37  ;;  %v1809_v58 = vadd.f32 %v1793_v62, %v1761_v10  ;;  %v1834_v45 = vmul.f32 %v9616_v21, %v16219_v56  ;;  %v9618_v55 = vld [vmem:[%s9886_s22 + $0x1f1] sm:$0xff]  ;;  %v12785_v54 = vld [vmem:[%s9886_s22 + $0x219] sm:$0xff] }
 0x1c3   : > { %v1835_v63 = vmul.f32 %v9617_v14, %v16219_v56  ;;  %v16221_v23 = vpack.c.bf16 %v12462_v52, %v12460_v24  ;;  %1689 = vst.msk [vmem:[#allocation2 + $0x78] sm:$0xff] %vm439_vm0, %v1673_v41  ;;  %v1836_v38 = vmul.f32 %v9618_v55, %v16219_v56  ;;  %v1837_v36 = vmul.f32 %v9619_v20, %v16219_v56  ;;  %v12775_v52 = vld [vmem:[%s9886_s22 + $0x209] sm:$0xff]  ;;  %v12799_v12 = vld [vmem:[%s9886_s22 + $0x237] sm:$0xff]  ;;  %v12818_v55 = vld [vmem:[%s9886_s22 + $0x220] sm:$0xff] }
 0x1c4   : > { %v1838_v39 = vmul.f32 %v12770_v32, %v16219_v56  ;;  %v1710_v29 = vld [vmem:[#allocation2 + $0x40] ss:$2 sm:$0xff]  ;;  %v1712_v24 = vld [vmem:[#allocation2 + $0x41] ss:$2 sm:$0xff]  ;;  %v1839_v41 = vmul.f32 %v12775_v52, %v16219_v56  ;;  %v1840_v15 = vmul.f32 %v12780_v28, %v16219_v56  ;;  %v1841_v37 = vmul.f32 %v12785_v54, %v16219_v56 }
 0x1c5   : > { %8037 = vmatmul.msk.bf16.vlgmr.msrb.gmra.mxu1 %vm439_vm0, %v16221_v23  ;;  %v1850_v10 = vadd.f32 %v1834_v45, %v1802_v44  ;;  %v1714_v26 = vmax.f32 %v1710_v29, %v1712_v24  ;;  %v1851_v40 = vadd.f32 %v1835_v63, %v1803_v43  ;;  %v1852_v3 = vadd.f32 %v1836_v38, %v1804_v31 }
 0x1c6   : > { %v1853_v61 = vadd.f32 %v1837_v36, %v1805_v0  ;;  %v1711_v49 = vld [vmem:[#allocation2 + $0x50] ss:$2 sm:$0x3f]  ;;  %v1713_v57 = vld [vmem:[#allocation2 + $0x51] ss:$2 sm:$0x3f]  ;;  %v1854_v8 = vadd.f32 %v1838_v39, %v1806_v7  ;;  %v1855_v62 = vadd.f32 %v1839_v41, %v1807_v48  ;;  %v1856_v21 = vadd.f32 %v1840_v15, %v1808_v11 }
 0x1c7   : > { %v1857_v14 = vadd.f32 %v1841_v37, %v1809_v58  ;;  %v1715_v44 = vmax.f32 %v1711_v49, %v1713_v57  ;;  %v1870_v43 = vmul.f32 %v12704_v47, %v9879_v5  ;;  %v1871_v31 = vmul.f32 %v12709_v50, %v9879_v5  ;;  %v12824_v57 = vld [vmem:[%s9886_s22 + $0x230] sm:$0xff] }
 0x1c8   : > { %v1872_v0 = vmul.f32 %v12715_v22, %v9879_v5  ;;  %v1716_v45 = vld [vmem:[#allocation2 + $0x60] ss:$2 sm:$0xff]  ;;  %v1718_v63 = vld [vmem:[#allocation2 + $0x61] ss:$2 sm:$0xff]  ;;  %v1873_v7 = vmul.f32 %v12720_v46, %v9879_v5  ;;  %v1874_v48 = vmul.f32 %v12790_v16, %v9879_v5  ;;  %v1875_v11 = vmul.f32 %v12793_v59, %v9879_v5 }
 0x1c9   : > { %v1876_v47 = vmul.f32 %v12796_v2, %v9879_v5  ;;  %v1720_v58 = vmax.f32 %v1716_v45, %v1718_v63  ;;  %v1877_v50 = vmul.f32 %v12799_v12, %v9879_v5  ;;  %v1886_v22 = vadd.f32 %v1870_v43, %v1850_v10  ;;  %v12821_v46 = vld [vmem:[%s9886_s22 + $0x228] sm:$0xff]  ;;  %v12827_v45 = vld [vmem:[%s9886_s22 + $0x238] sm:$0xff] }
 0x1ca   : > { %v1887_v23 = vadd.f32 %v1871_v31, %v1851_v40  ;;  %v1717_v38 = vld [vmem:[#allocation2 + $0x70] ss:$2 sm:$0x3f]  ;;  %v1719_v20 = vld [vmem:[#allocation2 + $0x71] ss:$2 sm:$0x3f]  ;;  %v1888_v36 = vadd.f32 %v1872_v0, %v1852_v3  ;;  %v1889_v39 = vadd.f32 %v1873_v7, %v1853_v61  ;;  %v1890_v29 = vadd.f32 %v1874_v48, %v1854_v8 }
 0x1cb   : > { %v1891_v24 = vadd.f32 %v1875_v11, %v1855_v62  ;;  %v1721_v41 = vmax.f32 %v1717_v38, %v1719_v20  ;;  %v1722_v15 = vmax.f32 %v1714_v26, %v1720_v58  ;;  %v1892_v37 = vadd.f32 %v1876_v47, %v1856_v21  ;;  %v12848_v0 = vld [vmem:[%s9886_s22 + $0x221] sm:$0xff]  ;;  %v12851_v63 = vld [vmem:[%s9886_s22 + $0x229] sm:$0xff]  ;;  %v12854_v7 = vld [vmem:[%s9886_s22 + $0x231] sm:$0xff] }
 0x1cc   : > { %v1893_v49 = vadd.f32 %v1877_v50, %v1857_v14  ;;  %v1906_v10 = vmul.f32 %v12734_v42, %v16220_v30  ;;  %v1907_v40 = vmul.f32 %v12739_v25, %v16220_v30  ;;  %v1908_v3 = vmul.f32 %v12745_v1, %v16220_v30  ;;  %v12857_v50 = vld [vmem:[%s9886_s22 + $0x239] sm:$0xff] }
 0x1cd   : > { %v1909_v26 = vmul.f32 %v12750_v17, %v16220_v30  ;;  %v1723_v61 = vmax.f32 %v1715_v44, %v1721_v41  ;;  %v1724_v8 = vadd.f32 %v1722_v15, %v16217_v18  ;;  %v1910_v62 = vmul.f32 %v12818_v55, %v16220_v30  ;;  %v1966_v15 = vld [vmem:[%s9886_s22 + $0x23f] sm:$0xff] }
 0x1ce   : > { %v1911_v42 = vmul.f32 %v12821_v46, %v16220_v30  ;;  %v1912_v25 = vmul.f32 %v12824_v57, %v16220_v30  ;;  %v1913_v1 = vmul.f32 %v12827_v45, %v16220_v30  ;;  %v1922_v21 = vadd.f32 %v1906_v10, %v1886_v22 }
 0x1cf   : > { %v1923_v14 = vadd.f32 %v1907_v40, %v1887_v23  ;;  %v1725_v17 = vadd.f32 %v1723_v61, %v16217_v18  ;;  %v1726_v44 = vmax.f32 %v1724_v8, 0.0  ;;  %v1924_v43 = vadd.f32 %v1908_v3, %v1888_v36 }
 0x1d0   : > { %v1925_v31 = vadd.f32 %v1909_v26, %v1889_v39  ;;  %v1926_v48 = vadd.f32 %v1910_v62, %v1890_v29  ;;  %v1927_v11 = vadd.f32 %v1911_v42, %v1891_v24  ;;  %v1928_v47 = vadd.f32 %v1912_v25, %v1892_v37  ;;  %v1968_v37 = vld [vmem:[%s9886_s22 + $0x24f] sm:$0xff]  ;;  %v1969_v26 = vld [vmem:[%s9886_s22 + $0x257] sm:$0xff] }
 0x1d1   : > { %v1929_v58 = vadd.f32 %v1913_v1, %v1893_v49  ;;  %v1727_v22 = vmax.f32 %v1725_v17, 0.0  ;;  %1728 = vst.msk [vmem:[#allocation3 + $0x70] sm:$0xff] %vm439_vm0, %v1726_v44  ;;  %v1942_v23 = vmul.f32 %v12770_v32, %v16188_v60  ;;  %v1943_v38 = vmul.f32 %v12775_v52, %v16188_v60 }
 0x1d2   : > { %v1944_v20 = vmul.f32 %v12780_v28, %v16188_v60  ;;  %v1945_v36 = vmul.f32 %v12785_v54, %v16188_v60  ;;  %v1946_v39 = vmul.f32 %v12848_v0, %v16188_v60  ;;  %v1947_v29 = vmul.f32 %v12851_v63, %v16188_v60  ;;  %v1967_v54 = vld [vmem:[%s9886_s22 + $0x247] sm:$0xff] }
 0x1d3   : > { %v1948_v24 = vmul.f32 %v12854_v7, %v16188_v60  ;;  %1729 = vst.msk [vmem:[#allocation3 + $0x78] sm:$0x3f] %vm900_vm1, %v1727_v22  ;;  %v1949_v32 = vmul.f32 %v12857_v50, %v16188_v60  ;;  %v1958_v52 = vadd.f32 %v1942_v23, %v1922_v21  ;;  %v1959_v28 = vadd.f32 %v1943_v38, %v1923_v14 }
 0x1d4   : > { %v1960_v41 = vadd.f32 %v1944_v20, %v1924_v43  ;;  %v1961_v49 = vadd.f32 %v1945_v36, %v1925_v31  ;;  %v1962_v10 = vadd.f32 %v1946_v39, %v1926_v48  ;;  %v1963_v40 = vadd.f32 %v1947_v29, %v1927_v11  ;;  %v2002_v43 = vld [vmem:[%s9886_s22 + $0x240] sm:$0xff]  ;;  %v2004_v31 = vld [vmem:[%s9886_s22 + $0x250] sm:$0xff] }
 0x1d5   : > { %v1964_v3 = vadd.f32 %v1948_v24, %v1928_v47  ;;  %8038 = vmatmul.msk.bf16.gmra.mxu1 %vm439_vm0, %v12475_v27  ;;  %v1965_v61 = vadd.f32 %v1949_v32, %v1929_v58  ;;  %v1978_v8 = vmul.f32 %v12790_v16, %v16201_v51  ;;  %v1979_v62 = vmul.f32 %v12793_v59, %v16201_v51  ;;  %v2003_v59 = vld [vmem:[%s9886_s22 + $0x248] sm:$0xff]  ;;  %v2005_v47 = vld [vmem:[%s9886_s22 + $0x258] sm:$0xff] }
 0x1d6   : > { %v1980_v42 = vmul.f32 %v12796_v2, %v16201_v51  ;;  %v1981_v25 = vmul.f32 %v12799_v12, %v16201_v51  ;;  %v1982_v1 = vmul.f32 %v1966_v15, %v16201_v51  ;;  %v1983_v21 = vmul.f32 %v1967_v54, %v16201_v51 }
 0x1d7   : > { %v1984_v27 = vmul.f32 %v1968_v37, %v16201_v51  ;;  %v1985_v14 = vmul.f32 %v1969_v26, %v16201_v51  ;;  %v1994_v17 = vadd.f32 %v1978_v8, %v1958_v52  ;;  %v1995_v16 = vadd.f32 %v1979_v62, %v1959_v28  ;;  %v2038_v28 = vld [vmem:[%s9886_s22 + $0x241] sm:$0xff]  ;;  %v3694_v26 = vld [vmem:[#allocation3 + $0x31] sm:$0xff] }
 0x1d8   : > { %v1996_v44 = vadd.f32 %v1980_v42, %v1960_v41  ;;  %v1997_v48 = vadd.f32 %v1981_v25, %v1961_v49  ;;  %v1998_v2 = vadd.f32 %v1982_v1, %v1962_v10  ;;  %v1999_v11 = vadd.f32 %v1983_v21, %v1963_v40  ;;  %v2040_v41 = vld [vmem:[%s9886_s22 + $0x251] sm:$0xff]  ;;  %v2041_v49 = vld [vmem:[%s9886_s22 + $0x259] sm:$0xff] }
 0x1d9   : > { %v2000_v12 = vadd.f32 %v1984_v27, %v1964_v3  ;;  %v2001_v58 = vadd.f32 %v1985_v14, %v1965_v61  ;;  %v2014_v22 = vmul.f32 %v12818_v55, %v16202_v4  ;;  %v2015_v23 = vmul.f32 %v12821_v46, %v16202_v4  ;;  %v2039_v46 = vld [vmem:[%s9886_s22 + $0x249] sm:$0xff]  ;;  %v3695_v61 = vld [vmem:[#allocation3 + $0x39] sm:$0xff] }
 0x1da   : > { %v2016_v38 = vmul.f32 %v12824_v57, %v16202_v4  ;;  %v2017_v20 = vmul.f32 %v12827_v45, %v16202_v4  ;;  %v2018_v36 = vmul.f32 %v2002_v43, %v16202_v4  ;;  %v2019_v39 = vmul.f32 %v2003_v59, %v16202_v4  ;;  %v3902_v8 = vld [vmem:[#allocation3 + $0x3f] sm:$0xff]  ;;  %v3389_v21 = vld [vmem:[#allocation3 + $0x70] sm:$0xff]  ;;  %v3903_v27 = vld [vmem:[#allocation3 + $0x47] sm:$0xff] }
 0x1db   : > { %v2020_v29 = vmul.f32 %v2004_v31, %v16202_v4  ;;  %v2021_v24 = vmul.f32 %v2005_v47, %v16202_v4  ;;  %v2030_v32 = vadd.f32 %v2014_v22, %v1994_v17  ;;  %v2031_v55 = vadd.f32 %v2015_v23, %v1995_v16  ;;  %v12927_v59 = vld [vmem:[#allocation3 + $0x41] sm:$0xff]  ;;  %v16223_v47 = vld [vmem:[#allocation23_spill] sm:$0xff] }
 0x1dc   : > { %v2032_v52 = vadd.f32 %v2016_v38, %v1996_v44  ;;  %v2033_v15 = vadd.f32 %v2017_v20, %v1997_v48  ;;  %v2034_v57 = vadd.f32 %v2018_v36, %v1998_v2  ;;  %v2035_v54 = vadd.f32 %v2019_v39, %v1999_v11  ;;  %v16224_v22 = vld [vmem:[#allocation26_spill] sm:$0xff]  ;;  %v16225_v23 = vld [vmem:[#allocation25_spill] sm:$0xff]  ;;  %v16227_v36 = vld [vmem:[#allocation28_spill] sm:$0xff] }
 0x1dd   : > { %v2036_v37 = vadd.f32 %v2020_v29, %v2000_v12  ;;  %v2037_v45 = vadd.f32 %v2021_v24, %v2001_v58  ;;  %v2050_v10 = vmul.f32 %v12679_v13, %v12848_v0  ;;  %v2051_v40 = vmul.f32 %v12679_v13, %v12851_v63  ;;  %v3390_v0 = vld [vmem:[#allocation3 + $0x78] sm:$0xff]  ;;  %v16229_v24 = vld [vmem:[#allocation42_spill] sm:$0xff] }
 0x1de   : > { %v2052_v3 = vmul.f32 %v12679_v13, %v12854_v7  ;;  %v2053_v62 = vmul.f32 %v12679_v13, %v12857_v50  ;;  %v2054_v42 = vmul.f32 %v12679_v13, %v2038_v28  ;;  %v2055_v25 = vmul.f32 %v12679_v13, %v2039_v46  ;;  %v12929_v50 = vld [vmem:[#allocation3 + $0x49] sm:$0xff]  ;;  %v16222_v12 = vld [vmem:[#allocation24_spill] sm:$0xff]  ;;  %v16226_v20 = vld [vmem:[#allocation41_spill] sm:$0xff] }
 0x1df   : > { %v2056_v1 = vmul.f32 %v12679_v13, %v2040_v41  ;;  %v2057_v63 = vmul.f32 %v12679_v13, %v2041_v49  ;;  %v2066_v14 = vadd.f32 %v2050_v10, %v2030_v32  ;;  %v2067_v17 = vadd.f32 %v2051_v40, %v2031_v55  ;;  %v16228_v29 = vld [vmem:[#allocation29_spill] sm:$0xff]  ;;  %v3904_v55 = vld [vmem:[#allocation3 + $0x4f] sm:$0xff] }
 0x1e0   : > { %v2068_v7 = vadd.f32 %v2052_v3, %v2032_v52  ;;  %v2069_v16 = vadd.f32 %v2053_v62, %v2033_v15  ;;  %v2070_v44 = vadd.f32 %v2054_v42, %v2034_v57  ;;  %v2071_v43 = vadd.f32 %v2055_v25, %v2035_v54  ;;  %v3905_v52 = vld [vmem:[#allocation3 + $0x57] sm:$0xff]  ;;  %v16230_v41 = vld [vmem:[#allocation51_spill] sm:$0xff] }
 0x1e1   : > { %v2072_v31 = vadd.f32 %v2056_v1, %v2036_v37  ;;  %2082 = vst.msk [vmem:[#allocation2 + $0x40] sm:$0xff] %vm439_vm0, %v2066_v14  ;;  %v3411_v48 = vpack.c.bf16 %v3390_v0, %v3389_v21  ;;  %v3720_v2 = vpack.c.bf16 %v3695_v61, %v3694_v26  ;;  %v12932_v11 = vpack.c.bf16 %v3903_v27, %v3902_v8  ;;  %v16231_v15 = vld [vmem:[#allocation49_spill] sm:$0xff]  ;;  %v12960_v3 = vld [vmem:[#allocation3 + $0x51] sm:$0xff]  ;;  %v16235_v8 = vld [vmem:[#allocation54_spill] sm:$0xff] }
 0x1e2   : > { %2083 = vst.msk [vmem:[#allocation2 + $0x48] sm:$0xff] %vm439_vm0, %v2067_v17  ;;  %v2094_v58 = vmax.f32 %v16223_v47, %v16222_v12  ;;  %v2095_v38 = vmax.f32 %v16225_v23, %v16224_v22  ;;  %v2100_v39 = vmax.f32 %v16227_v36, %v16226_v20  ;;  %v2101_v32 = vmax.f32 %v16229_v24, %v16228_v29  ;;  %v16232_v49 = vld [vmem:[#allocation53_spill] sm:$0xff]  ;;  %v16234_v61 = vld [vmem:[#allocation55_spill] sm:$0xff]  ;;  %v16237_v25 = vld [vmem:[#allocation56_spill] sm:$0xff] }
 0x1e3   : > { %v2073_v28 = vadd.f32 %v2057_v63, %v2037_v45  ;;  %2084 = vst.msk [vmem:[#allocation2 + $0x50] sm:$0xff] %vm439_vm0, %v2068_v7  ;;  %8021 = vmatmul.msk.bf16.gmra.mxu0 %vm439_vm0, %v3411_v48  ;;  %8065 = vmatmul.msk.bf16.gmra.mxu2 %vm439_vm0, %v3720_v2  ;;  %v3721_v46 = vpack.c.bf16 %v12929_v50, %v12927_v59  ;;  %v16233_v45 = vld [vmem:[#allocation52_spill] sm:$0xff]  ;;  %v16236_v42 = vld [vmem:[#allocation43_spill] sm:$0xff] }
 0x1e4   : > { %v2494_v57 = vmax.f32 %v16231_v15, %v16230_v41  ;;  %2085 = vst.msk [vmem:[#allocation2 + $0x58] sm:$0xff] %vm439_vm0, %v2069_v16  ;;  %8091 = vmatmul.msk.bf16.gmra.mxu3 %vm439_vm0, %v12932_v11  ;;  %v2102_v54 = vmax.f32 %v2094_v58, %v2100_v39  ;;  %v2103_v37 = vmax.f32 %v2095_v38, %v2101_v32  ;;  %v12962_v26 = vld [vmem:[#allocation3 + $0x59] sm:$0xff]  ;;  %v9625_v14 = vld [vmem:[%s9886_s22 + $0x267] sm:$0xff]  ;;  %v12996_v29 = vld [vmem:[%s9886_s22 + $0x28f] sm:$0xff] }
 0x1e5   : > { %8039 = vmatmul.msk.bf16.gmra.mxu1 %vm439_vm0, %v12575_v34  ;;  %v2495_v10 = vmax.f32 %v16233_v45, %v16232_v49  ;;  %2086 = vst.msk [vmem:[#allocation2 + $0x60] sm:$0xff] %vm439_vm0, %v2070_v44  ;;  %v12958_v40 = vpack.c.bf16 %v3905_v52, %v3904_v55  ;;  %v2500_v62 = vmax.f32 %v16235_v8, %v16234_v61  ;;  %v9624_v34 = vld [vmem:[%s9886_s22 + $0x25f] sm:$0xff]  ;;  %v9626_v44 = vld [vmem:[%s9886_s22 + $0x26f] sm:$0xff]  ;;  %v9627_v48 = vld [vmem:[%s9886_s22 + $0x277] sm:$0xff]  ;;  %v13006_v52 = vpop.f32.mrf.mxu0 }
 0x1e6   : > { %v2501_v1 = vmax.f32 %v16237_v25, %v16236_v42  ;;  %v2154_v21 = vmul.f32 %v9624_v34, %v16216_v35  ;;  %2087 = vst.msk [vmem:[#allocation2 + $0x68] sm:$0xff] %vm439_vm0, %v2071_v43  ;;  %v2104_v0 = vadd.f32 %v2102_v54, %v16217_v18  ;;  %v2105_v27 = vadd.f32 %v2103_v37, %v16217_v18  ;;  %v12984_v58 = vld [vmem:[%s9886_s22 + $0x27f] sm:$0xff]  ;;  %v12989_v22 = vld [vmem:[%s9886_s22 + $0x287] sm:$0xff]  ;;  %v13001_v32 = vld [vmem:[%s9886_s22 + $0x297] sm:$0xff] }
 0x1e7   : > { %v2155_v17 = vmul.f32 %v9625_v14, %v16216_v35  ;;  %2088 = vst.msk [vmem:[#allocation2 + $0x70] sm:$0xff] %vm439_vm0, %v2072_v31  ;;  %v2502_v7 = vmax.f32 %v2494_v57, %v2500_v62  ;;  %v2156_v43 = vmul.f32 %v9626_v44, %v16216_v35  ;;  %v2157_v2 = vmul.f32 %v9627_v48, %v16216_v35  ;;  %v9632_v41 = vld [vmem:[%s9886_s22 + $0x260] sm:$0xff]  ;;  %v9633_v57 = vld [vmem:[%s9886_s22 + $0x268] sm:$0xff]  ;;  %v9634_v37 = vld [vmem:[%s9886_s22 + $0x270] sm:$0xff] }
 0x1e8   : > { %v2503_v16 = vmax.f32 %v2495_v10, %v2501_v1  ;;  %2089 = vst.msk [vmem:[#allocation2 + $0x78] sm:$0xff] %vm439_vm0, %v2073_v28  ;;  %v2106_v12 = vmax.f32 %v2104_v0, 0.0  ;;  %v2107_v47 = vmax.f32 %v2105_v27, 0.0  ;;  %v2158_v31 = vmul.f32 %v12984_v58, %v16216_v35  ;;  %v9635_v61 = vld [vmem:[%s9886_s22 + $0x278] sm:$0xff]  ;;  %v13018_v62 = vld [vmem:[%s9886_s22 + $0x280] sm:$0xff]  ;;  %v13023_v25 = vld [vmem:[%s9886_s22 + $0x288] sm:$0xff] }
 0x1e9   : > { %v2159_v23 = vmul.f32 %v12989_v22, %v16216_v35  ;;  %v2110_v38 = vld [vmem:[#allocation2 + $0x40] ss:$2 sm:$0xff]  ;;  %v2112_v20 = vld [vmem:[#allocation2 + $0x41] ss:$2 sm:$0xff]  ;;  %v2504_v36 = vadd.f32 %v2502_v7, %v16217_v18  ;;  %v2160_v24 = vmul.f32 %v12996_v29, %v16216_v35  ;;  %v2161_v55 = vmul.f32 %v13001_v32, %v16216_v35  ;;  %16238 = vst [vmem:[#allocation16_spill] sm:$0xff] %v13006_v52  ;;  %v13028_v27 = vld [vmem:[%s9886_s22 + $0x290] sm:$0xff] }
 0x1ea   : > { %v2505_v39 = vadd.f32 %v2503_v16, %v16217_v18  ;;  %2108 = vst.msk [vmem:[#allocation3 + $0x80] sm:$0xff] %vm439_vm0, %v2106_v12  ;;  %v2114_v28 = vmax.f32 %v2110_v38, %v2112_v20  ;;  %v2186_v15 = vmul.f32 %v9632_v41, %v16218_v6  ;;  %v2187_v54 = vmul.f32 %v9633_v57, %v16218_v6  ;;  %v13033_v7 = vld [vmem:[%s9886_s22 + $0x298] sm:$0xff]  ;;  %v3907_v63 = vld [vmem:[#allocation3 + $0x67] sm:$0xff] }
 0x1eb   : > { %v2188_v49 = vmul.f32 %v9634_v37, %v16218_v6  ;;  %2109 = vst.msk [vmem:[#allocation3 + $0x88] sm:$0x3f] %vm900_vm1, %v2107_v47  ;;  %v2111_v45 = vld [vmem:[#allocation2 + $0x50] ss:$2 sm:$0x3f]  ;;  %v2506_v10 = vmax.f32 %v2504_v36, 0.0  ;;  %v2189_v8 = vmul.f32 %v9635_v61, %v16218_v6  ;;  %v2190_v42 = vmul.f32 %v13018_v62, %v16218_v6 }
 0x1ec   : > { %v2191_v1 = vmul.f32 %v13023_v25, %v16218_v6  ;;  %v2113_v34 = vld [vmem:[#allocation2 + $0x51] ss:$2 sm:$0x3f]  ;;  %v2507_v0 = vmax.f32 %v2505_v39, 0.0  ;;  %v2192_v14 = vmul.f32 %v13028_v27, %v16218_v6  ;;  %v2193_v16 = vmul.f32 %v13033_v7, %v16218_v6  ;;  %v9640_v61 = vld [vmem:[%s9886_s22 + $0x261] sm:$0xff] }
 0x1ed   : > { %v2202_v44 = vadd.f32 %v2186_v15, %v2154_v21  ;;  %v2115_v48 = vmax.f32 %v2111_v45, %v2113_v34  ;;  %v2116_v12 = vld [vmem:[#allocation2 + $0x60] ss:$2 sm:$0xff]  ;;  %v2118_v47 = vld [vmem:[#allocation2 + $0x61] ss:$2 sm:$0xff]  ;;  %2508 = vst.msk [vmem:[#allocation3 + $0xa0] sm:$0xff] %vm439_vm0, %v2506_v10  ;;  %v2203_v38 = vadd.f32 %v2187_v54, %v2155_v17  ;;  %v2204_v20 = vadd.f32 %v2188_v49, %v2156_v43 }
 0x1ee   : > { %v2205_v36 = vadd.f32 %v2189_v8, %v2157_v2  ;;  %v2120_v39 = vmax.f32 %v2116_v12, %v2118_v47  ;;  %2509 = vst.msk [vmem:[#allocation3 + $0xa8] sm:$0x3f] %vm900_vm1, %v2507_v0  ;;  %v2206_v41 = vadd.f32 %v2190_v42, %v2158_v31  ;;  %v2207_v57 = vadd.f32 %v2191_v1, %v2159_v23  ;;  %v9641_v17 = vld [vmem:[%s9886_s22 + $0x269] sm:$0xff]  ;;  %v9642_v2 = vld [vmem:[%s9886_s22 + $0x271] sm:$0xff]  ;;  %v9643_v8 = vld [vmem:[%s9886_s22 + $0x279] sm:$0xff] }
 0x1ef   : > { %v2208_v37 = vadd.f32 %v2192_v14, %v2160_v24  ;;  %v2117_v21 = vld [vmem:[#allocation2 + $0x70] ss:$2 sm:$0x3f]  ;;  %v2119_v15 = vld [vmem:[#allocation2 + $0x71] ss:$2 sm:$0x3f]  ;;  %v2209_v45 = vadd.f32 %v2193_v16, %v2161_v55  ;;  %v2234_v10 = vmul.f32 %v9640_v61, %v16219_v56  ;;  %v2235_v43 = vmul.f32 %v9641_v17, %v16219_v56 }
 0x1f0   : > { %v2236_v54 = vmul.f32 %v9642_v2, %v16219_v56  ;;  %v2121_v49 = vmax.f32 %v2117_v21, %v2119_v15  ;;  %v2122_v31 = vmax.f32 %v2114_v28, %v2120_v39  ;;  %v2237_v23 = vmul.f32 %v9643_v8, %v16219_v56  ;;  %v13048_v24 = vld [vmem:[%s9886_s22 + $0x281] sm:$0xff]  ;;  %v13053_v1 = vld [vmem:[%s9886_s22 + $0x289] sm:$0xff]  ;;  %v13058_v0 = vld [vmem:[%s9886_s22 + $0x291] sm:$0xff] }
 0x1f1   : > { %v2238_v55 = vmul.f32 %v13048_v24, %v16219_v56  ;;  %v3391_v42 = vld [vmem:[#allocation3 + $0x80] sm:$0xff]  ;;  %v2239_v34 = vmul.f32 %v13053_v1, %v16219_v56  ;;  %v2240_v28 = vmul.f32 %v13058_v0, %v16219_v56  ;;  %v2250_v12 = vadd.f32 %v2234_v10, %v2202_v44 }
 0x1f2   : > { %v13063_v14 = vld [vmem:[%s9886_s22 + $0x299] sm:$0xff]  ;;  %v3392_v47 = vld [vmem:[#allocation3 + $0x88] sm:$0xff]  ;;  %v2123_v39 = vmax.f32 %v2115_v48, %v2121_v49  ;;  %v2124_v21 = vadd.f32 %v2122_v31, %v16217_v18  ;;  %v2251_v15 = vadd.f32 %v2235_v43, %v2203_v38  ;;  %v2252_v61 = vadd.f32 %v2236_v54, %v2204_v20  ;;  %v13078_v49 = vpop.f32.mrf.mxu0 }
 0x1f3   : > { %v2241_v16 = vmul.f32 %v13063_v14, %v16219_v56  ;;  %v13069_v17 = vld [vmem:[%s9886_s22 + $0x29f] sm:$0xff]  ;;  %v3412_v2 = vpack.c.bf16 %v3392_v47, %v3391_v42  ;;  %8066 = vmatmul.msk.bf16.gmra.mxu2 %vm439_vm0, %v3721_v46  ;;  %v2253_v52 = vadd.f32 %v2237_v23, %v2205_v36  ;;  %v2254_v44 = vadd.f32 %v2238_v55, %v2206_v41  ;;  %v13076_v48 = vld [vmem:[%s9886_s22 + $0x2a7] sm:$0xff]  ;;  %v13088_v36 = vld [vmem:[%s9886_s22 + $0x2af] sm:$0xff] }
 0x1f4   : > { %v3906_v8 = vld [vmem:[#allocation3 + $0x5f] sm:$0xff]  ;;  %v2255_v10 = vadd.f32 %v2239_v34, %v2207_v57  ;;  %16239 = vst [vmem:[#allocation17_spill] sm:$0xff] %v13078_v49  ;;  %8092 = vmatmul.msk.bf16.gmra.mxu3 %vm439_vm0, %v12958_v40  ;;  %v2125_v38 = vadd.f32 %v2123_v39, %v16217_v18  ;;  %v2126_v20 = vmax.f32 %v2124_v21, 0.0  ;;  %v2256_v50 = vadd.f32 %v2240_v28, %v2208_v37  ;;  %v13091_v41 = vld [vmem:[%s9886_s22 + $0x2b7] sm:$0xff]  ;;  %v13112_v42 = vld [vmem:[#allocation3 + $0x69] sm:$0xff] }
 0x1f5   : > { %8040 = vmatmul.msk.bf16.gmra.mxu1 %vm439_vm0, %v12932_v11  ;;  %v13085_v59 = vld [vmem:[#allocation3 + $0xa0] sm:$0xff]  ;;  %v2257_v46 = vadd.f32 %v2241_v16, %v2209_v45  ;;  %8022 = vmatmul.msk.bf16.gmra.mxu0 %vm439_vm0, %v3412_v2  ;;  %v13094_v57 = vld [vmem:[#allocation3 + $0xa8] sm:$0xff]  ;;  %v2270_v11 = vmul.f32 %v12984_v58, %v9879_v5  ;;  %v2271_v37 = vmul.f32 %v12989_v22, %v9879_v5 }
 0x1f6   : > { %v9315_v43 = vld [vmem:[%s15963_s3 + $0x40] sm:$0xff]  ;;  %v2272_v45 = vmul.f32 %v12996_v29, %v9879_v5  ;;  %v2273_v31 = vmul.f32 %v13001_v32, %v9879_v5  ;;  %v2127_v23 = vmax.f32 %v2125_v38, 0.0  ;;  %2128 = vst.msk [vmem:[#allocation3 + $0x90] sm:$0xff] %vm439_vm0, %v2126_v20  ;;  %v13110_v55 = vpack.c.bf16 %v3907_v63, %v3906_v8  ;;  %v13131_v2 = vld [vmem:[%s9886_s22 + $0x2a8] sm:$0xff]  ;;  %v13134_v8 = vld [vmem:[%s9886_s22 + $0x2b0] sm:$0xff] }
 0x1f7   : > { %v13099_v54 = vld [vmem:[#allocation3 + $0x61] sm:$0xff]  ;;  %v2274_v58 = vmul.f32 %v13069_v17, %v9879_v5  ;;  %v2275_v22 = vmul.f32 %v13076_v48, %v9879_v5  ;;  %4214 = vmatpush.bf16.msrb.mxu0 %v9315_v43  ;;  %v2276_v63 = vmul.f32 %v13088_v36, %v9879_v5  ;;  %v2277_v34 = vmul.f32 %v13091_v41, %v9879_v5  ;;  %v13137_v38 = vld [vmem:[%s9886_s22 + $0x2b8] sm:$0xff] }
 0x1f8   : > { %v13127_v28 = vld [vmem:[%s9886_s22 + $0x2a0] sm:$0xff]  ;;  %2129 = vst.msk [vmem:[#allocation3 + $0x98] sm:$0x3f] %vm900_vm1, %v2127_v23  ;;  %v2286_v16 = vadd.f32 %v2270_v11, %v2250_v12  ;;  %v2287_v47 = vadd.f32 %v2271_v37, %v2251_v15  ;;  %v2288_v39 = vadd.f32 %v2272_v45, %v2252_v61  ;;  %v2289_v21 = vadd.f32 %v2273_v31, %v2253_v52  ;;  %v13161_v37 = vld [vmem:[%s9886_s22 + $0x2a9] sm:$0xff]  ;;  %v13164_v45 = vld [vmem:[%s9886_s22 + $0x2b1] sm:$0xff] }
 0x1f9   : > { %v2290_v20 = vadd.f32 %v2274_v58, %v2254_v44  ;;  %v2291_v43 = vadd.f32 %v2275_v22, %v2255_v10  ;;  %v2292_v29 = vadd.f32 %v2276_v63, %v2256_v50  ;;  %v2293_v32 = vadd.f32 %v2277_v34, %v2257_v46  ;;  %v13156_v50 = vld [vmem:[%s9886_s22 + $0x2a1] sm:$0xff]  ;;  %v13167_v31 = vld [vmem:[%s9886_s22 + $0x2b9] sm:$0xff] }
 0x1fa   : > { %v2306_v23 = vmul.f32 %v13018_v62, %v16220_v30  ;;  %v2307_v52 = vmul.f32 %v13023_v25, %v16220_v30  ;;  %v2308_v12 = vmul.f32 %v13028_v27, %v16220_v30  ;;  %v2309_v15 = vmul.f32 %v13033_v7, %v16220_v30  ;;  %v13158_v25 = vpop.f32.mrf.mxu0 }
 0x1fb   : > { %v2310_v61 = vmul.f32 %v13127_v28, %v16220_v30  ;;  %v2311_v44 = vmul.f32 %v13131_v2, %v16220_v30  ;;  %v2312_v10 = vmul.f32 %v13134_v8, %v16220_v30  ;;  %v2313_v62 = vmul.f32 %v13137_v38, %v16220_v30  ;;  %16240 = vst [vmem:[#allocation18_spill] sm:$0xff] %v13158_v25  ;;  %v2369_v25 = vld [vmem:[%s9886_s22 + $0x2d7] sm:$0xff] }
 0x1fc   : > { %v2322_v27 = vadd.f32 %v2306_v23, %v2286_v16  ;;  %v2323_v46 = vadd.f32 %v2307_v52, %v2287_v47  ;;  %v2324_v11 = vadd.f32 %v2308_v12, %v2288_v39  ;;  %v2325_v7 = vadd.f32 %v2309_v15, %v2289_v21  ;;  %v2366_v12 = vld [vmem:[%s9886_s22 + $0x2bf] sm:$0xff]  ;;  %v2368_v15 = vld [vmem:[%s9886_s22 + $0x2cf] sm:$0xff] }
 0x1fd   : > { %v3393_v58 = vld [vmem:[#allocation3 + $0x90] sm:$0xff]  ;;  %v2326_v22 = vadd.f32 %v2310_v61, %v2290_v20  ;;  %v2327_v63 = vadd.f32 %v2311_v44, %v2291_v43  ;;  %v2328_v34 = vadd.f32 %v2312_v10, %v2292_v29  ;;  %v2329_v49 = vadd.f32 %v2313_v62, %v2293_v32 }
 0x1fe   : > { %v2342_v16 = vmul.f32 %v13048_v24, %v16188_v60  ;;  %v2343_v47 = vmul.f32 %v13053_v1, %v16188_v60  ;;  %v2344_v39 = vmul.f32 %v13058_v0, %v16188_v60  ;;  %v2345_v21 = vmul.f32 %v13063_v14, %v16188_v60  ;;  %v2367_v14 = vld [vmem:[%s9886_s22 + $0x2c7] sm:$0xff] }
 0x1ff   : > { %v3394_v23 = vld [vmem:[#allocation3 + $0x98] sm:$0xff]  ;;  %v2346_v29 = vmul.f32 %v13156_v50, %v16188_v60  ;;  %v2347_v32 = vmul.f32 %v13161_v37, %v16188_v60  ;;  %v2348_v24 = vmul.f32 %v13164_v45, %v16188_v60  ;;  %v2349_v1 = vmul.f32 %v13167_v31, %v16188_v60 }
 0x200   : > { %v3413_v20 = vpack.c.bf16 %v3394_v23, %v3393_v58  ;;  %v2358_v43 = vadd.f32 %v2342_v16, %v2322_v27  ;;  %v2359_v0 = vadd.f32 %v2343_v47, %v2323_v46  ;;  %v2360_v52 = vadd.f32 %v2344_v39, %v2324_v11  ;;  %v2404_v47 = vld [vmem:[%s9886_s22 + $0x2d0] sm:$0xff]  ;;  %v2405_v39 = vld [vmem:[%s9886_s22 + $0x2d8] sm:$0xff] }
 0x201   : > { %v2361_v61 = vadd.f32 %v2345_v21, %v2325_v7  ;;  %v2362_v44 = vadd.f32 %v2346_v29, %v2326_v22  ;;  %v2363_v10 = vadd.f32 %v2347_v32, %v2327_v63  ;;  %v2364_v62 = vadd.f32 %v2348_v24, %v2328_v34 }
 0x202   : > { %v2365_v30 = vadd.f32 %v2349_v1, %v2329_v49  ;;  %v2378_v5 = vmul.f32 %v13069_v17, %v16201_v51  ;;  %v2379_v58 = vmul.f32 %v13076_v48, %v16201_v51  ;;  %v2380_v27 = vmul.f32 %v13088_v36, %v16201_v51  ;;  %v2402_v36 = vld [vmem:[%s9886_s22 + $0x2c0] sm:$0xff]  ;;  %v13214_v21 = vpop.f32.mrf.mxu0 }
 0x203   : > { %v16241_v46 = vpack.c.bf16 %v12962_v26, %v12960_v3  ;;  %v2381_v11 = vmul.f32 %v13091_v41, %v16201_v51  ;;  %v2382_v49 = vmul.f32 %v2366_v12, %v16201_v51  ;;  %v2383_v17 = vmul.f32 %v2367_v14, %v16201_v51  ;;  %v2403_v41 = vld [vmem:[%s9886_s22 + $0x2c8] sm:$0xff] }
 0x204   : > { %v2384_v7 = vmul.f32 %v2368_v15, %v16201_v51  ;;  %8093 = vmatmul.msk.bf16.gmra.mxu3 %vm439_vm0, %v13110_v55  ;;  %v2385_v3 = vmul.f32 %v2369_v25, %v16201_v51  ;;  %v2394_v26 = vadd.f32 %v2378_v5, %v2358_v43  ;;  %v2395_v48 = vadd.f32 %v2379_v58, %v2359_v0  ;;  %v2438_v0 = vld [vmem:[%s9886_s22 + $0x2c1] sm:$0xff] }
 0x205   : > { %8067 = vmatmul.msk.bf16.gmra.mxu2 %vm439_vm0, %v16241_v46  ;;  %8041 = vmatmul.msk.bf16.gmra.mxu1 %vm439_vm0, %v12958_v40  ;;  %v2396_v22 = vadd.f32 %v2380_v27, %v2360_v52  ;;  %v2397_v63 = vadd.f32 %v2381_v11, %v2361_v61  ;;  %v2398_v34 = vadd.f32 %v2382_v49, %v2362_v44  ;;  %v2439_v52 = vld [vmem:[%s9886_s22 + $0x2c9] sm:$0xff]  ;;  %v2441_v61 = vld [vmem:[%s9886_s22 + $0x2d9] sm:$0xff] }
 0x206   : > { %8023 = vmatmul.msk.bf16.gmra.mxu0 %vm439_vm0, %v3413_v20  ;;  %v2399_v16 = vadd.f32 %v2383_v17, %v2363_v10  ;;  %v2400_v23 = vadd.f32 %v2384_v7, %v2364_v62  ;;  %v2401_v40 = vadd.f32 %v2385_v3, %v2365_v30  ;;  %v2414_v5 = vmul.f32 %v13127_v28, %v16202_v4  ;;  %v3908_v44 = vld [vmem:[#allocation3 + $0x6f] sm:$0xff] }
 0x207   : > { %v2415_v25 = vmul.f32 %v13131_v2, %v16202_v4  ;;  %v2416_v29 = vmul.f32 %v13134_v8, %v16202_v4  ;;  %v2417_v32 = vmul.f32 %v13137_v38, %v16202_v4  ;;  %v2418_v24 = vmul.f32 %v2402_v36, %v16202_v4  ;;  %v2440_v8 = vld [vmem:[%s9886_s22 + $0x2d1] sm:$0xff] }
 0x208   : > { %v2419_v1 = vmul.f32 %v2403_v41, %v16202_v4  ;;  %v2420_v30 = vmul.f32 %v2404_v47, %v16202_v4  ;;  %v2421_v20 = vmul.f32 %v2405_v39, %v16202_v4  ;;  %v2430_v28 = vadd.f32 %v2414_v5, %v2394_v26  ;;  %v3909_v38 = vld [vmem:[#allocation3 + $0x77] sm:$0xff]  ;;  %v16242_v47 = vld [vmem:[#allocation47_spill] sm:$0xff]  ;;  %v16243_v39 = vld [vmem:[#allocation46_spill] sm:$0xff] }
 0x209   : > { %v2431_v43 = vadd.f32 %v2415_v25, %v2395_v48  ;;  %v2432_v2 = vadd.f32 %v2416_v29, %v2396_v22  ;;  %v2433_v12 = vadd.f32 %v2417_v32, %v2397_v63  ;;  %v2434_v14 = vadd.f32 %v2418_v24, %v2398_v34  ;;  %v13252_v34 = vld [vmem:[#allocation3 + $0x71] sm:$0xff]  ;;  %v9648_v29 = vld [vmem:[%s9886_s22 + $0x2df] sm:$0xff] }
 0x20a   : > { %v2435_v15 = vadd.f32 %v2419_v1, %v2399_v16  ;;  %v2436_v10 = vadd.f32 %v2420_v30, %v2400_v23  ;;  %v2437_v62 = vadd.f32 %v2421_v20, %v2401_v40  ;;  %v2450_v58 = vmul.f32 %v12679_v13, %v13156_v50  ;;  %v13254_v16 = vld [vmem:[#allocation3 + $0x79] sm:$0xff]  ;;  %v9650_v24 = vld [vmem:[%s9886_s22 + $0x2ef] sm:$0xff] }
 0x20b   : > { %v2451_v27 = vmul.f32 %v12679_v13, %v13161_v37  ;;  %v2452_v46 = vmul.f32 %v12679_v13, %v13164_v45  ;;  %v2453_v11 = vmul.f32 %v12679_v13, %v13167_v31  ;;  %v2454_v49 = vmul.f32 %v12679_v13, %v2438_v0  ;;  %v16244_v40 = vld [vmem:[#allocation37_spill] sm:$0xff]  ;;  %v16245_v5 = vld [vmem:[#allocation48_spill] sm:$0xff] }
 0x20c   : > { %v2455_v17 = vmul.f32 %v12679_v13, %v2439_v52  ;;  %v2456_v7 = vmul.f32 %v12679_v13, %v2440_v8  ;;  %v2457_v3 = vmul.f32 %v12679_v13, %v2441_v61  ;;  %v2466_v26 = vadd.f32 %v2450_v58, %v2430_v28  ;;  %v9651_v30 = vld [vmem:[%s9886_s22 + $0x2f7] sm:$0xff]  ;;  %v13275_v0 = vld [vmem:[%s9886_s22 + $0x2ff] sm:$0xff] }
 0x20d   : > { %v2467_v48 = vadd.f32 %v2451_v27, %v2431_v43  ;;  %v13244_v50 = vpack.c.bf16 %v3909_v38, %v3908_v44  ;;  %v2468_v37 = vadd.f32 %v2452_v46, %v2432_v2  ;;  %v2469_v36 = vadd.f32 %v2453_v11, %v2433_v12  ;;  %v13280_v2 = vld [vmem:[%s9886_s22 + $0x307] sm:$0xff]  ;;  %v13291_v8 = vld [vmem:[%s9886_s22 + $0x317] sm:$0xff] }
 0x20e   : > { %v2470_v41 = vadd.f32 %v2454_v49, %v2434_v14  ;;  %v2471_v45 = vadd.f32 %v2455_v17, %v2435_v15  ;;  %v2472_v22 = vadd.f32 %v2456_v7, %v2436_v10  ;;  %2482 = vst.msk [vmem:[#allocation2 + $0x40] sm:$0xff] %vm439_vm0, %v2466_v26  ;;  %v2894_v31 = vmax.f32 %v12376_v9, %v12378_v53  ;;  %v13262_v53 = vpop.f32.mrf.mxu0  ;;  %v13286_v14 = vld [vmem:[%s9886_s22 + $0x30f] sm:$0xff]  ;;  %v9656_v44 = vld [vmem:[%s9886_s22 + $0x2e0] sm:$0xff] }
 0x20f   : > { %v2895_v13 = vmax.f32 %v12394_v33, %v12396_v19  ;;  %v2473_v63 = vadd.f32 %v2457_v3, %v2437_v62  ;;  %2483 = vst.msk [vmem:[#allocation2 + $0x48] sm:$0xff] %vm439_vm0, %v2467_v48  ;;  %v2900_v23 = vmax.f32 %v16243_v39, %v16242_v47  ;;  %v2901_v25 = vmax.f32 %v16245_v5, %v16244_v40  ;;  %v9649_v19 = vld [vmem:[%s9886_s22 + $0x2e7] sm:$0xff] }
 0x210   : > { %v2554_v9 = vmul.f32 %v9648_v29, %v16216_v35  ;;  %2484 = vst.msk [vmem:[#allocation2 + $0x50] sm:$0xff] %vm439_vm0, %v2468_v37  ;;  %v3724_v33 = vpack.c.bf16 %v13254_v16, %v13252_v34  ;;  %v2555_v32 = vmul.f32 %v9649_v19, %v16216_v35  ;;  %v2556_v1 = vmul.f32 %v9650_v24, %v16216_v35  ;;  %v9657_v10 = vld [vmem:[%s9886_s22 + $0x2e8] sm:$0xff]  ;;  %v13316_v49 = vld [vmem:[%s9886_s22 + $0x300] sm:$0xff]  ;;  %v13331_v37 = vld [vmem:[%s9886_s22 + $0x310] sm:$0xff] }
 0x211   : > { %v2557_v20 = vmul.f32 %v9651_v30, %v16216_v35  ;;  %2485 = vst.msk [vmem:[#allocation2 + $0x58] sm:$0xff] %vm439_vm0, %v2469_v36  ;;  %v2902_v28 = vmax.f32 %v2894_v31, %v2900_v23  ;;  %v2903_v43 = vmax.f32 %v2895_v13, %v2901_v25  ;;  %v2558_v52 = vmul.f32 %v13275_v0, %v16216_v35  ;;  %v13321_v7 = vld [vmem:[%s9886_s22 + $0x308] sm:$0xff]  ;;  %v9666_v24 = vld [vmem:[%s9886_s22 + $0x2f1] sm:$0xff] }
 0x212   : > { %v2559_v12 = vmul.f32 %v13280_v2, %v16216_v35  ;;  %2486 = vst.msk [vmem:[#allocation2 + $0x60] sm:$0xff] %vm439_vm0, %v2470_v41  ;;  %v2560_v15 = vmul.f32 %v13286_v14, %v16216_v35  ;;  %v2561_v61 = vmul.f32 %v13291_v8, %v16216_v35  ;;  %v2586_v38 = vmul.f32 %v9656_v44, %v16218_v6  ;;  %v9658_v35 = vld [vmem:[%s9886_s22 + $0x2f0] sm:$0xff]  ;;  %v13336_v41 = vld [vmem:[%s9886_s22 + $0x318] sm:$0xff]  ;;  %v9664_v29 = vld [vmem:[%s9886_s22 + $0x2e1] sm:$0xff] }
 0x213   : > { %v2587_v62 = vmul.f32 %v9657_v10, %v16218_v6  ;;  %v16246_v58 = vpack.c.bf16 %v13112_v42, %v13099_v54  ;;  %2487 = vst.msk [vmem:[#allocation2 + $0x68] sm:$0xff] %vm439_vm0, %v2471_v45  ;;  %v2904_v27 = vadd.f32 %v2902_v28, %v16217_v18  ;;  %v2905_v46 = vadd.f32 %v2903_v43, %v16217_v18  ;;  %v9659_v54 = vld [vmem:[%s9886_s22 + $0x2f8] sm:$0xff]  ;;  %v9665_v19 = vld [vmem:[%s9886_s22 + $0x2e9] sm:$0xff]  ;;  %v13351_v43 = vld [vmem:[%s9886_s22 + $0x301] sm:$0xff] }
 0x214   : > { %v2588_v11 = vmul.f32 %v9658_v35, %v16218_v6  ;;  %8094 = vmatmul.msk.bf16.gmra.mxu3 %vm439_vm0, %v13244_v50  ;;  %2488 = vst.msk [vmem:[#allocation2 + $0x70] sm:$0xff] %vm439_vm0, %v2472_v22  ;;  %v2589_v42 = vmul.f32 %v9659_v54, %v16218_v6  ;;  %v2590_v17 = vmul.f32 %v13316_v49, %v16218_v6  ;;  %v13364_v44 = vld [vmem:[%s9886_s22 + $0x327] sm:$0xff] }
 0x215   : > { %8068 = vmatmul.msk.bf16.gmra.mxu2 %vm439_vm0, %v16246_v58  ;;  %8042 = vmatmul.msk.bf16.gmra.mxu1 %vm439_vm0, %v13110_v55  ;;  %v2591_v3 = vmul.f32 %v13321_v7, %v16218_v6  ;;  %v16247_v26 = vpack.c.bf16 %v13094_v57, %v13085_v59  ;;  %2489 = vst.msk [vmem:[#allocation2 + $0x78] sm:$0xff] %vm439_vm0, %v2473_v63  ;;  %v2906_v55 = vmax.f32 %v2904_v27, 0.0  ;;  %v2907_v48 = vmax.f32 %v2905_v46, 0.0  ;;  %v13369_v58 = vld [vmem:[%s9886_s22 + $0x311] sm:$0xff]  ;;  %v13374_v46 = vld [vmem:[%s9886_s22 + $0x319] sm:$0xff] }
 0x216   : > { %v2592_v36 = vmul.f32 %v13331_v37, %v16218_v6  ;;  %v2593_v45 = vmul.f32 %v13336_v41, %v16218_v6  ;;  %v2510_v22 = vld [vmem:[#allocation2 + $0x40] ss:$2 sm:$0xff]  ;;  %v2512_v59 = vld [vmem:[#allocation2 + $0x41] ss:$2 sm:$0xff]  ;;  %v2602_v57 = vadd.f32 %v2586_v38, %v2554_v9  ;;  %v2603_v31 = vadd.f32 %v2587_v62, %v2555_v32  ;;  %v13366_v62 = vpop.f32.mrf.mxu0 }
 0x217   : > { %8024 = vmatmul.msk.bf16.gmra.mxu0 %vm439_vm0, %v16247_v26  ;;  %v2604_v13 = vadd.f32 %v2588_v11, %v2556_v1  ;;  %v2605_v63 = vadd.f32 %v2589_v42, %v2557_v20  ;;  %v2514_v47 = vmax.f32 %v2510_v22, %v2512_v59  ;;  %2908 = vst.msk [vmem:[#allocation3 + $0xc0] sm:$0xff] %vm439_vm0, %v2906_v55  ;;  %v9667_v20 = vld [vmem:[%s9886_s22 + $0x2f9] sm:$0xff]  ;;  %v13379_v42 = vld [vmem:[%s9886_s22 + $0x32f] sm:$0xff]  ;;  %v3911_v26 = vld [vmem:[#allocation3 + $0x87] sm:$0xff] }
 0x218   : > { %v2606_v39 = vadd.f32 %v2590_v17, %v2558_v52  ;;  %v2607_v23 = vadd.f32 %v2591_v3, %v2559_v12  ;;  %v2608_v40 = vadd.f32 %v2592_v36, %v2560_v15  ;;  %v2511_v5 = vld [vmem:[#allocation2 + $0x50] ss:$2 sm:$0x3f]  ;;  %v2513_v25 = vld [vmem:[#allocation2 + $0x51] ss:$2 sm:$0x3f]  ;;  %v2609_v6 = vadd.f32 %v2593_v45, %v2561_v61 }
 0x219   : > { %v2634_v9 = vmul.f32 %v9664_v29, %v16219_v56  ;;  %v2635_v32 = vmul.f32 %v9665_v19, %v16219_v56  ;;  %v2636_v1 = vmul.f32 %v9666_v24, %v16219_v56  ;;  %v2515_v30 = vmax.f32 %v2511_v5, %v2513_v25  ;;  %2909 = vst.msk [vmem:[#allocation3 + $0xc8] sm:$0x3f] %vm900_vm1, %v2907_v48  ;;  %v13356_v12 = vld [vmem:[%s9886_s22 + $0x309] sm:$0xff]  ;;  %v13361_v61 = vld [vmem:[%s9886_s22 + $0x31f] sm:$0xff]  ;;  %v13382_v45 = vld [vmem:[%s9886_s22 + $0x337] sm:$0xff] }
 0x21a   : > { %v2637_v28 = vmul.f32 %v9667_v20, %v16219_v56  ;;  %v2638_v52 = vmul.f32 %v13351_v43, %v16219_v56  ;;  %v2639_v15 = vmul.f32 %v13356_v12, %v16219_v56  ;;  %v2516_v38 = vld [vmem:[#allocation2 + $0x60] ss:$2 sm:$0xff]  ;;  %v2518_v10 = vld [vmem:[#allocation2 + $0x61] ss:$2 sm:$0xff]  ;;  %v2640_v27 = vmul.f32 %v13369_v58, %v16219_v56  ;;  %v16248_v19 = vld [vmem:[#allocation12_spill] sm:$0xff] }
 0x21b   : > { %v2641_v35 = vmul.f32 %v13374_v46, %v16219_v56  ;;  %v2650_v11 = vadd.f32 %v2634_v9, %v2602_v57  ;;  %v2651_v54 = vadd.f32 %v2635_v32, %v2603_v31  ;;  %v2520_v17 = vmax.f32 %v2516_v38, %v2518_v10  ;;  %v3910_v3 = vld [vmem:[#allocation3 + $0x7f] sm:$0xff] }
 0x21c   : > { %v2652_v55 = vadd.f32 %v2636_v1, %v2604_v13  ;;  %v2653_v48 = vadd.f32 %v2637_v28, %v2605_v63  ;;  %v2654_v36 = vadd.f32 %v2638_v52, %v2606_v39  ;;  %v2517_v22 = vld [vmem:[#allocation2 + $0x70] ss:$2 sm:$0x3f]  ;;  %v2519_v59 = vld [vmem:[#allocation2 + $0x71] ss:$2 sm:$0x3f]  ;;  %v2655_v5 = vadd.f32 %v2639_v15, %v2607_v23 }
 0x21d   : > { %v2656_v25 = vadd.f32 %v2640_v27, %v2608_v40  ;;  %v2657_v29 = vadd.f32 %v2641_v35, %v2609_v6  ;;  %v2670_v56 = vmul.f32 %v13275_v0, %v16248_v19  ;;  %v2521_v57 = vmax.f32 %v2517_v22, %v2519_v59  ;;  %v13403_v6 = vld [vmem:[#allocation3 + $0x89] sm:$0xff]  ;;  %v3913_v1 = vld [vmem:[#allocation3 + $0x97] sm:$0xff]  ;;  %v13413_v27 = vld [vmem:[%s9886_s22 + $0x320] sm:$0xff] }
 0x21e   : > { %v2522_v31 = vmax.f32 %v2514_v47, %v2520_v17  ;;  %v2671_v9 = vmul.f32 %v13280_v2, %v16248_v19  ;;  %v2672_v13 = vmul.f32 %v13286_v14, %v16248_v19  ;;  %v2673_v63 = vmul.f32 %v13291_v8, %v16248_v19  ;;  %v13401_v14 = vld [vmem:[#allocation3 + $0x81] sm:$0xff]  ;;  %v3912_v8 = vld [vmem:[#allocation3 + $0x8f] sm:$0xff] }
 0x21f   : > { %v2674_v39 = vmul.f32 %v13361_v61, %v16248_v19  ;;  %v2675_v23 = vmul.f32 %v13364_v44, %v16248_v19  ;;  %v2676_v0 = vmul.f32 %v13379_v42, %v16248_v19  ;;  %v2523_v40 = vmax.f32 %v2515_v30, %v2521_v57  ;;  %v13416_v35 = vld [vmem:[%s9886_s22 + $0x328] sm:$0xff]  ;;  %v13419_v59 = vld [vmem:[%s9886_s22 + $0x330] sm:$0xff]  ;;  %v13422_v57 = vld [vmem:[%s9886_s22 + $0x338] sm:$0xff] }
 0x220   : > { %v2524_v47 = vadd.f32 %v2522_v31, %v16217_v18  ;;  %v13399_v2 = vpack.c.bf16 %v3911_v26, %v3910_v3  ;;  %v2677_v32 = vmul.f32 %v13382_v45, %v16248_v19  ;;  %v3725_v24 = vpack.c.bf16 %v13403_v6, %v13401_v14 }
 0x221   : > { %v2686_v30 = vadd.f32 %v2670_v56, %v2650_v11  ;;  %v2687_v20 = vadd.f32 %v2671_v9, %v2651_v54  ;;  %v2688_v28 = vadd.f32 %v2672_v13, %v2652_v55  ;;  %v2525_v52 = vadd.f32 %v2523_v40, %v16217_v18  ;;  %v16249_v54 = vld [vmem:[#allocation15_spill] sm:$0xff] }
 0x222   : > { %v2526_v15 = vmax.f32 %v2524_v47, 0.0  ;;  %v13410_v38 = vpack.c.bf16 %v3913_v1, %v3912_v8  ;;  %v2689_v10 = vadd.f32 %v2673_v63, %v2653_v48  ;;  %v2690_v17 = vadd.f32 %v2674_v39, %v2654_v36  ;;  %v13459_v13 = vld [vmem:[%s9886_s22 + $0x331] sm:$0xff]  ;;  %v13462_v63 = vld [vmem:[%s9886_s22 + $0x339] sm:$0xff] }
 0x223   : > { %v2691_v3 = vadd.f32 %v2675_v23, %v2655_v5  ;;  %v2692_v26 = vadd.f32 %v2676_v0, %v2656_v25  ;;  %v2693_v22 = vadd.f32 %v2677_v32, %v2657_v29  ;;  %v2527_v11 = vmax.f32 %v2525_v52, 0.0  ;;  %v13435_v5 = vpop.f32.mrf.mxu0  ;;  %v13453_v25 = vld [vmem:[%s9886_s22 + $0x321] sm:$0xff]  ;;  %v13456_v29 = vld [vmem:[%s9886_s22 + $0x329] sm:$0xff] }
 0x224   : > { %2528 = vst.msk [vmem:[#allocation3 + $0xb0] sm:$0xff] %vm439_vm0, %v2526_v15  ;;  %v2706_v55 = vmul.f32 %v13316_v49, %v16249_v54  ;;  %v2707_v48 = vmul.f32 %v13321_v7, %v16249_v54  ;;  %v2708_v36 = vmul.f32 %v13331_v37, %v16249_v54  ;;  %8095 = vmatmul.msk.bf16.gmra.mxu3 %vm439_vm0, %v13399_v2 }
 0x225   : > { %8069 = vmatmul.msk.bf16.gmra.mxu2 %vm439_vm0, %v3724_v33  ;;  %8043 = vmatmul.msk.bf16.gmra.mxu1 %vm439_vm0, %v13244_v50  ;;  %v2709_v34 = vmul.f32 %v13336_v41, %v16249_v54  ;;  %v2710_v16 = vmul.f32 %v13413_v27, %v16249_v54  ;;  %v2711_v33 = vmul.f32 %v13416_v35, %v16249_v54 }
 0x226   : > { %2529 = vst.msk [vmem:[#allocation3 + $0xb8] sm:$0x3f] %vm900_vm1, %v2527_v11  ;;  %v2712_v49 = vmul.f32 %v13419_v59, %v16249_v54  ;;  %v2713_v7 = vmul.f32 %v13422_v57, %v16249_v54  ;;  %v2722_v37 = vadd.f32 %v2706_v55, %v2686_v30  ;;  %v2723_v50 = vadd.f32 %v2707_v48, %v2687_v20 }
 0x227   : > { %v2724_v41 = vadd.f32 %v2708_v36, %v2688_v28  ;;  %v2725_v56 = vadd.f32 %v2709_v34, %v2689_v10  ;;  %v2726_v31 = vadd.f32 %v2710_v16, %v2690_v17  ;;  %v2727_v9 = vadd.f32 %v2711_v33, %v2691_v3  ;;  %v2766_v28 = vld [vmem:[%s9886_s22 + $0x33f] sm:$0xff]  ;;  %v2768_v3 = vld [vmem:[%s9886_s22 + $0x34f] sm:$0xff] }
 0x228   : > { %v2728_v39 = vadd.f32 %v2712_v49, %v2692_v26  ;;  %v2729_v23 = vadd.f32 %v2713_v7, %v2693_v22  ;;  %v2742_v0 = vmul.f32 %v13351_v43, %v16188_v60  ;;  %v2743_v40 = vmul.f32 %v13356_v12, %v16188_v60  ;;  %v2769_v26 = vld [vmem:[%s9886_s22 + $0x357] sm:$0xff] }
 0x229   : > { %v2744_v47 = vmul.f32 %v13369_v58, %v16188_v60  ;;  %v2745_v8 = vmul.f32 %v13374_v46, %v16188_v60  ;;  %v2746_v32 = vmul.f32 %v13453_v25, %v16188_v60  ;;  %v2747_v1 = vmul.f32 %v13456_v29, %v16188_v60  ;;  %v2767_v58 = vld [vmem:[%s9886_s22 + $0x347] sm:$0xff] }
 0x22a   : > { %v2748_v43 = vmul.f32 %v13459_v13, %v16188_v60  ;;  %v2749_v12 = vmul.f32 %v13462_v63, %v16188_v60  ;;  %v2758_v30 = vadd.f32 %v2742_v0, %v2722_v37  ;;  %v2759_v20 = vadd.f32 %v2743_v40, %v2723_v50  ;;  %v2802_v50 = vld [vmem:[%s9886_s22 + $0x340] sm:$0xff] }
 0x22b   : > { %v3397_v52 = vld [vmem:[#allocation3 + $0xb0] sm:$0xff]  ;;  %v2760_v15 = vadd.f32 %v2744_v47, %v2724_v41  ;;  %v2761_v10 = vadd.f32 %v2745_v8, %v2725_v56  ;;  %v2762_v46 = vadd.f32 %v2746_v32, %v2726_v31  ;;  %v2763_v17 = vadd.f32 %v2747_v1, %v2727_v9  ;;  %v13497_v41 = vpop.f32.mrf.mxu0 }
 0x22c   : > { %v2764_v22 = vadd.f32 %v2748_v43, %v2728_v39  ;;  %v2765_v11 = vadd.f32 %v2749_v12, %v2729_v23  ;;  %v2778_v55 = vmul.f32 %v13361_v61, %v16201_v51  ;;  %v2779_v48 = vmul.f32 %v13364_v44, %v16201_v51  ;;  %v2803_v39 = vld [vmem:[%s9886_s22 + $0x348] sm:$0xff]  ;;  %v2804_v23 = vld [vmem:[%s9886_s22 + $0x350] sm:$0xff] }
 0x22d   : > { %v3398_v36 = vld [vmem:[#allocation3 + $0xb8] sm:$0xff]  ;;  %v2780_v34 = vmul.f32 %v13379_v42, %v16201_v51  ;;  %v2781_v16 = vmul.f32 %v13382_v45, %v16201_v51  ;;  %v2782_v33 = vmul.f32 %v2766_v28, %v16201_v51  ;;  %v2783_v49 = vmul.f32 %v2767_v58, %v16201_v51 }
 0x22e   : > { %v3415_v7 = vpack.c.bf16 %v3398_v36, %v3397_v52  ;;  %v2784_v61 = vmul.f32 %v2768_v3, %v16201_v51  ;;  %v2785_v37 = vmul.f32 %v2769_v26, %v16201_v51  ;;  %v2794_v44 = vadd.f32 %v2778_v55, %v2758_v30  ;;  %v2805_v45 = vld [vmem:[%s9886_s22 + $0x358] sm:$0xff]  ;;  %v2838_v52 = vld [vmem:[%s9886_s22 + $0x341] sm:$0xff] }
 0x22f   : > { %v2795_v56 = vadd.f32 %v2779_v48, %v2759_v20  ;;  %v2796_v31 = vadd.f32 %v2780_v34, %v2760_v15  ;;  %v2797_v42 = vadd.f32 %v2781_v16, %v2761_v10  ;;  %v2798_v9 = vadd.f32 %v2782_v33, %v2762_v46  ;;  %v2839_v46 = vld [vmem:[%s9886_s22 + $0x349] sm:$0xff]  ;;  %v2841_v26 = vld [vmem:[%s9886_s22 + $0x359] sm:$0xff] }
 0x230   : > { %8025 = vmatmul.msk.bf16.gmra.mxu0 %vm439_vm0, %v3415_v7  ;;  %v2799_v0 = vadd.f32 %v2783_v49, %v2763_v17  ;;  %v2800_v40 = vadd.f32 %v2784_v61, %v2764_v22  ;;  %v2801_v47 = vadd.f32 %v2785_v37, %v2765_v11  ;;  %v2814_v8 = vmul.f32 %v13413_v27, %v16202_v4  ;;  %v2840_v17 = vld [vmem:[%s9886_s22 + $0x351] sm:$0xff]  ;;  %v13528_v22 = vld [vmem:[%s15964_s1 + $0x8] ss:$0 sm:$0xff]  ;;  %s7942_s1 = sshll.u32 %s7938_s15, 4  ;;  %s7943_s1 = int_to_ptr.hbm [resolvable:$true] %s7942_s1 }
 0x231   : > { %v13505_v32 = vpop.f32.mrf.mxu1  ;;  %v2815_v1 = vmul.f32 %v13416_v35, %v16202_v4  ;;  %v2816_v43 = vmul.f32 %v13419_v59, %v16202_v4  ;;  %v2817_v12 = vmul.f32 %v13422_v57, %v16202_v4  ;;  %v2818_v30 = vmul.f32 %v2802_v50, %v16202_v4  ;;  %v3400_v7 = vld [vmem:[#allocation3 + $0xc8] sm:$0xff]  ;;  %s9687_s23 = sshra.s32 %s7943_s1, 4  ;;  %s9688_s23 = int_to_ptr.hbm [resolvable:$true] %s9687_s23 }
 0x232   : > { %v2819_v20 = vmul.f32 %v2803_v39, %v16202_v4  ;;  %v2820_v28 = vmul.f32 %v2804_v23, %v16202_v4  ;;  %v2821_v27 = vmul.f32 %v2805_v45, %v16202_v4  ;;  %v2830_v58 = vadd.f32 %v2814_v8, %v2794_v44  ;;  %v3915_v39 = vld [vmem:[#allocation3 + $0xa7] sm:$0xff]  ;;  %p9694_p0 = scmp.lt.s32.totalorder %s9688_s23, %s15809_s13 }
 0x233   : > { %v2831_v15 = vadd.f32 %v2815_v1, %v2795_v56  ;;  %v2832_v10 = vadd.f32 %v2816_v43, %v2796_v31  ;;  %v2833_v35 = vadd.f32 %v2817_v12, %v2797_v42  ;;  %v2834_v59 = vadd.f32 %v2818_v30, %v2798_v9  ;;  %v13547_v61 = vpop.f32.mrf.mxu0  ;;  %v3706_v31 = vld [vmem:[#allocation3 + $0x91] sm:$0xff]  ;;  %v3707_v42 = vld [vmem:[#allocation3 + $0x99] sm:$0xff] }
 0x234   : > { %v2835_v57 = vadd.f32 %v2819_v20, %v2799_v0  ;;  %v2836_v3 = vadd.f32 %v2820_v28, %v2800_v40  ;;  %v2850_v11 = vmul.f32 %v13528_v22, %v13453_v25  ;;  %8096 = vmatmul.msk.bf16.gmra.mxu3 %vm439_vm0, %v13410_v38  ;;  %v2851_v14 = vmul.f32 %v13528_v22, %v13456_v29  ;;  %v3914_v9 = vld [vmem:[#allocation3 + $0x9f] sm:$0xff]  ;;  %v3800_v40 = vpop.f32.mrf.mxu2  ;;  %v16250_v12 = vld [vmem:[#allocation16_spill] sm:$0xff] }
 0x235   : > { %8070 = vmatmul.msk.bf16.gmra.mxu2 %vm439_vm0, %v3725_v24  ;;  %v2852_v6 = vmul.f32 %v13528_v22, %v13459_v13  ;;  %v2853_v24 = vmul.f32 %v13528_v22, %v13462_v63  ;;  %v2854_v55 = vmul.f32 %v13528_v22, %v2838_v52  ;;  %v2837_v48 = vadd.f32 %v2821_v27, %v2801_v47  ;;  %v3399_v63 = vld [vmem:[#allocation3 + $0xc0] sm:$0xff] }
 0x236   : > { %v2855_v36 = vmul.f32 %v13528_v22, %v2839_v46  ;;  %v2856_v34 = vmul.f32 %v13528_v22, %v2840_v17  ;;  %v2866_v25 = vadd.f32 %v2850_v11, %v2830_v58  ;;  %8044 = vmatmul.msk.bf16.gmra.mxu1 %vm439_vm0, %v13399_v2  ;;  %v2857_v16 = vmul.f32 %v13528_v22, %v2841_v26  ;;  %v4008_v26 = vpop.f32.mrf.mxu3 }
 0x237   : > { %v2867_v29 = vadd.f32 %v2851_v14, %v2831_v15  ;;  %v2868_v33 = vadd.f32 %v2852_v6, %v2832_v10  ;;  %v2869_v49 = vadd.f32 %v2853_v24, %v2833_v35  ;;  %v2870_v13 = vadd.f32 %v2854_v55, %v2834_v59 }
 0x238   : > { %2882 = vst.msk [vmem:[#allocation2 + $0x40] sm:$0xff] %vm439_vm0, %v2866_v25  ;;  %v2871_v37 = vadd.f32 %v2855_v36, %v2835_v57  ;;  %v2872_v50 = vadd.f32 %v2856_v34, %v2836_v3  ;;  %v2873_v2 = vadd.f32 %v2857_v16, %v2837_v48  ;;  %v3416_v56 = vpack.c.bf16 %v3400_v7, %v3399_v63  ;;  %v16251_v48 = vld [vmem:[#allocation17_spill] sm:$0xff] }
 0x239   : > { %2883 = vst.msk [vmem:[#allocation2 + $0x48] sm:$0xff] %vm439_vm0, %v2867_v29  ;;  %v13550_v44 = vpop.f32.mrf.mxu1  ;;  %v3726_v0 = vpack.c.bf16 %v3707_v42, %v3706_v31  ;;  %v3934_v8 = vpack.c.bf16 %v3915_v39, %v3914_v9  ;;  %v3708_v16 = vld [vmem:[#allocation3 + $0xa1] sm:$0xff]  ;;  %v3709_v29 = vld [vmem:[#allocation3 + $0xa9] sm:$0xff] }
 0x23a   : > { %2884 = vst.msk [vmem:[#allocation2 + $0x50] sm:$0xff] %vm439_vm0, %v2868_v33  ;;  %v3916_v33 = vld [vmem:[#allocation3 + $0xaf] sm:$0xff] }
 0x23b   : > { %2885 = vst.msk [vmem:[#allocation2 + $0x58] sm:$0xff] %vm439_vm0, %v2869_v49  ;;  %v13560_v28 = vpop.f32.mrf.mxu0  ;;  %v3917_v49 = vld [vmem:[#allocation3 + $0xb7] sm:$0xff] }
 0x23c   : > { %2886 = vst.msk [vmem:[#allocation2 + $0x60] sm:$0xff] %vm439_vm0, %v2870_v13  ;;  %v3802_v6 = vpop.f32.mrf.mxu2  ;;  %v3727_v13 = vpack.c.bf16 %v3709_v29, %v3708_v16  ;;  %v3935_v7 = vpack.c.bf16 %v3917_v49, %v3916_v33  ;;  %v9322_v16 = vld [vmem:[%s15963_s3 + $0x78] sm:$0xff] }
 0x23d   : > { %2887 = vst.msk [vmem:[#allocation2 + $0x68] sm:$0xff] %vm439_vm0, %v2871_v37  ;;  %v9318_v49 = vld [vmem:[%s15963_s3 + $0x58] sm:$0xff]  ;;  %4837 = vmatpush.bf16.msrb.mxu3 %v9322_v16 }
 0x23e   : > { %2888 = vst.msk [vmem:[#allocation2 + $0x70] sm:$0xff] %vm439_vm0, %v2872_v50  ;;  %v4010_v63 = vpop.f32.mrf.mxu3  ;;  %4421 = vmatpush.bf16.msra.mxu1 %v9318_v49 }
 0x23f   : > { %2889 = vst.msk [vmem:[#allocation2 + $0x78] sm:$0xff] %vm439_vm0, %v2873_v2 }
 0x240   : > { %8026 = vmatmul.msk.bf16.gmra.mxu0 %vm439_vm0, %v3416_v56  ;;  %v2910_v23 = vld [vmem:[#allocation2 + $0x40] ss:$2 sm:$0xff]  ;;  %v2912_v45 = vld [vmem:[#allocation2 + $0x41] ss:$2 sm:$0xff] }
 0x241   : > { %v2914_v20 = vmax.f32 %v2910_v23, %v2912_v45  ;;  %v16252_v56 = vld [vmem:[#allocation18_spill] sm:$0xff] }
 0x242   : > { %v3620_v47 = vpop.f32.mrf.mxu1  ;;  %v2911_v1 = vld [vmem:[#allocation2 + $0x50] ss:$2 sm:$0x3f]  ;;  %v2913_v43 = vld [vmem:[#allocation2 + $0x51] ss:$2 sm:$0x3f] }
 0x243   : > { %v3621_v30 = vadd.f32 %v3620_v47, %v16250_v12  ;;  %v2915_v15 = vmax.f32 %v2911_v1, %v2913_v43  ;;  %v13572_v25 = vpop.f32.mrf.mxu0 }
 0x244   : > { %v2916_v27 = vld [vmem:[#allocation2 + $0x60] ss:$2 sm:$0xff]  ;;  %v2918_v58 = vld [vmem:[#allocation2 + $0x61] ss:$2 sm:$0xff]  ;;  %8097 = vmatmul.msk.bf16.gmra.mxu3 %vm439_vm0, %v3934_v8  ;;  %v3805_v2 = vpop.f32.mrf.mxu2 }
 0x245   : > { %8071 = vmatmul.msk.bf16.gmra.mxu2 %vm439_vm0, %v3726_v0  ;;  %v3870_v52 = vadd.f32 %v3800_v40, %v3621_v30  ;;  %v2920_v10 = vmax.f32 %v2916_v27, %v2918_v58  ;;  %v3710_v30 = vld [vmem:[#allocation3 + $0xb1] sm:$0xff]  ;;  %v3919_v27 = vld [vmem:[#allocation3 + $0xc7] sm:$0xff] }
 0x246   : > { %v2917_v35 = vld [vmem:[#allocation2 + $0x70] ss:$2 sm:$0x3f]  ;;  %v2919_v46 = vld [vmem:[#allocation2 + $0x71] ss:$2 sm:$0x3f]  ;;  %8045 = vmatmul.msk.bf16.gmra.mxu1 %vm439_vm0, %v13410_v38  ;;  %v4013_v0 = vpop.f32.mrf.mxu3 }
 0x247   : > { %v2921_v17 = vmax.f32 %v2917_v35, %v2919_v46  ;;  %v2922_v59 = vmax.f32 %v2914_v20, %v2920_v10  ;;  %v13567_v11 = vadd.f32 %v4008_v26, %v3870_v52  ;;  %v3711_v20 = vld [vmem:[#allocation3 + $0xb9] sm:$0xff]  ;;  %v4107_v46 = vld [vmem:[#allocation3 + $0x28] sm:$0xff] }
 0x248   : > { %v3728_v58 = vpack.c.bf16 %v3711_v20, %v3710_v30  ;;  %v4106_v35 = vld [vmem:[#allocation3 + $0x20] sm:$0xff]  ;;  %v4108_v30 = vld [vmem:[#allocation3 + $0x30] sm:$0xff] }
 0x249   : > { %v2923_v57 = vmax.f32 %v2915_v15, %v2921_v17  ;;  %v2924_v3 = vadd.f32 %v2922_v59, %v16217_v18  ;;  %v3059_v26 = vld [vmem:[%s9886_s22 + $0x3a7] sm:$0xff] }
 0x24a   : > { %v3622_v14 = vpop.f32.mrf.mxu1 }
 0x24b   : > { %v2925_v24 = vadd.f32 %v2923_v57, %v16217_v18  ;;  %v2926_v55 = vmax.f32 %v2924_v3, 0.0  ;;  %v3623_v36 = vadd.f32 %v3622_v14, %v16251_v48  ;;  %v13583_v45 = vpop.f32.mrf.mxu0  ;;  %v4134_v57 = vpack.c.bf16 %v4107_v46, %v4106_v35  ;;  %v3058_v3 = vld [vmem:[%s9886_s22 + $0x39f] sm:$0xff] }
 0x24c   : > { %v3807_v1 = vpop.f32.mrf.mxu2  ;;  %v3074_v48 = vmul.f32 %v3058_v3, %v16248_v19 }
 0x24d   : > { %v2927_v34 = vmax.f32 %v2925_v24, 0.0  ;;  %2928 = vst.msk [vmem:[#allocation3 + $0xd0] sm:$0xff] %vm439_vm0, %v2926_v55  ;;  %v3871_v38 = vadd.f32 %v3802_v6, %v3623_v36  ;;  %v13604_v6 = vld [vmem:[%s9886_s22 + $0x3af] sm:$0xff]  ;;  %v13607_v55 = vld [vmem:[%s9886_s22 + $0x3b7] sm:$0xff]  ;;  %v3075_v36 = vmul.f32 %v3059_v26, %v16248_v19 }
 0x24e   : > { %v4015_v15 = vpop.f32.mrf.mxu3 }
 0x24f   : > { %2929 = vst.msk [vmem:[#allocation3 + $0xd8] sm:$0x3f] %vm900_vm1, %v2927_v34  ;;  %v13575_v37 = vadd.f32 %v4010_v63, %v3871_v38  ;;  %v9320_v38 = vld [vmem:[%s15963_s3 + $0x68] sm:$0xff]  ;;  %v3077_v63 = vmul.f32 %v13607_v55, %v16248_v19 }
 0x250   : > { %4629 = vmatpush.bf16.msrb.mxu2 %v9320_v38  ;;  %v13650_v38 = vld [vmem:[%s9886_s22 + $0x3b8] sm:$0xff] }
 0x252   : > { %v3625_v50 = vpop.f32.mrf.mxu1 }
 0x253   : > { %v3626_v31 = vadd.f32 %v3625_v50, %v16252_v56  ;;  %v3712_v50 = vld [vmem:[#allocation3 + $0xc1] sm:$0xff] }
 0x254   : > { %v3401_v42 = vld [vmem:[#allocation3 + $0xd0] sm:$0xff]  ;;  %8098 = vmatmul.msk.bf16.gmra.mxu3 %vm439_vm0, %v3935_v7 }
 0x255   : > { %8072 = vmatmul.msk.bf16.gmra.mxu2 %vm439_vm0, %v3727_v13  ;;  %v3872_v9 = vadd.f32 %v3805_v2, %v3626_v31  ;;  %v3076_v13 = vmul.f32 %v13604_v6, %v16248_v19  ;;  %v16253_v2 = vld [vmem:[#allocation64_spill] sm:$0xff]  ;;  %v16254_v31 = vld [vmem:[#allocation65_spill] sm:$0xff] }
 0x256   : > { %v3402_v39 = vld [vmem:[#allocation3 + $0xd8] sm:$0xff]  ;;  %8046 = vmatmul.msk.bf16.gmra.mxu1 %vm439_vm0, %v3934_v8  ;;  %v3090_v56 = vadd.f32 %v3074_v48, %v16253_v2 }
 0x257   : > { %v13581_v23 = vpack.c.bf16 %v3402_v39, %v3401_v42  ;;  %v13587_v40 = vadd.f32 %v4013_v0, %v3872_v9  ;;  %v3918_v8 = vld [vmem:[#allocation3 + $0xbf] sm:$0xff]  ;;  %v3091_v42 = vadd.f32 %v3075_v36, %v16254_v31  ;;  %v3713_v9 = vld [vmem:[#allocation3 + $0xc9] sm:$0xff]  ;;  %v3921_v0 = vld [vmem:[#allocation3 + $0xd7] sm:$0xff] }
 0x258   : > { %v13592_v10 = vpack.c.bf16 %v3919_v27, %v3918_v8  ;;  %v3920_v39 = vld [vmem:[#allocation3 + $0xcf] sm:$0xff]  ;;  %v4109_v19 = vld [vmem:[#allocation3 + $0x38] sm:$0xff]  ;;  %v3729_v35 = vpack.c.bf16 %v3713_v9, %v3712_v50  ;;  %v3113_v50 = vmul.f32 %v13650_v38, %v16249_v54  ;;  %v3178_v9 = vmul.f32 %v3058_v3, %v16201_v51 }
 0x259   : > { %8027 = vmatmul.msk.bf16.gmra.mxu0 %vm439_vm0, %v13581_v23  ;;  %v16256_v27 = vld [vmem:[#allocation67_spill] sm:$0xff]  ;;  %v13640_v46 = vpack.c.bf16 %v3921_v0, %v3920_v39  ;;  %v13652_v16 = vpack.c.bf16 %v4109_v19, %v4108_v30  ;;  %v3179_v39 = vmul.f32 %v3059_v26, %v16201_v51 }
 0x25a   : > { %v3627_v47 = vpop.f32.mrf.mxu1  ;;  %v3203_v30 = vld [vmem:[%s9886_s22 + $0x3c8] sm:$0xff] }
 0x25b   : > { %v3628_v43 = vadd.f32 %v3627_v47, %v13214_v21  ;;  %v3094_v47 = vld [vmem:[%s9886_s22 + $0x3a0] sm:$0xff] }
 0x25c   : > { %v3110_v20 = vmul.f32 %v3094_v47, %v16249_v54  ;;  %v3214_v3 = vmul.f32 %v3094_v47, %v16202_v4 }
 0x25d   : > { %v3873_v12 = vadd.f32 %v3807_v1, %v3628_v43  ;;  %v3095_v1 = vld [vmem:[%s9886_s22 + $0x3a8] sm:$0xff] }
 0x25e   : > { %v16255_v43 = vld [vmem:[#allocation66_spill] sm:$0xff]  ;;  %v3111_v8 = vmul.f32 %v3095_v1, %v16249_v54 }
 0x25f   : > { %v13594_v17 = vadd.f32 %v4015_v15, %v3873_v12  ;;  %v3092_v12 = vadd.f32 %v3076_v13, %v16255_v43  ;;  %v3166_v13 = vld [vmem:[%s9886_s22 + $0x3bf] sm:$0xff] }
 0x260   : > { %v13590_v52 = vpop.f32.mrf.mxu0  ;;  %v3127_v48 = vadd.f32 %v3111_v8, %v3091_v42  ;;  %v3182_v0 = vmul.f32 %v3166_v13, %v16201_v51  ;;  %v16258_v8 = vld [vmem:[#allocation44_spill] sm:$0xff] }
 0x262   : > { %v3630_v21 = vpop.f32.mrf.mxu1 }
 0x263   : > { %v3631_v59 = vadd.f32 %v3630_v21, %v13262_v53  ;;  %v3130_v21 = vld [vmem:[%s9886_s22 + $0x3a1] sm:$0xff] }
 0x264   : > { %8099 = vmatmul.msk.bf16.gmra.mxu3 %vm439_vm0, %v13592_v10  ;;  %v3146_v36 = vmul.f32 %v3130_v21, %v16188_v60 }
 0x265   : > { %8073 = vmatmul.msk.bf16.gmra.mxu2 %vm439_vm0, %v3728_v58  ;;  %v13638_v58 = vadd.f32 %v3077_v63, %v16256_v27  ;;  %v3167_v63 = vld [vmem:[%s9886_s22 + $0x3c7] sm:$0xff]  ;;  %v3195_v27 = vadd.f32 %v3179_v39, %v16258_v8  ;;  %v3169_v8 = vld [vmem:[%s9886_s22 + $0x3d7] sm:$0xff] }
 0x266   : > { %8047 = vmatmul.msk.bf16.gmra.mxu1 %vm439_vm0, %v3935_v7  ;;  %v3810_v14 = vpop.f32.mrf.mxu2  ;;  %v3183_v43 = vmul.f32 %v3167_v63, %v16201_v51  ;;  %v9324_v39 = vld [vmem:[%s15963_s3 + $0x88] sm:$0xff] }
 0x267   : > { %v3874_v24 = vadd.f32 %v3810_v14, %v3631_v59  ;;  %v4018_v34 = vpop.f32.mrf.mxu3  ;;  %v3131_v59 = vld [vmem:[%s9886_s22 + $0x3a9] sm:$0xff]  ;;  %5045 = vmatpush.bf16.msra.mxu0 %v9324_v39 }
 0x268   : > { %v13612_v53 = vpop.f32.mrf.mxu0 }
 0x269   : > { %8115 = vmatmul.msk.bf16.vlgmr.msrb.gmra.mxu0 %vm439_vm0, %v4134_v57  ;;  %v13620_v29 = vadd.f32 %v4018_v34, %v3874_v24  ;;  %v13645_v57 = vld [vmem:[%s9886_s22 + $0x3b0] sm:$0xff]  ;;  %v3126_v24 = vadd.f32 %v3110_v20, %v3090_v56  ;;  %v3147_v34 = vmul.f32 %v3131_v59, %v16188_v60  ;;  %v3215_v20 = vmul.f32 %v3095_v1, %v16202_v4 }
 0x26a   : > { %v3632_v33 = vpop.f32.mrf.mxu1  ;;  %v3250_v1 = vmul.f32 %v13528_v22, %v3130_v21  ;;  %v13695_v21 = vld [vmem:[#allocation3 + $0xd1] sm:$0xff] }
 0x26b   : > { %v3633_v7 = vadd.f32 %v3632_v33, %v13366_v62  ;;  %v3162_v31 = vadd.f32 %v3146_v36, %v3126_v24  ;;  %v3163_v42 = vadd.f32 %v3147_v34, %v3127_v48  ;;  %v3239_v24 = vld [vmem:[%s9886_s22 + $0x3c9] sm:$0xff]  ;;  %v3132_v48 = vld [vmem:[%s9886_s22 + $0x3b1] sm:$0xff]  ;;  %v3251_v34 = vmul.f32 %v13528_v22, %v3131_v59  ;;  %v3715_v59 = vld [vmem:[#allocation3 + $0xd9] sm:$0xff] }
 0x26c   : > { %v3231_v13 = vadd.f32 %v3215_v20, %v3195_v27 }
 0x26e   : > { %v3812_v62 = vpop.f32.mrf.mxu2 }
 0x26f   : > { %v3875_v15 = vadd.f32 %v3812_v62, %v3633_v7  ;;  %v4020_v14 = vpop.f32.mrf.mxu3  ;;  %v3112_v7 = vmul.f32 %v13645_v57, %v16249_v54  ;;  %v3202_v54 = vld [vmem:[%s9886_s22 + $0x3c0] sm:$0xff] }
 0x270   : > { %v3218_v26 = vmul.f32 %v3202_v54, %v16202_v4 }
 0x271   : > { %v13654_v33 = vadd.f32 %v4020_v14, %v3875_v15  ;;  %v3128_v19 = vadd.f32 %v3112_v7, %v3092_v12  ;;  %v3198_v15 = vadd.f32 %v3182_v0, %v3162_v31  ;;  %v3199_v12 = vadd.f32 %v3183_v43, %v3163_v42  ;;  %v3238_v14 = vld [vmem:[%s9886_s22 + $0x3c1] sm:$0xff]  ;;  %v3133_v31 = vld [vmem:[%s9886_s22 + $0x3b9] sm:$0xff] }
 0x272   : > { %v3635_v49 = vpop.f32.mrf.mxu1  ;;  %v13662_v2 = vpop.f32.mrf.mxu0  ;;  %v3255_v0 = vmul.f32 %v13528_v22, %v3239_v24  ;;  %v3148_v43 = vmul.f32 %v3132_v48, %v16188_v60 }
 0x273   : > { %v3636_v56 = vadd.f32 %v3635_v49, %v13435_v5  ;;  %v16257_v5 = vld [vmem:[#allocation32_spill] sm:$0xff]  ;;  %v3254_v49 = vmul.f32 %v13528_v22, %v3238_v14  ;;  %v3234_v63 = vadd.f32 %v3218_v26, %v3198_v15  ;;  %v3129_v26 = vadd.f32 %v3113_v50, %v13638_v58 }
 0x274   : > { %8100 = vmatmul.msk.bf16.gmra.mxu3 %vm439_vm0, %v13640_v46  ;;  %v3194_v62 = vadd.f32 %v3178_v9, %v16257_v5  ;;  %v3168_v9 = vld [vmem:[%s9886_s22 + $0x3cf] sm:$0xff]  ;;  %v3922_v5 = vld [vmem:[#allocation3 + $0xdf] sm:$0xff]  ;;  %v3730_v15 = vpack.c.bf16 %v3715_v59, %v13695_v21  ;;  %v3149_v58 = vmul.f32 %v3133_v31, %v16188_v60  ;;  %v3164_v50 = vadd.f32 %v3148_v43, %v3128_v19 }
 0x275   : > { %8074 = vmatmul.msk.bf16.gmra.mxu2 %vm439_vm0, %v3729_v35  ;;  %v3219_v35 = vmul.f32 %v3203_v30, %v16202_v4  ;;  %v3270_v20 = vadd.f32 %v3254_v49, %v3234_v63  ;;  %v3216_v49 = vmul.f32 %v13645_v57, %v16202_v4  ;;  %v16259_v19 = vld [vmem:[#allocation36_spill] sm:$0xff]  ;;  %v3252_v57 = vmul.f32 %v13528_v22, %v3132_v48 }
 0x276   : > { %8048 = vmatmul.msk.bf16.gmra.mxu1 %vm439_vm0, %v13592_v10  ;;  %v3815_v36 = vpop.f32.mrf.mxu2  ;;  %v3230_v47 = vadd.f32 %v3214_v3, %v3194_v62  ;;  %v3923_v62 = vld [vmem:[#allocation3 + $0xe7] sm:$0xff]  ;;  %v3267_v3 = vadd.f32 %v3251_v34, %v3231_v13  ;;  %v3185_v34 = vmul.f32 %v3169_v8, %v16201_v51  ;;  %v3165_v60 = vadd.f32 %v3149_v58, %v3129_v26  ;;  %v3240_v63 = vld [vmem:[%s9886_s22 + $0x3d1] sm:$0xff] }
 0x277   : > { %v3876_v10 = vadd.f32 %v3815_v36, %v3636_v56  ;;  %v3235_v7 = vadd.f32 %v3219_v35, %v3199_v12  ;;  %v4023_v42 = vpop.f32.mrf.mxu3  ;;  %v3204_v35 = vld [vmem:[%s9886_s22 + $0x3d0] sm:$0xff]  ;;  %v13709_v24 = vpack.c.bf16 %v3923_v62, %v3922_v5  ;;  %v3205_v36 = vld [vmem:[%s9886_s22 + $0x3d8] sm:$0xff]  ;;  %3286 = vst.msk [vmem:[#allocation2 + $0x60] sm:$0xff] %vm439_vm0, %v3270_v20  ;;  %v3256_v5 = vmul.f32 %v13528_v22, %v3240_v63  ;;  %v4111_v20 = vld [vmem:[#allocation3 + $0x48] sm:$0xff] }
 0x278   : > { %v3266_v56 = vadd.f32 %v3250_v1, %v3230_v47  ;;  %3283 = vst.msk [vmem:[#allocation2 + $0x48] sm:$0xff] %vm439_vm0, %v3267_v3  ;;  %v3181_v47 = vmul.f32 %v13607_v55, %v16201_v51  ;;  %v3184_v1 = vmul.f32 %v3168_v9, %v16201_v51  ;;  %v3220_v13 = vmul.f32 %v3204_v35, %v16202_v4  ;;  %v4110_v3 = vld [vmem:[#allocation3 + $0x40] sm:$0xff] }
 0x279   : > { %8116 = vmatmul.msk.bf16.gmra.mxu0 %vm439_vm0, %v13652_v16  ;;  %v13699_v54 = vadd.f32 %v4023_v42, %v3876_v10  ;;  %v3271_v12 = vadd.f32 %v3255_v0, %v3235_v7  ;;  %v3241_v7 = vld [vmem:[%s9886_s22 + $0x3d9] sm:$0xff]  ;;  %v3201_v59 = vadd.f32 %v3185_v34, %v3165_v60  ;;  %s431_s22 = sand.u32 1, %s9727_s26  }
 0x27a   : > { %v3637_v30 = vpop.f32.mrf.mxu1  ;;  %3282 = vst.msk [vmem:[#allocation2 + $0x40] sm:$0xff] %vm439_vm0, %v3266_v56  ;;  %v13707_v14 = vpop.f32.mrf.mxu0  ;;  %v16260_v42 = vld [vmem:[#allocation45_spill] sm:$0xff]  ;;  %v3200_v39 = vadd.f32 %v3184_v1, %v3164_v50  ;;  %v3253_v56 = vmul.f32 %v13528_v22, %v3133_v31  ;;  %v3257_v62 = vmul.f32 %v13528_v22, %v3241_v7  ;;  %v13741_v22 = vpack.c.bf16 %v4111_v20, %v4110_v3  ;;  %s432_s21 = scalar_lea.vmem [#allocation7], %s431_s22  ;;  %s7930_s2 = scalar_lea.sflag [#allocation8], %s431_s22 }
 0x27b   : > { %v3638_v27 = vadd.f32 %v3637_v30, %v13497_v41  ;;  %v3180_v41 = vmul.f32 %v13604_v6, %v16201_v51  ;;  %3287 = vst.msk [vmem:[#allocation2 + $0x68] sm:$0xff] %vm439_vm0, %v3271_v12  ;;  %v3217_v6 = vmul.f32 %v13650_v38, %v16202_v4  ;;  %v3197_v9 = vadd.f32 %v3181_v47, %v16260_v42  ;;  %s7940_s0 = sshll.u32 %s432_s21, 4  ;;  %s7941_s0 = int_to_ptr.vmem [resolvable:$true] %s7940_s0 }
 0x27c   : > { %v3221_v51 = vmul.f32 %v3205_v36, %v16202_v4  ;;  %v3236_v38 = vadd.f32 %v3220_v13, %v3200_v39 }
 0x27d   : > { %v3196_v10 = vadd.f32 %v3180_v41, %v16259_v19  ;;  %v3233_v30 = vadd.f32 %v3217_v6, %v3197_v9 }
 0x27e   : > { %v3817_v55 = vpop.f32.mrf.mxu2  ;;  %v3237_v4 = vadd.f32 %v3221_v51, %v3201_v59  ;;  %v3272_v58 = vadd.f32 %v3256_v5, %v3236_v38  ;;  %v3716_v38 = vld [vmem:[#allocation3 + $0xe1] sm:$0xff] }
 0x27f   : > { %v3877_v21 = vadd.f32 %v3817_v55, %v3638_v27  ;;  %v3232_v0 = vadd.f32 %v3216_v49, %v3196_v10  ;;  %v4025_v43 = vpop.f32.mrf.mxu3  ;;  %v3269_v35 = vadd.f32 %v3253_v56, %v3233_v30  ;;  %v4113_v56 = vld [vmem:[#allocation3 + $0x58] sm:$0xff] }
 0x280   : > { %v3273_v41 = vadd.f32 %v3257_v62, %v3237_v4  ;;  %3288 = vst.msk [vmem:[#allocation2 + $0x70] sm:$0xff] %vm439_vm0, %v3272_v58 }
 0x281   : > { %v13736_v26 = vadd.f32 %v4025_v43, %v3877_v21  ;;  %v3268_v12 = vadd.f32 %v3252_v57, %v3232_v0  ;;  %v3310_v48 = vld [vmem:[#allocation2 + $0x40] ss:$2 sm:$0xff]  ;;  %v3312_v27 = vld [vmem:[#allocation2 + $0x41] ss:$2 sm:$0xff]  ;;  %3285 = vst.msk [vmem:[#allocation2 + $0x58] sm:$0xff] %vm439_vm0, %v3269_v35  ;;  %v4112_v0 = vld [vmem:[#allocation3 + $0x50] sm:$0xff] }
 0x282   : > { %v3640_v8 = vpop.f32.mrf.mxu1  ;;  %v3314_v50 = vmax.f32 %v3310_v48, %v3312_v27  ;;  %v3316_v36 = vld [vmem:[#allocation2 + $0x60] ss:$2 sm:$0xff]  ;;  %v3318_v47 = vld [vmem:[#allocation2 + $0x61] ss:$2 sm:$0xff]  ;;  %3289 = vst.msk [vmem:[#allocation2 + $0x78] sm:$0xff] %vm439_vm0, %v3273_v41  ;;  %v13765_v3 = vpack.c.bf16 %v4113_v56, %v4112_v0  ;;  %v9321_v27 = vld [vmem:[%s15963_s3 + $0x70] sm:$0xff] }
 0x283   : > { %v3641_v31 = vadd.f32 %v3640_v8, %v13547_v61  ;;  %3284 = vst.msk [vmem:[#allocation2 + $0x50] sm:$0xff] %vm439_vm0, %v3268_v12  ;;  %v13746_v1 = vpop.f32.mrf.mxu0  ;;  %4838 = vmatpush.bf16.msrb.mxu3 %v9321_v27  ;;  %v9317_v41 = vld [vmem:[%s15963_s3 + $0x50] sm:$0xff] }
 0x284   : > { %8101 = vmatmul.msk.bf16.gmra.mxu3 %vm439_vm0, %v13709_v24  ;;  %4422 = vmatpush.bf16.msra.mxu1 %v9317_v41 }
 0x285   : > { %8075 = vmatmul.msk.bf16.gmra.mxu2 %vm439_vm0, %v3730_v15  ;;  %v3320_v15 = vmax.f32 %v3316_v36, %v3318_v47 }
 0x286   : > { %8049 = vmatmul.msk.bf16.gmra.mxu1 %vm439_vm0, %v13640_v46 }
 0x287   : > { %v3322_v49 = vmax.f32 %v3314_v50, %v3320_v15  ;;  %v4028_v60 = vpop.f32.mrf.mxu3 }
 0x288   : > { %v3820_v61 = vpop.f32.mrf.mxu2 }
 0x289   : > { %v3878_v34 = vadd.f32 %v3820_v61, %v3641_v31  ;;  %8117 = vmatmul.msk.bf16.gmra.mxu0 %vm439_vm0, %v13741_v22  ;;  %v3324_v6 = vadd.f32 %v3322_v49, %v16217_v18  ;;  %v3317_v42 = vld [vmem:[#allocation2 + $0x70] ss:$2 sm:$0x3f]  ;;  %v3319_v39 = vld [vmem:[#allocation2 + $0x71] ss:$2 sm:$0x3f] }
 0x28a   : > { %v3642_v10 = vpop.f32.mrf.mxu1  ;;  %v3311_v63 = vld [vmem:[#allocation2 + $0x50] ss:$2 sm:$0x3f]  ;;  %v3313_v7 = vld [vmem:[#allocation2 + $0x51] ss:$2 sm:$0x3f]  ;;  %v3321_v21 = vmax.f32 %v3317_v42, %v3319_v39 }
 0x28b   : > { %v13754_v19 = vadd.f32 %v4028_v60, %v3878_v34  ;;  %v3643_v13 = vadd.f32 %v3642_v10, %v13560_v28  ;;  %v3326_v46 = vmax.f32 %v3324_v6, 0.0  ;;  %v3315_v55 = vmax.f32 %v3311_v63, %v3313_v7  ;;  %v13759_v51 = vpop.f32.mrf.mxu0  ;;  %v4522_v49 = vld [vmem:[#allocation3 + $0x2f] sm:$0xff]  ;;  %v4523_v60 = vld [vmem:[#allocation3 + $0x37] sm:$0xff]  ;;  %v4114_v10 = vld [vmem:[#allocation3 + $0x60] sm:$0xff] }
 0x28c   : > { %v4115_v6 = vld [vmem:[#allocation3 + $0x68] sm:$0xff]  ;;  %v4550_v7 = vpack.c.bf16 %v4523_v60, %v4522_v49 }
 0x28d   : > { %3328 = vst.msk [vmem:[#allocation3 + $0xf0] sm:$0xff] %vm439_vm0, %v3326_v46  ;;  %v3323_v28 = vmax.f32 %v3315_v55, %v3321_v21  ;;  %v13799_v55 = vpack.c.bf16 %v4115_v6, %v4114_v10  ;;  %v4314_v42 = vld [vmem:[#allocation3 + $0x21] sm:$0xff]  ;;  %v4526_v6 = vld [vmem:[#allocation3 + $0x4f] sm:$0xff] }
 0x28f   : > { %v4030_v59 = vpop.f32.mrf.mxu3  ;;  %v3325_v62 = vadd.f32 %v3323_v28, %v16217_v18 }
 0x290   : > { %v3822_v9 = vpop.f32.mrf.mxu2 }
 0x291   : > { %v3879_v57 = vadd.f32 %v3822_v9, %v3643_v13  ;;  %v3327_v4 = vmax.f32 %v3325_v62, 0.0  ;;  %v4315_v9 = vld [vmem:[#allocation3 + $0x29] sm:$0xff]  ;;  %v4524_v62 = vld [vmem:[#allocation3 + $0x3f] sm:$0xff] }
 0x292   : > { %v3645_v30 = vpop.f32.mrf.mxu1 }
 0x293   : > { %v13761_v43 = vadd.f32 %v4030_v59, %v3879_v57  ;;  %v3646_v5 = vadd.f32 %v3645_v30, %v13572_v25  ;;  %3329 = vst.msk [vmem:[#allocation3 + $0xf8] sm:$0x3f] %vm900_vm1, %v3327_v4  ;;  %v9319_v25 = vld [vmem:[%s15963_s3 + $0x60] sm:$0xff]  ;;  %v4342_v57 = vpack.c.bf16 %v4315_v9, %v4314_v42  ;;  %v4116_v4 = vld [vmem:[#allocation3 + $0x70] sm:$0xff]  ;;  %v4119_v42 = vld [vmem:[#allocation3 + $0x88] sm:$0xff] }
 0x294   : > { %v3717_v20 = vld [vmem:[#allocation3 + $0xe9] sm:$0xff]  ;;  %4630 = vmatpush.bf16.msrb.mxu2 %v9319_v25 }
 0x295   : > { %v13767_v8 = vpack.c.bf16 %v3717_v20, %v3716_v38  ;;  %v3924_v50 = vld [vmem:[#allocation3 + $0xef] sm:$0xff]  ;;  %v4525_v20 = vld [vmem:[#allocation3 + $0x47] sm:$0xff] }
 0x296   : > { %8050 = vmatmul.msk.bf16.gmra.mxu1 %vm439_vm0, %v13709_v24  ;;  %v13782_v24 = vpop.f32.mrf.mxu0 }
 0x297   : > { %8076 = vmatmul.msk.bf16.gmra.mxu2 %vm439_vm0, %v13767_v8  ;;  %v4033_v18 = vpop.f32.mrf.mxu3 }
 0x298   : > { %v3825_v12 = vpop.f32.mrf.mxu2 }
 0x299   : > { %v3880_v48 = vadd.f32 %v3825_v12, %v3646_v5  ;;  %8118 = vmatmul.msk.bf16.gmra.mxu0 %vm439_vm0, %v13765_v3  ;;  %v4117_v12 = vld [vmem:[#allocation3 + $0x78] sm:$0xff] }
 0x29a   : > { %v3647_v58 = vpop.f32.mrf.mxu1  ;;  %v3925_v36 = vld [vmem:[#allocation3 + $0xf7] sm:$0xff]  ;;  %v13814_v25 = vpack.c.bf16 %v4117_v12, %v4116_v4 }
 0x29b   : > { %v13784_v35 = vadd.f32 %v4033_v18, %v3880_v48  ;;  %v3648_v31 = vadd.f32 %v3647_v58, %v13583_v45  ;;  %v13790_v15 = vpack.c.bf16 %v3925_v36, %v3924_v50  ;;  %v4551_v18 = vpack.c.bf16 %v4525_v20, %v4524_v62  ;;  %v4316_v58 = vld [vmem:[#allocation3 + $0x31] sm:$0xff]  ;;  %v4317_v50 = vld [vmem:[#allocation3 + $0x39] sm:$0xff] }
 0x29c   : > { %v13820_v36 = vpack.c.bf16 %v4317_v50, %v4316_v58  ;;  %v4529_v58 = vld [vmem:[#allocation3 + $0x67] sm:$0xff] }
 0x29d   : > { %8102 = vmatmul.msk.bf16.gmra.mxu3 %vm439_vm0, %v13790_v15 }
 0x29e   : > { %v13797_v63 = vpop.f32.mrf.mxu0 }
 0x29f   : > { %v4035_v34 = vpop.f32.mrf.mxu3 }
 0x2a0   : > { %v3827_v47 = vpop.f32.mrf.mxu2 }
 0x2a1   : > { %v3881_v61 = vadd.f32 %v3827_v47, %v3648_v31 }
 0x2a2   : > { %v3650_v13 = vpop.f32.mrf.mxu1 }
 0x2a3   : > { %v13794_v45 = vadd.f32 %v4035_v34, %v3881_v61  ;;  %v3651_v46 = vadd.f32 %v3650_v13, %v13590_v52  ;;  %v4527_v13 = vld [vmem:[#allocation3 + $0x57] sm:$0xff] }
 0x2a6   : > { %8141 = vmatmul.msk.bf16.vlgmr.msra.gmra.mxu1 %vm439_vm0, %v4342_v57 }
 0x2a7   : > { %8167 = vmatmul.msk.bf16.vlgmr.msrb.gmra.mxu2 %vm439_vm0, %v4550_v7  ;;  %v4038_v59 = vpop.f32.mrf.mxu3  ;;  %v4118_v7 = vld [vmem:[#allocation3 + $0x80] sm:$0xff] }
 0x2a8   : > { %v3830_v39 = vpop.f32.mrf.mxu2  ;;  %v13835_v57 = vpack.c.bf16 %v4119_v42, %v4118_v7 }
 0x2a9   : > { %v3882_v21 = vadd.f32 %v3830_v39, %v3651_v46  ;;  %8119 = vmatmul.msk.bf16.gmra.mxu0 %vm439_vm0, %v13799_v55  ;;  %v4552_v39 = vpack.c.bf16 %v4527_v13, %v4526_v6 }
 0x2aa   : > { %v3652_v52 = vpop.f32.mrf.mxu1 }
 0x2ab   : > { %v13805_v0 = vadd.f32 %v4038_v59, %v3882_v21  ;;  %v3653_v56 = vadd.f32 %v3652_v52, %v13612_v53  ;;  %v4318_v59 = vld [vmem:[#allocation3 + $0x41] sm:$0xff] }
 0x2ad   : > { %v13808_v30 = vpop.f32.mrf.mxu0  ;;  %8193 = vmatmul.msk.bf16.vlgmr.msrb.gmra.mxu3 %vm439_vm0, %v13652_v16 }
 0x2af   : > { %v4040_v5 = vpop.f32.mrf.mxu3 }
 0x2b0   : > { %v3832_v28 = vpop.f32.mrf.mxu2 }
 0x2b1   : > { %v3883_v38 = vadd.f32 %v3832_v28, %v3653_v56  ;;  %v4319_v56 = vld [vmem:[#allocation3 + $0x49] sm:$0xff] }
 0x2b2   : > { %v13839_v28 = vpack.c.bf16 %v4319_v56, %v4318_v59  ;;  %v4531_v56 = vld [vmem:[#allocation3 + $0x77] sm:$0xff] }
 0x2b3   : > { %v13812_v48 = vadd.f32 %v4040_v5, %v3883_v38  ;;  %v3655_v27 = vpop.f32.mrf.mxu1 }
 0x2b4   : > { %v3656_v53 = vadd.f32 %v3655_v27, %v13662_v2  ;;  %v4528_v27 = vld [vmem:[#allocation3 + $0x5f] sm:$0xff] }
 0x2b5   : > { %v13817_v41 = vpop.f32.mrf.mxu0 }
 0x2b6   : > { %8142 = vmatmul.msk.bf16.gmra.mxu1 %vm439_vm0, %v13820_v36 }
 0x2b7   : > { %8168 = vmatmul.msk.bf16.gmra.mxu2 %vm439_vm0, %v4551_v18  ;;  %v4043_v47 = vpop.f32.mrf.mxu3 }
 0x2b8   : > { %v3835_v31 = vpop.f32.mrf.mxu2 }
 0x2b9   : > { %8120 = vmatmul.msk.bf16.gmra.mxu0 %vm439_vm0, %v13814_v25  ;;  %v3884_v16 = vadd.f32 %v3835_v31, %v3656_v53  ;;  %v4120_v53 = vld [vmem:[#allocation3 + $0x90] sm:$0xff]  ;;  %v4121_v31 = vld [vmem:[#allocation3 + $0x98] sm:$0xff] }
 0x2bb   : > { %v13826_v61 = vadd.f32 %v4043_v47, %v3884_v16  ;;  %v3657_v34 = vpop.f32.mrf.mxu1  ;;  %v4553_v16 = vpack.c.bf16 %v4529_v58, %v4528_v27  ;;  %v13854_v47 = vpack.c.bf16 %v4121_v31, %v4120_v53  ;;  %v4322_v27 = vld [vmem:[#allocation3 + $0x61] sm:$0xff]  ;;  %v4323_v31 = vld [vmem:[#allocation3 + $0x69] sm:$0xff] }
 0x2bc   : > { %v3658_v2 = vadd.f32 %v3657_v34, %v13707_v14 }
 0x2bd   : > { %v13829_v46 = vpop.f32.mrf.mxu0  ;;  %8194 = vmatmul.msk.bf16.gmra.mxu3 %vm439_vm0, %v13741_v22 }
 0x2bf   : > { %v4045_v10 = vpop.f32.mrf.mxu3 }
 0x2c0   : > { %v3837_v49 = vpop.f32.mrf.mxu2 }
 0x2c1   : > { %v3885_v60 = vadd.f32 %v3837_v49, %v3658_v2  ;;  %v4320_v49 = vld [vmem:[#allocation3 + $0x51] sm:$0xff] }
 0x2c3   : > { %v13833_v9 = vadd.f32 %v4045_v10, %v3885_v60  ;;  %v3660_v21 = vpop.f32.mrf.mxu1  ;;  %v4321_v10 = vld [vmem:[#allocation3 + $0x59] sm:$0xff] }
 0x2c4   : > { %v3661_v14 = vadd.f32 %v3660_v21, %v13746_v1  ;;  %v13860_v6 = vpack.c.bf16 %v4321_v10, %v4320_v49  ;;  %v9323_v49 = vld [vmem:[%s15963_s3 + $0x80] sm:$0xff]  ;;  %s9689_s3 = scalar_lea.hbm %s9688_s23, 1 }
 0x2c5   : > { %v13847_v62 = vpop.f32.mrf.mxu0  ;;  %5046 = vmatpush.bf16.msra.mxu0 %v9323_v49  ;;  %p9690_p11 = scmp.ne.s32.totalorder %s9688_s23, %s9689_s3  ;;  %p9695_p1 = scmp.lt.s32.totalorder %s9693_s30, %s9689_s3 }
 0x2c6   : > { %8143 = vmatmul.msk.bf16.gmra.mxu1 %vm439_vm0, %v13839_v28 }
 0x2c7   : > { %8169 = vmatmul.msk.bf16.gmra.mxu2 %vm439_vm0, %v4552_v39  ;;  %v4048_v22 = vpop.f32.mrf.mxu3  ;;  %p9691_p12 = pnand %p9690_p11, %p9846_p5  ;;  %p9696_p2 = por %p9695_p1, %p9694_p0 }
 0x2c8   : > { %v3840_v52 = vpop.f32.mrf.mxu2 }
 0x2c9   : > { %8121 = vmatmul.msk.bf16.gmra.mxu0 %vm439_vm0, %v13835_v57  ;;  %v3886_v38 = vadd.f32 %v3840_v52, %v3661_v14  ;;  %v4530_v52 = vld [vmem:[#allocation3 + $0x6f] sm:$0xff]  ;;  %p9692_p13 = pneg %p9691_p12 }
 0x2cb   : > { %v13845_v5 = vadd.f32 %v4048_v22, %v3886_v38  ;;  %v3662_v20 = vpop.f32.mrf.mxu1  ;;  %v4122_v38 = vld [vmem:[#allocation3 + $0xa0] sm:$0xff]  ;;  %v4123_v22 = vld [vmem:[#allocation3 + $0xa8] sm:$0xff]  ;;  %p9697_p3 = pnand %p9696_p2, %p9692_p13 }
 0x2cc   : > { %v3663_v1 = vadd.f32 %v3662_v20, %v13759_v51 }
 0x2cd   : > { %8195 = vmatmul.msk.bf16.gmra.mxu3 %vm439_vm0, %v13765_v3 }
 0x2cf   : > { %v4050_v18 = vpop.f32.mrf.mxu3 }
 0x2d0   : > { %v3842_v4 = vpop.f32.mrf.mxu2 }
 0x2d1   : > { %v3887_v12 = vadd.f32 %v3842_v4, %v3663_v1  ;;  %v4554_v1 = vpack.c.bf16 %v4531_v56, %v4530_v52  ;;  %v13875_v4 = vpack.c.bf16 %v4123_v22, %v4122_v38 }
 0x2d3   : > { %v13852_v50 = vadd.f32 %v4050_v18, %v3887_v12  ;;  %v3665_v2 = vpop.f32.mrf.mxu1 }
 0x2d4   : > { %v3666_v51 = vadd.f32 %v3665_v2, %v13782_v24 }
 0x2d6   : > { %v13856_v34 = vpop.f32.mrf.mxu0  ;;  %8144 = vmatmul.msk.bf16.gmra.mxu1 %vm439_vm0, %v13860_v6 }
 0x2d7   : > { %8170 = vmatmul.msk.bf16.gmra.mxu2 %vm439_vm0, %v4553_v16  ;;  %v4053_v13 = vpop.f32.mrf.mxu3  ;;  %v13882_v16 = vpack.c.bf16 %v4323_v31, %v4322_v27 }
 0x2d8   : > { %v3845_v60 = vpop.f32.mrf.mxu2 }
 0x2d9   : > { %8122 = vmatmul.msk.bf16.gmra.mxu0 %vm439_vm0, %v13854_v47  ;;  %v3888_v3 = vadd.f32 %v3845_v60, %v3666_v51 }
 0x2db   : > { %v13866_v7 = vadd.f32 %v4053_v13, %v3888_v3  ;;  %v3667_v39 = vpop.f32.mrf.mxu1 }
 0x2dc   : > { %v3668_v24 = vadd.f32 %v3667_v39, %v13797_v63 }
 0x2dd   : > { %8196 = vmatmul.msk.bf16.gmra.mxu3 %vm439_vm0, %v13799_v55 }
 0x2de   : > { %v13868_v42 = vpop.f32.mrf.mxu0 }
 0x2df   : > { %v4055_v14 = vpop.f32.mrf.mxu3 }
 0x2e0   : > { %v3847_v21 = vpop.f32.mrf.mxu2 }
 0x2e1   : > { %v3889_v59 = vadd.f32 %v3847_v21, %v3668_v24  ;;  %v4532_v24 = vld [vmem:[#allocation3 + $0x7f] sm:$0xff]  ;;  %v4533_v21 = vld [vmem:[#allocation3 + $0x87] sm:$0xff] }
 0x2e2   : > { %v4555_v56 = vpack.c.bf16 %v4533_v21, %v4532_v24 }
 0x2e3   : > { %v13873_v20 = vadd.f32 %v4055_v14, %v3889_v59  ;;  %v3670_v18 = vpop.f32.mrf.mxu1  ;;  %v4124_v59 = vld [vmem:[#allocation3 + $0xb0] sm:$0xff]  ;;  %v4125_v14 = vld [vmem:[#allocation3 + $0xb8] sm:$0xff] }
 0x2e4   : > { %v3671_v58 = vadd.f32 %v3670_v18, %v13808_v30  ;;  %v13901_v38 = vpack.c.bf16 %v4125_v14, %v4124_v59 }
 0x2e6   : > { %v4216_v12 = vpop.f32.mrf.mxu0  ;;  %8145 = vmatmul.msk.bf16.gmra.mxu1 %vm439_vm0, %v13882_v16 }
 0x2e7   : > { %v13878_v63 = vadd.f32 %v4216_v12, %v13567_v11  ;;  %8171 = vmatmul.msk.bf16.gmra.mxu2 %vm439_vm0, %v4554_v1  ;;  %v4058_v2 = vpop.f32.mrf.mxu3  ;;  %v4324_v1 = vld [vmem:[#allocation3 + $0x71] sm:$0xff]  ;;  %v4325_v12 = vld [vmem:[#allocation3 + $0x79] sm:$0xff] }
 0x2e8   : > { %v3850_v53 = vpop.f32.mrf.mxu2 }
 0x2e9   : > { %8123 = vmatmul.msk.bf16.gmra.mxu0 %vm439_vm0, %v13875_v4  ;;  %v3890_v55 = vadd.f32 %v3850_v53, %v3671_v58  ;;  %v13907_v58 = vpack.c.bf16 %v4325_v12, %v4324_v1  ;;  %v4327_v1 = vld [vmem:[#allocation3 + $0x89] sm:$0xff] }
 0x2eb   : > { %v13891_v11 = vadd.f32 %v4058_v2, %v3890_v55  ;;  %v3672_v51 = vpop.f32.mrf.mxu1 }
 0x2ec   : > { %v3673_v10 = vadd.f32 %v3672_v51, %v13817_v41 }
 0x2ed   : > { %8197 = vmatmul.msk.bf16.gmra.mxu3 %vm439_vm0, %v13814_v25 }
 0x2ee   : > { %v4218_v30 = vpop.f32.mrf.mxu0 }
 0x2ef   : > { %v13894_v60 = vadd.f32 %v4218_v30, %v13575_v37  ;;  %v4060_v39 = vpop.f32.mrf.mxu3 }
 0x2f0   : > { %v3852_v3 = vpop.f32.mrf.mxu2 }
 0x2f1   : > { %v3891_v13 = vadd.f32 %v3852_v3, %v3673_v10  ;;  %v4534_v10 = vld [vmem:[#allocation3 + $0x8f] sm:$0xff]  ;;  %v4535_v3 = vld [vmem:[#allocation3 + $0x97] sm:$0xff] }
 0x2f2   : > { %v4556_v21 = vpack.c.bf16 %v4535_v3, %v4534_v10 }
 0x2f3   : > { %v13899_v52 = vadd.f32 %v4060_v39, %v3891_v13  ;;  %v3675_v37 = vpop.f32.mrf.mxu1  ;;  %v4126_v13 = vld [vmem:[#allocation3 + $0xc0] sm:$0xff]  ;;  %v4127_v39 = vld [vmem:[#allocation3 + $0xc8] sm:$0xff] }
 0x2f4   : > { %v3676_v18 = vadd.f32 %v3675_v37, %v13829_v46  ;;  %v13924_v59 = vpack.c.bf16 %v4127_v39, %v4126_v13  ;;  %v4328_v39 = vld [vmem:[#allocation3 + $0x91] sm:$0xff] }
 0x2f6   : > { %v4221_v22 = vpop.f32.mrf.mxu0  ;;  %8146 = vmatmul.msk.bf16.gmra.mxu1 %vm439_vm0, %v13907_v58 }
 0x2f7   : > { %v13904_v41 = vadd.f32 %v4221_v22, %v13587_v40  ;;  %8172 = vmatmul.msk.bf16.gmra.mxu2 %vm439_vm0, %v4555_v56  ;;  %v4063_v53 = vpop.f32.mrf.mxu3  ;;  %v4326_v56 = vld [vmem:[#allocation3 + $0x81] sm:$0xff] }
 0x2f8   : > { %v3855_v27 = vpop.f32.mrf.mxu2  ;;  %v13931_v12 = vpack.c.bf16 %v4327_v1, %v4326_v56  ;;  %v4538_v1 = vld [vmem:[#allocation3 + $0xaf] sm:$0xff] }
 0x2f9   : > { %8124 = vmatmul.msk.bf16.gmra.mxu0 %vm439_vm0, %v13901_v38  ;;  %v3892_v25 = vadd.f32 %v3855_v27, %v3676_v18 }
 0x2fb   : > { %v13914_v31 = vadd.f32 %v4063_v53, %v3892_v25  ;;  %v3677_v40 = vpop.f32.mrf.mxu1 }
 0x2fc   : > { %v3678_v46 = vadd.f32 %v3677_v40, %v13847_v62 }
 0x2fd   : > { %8198 = vmatmul.msk.bf16.gmra.mxu3 %vm439_vm0, %v13835_v57 }
 0x2fe   : > { %v4223_v55 = vpop.f32.mrf.mxu0 }
 0x2ff   : > { %v13917_v2 = vadd.f32 %v4223_v55, %v13594_v17  ;;  %v4065_v51 = vpop.f32.mrf.mxu3 }
 0x300   : > { %v3857_v49 = vpop.f32.mrf.mxu2 }
 0x301   : > { %v3893_v30 = vadd.f32 %v3857_v49, %v3678_v46  ;;  %v4536_v49 = vld [vmem:[#allocation3 + $0x9f] sm:$0xff] }
 0x303   : > { %v13922_v24 = vadd.f32 %v4065_v51, %v3893_v30  ;;  %v3680_v17 = vpop.f32.mrf.mxu1  ;;  %v4537_v30 = vld [vmem:[#allocation3 + $0xa7] sm:$0xff] }
 0x304   : > { %v3681_v22 = vadd.f32 %v3680_v17, %v13856_v34  ;;  %v4557_v10 = vpack.c.bf16 %v4537_v30, %v4536_v49  ;;  %v4330_v49 = vld [vmem:[#allocation3 + $0xa1] sm:$0xff]  ;;  %v4331_v30 = vld [vmem:[#allocation3 + $0xa9] sm:$0xff] }
 0x306   : > { %v4226_v14 = vpop.f32.mrf.mxu0  ;;  %8147 = vmatmul.msk.bf16.gmra.mxu1 %vm439_vm0, %v13931_v12 }
 0x307   : > { %v13927_v62 = vadd.f32 %v4226_v14, %v13620_v29  ;;  %8173 = vmatmul.msk.bf16.gmra.mxu2 %vm439_vm0, %v4556_v21  ;;  %v4068_v18 = vpop.f32.mrf.mxu3 }
 0x308   : > { %v3860_v37 = vpop.f32.mrf.mxu2 }
 0x309   : > { %8125 = vmatmul.msk.bf16.gmra.mxu0 %vm439_vm0, %v13924_v59  ;;  %v3894_v57 = vadd.f32 %v3860_v37, %v3681_v22 }
 0x30b   : > { %v13937_v27 = vadd.f32 %v4068_v18, %v3894_v57  ;;  %v3682_v25 = vpop.f32.mrf.mxu1  ;;  %v4539_v57 = vld [vmem:[#allocation3 + $0xb7] sm:$0xff]  ;;  %v4131_v18 = vld [vmem:[#allocation3 + $0xe8] sm:$0xff] }
 0x30c   : > { %v3683_v53 = vadd.f32 %v3682_v25, %v13868_v42  ;;  %v4558_v25 = vpack.c.bf16 %v4539_v57, %v4538_v1 }
 0x30d   : > { %8199 = vmatmul.msk.bf16.gmra.mxu3 %vm439_vm0, %v13854_v47 }
 0x30e   : > { %v4228_v29 = vpop.f32.mrf.mxu0 }
 0x30f   : > { %v13940_v34 = vadd.f32 %v4228_v29, %v13654_v33  ;;  %v4070_v46 = vpop.f32.mrf.mxu3  ;;  %v4329_v33 = vld [vmem:[#allocation3 + $0x99] sm:$0xff] }
 0x310   : > { %v3862_v55 = vpop.f32.mrf.mxu2  ;;  %v13952_v14 = vpack.c.bf16 %v4329_v33, %v4328_v39 }
 0x311   : > { %v3895_v40 = vadd.f32 %v3862_v55, %v3683_v53 }
 0x313   : > { %v13945_v51 = vadd.f32 %v4070_v46, %v3895_v40  ;;  %v3685_v13 = vpop.f32.mrf.mxu1 }
 0x314   : > { %v3686_v42 = vadd.f32 %v3685_v13, %v13505_v32  ;;  %v4130_v32 = vld [vmem:[#allocation3 + $0xe0] sm:$0xff] }
 0x315   : > { %v13964_v53 = vpack.c.bf16 %v4131_v18, %v4130_v32 }
 0x316   : > { %v4231_v3 = vpop.f32.mrf.mxu0  ;;  %8148 = vmatmul.msk.bf16.gmra.mxu1 %vm439_vm0, %v13952_v14 }
 0x317   : > { %v13948_v21 = vadd.f32 %v4231_v3, %v13699_v54  ;;  %8174 = vmatmul.msk.bf16.gmra.mxu2 %vm439_vm0, %v4557_v10  ;;  %v13972_v3 = vpack.c.bf16 %v4331_v30, %v4330_v49 }
 0x319   : > { %8126 = vmatmul.msk.bf16.gmra.mxu0 %vm439_vm0, %v13581_v23 }
 0x31a   : > { %v3865_v47 = vpop.f32.mrf.mxu2 }
 0x31b   : > { %v3896_v17 = vadd.f32 %v3865_v47, %v3686_v42  ;;  %v3687_v22 = vpop.f32.mrf.mxu1 }
 0x31c   : > { %v3688_v37 = vadd.f32 %v3687_v22, %v13550_v44  ;;  %v4132_v22 = vld [vmem:[#allocation3 + $0xf0] sm:$0xff] }
 0x31d   : > { %8200 = vmatmul.msk.bf16.gmra.mxu3 %vm439_vm0, %v13875_v4 }
 0x31e   : > { %v4233_v56 = vpop.f32.mrf.mxu0 }
 0x31f   : > { %v13959_v54 = vadd.f32 %v4233_v56, %v13736_v26  ;;  %v4541_v56 = vld [vmem:[#allocation3 + $0xc7] sm:$0xff] }
 0x320   : > { %v4073_v55 = vpop.f32.mrf.mxu3 }
 0x321   : > { %v13966_v46 = vadd.f32 %v4073_v55, %v3896_v17  ;;  %v4540_v17 = vld [vmem:[#allocation3 + $0xbf] sm:$0xff] }
 0x322   : > { %v3867_v23 = vpop.f32.mrf.mxu2  ;;  %v4559_v32 = vpack.c.bf16 %v4541_v56, %v4540_v17  ;;  %v4333_v55 = vld [vmem:[#allocation3 + $0xb9] sm:$0xff] }
 0x323   : > { %v3897_v29 = vadd.f32 %v3867_v23, %v3688_v37  ;;  %v4424_v26 = vpop.f32.mrf.mxu1  ;;  %v4133_v37 = vld [vmem:[#allocation3 + $0xf8] sm:$0xff] }
 0x324   : > { %v4494_v10 = vadd.f32 %v4424_v26, %v13878_v63  ;;  %v13987_v18 = vpack.c.bf16 %v4133_v37, %v4132_v22 }
 0x326   : > { %v4236_v40 = vpop.f32.mrf.mxu0  ;;  %8149 = vmatmul.msk.bf16.gmra.mxu1 %vm439_vm0, %v13972_v3 }
 0x327   : > { %v13969_v44 = vadd.f32 %v4236_v40, %v13754_v19  ;;  %8175 = vmatmul.msk.bf16.gmra.mxu2 %vm439_vm0, %v4558_v25 }
 0x328   : > { %v4075_v39 = vpop.f32.mrf.mxu3 }
 0x329   : > { %8127 = vmatmul.msk.bf16.gmra.mxu0 %vm439_vm0, %v13964_v53  ;;  %v13979_v42 = vadd.f32 %v4075_v39, %v3897_v29 }
 0x32a   : > { %v4632_v4 = vpop.f32.mrf.mxu2 }
 0x32b   : > { %v4702_v13 = vadd.f32 %v4632_v4, %v4494_v10  ;;  %v4426_v19 = vpop.f32.mrf.mxu1 }
 0x32c   : > { %v4495_v63 = vadd.f32 %v4426_v19, %v13894_v60  ;;  %v4542_v19 = vld [vmem:[#allocation3 + $0xcf] sm:$0xff] }
 0x32d   : > { %8201 = vmatmul.msk.bf16.gmra.mxu3 %vm439_vm0, %v13901_v38 }
 0x32e   : > { %v4238_v33 = vpop.f32.mrf.mxu0 }
 0x32f   : > { %v13982_v47 = vadd.f32 %v4238_v33, %v13761_v43  ;;  %v4332_v43 = vld [vmem:[#allocation3 + $0xb1] sm:$0xff] }
 0x330   : > { %v4840_v23 = vpop.f32.mrf.mxu3  ;;  %v13994_v26 = vpack.c.bf16 %v4333_v55, %v4332_v43 }
 0x331   : > { %v13989_v25 = vadd.f32 %v4840_v23, %v4702_v13 }
 0x332   : > { %v4634_v1 = vpop.f32.mrf.mxu2 }
 0x333   : > { %v4703_v57 = vadd.f32 %v4634_v1, %v4495_v63  ;;  %v4429_v40 = vpop.f32.mrf.mxu1 }
 0x334   : > { %v4496_v38 = vadd.f32 %v4429_v40, %v13904_v41  ;;  %v4543_v41 = vld [vmem:[#allocation3 + $0xd7] sm:$0xff] }
 0x335   : > { %v4560_v56 = vpack.c.bf16 %v4543_v41, %v4542_v19 }
 0x336   : > { %v4241_v29 = vpop.f32.mrf.mxu0  ;;  %8150 = vmatmul.msk.bf16.gmra.mxu1 %vm439_vm0, %v13994_v26 }
 0x337   : > { %v13992_v60 = vadd.f32 %v4241_v29, %v13784_v35  ;;  %8176 = vmatmul.msk.bf16.gmra.mxu2 %vm439_vm0, %v4559_v32  ;;  %v4335_v32 = vld [vmem:[#allocation3 + $0xc9] sm:$0xff] }
 0x338   : > { %v4842_v10 = vpop.f32.mrf.mxu3 }
 0x339   : > { %8128 = vmatmul.msk.bf16.gmra.mxu0 %vm439_vm0, %v13987_v18  ;;  %v14002_v13 = vadd.f32 %v4842_v10, %v4703_v57  ;;  %v4334_v57 = vld [vmem:[#allocation3 + $0xc1] sm:$0xff] }
 0x33a   : > { %v4637_v49 = vpop.f32.mrf.mxu2  ;;  %v14015_v23 = vpack.c.bf16 %v4335_v32, %v4334_v57  ;;  %v4341_v57 = vld [vmem:[#allocation3 + $0xf9] sm:$0xff] }
 0x33b   : > { %v4704_v30 = vadd.f32 %v4637_v49, %v4496_v38  ;;  %v4431_v39 = vpop.f32.mrf.mxu1  ;;  %v4544_v38 = vld [vmem:[#allocation3 + $0xdf] sm:$0xff]  ;;  %v4545_v49 = vld [vmem:[#allocation3 + $0xe7] sm:$0xff] }
 0x33c   : > { %v4497_v33 = vadd.f32 %v4431_v39, %v13917_v2  ;;  %v4750_v2 = vld [vmem:[#allocation3 + $0xd0] sm:$0xff] }
 0x33d   : > { %8202 = vmatmul.msk.bf16.gmra.mxu3 %vm439_vm0, %v13924_v59  ;;  %v4751_v59 = vld [vmem:[#allocation3 + $0xd8] sm:$0xff] }
 0x33e   : > { %v4243_v4 = vpop.f32.mrf.mxu0  ;;  %v4768_v40 = vpack.c.bf16 %v4751_v59, %v4750_v2  ;;  %v4757_v59 = vld [vmem:[#allocation3 + $0x108] sm:$0xff] }
 0x33f   : > { %v14005_v35 = vadd.f32 %v4243_v4, %v13794_v45  ;;  %v4337_v4 = vld [vmem:[#allocation3 + $0xd9] sm:$0xff] }
 0x340   : > { %v4845_v22 = vpop.f32.mrf.mxu3 }
 0x341   : > { %v14010_v1 = vadd.f32 %v4845_v22, %v4704_v30  ;;  %v4561_v30 = vpack.c.bf16 %v4545_v49, %v4544_v38 }
 0x342   : > { %v4639_v63 = vpop.f32.mrf.mxu2 }
 0x343   : > { %v4705_v17 = vadd.f32 %v4639_v63, %v4497_v33 }
 0x346   : > { %v4246_v37 = vpop.f32.mrf.mxu0  ;;  %8151 = vmatmul.msk.bf16.gmra.mxu1 %vm439_vm0, %v14015_v23 }
 0x347   : > { %v14013_v45 = vadd.f32 %v4246_v37, %v13805_v0  ;;  %8177 = vmatmul.msk.bf16.gmra.mxu2 %vm439_vm0, %v4560_v56  ;;  %v4340_v37 = vld [vmem:[#allocation3 + $0xf1] sm:$0xff] }
 0x348   : > { %v4847_v29 = vpop.f32.mrf.mxu3  ;;  %v14074_v2 = vpack.c.bf16 %v4341_v57, %v4340_v37  ;;  %v9327_v37 = vld [vmem:[%s15801_s5 + $0x10] sm:$0xff] }
 0x349   : > { %8219 = vmatmul.msk.bf16.vlgmr.msra.gmra.mxu0 %vm439_vm0, %v13820_v36  ;;  %v14022_v55 = vadd.f32 %v4847_v29, %v4705_v17  ;;  %v4336_v36 = vld [vmem:[#allocation3 + $0xd1] sm:$0xff] }
 0x34a   : > { %v14031_v33 = vpack.c.bf16 %v4337_v4, %v4336_v36 }
 0x34d   : > { %8203 = vmatmul.msk.bf16.gmra.mxu3 %vm439_vm0, %v4768_v40 }
 0x34e   : > { %v4248_v43 = vpop.f32.mrf.mxu0 }
 0x34f   : > { %v14025_v0 = vadd.f32 %v4248_v43, %v13812_v48 }
 0x356   : > { %v4251_v10 = vpop.f32.mrf.mxu0  ;;  %8152 = vmatmul.msk.bf16.gmra.mxu1 %vm439_vm0, %v14031_v33 }
 0x357   : > { %v14029_v39 = vadd.f32 %v4251_v10, %v13826_v61  ;;  %8178 = vmatmul.msk.bf16.gmra.mxu2 %vm439_vm0, %v4561_v30 }
 0x359   : > { %8220 = vmatmul.msk.bf16.gmra.mxu0 %vm439_vm0, %v13839_v28  ;;  %v14052_v28 = vpop.f32.mrf.mxu1 }
 0x35d   : > { %8204 = vmatmul.msk.bf16.gmra.mxu3 %vm439_vm0, %v13964_v53 }
 0x35e   : > { %v4253_v48 = vpop.f32.mrf.mxu0 }
 0x35f   : > { %v14039_v19 = vadd.f32 %v4253_v48, %v13833_v9  ;;  %v14054_v9 = vpop.f32.mrf.mxu2  ;;  %v14101_v48 = vpop.f32.mrf.mxu3 }
 0x361   : > { %v14067_v56 = vpop.f32.mrf.mxu1 }
 0x366   : > { %v4256_v41 = vpop.f32.mrf.mxu0  ;;  %8153 = vmatmul.msk.bf16.gmra.mxu1 %vm439_vm0, %v13767_v8  ;;  %v4549_v8 = vld [vmem:[#allocation3 + $0x107] sm:$0xff] }
 0x367   : > { %v14044_v61 = vadd.f32 %v4256_v41, %v13845_v5  ;;  %8179 = vmatmul.msk.bf16.gmra.mxu2 %vm439_vm0, %v13790_v15  ;;  %v9328_v5 = vld [vmem:[%s15801_s5 + $0x18] sm:$0xff] }
 0x368   : > { %v9332_v15 = vld [vmem:[%s15801_s5 + $0x38] sm:$0xff]  ;;  %5473 = vmatpush.bf16.msra.mxu2 %v9328_v5  ;;  %v14112_v5 = vpop.f32.mrf.mxu3 }
 0x369   : > { %8221 = vmatmul.msk.bf16.gmra.mxu0 %vm439_vm0, %v13860_v6  ;;  %5384 = vmatpush.bf16.msrb.mxu1 %v9332_v15  ;;  %v4548_v6 = vld [vmem:[#allocation3 + $0xff] sm:$0xff]  ;;  %v14081_v40 = vpop.f32.mrf.mxu1 }
 0x36a   : > { %v4563_v17 = vpack.c.bf16 %v4549_v8, %v4548_v6  ;;  %v16265_v8 = vmov 0.0  }
 0x36b   : > { %478 = vst.msk [vmem:[#allocation5 + $0x8] sm:$0xff] %vm476_vm2, %v16265_v8 }
 0x36c   : > { %479 = vst.msk [vmem:[#allocation5 + $0x10] sm:$0xff] %vm476_vm2, %v16265_v8  ;;  %5474 = vmatpush.bf16.msra.mxu2 %v9327_v37 }
 0x36d   : > { %8205 = vmatmul.msk.bf16.gmra.mxu3 %vm439_vm0, %v13987_v18  ;;  %v4756_v18 = vld [vmem:[#allocation3 + $0x100] sm:$0xff]  ;;  %480 = vst.msk [vmem:[#allocation5 + $0x18] sm:$0xff] %vm476_vm2, %v16265_v8 }
 0x36e   : > { %v4258_v63 = vpop.f32.mrf.mxu0  ;;  %v4771_v43 = vpack.c.bf16 %v4757_v59, %v4756_v18  ;;  %481 = vst.msk [vmem:[#allocation5 + $0x20] sm:$0xff] %vm476_vm2, %v16265_v8 }
 0x36f   : > { %v14057_v53 = vadd.f32 %v4258_v63, %v13852_v50  ;;  %v14069_v50 = vpop.f32.mrf.mxu2  ;;  %482 = vst.msk [vmem:[#allocation5 + $0x28] sm:$0xff] %vm476_vm2, %v16265_v8 }
 0x370   : > { %483 = vst.msk [vmem:[#allocation5 + $0x30] sm:$0xff] %vm476_vm2, %v16265_v8 }
 0x371   : > { %484 = vst.msk [vmem:[#allocation5 + $0x38] sm:$0xff] %vm476_vm2, %v16265_v8 }
 0x372   : > { %485 = vst.msk [vmem:[#allocation5 + $0x40] sm:$0xff] %vm476_vm2, %v16265_v8 }
 0x373   : > { %486 = vst.msk [vmem:[#allocation5 + $0x48] sm:$0xff] %vm476_vm2, %v16265_v8 }
 0x374   : > { %487 = vst.msk [vmem:[#allocation5 + $0x50] sm:$0xff] %vm476_vm2, %v16265_v8 }
 0x375   : > { %488 = vst.msk [vmem:[#allocation5 + $0x58] sm:$0xff] %vm476_vm2, %v16265_v8 }
 0x376   : > { %v4261_v22 = vpop.f32.mrf.mxu0  ;;  %8154 = vmatmul.msk.bf16.gmra.mxu1 %vm439_vm0, %v14074_v2  ;;  %489 = vst.msk [vmem:[#allocation5 + $0x60] sm:$0xff] %vm476_vm2, %v16265_v8 }
 0x377   : > { %v14072_v32 = vadd.f32 %v4261_v22, %v13866_v7  ;;  %8180 = vmatmul.msk.bf16.gmra.mxu2 %vm439_vm0, %v4563_v17  ;;  %v14083_v38 = vpop.f32.mrf.mxu2  ;;  %490 = vst.msk [vmem:[#allocation5 + $0x68] sm:$0xff] %vm476_vm2, %v16265_v8 }
 0x378   : > { %491 = vst.msk [vmem:[#allocation5 + $0x70] sm:$0xff] %vm476_vm2, %v16265_v8 }
 0x379   : > { %8222 = vmatmul.msk.bf16.gmra.mxu0 %vm439_vm0, %v13882_v16  ;;  %v14092_v16 = vpop.f32.mrf.mxu1  ;;  %492 = vst.msk [vmem:[#allocation5 + $0x78] sm:$0xff] %vm476_vm2, %v16265_v8 }
 0x37a   : > { %493 = vst.msk [vmem:[#allocation5 + $0x80] sm:$0xff] %vm476_vm2, %v16265_v8 }
 0x37b   : > { %494 = vst.msk [vmem:[#allocation5 + $0x88] sm:$0xff] %vm476_vm2, %v16265_v8 }
 0x37c   : > { %495 = vst.msk [vmem:[#allocation5 + $0x90] sm:$0xff] %vm476_vm2, %v16265_v8 }
 0x37d   : > { %8206 = vmatmul.msk.bf16.gmra.mxu3 %vm439_vm0, %v4771_v43  ;;  %496 = vst.msk [vmem:[#allocation5 + $0x98] sm:$0xff] %vm476_vm2, %v16265_v8 }
 0x37e   : > { %v4263_v29 = vpop.f32.mrf.mxu0  ;;  %497 = vst.msk [vmem:[#allocation5 + $0xa0] sm:$0xff] %vm476_vm2, %v16265_v8  ;;  %v9330_v8 = vld [vmem:[%s15801_s5 + $0x28] sm:$0xff] }
 0x37f   : > { %v14086_v7 = vadd.f32 %v4263_v29, %v13873_v20  ;;  %v14094_v10 = vpop.f32.mrf.mxu2 }
 0x381   : > { %v14103_v20 = vpop.f32.mrf.mxu1 }
 0x386   : > { %v4266_v49 = vpop.f32.mrf.mxu0 }
 0x387   : > { %v14090_v30 = vadd.f32 %v4266_v49, %v13891_v11  ;;  %v14105_v41 = vpop.f32.mrf.mxu2 }
 0x389   : > { %16261 = vst [vmem:[#allocation10_spill] sm:$0xff] %v14090_v30  ;;  %8223 = vmatmul.msk.bf16.gmra.mxu0 %vm439_vm0, %v13907_v58  ;;  %v14114_v58 = vpop.f32.mrf.mxu1 }
 0x38e   : > { %v4268_v36 = vpop.f32.mrf.mxu0 }
 0x38f   : > { %v14099_v4 = vadd.f32 %v4268_v36, %v13899_v52  ;;  %v14116_v15 = vpop.f32.mrf.mxu2 }
 0x391   : > { %16262 = vst [vmem:[#allocation19_spill] sm:$0xff] %v14099_v4 }
 0x396   : > { %v4271_v63 = vpop.f32.mrf.mxu0 }
 0x397   : > { %v14108_v11 = vadd.f32 %v4271_v63, %v13914_v31  ;;  %v14131_v31 = vpop.f32.mrf.mxu3  ;;  %v14137_v17 = vpop.f32.mrf.mxu2 }
 0x399   : > { %16263 = vst [vmem:[#allocation38_spill] sm:$0xff] %v14108_v11  ;;  %8224 = vmatmul.msk.bf16.gmra.mxu0 %vm439_vm0, %v13931_v12  ;;  %v14135_v12 = vpop.f32.mrf.mxu1 }
 0x39e   : > { %v4273_v52 = vpop.f32.mrf.mxu0 }
 0x39f   : > { %v14119_v6 = vadd.f32 %v4273_v52, %v13922_v24  ;;  %v14171_v18 = vpop.f32.mrf.mxu3  ;;  %v14177_v29 = vpop.f32.mrf.mxu2 }
 0x3a1   : > { %16264 = vst [vmem:[#allocation57_spill] sm:$0xff] %v14119_v6  ;;  %v14175_v59 = vpop.f32.mrf.mxu1  ;;  %v9336_v6 = vld [vmem:[%s15801_s5 + $0x58] sm:$0xff] }
 0x3a2   : > { %5592 = vmatpush.bf16.msra.mxu3 %v9336_v6  ;;  %v9334_v6 = vld [vmem:[%s15801_s5 + $0x48] sm:$0xff] }
 0x3a6   : > { %v4276_v24 = vpop.f32.mrf.mxu0 }
 0x3a7   : > { %v14140_v22 = vadd.f32 %v4276_v24, %v13937_v27  ;;  %v9331_v27 = vld [vmem:[%s15801_s5 + $0x30] sm:$0xff]  ;;  %v14192_v49 = vpop.f32.mrf.mxu3  ;;  %v14196_v63 = vpop.f32.mrf.mxu2 }
 0x3a8   : > { %5385 = vmatpush.bf16.msrb.mxu1 %v9331_v27 }
 0x3a9   : > { %16266 = vst [vmem:[#allocation58_spill] sm:$0xff] %v14140_v22  ;;  %8225 = vmatmul.msk.bf16.gmra.mxu0 %vm439_vm0, %v13952_v14  ;;  %v14194_v36 = vpop.f32.mrf.mxu1 }
 0x3ac   : > { %5386 = vmatpush.bf16.msrb.mxu1 %v9330_v8  ;;  %v5306_v8 = vld [vmem:[#allocation5 + $0x18] sm:$0xff] }
 0x3ae   : > { %v4278_v14 = vpop.f32.mrf.mxu0 }
 0x3af   : > { %v14167_v57 = vadd.f32 %v4278_v14, %v13945_v51  ;;  %v14207_v37 = vpop.f32.mrf.mxu3  ;;  %v14211_v27 = vpop.f32.mrf.mxu2 }
 0x3b1   : > { %16267 = vst [vmem:[#allocation59_spill] sm:$0xff] %v14167_v57  ;;  %v5277_v57 = vld [vmem:[#allocation5 + $0x17] sm:$0xff] }
 0x3b6   : > { %v4281_v51 = vpop.f32.mrf.mxu0 }
 0x3b7   : > { %v14188_v43 = vadd.f32 %v4281_v51, %v13966_v46  ;;  %v9326_v46 = vld [vmem:[%s15801_s5 + $0x8] sm:$0xff]  ;;  %v9325_v51 = vld [vmem:[%s15801_s5] sm:$0xff] }
 0x3b8   : > { %5475 = vmatpush.bf16.msra.mxu2 %v9326_v46  ;;  %v5276_v46 = vld [vmem:[#allocation5 + $0xf] sm:$0xff] }
 0x3b9   : > { %16268 = vst [vmem:[#allocation60_spill] sm:$0xff] %v14188_v43  ;;  %8226 = vmatmul.msk.bf16.gmra.mxu0 %vm439_vm0, %v13972_v3  ;;  %v14209_v3 = vpop.f32.mrf.mxu1  ;;  %v5290_v22 = vpack.c.bf16 %v5277_v57, %v5276_v46  ;;  %v4498_v46 = vadd.f32 %v14052_v28, %v13927_v62  ;;  %v3330_v62 = vld [vmem:[%s15800_s4] sm:$0x1] }
 0x3ba   : > { %v14273_v30 = vperm.slane %v3330_v62, 0 }
 0x3bc   : > { %5476 = vmatpush.bf16.msra.mxu2 %v9325_v51 }
 0x3be   : > { %v4283_v52 = vpop.f32.mrf.mxu0 }
 0x3bf   : > { %v14199_v24 = vadd.f32 %v4283_v52, %v13979_v42  ;;  %v9329_v42 = vld [vmem:[%s15801_s5 + $0x20] sm:$0xff]  ;;  %8280 = vmatmul.msk.bf16.vlgmr.msra.gmra.mxu2 %vm476_vm2, %v5290_v22 }
 0x3c0   : > { %5387 = vmatpush.bf16.msrb.mxu1 %v9329_v42  ;;  %v9335_v42 = vld [vmem:[%s15801_s5 + $0x50] sm:$0xff] }
 0x3c1   : > { %16269 = vst [vmem:[#allocation61_spill] sm:$0xff] %v14199_v24  ;;  %v5305_v24 = vld [vmem:[#allocation5 + $0x10] sm:$0xff]  ;;  %5593 = vmatpush.bf16.msra.mxu3 %v9335_v42 }
 0x3c2   : > { %v5319_v43 = vpack.c.bf16 %v5306_v8, %v5305_v24  ;;  %v14235_v24 = vpop.f32.mrf.mxu2 }
 0x3c4   : > { %8257 = vmatmul.msk.bf16.vlgmr.msrb.gmra.mxu1 %vm476_vm2, %v5319_v43  ;;  %v9333_v43 = vld [vmem:[%s15801_s5 + $0x40] sm:$0xff] }
 0x3c5   : > { %5594 = vmatpush.bf16.msra.mxu3 %v9334_v6 }
 0x3c6   : > { %v5048_v14 = vpop.f32.mrf.mxu0 }
 0x3c7   : > { %v5118_v52 = vadd.f32 %v5048_v14, %v13989_v25  ;;  %v14228_v25 = vpop.f32.mrf.mxu3 }
 0x3c9   : > { %5146 = vst.msk [vmem:[#allocation4] sm:$0xff] %vm476_vm2, %v5118_v52  ;;  %8227 = vmatmul.msk.bf16.gmra.mxu0 %vm439_vm0, %v13994_v26  ;;  %v14233_v26 = vpop.f32.mrf.mxu1  ;;  %5595 = vmatpush.bf16.msra.mxu3 %v9333_v43 }
 0x3ce   : > { %v5050_v14 = vpop.f32.mrf.mxu0 }
 0x3cf   : > { %v5119_v57 = vadd.f32 %v5050_v14, %v14002_v13  ;;  %v14246_v52 = vpop.f32.mrf.mxu3  ;;  %v14250_v13 = vpop.f32.mrf.mxu2 }
 0x3d1   : > { %5147 = vst.msk [vmem:[#allocation4 + $0x8] sm:$0xff] %vm476_vm2, %v5119_v57  ;;  %v14248_v8 = vpop.f32.mrf.mxu1 }
 0x3d6   : > { %v5053_v22 = vpop.f32.mrf.mxu0 }
 0x3d7   : > { %v5120_v51 = vadd.f32 %v5053_v22, %v14010_v1  ;;  %v4706_v1 = vadd.f32 %v14054_v9, %v4498_v46  ;;  %v14260_v57 = vpop.f32.mrf.mxu3  ;;  %v14264_v22 = vpop.f32.mrf.mxu2 }
 0x3d8   : > { %v5176_v28 = vld [vmem:[#allocation4 + $0x1] ss:$2 sm:$0x7f] }
 0x3d9   : > { %5148 = vst.msk [vmem:[#allocation4 + $0x10] sm:$0xff] %vm476_vm2, %v5120_v51  ;;  %8228 = vmatmul.msk.bf16.gmra.mxu0 %vm439_vm0, %v14015_v23  ;;  %v14262_v6 = vpop.f32.mrf.mxu1  ;;  %v4914_v43 = vadd.f32 %v14101_v48, %v4706_v1  ;;  %v4499_v23 = vadd.f32 %v14067_v56, %v13940_v34  ;;  %v4500_v1 = vadd.f32 %v14081_v40, %v13948_v21 }
 0x3da   : > { %v4501_v40 = vadd.f32 %v14092_v16, %v13959_v54 }
 0x3de   : > { %v5055_v14 = vpop.f32.mrf.mxu0 }
 0x3df   : > { %v5121_v42 = vadd.f32 %v5055_v14, %v14022_v55  ;;  %v5174_v55 = vld [vmem:[#allocation4] ss:$2 sm:$0x7f]  ;;  %v14278_v56 = vpop.f32.mrf.mxu3 }
 0x3e0   : > { %v5177_v11 = vmax.f32 %v5174_v55, %v5176_v28 }
 0x3e1   : > { %5149 = vst.msk [vmem:[#allocation4 + $0x18] sm:$0xff] %vm476_vm2, %v5121_v42  ;;  %v4707_v42 = vadd.f32 %v14069_v50, %v4499_v23  ;;  %v14285_v50 = vpop.f32.mrf.mxu2 }
 0x3e3   : > { %v4915_v48 = vadd.f32 %v14112_v5, %v4707_v42  ;;  %v5308_v42 = vld [vmem:[#allocation5 + $0x28] sm:$0xff] }
 0x3e6   : > { %v5058_v9 = vpop.f32.mrf.mxu0 }
 0x3e7   : > { %v5122_v51 = vadd.f32 %v5058_v9, %v4914_v43  ;;  %v14283_v43 = vpop.f32.mrf.mxu1  ;;  %v14294_v9 = vpop.f32.mrf.mxu3 }
 0x3e8   : > { %v5179_v46 = vld [vmem:[#allocation4 + $0x10] ss:$2 sm:$0x7f]  ;;  %v5181_v14 = vld [vmem:[#allocation4 + $0x11] ss:$2 sm:$0x7f] }
 0x3e9   : > { %v5182_v4 = vmax.f32 %v5179_v46, %v5181_v14  ;;  %5150 = vst.msk [vmem:[#allocation4 + $0x20] sm:$0xff] %vm476_vm2, %v5122_v51  ;;  %8229 = vmatmul.msk.bf16.gmra.mxu0 %vm439_vm0, %v14031_v33  ;;  %v4708_v33 = vadd.f32 %v14083_v38, %v4500_v1  ;;  %v14298_v14 = vpop.f32.mrf.mxu2  ;;  %v4709_v1 = vadd.f32 %v14094_v10, %v4501_v40 }
 0x3eb   : > { %v5183_v34 = vmax.f32 %v5177_v11, %v5182_v4  ;;  %v4960_v4 = vld [vmem:[#allocation3 + $0xe1] sm:$0xff]  ;;  %v4961_v11 = vld [vmem:[#allocation3 + $0xe9] sm:$0xff]  ;;  %v4916_v21 = vadd.f32 %v14131_v31, %v4708_v33  ;;  %v4917_v10 = vadd.f32 %v14171_v18, %v4709_v1  ;;  %v4502_v33 = vadd.f32 %v14103_v20, %v13969_v44 }
 0x3ec   : > { %v4977_v5 = vpack.c.bf16 %v4961_v11, %v4960_v4  ;;  %v9350_v44 = vld [vmem:[%s15801_s5 + $0xc8] sm:$0xff]  ;;  %v4503_v18 = vadd.f32 %v14114_v58, %v13982_v47  ;;  %v9349_v1 = vld [vmem:[%s15801_s5 + $0xc0] sm:$0xff] }
 0x3ed   : > { %v5187_v23 = vadd.f32 %v14273_v30, %v5183_v34  ;;  %v5279_v34 = vld [vmem:[#allocation5 + $0x27] sm:$0xff] }
 0x3ee   : > { %v5060_v62 = vpop.f32.mrf.mxu0 }
 0x3ef   : > { %v5188_v55 = vmax.f32 %v5187_v23, 0.0  ;;  %v5123_v28 = vadd.f32 %v5060_v62, %v4915_v48  ;;  %v14296_v46 = vpop.f32.mrf.mxu1  ;;  %v5513_v48 = vld [vmem:[#allocation5 + $0x11] sm:$0xff]  ;;  %v14321_v40 = vpop.f32.mrf.mxu3 }
 0x3f1   : > { %5151 = vst.msk [vmem:[#allocation4 + $0x28] sm:$0xff] %vm476_vm2, %v5123_v28  ;;  %v9352_v28 = vld [vmem:[%s15801_s5 + $0xd8] sm:$0xff] }
 0x3f2   : > { %5190 = vst.msk [vmem:[#allocation5 + $0x20] sm:$0x7f] %vm5189_vm3, %v5188_v55  ;;  %6124 = vmatpush.bf16.msrb.mxu0 %v9352_v28 }
 0x3f6   : > { %v5063_v51 = vpop.f32.mrf.mxu0 }
 0x3f7   : > { %v5124_v38 = vadd.f32 %v5063_v51, %v4916_v21  ;;  %v9351_v21 = vld [vmem:[%s15801_s5 + $0xd0] sm:$0xff]  ;;  %v14324_v51 = vpop.f32.mrf.mxu1  ;;  %v14342_v47 = vpop.f32.mrf.mxu3 }
 0x3f8   : > { %6125 = vmatpush.bf16.msrb.mxu0 %v9351_v21 }
 0x3f9   : > { %5152 = vst.msk [vmem:[#allocation4 + $0x30] sm:$0xff] %vm476_vm2, %v5124_v38  ;;  %8230 = vmatmul.msk.bf16.gmra.mxu0 %vm439_vm0, %v4977_v5  ;;  %v5307_v31 = vld [vmem:[#allocation5 + $0x20] sm:$0xff]  ;;  %v4710_v5 = vadd.f32 %v14105_v41, %v4502_v33  ;;  %v14326_v38 = vpop.f32.mrf.mxu2 }
 0x3fa   : > { %v5278_v54 = vld [vmem:[#allocation5 + $0x1f] sm:$0xff]  ;;  %v14303_v23 = vpack.c.bf16 %v5308_v42, %v5307_v31 }
 0x3fb   : > { %v5514_v16 = vld [vmem:[#allocation5 + $0x19] sm:$0xff]  ;;  %v14305_v62 = vpack.c.bf16 %v5279_v34, %v5278_v54  ;;  %v4918_v20 = vadd.f32 %v14192_v49, %v4710_v5  ;;  %v5194_v34 = vld [vmem:[#allocation4 + $0x21] ss:$2 sm:$0x7f] }
 0x3fc   : > { %v5527_v55 = vpack.c.bf16 %v5514_v16, %v5513_v48  ;;  %8258 = vmatmul.msk.bf16.gmra.mxu1 %vm476_vm2, %v14303_v23  ;;  %6126 = vmatpush.bf16.msrb.mxu0 %v9350_v44  ;;  %v5192_v42 = vld [vmem:[#allocation4 + $0x20] ss:$2 sm:$0x7f]  ;;  %v4711_v16 = vadd.f32 %v14116_v15, %v4503_v18  ;;  %v4504_v15 = vadd.f32 %v14135_v12, %v13992_v60 }
 0x3fd   : > { %8281 = vmatmul.msk.bf16.gmra.mxu2 %vm476_vm2, %v14305_v62  ;;  %v4964_v44 = vld [vmem:[#allocation3 + $0x101] sm:$0xff]  ;;  %v4505_v60 = vadd.f32 %v14175_v59, %v14005_v35 }
 0x3fe   : > { %8311 = vmatmul.msk.bf16.vlgmr.msra.gmra.mxu3 %vm476_vm2, %v5527_v55  ;;  %v5065_v4 = vpop.f32.mrf.mxu0  ;;  %v5195_v55 = vmax.f32 %v5192_v42, %v5194_v34  ;;  %v4919_v33 = vadd.f32 %v14207_v37, %v4711_v16 }
 0x3ff   : > { %v5125_v11 = vadd.f32 %v5065_v4, %v4917_v10  ;;  %v14344_v58 = vpop.f32.mrf.mxu1  ;;  %v14355_v18 = vpop.f32.mrf.mxu3 }
 0x400   : > { %6127 = vmatpush.bf16.msrb.mxu0 %v9349_v1 }
 0x401   : > { %5153 = vst.msk [vmem:[#allocation4 + $0x38] sm:$0xff] %vm476_vm2, %v5125_v11  ;;  %v14346_v49 = vpop.f32.mrf.mxu2 }
 0x406   : > { %v5068_v41 = vpop.f32.mrf.mxu0 }
 0x407   : > { %v5126_v48 = vadd.f32 %v5068_v41, %v4918_v20  ;;  %v4965_v20 = vld [vmem:[#allocation3 + $0x109] sm:$0xff]  ;;  %v14360_v12 = vpop.f32.mrf.mxu1 }
 0x408   : > { %v5197_v31 = vld [vmem:[#allocation4 + $0x30] ss:$2 sm:$0x7f]  ;;  %v5199_v54 = vld [vmem:[#allocation4 + $0x31] ss:$2 sm:$0x7f]  ;;  %v4979_v34 = vpack.c.bf16 %v4965_v20, %v4964_v44 }
 0x409   : > { %v5200_v28 = vmax.f32 %v5197_v31, %v5199_v54  ;;  %5154 = vst.msk [vmem:[#allocation4 + $0x40] sm:$0xff] %vm476_vm2, %v5126_v48  ;;  %8231 = vmatmul.msk.bf16.gmra.mxu0 %vm439_vm0, %v14074_v2  ;;  %v4712_v2 = vadd.f32 %v14137_v17, %v4504_v15  ;;  %v14362_v42 = vpop.f32.mrf.mxu2  ;;  %v5310_v17 = vld [vmem:[#allocation5 + $0x38] sm:$0xff]  ;;  %v5515_v31 = vld [vmem:[#allocation5 + $0x21] sm:$0xff] }
 0x40a   : > { %v5281_v48 = vld [vmem:[#allocation5 + $0x37] sm:$0xff] }
 0x40b   : > { %v5201_v10 = vmax.f32 %v5195_v55, %v5200_v28  ;;  %v4920_v37 = vadd.f32 %v14228_v25, %v4712_v2  ;;  %v4713_v28 = vadd.f32 %v14177_v29, %v4505_v60 }
 0x40d   : > { %v5202_v4 = vadd.f32 %v5201_v10, %v14273_v30  ;;  %v4921_v29 = vadd.f32 %v14246_v52, %v4713_v28  ;;  %v4506_v10 = vadd.f32 %v14194_v36, %v14013_v45  ;;  %v4507_v52 = vadd.f32 %v14209_v3, %v14025_v0 }
 0x40e   : > { %v5070_v11 = vpop.f32.mrf.mxu0 }
 0x40f   : > { %v5203_v21 = vmax.f32 %v5202_v4, 0.0  ;;  %v5127_v5 = vadd.f32 %v5070_v11, %v4919_v33  ;;  %v14382_v33 = vpop.f32.mrf.mxu3  ;;  %v14384_v4 = vpop.f32.mrf.mxu1 }
 0x411   : > { %5204 = vst.msk [vmem:[#allocation5 + $0x30] sm:$0x7f] %vm5189_vm3, %v5203_v21  ;;  %v14386_v11 = vpop.f32.mrf.mxu2 }
 0x412   : > { %5155 = vst.msk [vmem:[#allocation4 + $0x48] sm:$0xff] %vm476_vm2, %v5127_v5  ;;  %v4714_v5 = vadd.f32 %v14196_v63, %v4506_v10 }
 0x414   : > { %v4922_v2 = vadd.f32 %v14260_v57, %v4714_v5  ;;  %v4508_v57 = vadd.f32 %v14233_v26, %v14029_v39  ;;  %v4509_v39 = vadd.f32 %v14248_v8, %v14039_v19 }
 0x416   : > { %v5073_v41 = vpop.f32.mrf.mxu0 }
 0x417   : > { %v5128_v1 = vadd.f32 %v5073_v41, %v4920_v37  ;;  %v14393_v37 = vpop.f32.mrf.mxu3  ;;  %v4715_v41 = vadd.f32 %v14211_v27, %v4507_v52 }
 0x418   : > { %v5309_v54 = vld [vmem:[#allocation5 + $0x30] sm:$0xff] }
 0x419   : > { %v5280_v16 = vld [vmem:[#allocation5 + $0x2f] sm:$0xff]  ;;  %8232 = vmatmul.msk.bf16.gmra.mxu0 %vm439_vm0, %v4979_v34  ;;  %v14366_v25 = vpack.c.bf16 %v5310_v17, %v5309_v54  ;;  %5156 = vst.msk [vmem:[#allocation4 + $0x50] sm:$0xff] %vm476_vm2, %v5128_v1  ;;  %v5206_v44 = vld [vmem:[#allocation4 + $0x40] ss:$2 sm:$0x7f]  ;;  %v14396_v17 = vpop.f32.mrf.mxu1  ;;  %v14398_v63 = vpop.f32.mrf.mxu2  ;;  %v4923_v3 = vadd.f32 %v14278_v56, %v4715_v41 }
 0x41a   : > { %v5516_v55 = vld [vmem:[#allocation5 + $0x29] sm:$0xff]  ;;  %v14368_v35 = vpack.c.bf16 %v5281_v48, %v5280_v16 }
 0x41b   : > { %v14370_v59 = vpack.c.bf16 %v5516_v55, %v5515_v31  ;;  %8259 = vmatmul.msk.bf16.gmra.mxu1 %vm476_vm2, %v14366_v25  ;;  %v5208_v20 = vld [vmem:[#allocation4 + $0x41] ss:$2 sm:$0x7f]  ;;  %v4716_v55 = vadd.f32 %v14235_v24, %v4508_v57  ;;  %v5517_v24 = vld [vmem:[#allocation5 + $0x31] sm:$0xff] }
 0x41c   : > { %8282 = vmatmul.msk.bf16.gmra.mxu2 %vm476_vm2, %v14368_v35  ;;  %v5209_v48 = vmax.f32 %v5206_v44, %v5208_v20  ;;  %v4717_v20 = vadd.f32 %v14250_v13, %v4509_v39  ;;  %v4510_v13 = vadd.f32 %v14262_v6, %v14044_v61 }
 0x41d   : > { %8312 = vmatmul.msk.bf16.gmra.mxu3 %vm476_vm2, %v14370_v59  ;;  %v4924_v56 = vadd.f32 %v14294_v9, %v4716_v55 }
 0x41e   : > { %v5075_v15 = vpop.f32.mrf.mxu0  ;;  %v4925_v8 = vadd.f32 %v14321_v40, %v4717_v20  ;;  %v5285_v20 = vld [vmem:[#allocation5 + $0x57] sm:$0xff] }
 0x41f   : > { %v5129_v21 = vadd.f32 %v5075_v15, %v4921_v29  ;;  %v14409_v28 = vpop.f32.mrf.mxu3  ;;  %v5312_v15 = vld [vmem:[#allocation5 + $0x48] sm:$0xff] }
 0x421   : > { %5157 = vst.msk [vmem:[#allocation4 + $0x58] sm:$0xff] %vm476_vm2, %v5129_v21  ;;  %v14412_v29 = vpop.f32.mrf.mxu1  ;;  %v14414_v10 = vpop.f32.mrf.mxu2  ;;  %v5283_v21 = vld [vmem:[#allocation5 + $0x47] sm:$0xff] }
 0x426   : > { %v5078_v45 = vpop.f32.mrf.mxu0 }
 0x427   : > { %v5130_v36 = vadd.f32 %v5078_v45, %v4922_v2  ;;  %v14431_v19 = vpop.f32.mrf.mxu3 }
 0x428   : > { %v5211_v60 = vld [vmem:[#allocation4 + $0x50] ss:$2 sm:$0x7f]  ;;  %v5213_v34 = vld [vmem:[#allocation4 + $0x51] ss:$2 sm:$0x7f] }
 0x429   : > { %v5214_v1 = vmax.f32 %v5211_v60, %v5213_v34  ;;  %5158 = vst.msk [vmem:[#allocation4 + $0x60] sm:$0xff] %vm476_vm2, %v5130_v36  ;;  %8435 = vmatmul.msk.bf16.vlgmr.msrb.gmra.mxu0 %vm476_vm2, %v14368_v35  ;;  %v14440_v9 = vpop.f32.mrf.mxu1  ;;  %v14442_v34 = vpop.f32.mrf.mxu2 }
 0x42b   : > { %v5215_v0 = vmax.f32 %v5209_v48, %v5214_v1  ;;  %v4718_v1 = vadd.f32 %v14264_v22, %v4510_v13 }
 0x42d   : > { %v5216_v31 = vadd.f32 %v5215_v0, %v14273_v30  ;;  %v4926_v0 = vadd.f32 %v14342_v47, %v4718_v1 }
 0x42e   : > { %v5080_v27 = vpop.f32.mrf.mxu0 }
 0x42f   : > { %v5217_v54 = vmax.f32 %v5216_v31, 0.0  ;;  %v5131_v16 = vadd.f32 %v5080_v27, %v4923_v3  ;;  %v4511_v3 = vadd.f32 %v14283_v43, %v14057_v53  ;;  %v14449_v57 = vpop.f32.mrf.mxu3  ;;  %v4512_v43 = vadd.f32 %v14296_v46, %v14072_v32 }
 0x430   : > { %v4513_v32 = vadd.f32 %v14324_v51, %v14086_v7  ;;  %v9344_v51 = vld [vmem:[%s15801_s5 + $0x98] sm:$0xff] }
 0x431   : > { %5218 = vst.msk [vmem:[#allocation5 + $0x40] sm:$0x7f] %vm5189_vm3, %v5217_v54  ;;  %v14451_v6 = vpop.f32.mrf.mxu1  ;;  %v14453_v27 = vpop.f32.mrf.mxu2  ;;  %v4719_v22 = vadd.f32 %v14285_v50, %v4511_v3  ;;  %5858 = vmatpush.bf16.msrb.mxu2 %v9344_v51 }
 0x432   : > { %5159 = vst.msk [vmem:[#allocation4 + $0x68] sm:$0xff] %vm476_vm2, %v5131_v16  ;;  %v4721_v1 = vadd.f32 %v14326_v38, %v4513_v32  ;;  %v9340_v38 = vld [vmem:[%s15801_s5 + $0x78] sm:$0xff] }
 0x433   : > { %v4927_v53 = vadd.f32 %v14355_v18, %v4719_v22  ;;  %5725 = vmatpush.bf16.msra.mxu1 %v9340_v38  ;;  %v5316_v38 = vld [vmem:[#allocation5 + $0x68] sm:$0xff] }
 0x436   : > { %v5083_v26 = vpop.f32.mrf.mxu0 }
 0x437   : > { %v5132_v5 = vadd.f32 %v5083_v26, %v4924_v56 }
 0x438   : > { %v5311_v2 = vld [vmem:[#allocation5 + $0x40] sm:$0xff] }
 0x439   : > { %v5282_v52 = vld [vmem:[#allocation5 + $0x3f] sm:$0xff]  ;;  %v14420_v45 = vpack.c.bf16 %v5312_v15, %v5311_v2  ;;  %5160 = vst.msk [vmem:[#allocation4 + $0x70] sm:$0xff] %vm476_vm2, %v5132_v5  ;;  %v4720_v2 = vadd.f32 %v14298_v14, %v4512_v43  ;;  %v14464_v50 = vpop.f32.mrf.mxu1  ;;  %v16271_v43 = vld [vmem:[#allocation19_spill] sm:$0xff] }
 0x43a   : > { %v5518_v44 = vld [vmem:[#allocation5 + $0x39] sm:$0xff]  ;;  %v14422_v36 = vpack.c.bf16 %v5283_v21, %v5282_v52  ;;  %v5222_v31 = vld [vmem:[#allocation4 + $0x61] ss:$2 sm:$0x7f]  ;;  %v14466_v52 = vpop.f32.mrf.mxu2 }
 0x43b   : > { %v14424_v60 = vpack.c.bf16 %v5518_v44, %v5517_v24  ;;  %8260 = vmatmul.msk.bf16.gmra.mxu1 %vm476_vm2, %v14420_v45  ;;  %v5220_v40 = vld [vmem:[#allocation4 + $0x60] ss:$2 sm:$0x7f]  ;;  %v14461_v24 = vpop.f32.mrf.mxu3  ;;  %v4928_v18 = vadd.f32 %v14382_v33, %v4720_v2  ;;  %v5314_v44 = vld [vmem:[#allocation5 + $0x58] sm:$0xff] }
 0x43c   : > { %8283 = vmatmul.msk.bf16.gmra.mxu2 %vm476_vm2, %v14422_v36  ;;  %8436 = vmatmul.msk.bf16.gmra.mxu0 %vm476_vm2, %v14422_v36  ;;  %v5223_v56 = vmax.f32 %v5220_v40, %v5222_v31  ;;  %v5519_v13 = vld [vmem:[#allocation5 + $0x41] sm:$0xff] }
 0x43d   : > { %8313 = vmatmul.msk.bf16.gmra.mxu3 %vm476_vm2, %v14424_v60 }
 0x43e   : > { %v5085_v41 = vpop.f32.mrf.mxu0 }
 0x43f   : > { %v5133_v48 = vadd.f32 %v5085_v41, %v4925_v8 }
 0x441   : > { %5161 = vst.msk [vmem:[#allocation4 + $0x78] sm:$0xff] %vm476_vm2, %v5133_v48  ;;  %v5389_v33 = vpop.f32.mrf.mxu1 }
 0x442   : > { %v5478_v31 = vpop.f32.mrf.mxu2 }
 0x443   : > { %v14483_v7 = vadd.f32 %v5478_v31, %v5389_v33 }
 0x446   : > { %v5088_v61 = vpop.f32.mrf.mxu0 }
 0x447   : > { %v5134_v54 = vadd.f32 %v5088_v61, %v4926_v0  ;;  %v14480_v61 = vpop.f32.mrf.mxu3 }
 0x448   : > { %v5225_v16 = vld [vmem:[#allocation4 + $0x70] ss:$2 sm:$0x7f]  ;;  %v5227_v55 = vld [vmem:[#allocation4 + $0x71] ss:$2 sm:$0x7f] }
 0x449   : > { %v5228_v39 = vmax.f32 %v5225_v16, %v5227_v55  ;;  %5162 = vst.msk [vmem:[#allocation4 + $0x80] sm:$0xff] %vm476_vm2, %v5134_v54  ;;  %v4929_v54 = vadd.f32 %v14393_v37, %v4721_v1  ;;  %v16270_v16 = vld [vmem:[#allocation10_spill] sm:$0xff]  ;;  %v5391_v33 = vpop.f32.mrf.mxu1 }
 0x44a   : > { %v4514_v55 = vadd.f32 %v14344_v58, %v16270_v16  ;;  %v5480_v31 = vpop.f32.mrf.mxu2  ;;  %v16276_v33 = vld [vmem:[#allocation60_spill] sm:$0xff] }
 0x44b   : > { %v5229_v47 = vmax.f32 %v5223_v56, %v5228_v39 }
 0x44c   : > { %v4722_v39 = vadd.f32 %v14346_v49, %v4514_v55 }
 0x44d   : > { %v5230_v26 = vadd.f32 %v5229_v47, %v14273_v30 }
 0x44e   : > { %v5090_v15 = vpop.f32.mrf.mxu0 }
 0x44f   : > { %v5231_v21 = vmax.f32 %v5230_v26, 0.0  ;;  %v5135_v5 = vadd.f32 %v5090_v15, %v4927_v53  ;;  %v14504_v47 = vpop.f32.mrf.mxu3  ;;  %v4930_v53 = vadd.f32 %v14409_v28, %v4722_v39  ;;  %v4515_v26 = vadd.f32 %v14360_v12, %v16271_v43 }
 0x451   : > { %5232 = vst.msk [vmem:[#allocation5 + $0x50] sm:$0x7f] %vm5189_vm3, %v5231_v21 }
 0x452   : > { %5163 = vst.msk [vmem:[#allocation4 + $0x88] sm:$0xff] %vm476_vm2, %v5135_v5 }
 0x456   : > { %v5093_v46 = vpop.f32.mrf.mxu0 }
 0x457   : > { %v5136_v8 = vadd.f32 %v5093_v46, %v4928_v18  ;;  %v4723_v18 = vadd.f32 %v14362_v42, %v4515_v26  ;;  %v9343_v42 = vld [vmem:[%s15801_s5 + $0x90] sm:$0xff] }
 0x458   : > { %v5313_v41 = vld [vmem:[#allocation5 + $0x50] sm:$0xff]  ;;  %5859 = vmatpush.bf16.msrb.mxu2 %v9343_v42  ;;  %v9337_v42 = vld [vmem:[%s15801_s5 + $0x60] sm:$0xff] }
 0x459   : > { %v5284_v14 = vld [vmem:[#allocation5 + $0x4f] sm:$0xff]  ;;  %v14474_v0 = vpack.c.bf16 %v5314_v44, %v5313_v41  ;;  %5164 = vst.msk [vmem:[#allocation4 + $0x90] sm:$0xff] %vm476_vm2, %v5136_v8  ;;  %v5234_v15 = vld [vmem:[#allocation4 + $0x80] ss:$2 sm:$0x7f]  ;;  %v4931_v44 = vadd.f32 %v14431_v19, %v4723_v18  ;;  %v14515_v8 = vpop.f32.mrf.mxu3 }
 0x45a   : > { %v5520_v48 = vld [vmem:[#allocation5 + $0x49] sm:$0xff]  ;;  %v14476_v3 = vpack.c.bf16 %v5285_v20, %v5284_v14  ;;  %v16273_v19 = vld [vmem:[#allocation57_spill] sm:$0xff]  ;;  %v5521_v16 = vld [vmem:[#allocation5 + $0x51] sm:$0xff] }
 0x45b   : > { %v14478_v40 = vpack.c.bf16 %v5520_v48, %v5519_v13  ;;  %8261 = vmatmul.msk.bf16.gmra.mxu1 %vm476_vm2, %v14474_v0  ;;  %v5236_v37 = vld [vmem:[#allocation4 + $0x81] ss:$2 sm:$0x7f]  ;;  %v4517_v1 = vadd.f32 %v14396_v17, %v16273_v19  ;;  %v9339_v17 = vld [vmem:[%s15801_s5 + $0x70] sm:$0xff] }
 0x45c   : > { %8284 = vmatmul.msk.bf16.gmra.mxu2 %vm476_vm2, %v14476_v3  ;;  %8437 = vmatmul.msk.bf16.gmra.mxu0 %vm476_vm2, %v14476_v3  ;;  %v5237_v32 = vmax.f32 %v5234_v15, %v5236_v37  ;;  %v16272_v20 = vld [vmem:[#allocation38_spill] sm:$0xff] }
 0x45d   : > { %8314 = vmatmul.msk.bf16.gmra.mxu3 %vm476_vm2, %v14478_v40  ;;  %v4516_v28 = vadd.f32 %v14384_v4, %v16272_v20  ;;  %v16274_v15 = vld [vmem:[#allocation58_spill] sm:$0xff]  ;;  %5726 = vmatpush.bf16.msra.mxu1 %v9339_v17  ;;  %v5289_v17 = vld [vmem:[#allocation5 + $0x77] sm:$0xff] }
 0x45e   : > { %v5095_v22 = vpop.f32.mrf.mxu0  ;;  %v4518_v37 = vadd.f32 %v14412_v29, %v16274_v15  ;;  %v9338_v20 = vld [vmem:[%s15801_s5 + $0x68] sm:$0xff] }
 0x45f   : > { %v5137_v56 = vadd.f32 %v5095_v22, %v4929_v54  ;;  %v4724_v48 = vadd.f32 %v14386_v11, %v4516_v28  ;;  %v5287_v54 = vld [vmem:[#allocation5 + $0x67] sm:$0xff] }
 0x460   : > { %v9342_v28 = vld [vmem:[%s15801_s5 + $0x88] sm:$0xff] }
 0x461   : > { %5165 = vst.msk [vmem:[#allocation4 + $0x98] sm:$0xff] %vm476_vm2, %v5137_v56  ;;  %v4932_v4 = vadd.f32 %v14449_v57, %v4724_v48  ;;  %v14526_v55 = vpop.f32.mrf.mxu3  ;;  %5727 = vmatpush.bf16.msra.mxu1 %v9338_v20  ;;  %5860 = vmatpush.bf16.msrb.mxu2 %v9342_v28 }
 0x465   : > { %5728 = vmatpush.bf16.msra.mxu1 %v9337_v42 }
 0x466   : > { %v5098_v21 = vpop.f32.mrf.mxu0 }
 0x467   : > { %v5138_v5 = vadd.f32 %v5098_v21, %v4930_v53  ;;  %v4725_v53 = vadd.f32 %v14398_v63, %v4517_v1 }
 0x468   : > { %v5239_v58 = vld [vmem:[#allocation4 + $0x90] ss:$2 sm:$0x7f]  ;;  %v5241_v2 = vld [vmem:[#allocation4 + $0x91] ss:$2 sm:$0x7f] }
 0x469   : > { %v5242_v46 = vmax.f32 %v5239_v58, %v5241_v2  ;;  %5166 = vst.msk [vmem:[#allocation4 + $0xa0] sm:$0xff] %vm476_vm2, %v5138_v5  ;;  %v4933_v63 = vadd.f32 %v14461_v24, %v4725_v53 }
 0x46b   : > { %v5243_v49 = vmax.f32 %v5237_v32, %v5242_v46  ;;  %v4726_v46 = vadd.f32 %v14414_v10, %v4518_v37 }
 0x46d   : > { %v5244_v12 = vadd.f32 %v5243_v49, %v14273_v30  ;;  %v4934_v24 = vadd.f32 %v14480_v61, %v4726_v46 }
 0x46e   : > { %v5100_v13 = vpop.f32.mrf.mxu0 }
 0x46f   : > { %v5245_v41 = vmax.f32 %v5244_v12, 0.0  ;;  %v5139_v14 = vadd.f32 %v5100_v13, %v4931_v44  ;;  %v16275_v44 = vld [vmem:[#allocation59_spill] sm:$0xff] }
 0x470   : > { %v4519_v29 = vadd.f32 %v14440_v9, %v16275_v44 }
 0x471   : > { %5246 = vst.msk [vmem:[#allocation5 + $0x60] sm:$0x7f] %vm5189_vm3, %v5245_v41 }
 0x472   : > { %5167 = vst.msk [vmem:[#allocation4 + $0xa8] sm:$0xff] %vm476_vm2, %v5139_v14  ;;  %v4727_v61 = vadd.f32 %v14442_v34, %v4519_v29  ;;  %v4520_v34 = vadd.f32 %v14451_v6, %v16276_v33  ;;  %v5318_v6 = vld [vmem:[#allocation5 + $0x78] sm:$0xff]  ;;  %v6056_v33 = vld [vmem:[#allocation5 + $0x87] sm:$0xff] }
 0x474   : > { %v4935_v1 = vadd.f32 %v14504_v47, %v4727_v61 }
 0x476   : > { %v5103_v51 = vpop.f32.mrf.mxu0 }
 0x477   : > { %v5140_v11 = vadd.f32 %v5103_v51, %v4932_v4  ;;  %v9341_v4 = vld [vmem:[%s15801_s5 + $0x80] sm:$0xff] }
 0x478   : > { %v5315_v22 = vld [vmem:[#allocation5 + $0x60] sm:$0xff]  ;;  %5861 = vmatpush.bf16.msrb.mxu2 %v9341_v4 }
 0x479   : > { %v5286_v56 = vld [vmem:[#allocation5 + $0x5f] sm:$0xff]  ;;  %v14529_v43 = vpack.c.bf16 %v5316_v38, %v5315_v22  ;;  %5168 = vst.msk [vmem:[#allocation4 + $0xb0] sm:$0xff] %vm476_vm2, %v5140_v11  ;;  %v5394_v5 = vpop.f32.mrf.mxu1  ;;  %v4728_v11 = vadd.f32 %v14453_v27, %v4520_v34 }
 0x47a   : > { %v5522_v39 = vld [vmem:[#allocation5 + $0x59] sm:$0xff]  ;;  %v14531_v57 = vpack.c.bf16 %v5287_v54, %v5286_v56  ;;  %v5250_v10 = vld [vmem:[#allocation4 + $0xa1] ss:$2 sm:$0x7f] }
 0x47b   : > { %v14533_v26 = vpack.c.bf16 %v5522_v39, %v5521_v16  ;;  %8262 = vmatmul.msk.bf16.gmra.mxu1 %vm476_vm2, %v14529_v43  ;;  %v5248_v12 = vld [vmem:[#allocation4 + $0xa0] ss:$2 sm:$0x7f]  ;;  %v4936_v16 = vadd.f32 %v14515_v8, %v4728_v11 }
 0x47c   : > { %8285 = vmatmul.msk.bf16.gmra.mxu2 %vm476_vm2, %v14531_v57  ;;  %8438 = vmatmul.msk.bf16.gmra.mxu0 %vm476_vm2, %v14531_v57  ;;  %v5251_v48 = vmax.f32 %v5248_v12, %v5250_v10  ;;  %v16277_v22 = vld [vmem:[#allocation61_spill] sm:$0xff]  ;;  %v9347_v10 = vld [vmem:[%s15801_s5 + $0xb0] sm:$0xff] }
 0x47d   : > { %8315 = vmatmul.msk.bf16.gmra.mxu3 %vm476_vm2, %v14533_v26  ;;  %v4521_v56 = vadd.f32 %v14464_v50, %v16277_v22  ;;  %v5523_v37 = vld [vmem:[#allocation5 + $0x61] sm:$0xff]  ;;  %v9348_v50 = vld [vmem:[%s15801_s5 + $0xb8] sm:$0xff] }
 0x47e   : > { %v5105_v21 = vpop.f32.mrf.mxu0  ;;  %5991 = vmatpush.bf16.msrb.mxu3 %v9348_v50  ;;  %v9357_v50 = vld [vmem:[%s15801_s5 + $0x100] sm:$0xff] }
 0x47f   : > { %v5141_v58 = vadd.f32 %v5105_v21, %v4933_v63 }
 0x480   : > { %v5483_v2 = vpop.f32.mrf.mxu2 }
 0x481   : > { %v14550_v18 = vadd.f32 %v5483_v2, %v5394_v5  ;;  %v5597_v32 = vpop.f32.mrf.mxu3  ;;  %5169 = vst.msk [vmem:[#allocation4 + $0xb8] sm:$0xff] %vm476_vm2, %v5141_v58  ;;  %v5396_v47 = vpop.f32.mrf.mxu1  ;;  %v4729_v58 = vadd.f32 %v14466_v52, %v4521_v56  ;;  %v9360_v56 = vld [vmem:[%s15801_s5 + $0x118] sm:$0xff] }
 0x482   : > { %v14555_v49 = vadd.f32 %v5597_v32, %v14483_v7  ;;  %5992 = vmatpush.bf16.msrb.mxu3 %v9347_v10  ;;  %v9356_v47 = vld [vmem:[%s15801_s5 + $0xf8] sm:$0xff]  ;;  %6390 = vmatpush.bf16.msra.mxu2 %v9360_v56 }
 0x483   : > { %v4937_v52 = vadd.f32 %v14526_v55, %v4729_v58  ;;  %v9346_v55 = vld [vmem:[%s15801_s5 + $0xa8] sm:$0xff]  ;;  %6257 = vmatpush.bf16.msrb.mxu1 %v9356_v47 }
 0x486   : > { %v5108_v13 = vpop.f32.mrf.mxu0  ;;  %5993 = vmatpush.bf16.msrb.mxu3 %v9346_v55  ;;  %v6057_v55 = vld [vmem:[#allocation5 + $0x8f] sm:$0xff] }
 0x487   : > { %v5142_v41 = vadd.f32 %v5108_v13, %v4934_v24 }
 0x488   : > { %v5253_v7 = vld [vmem:[#allocation4 + $0xb0] ss:$2 sm:$0x7f]  ;;  %v5255_v14 = vld [vmem:[#allocation4 + $0xb1] ss:$2 sm:$0x7f]  ;;  %v5485_v39 = vpop.f32.mrf.mxu2 }
 0x489   : > { %v5256_v9 = vmax.f32 %v5253_v7, %v5255_v14  ;;  %5170 = vst.msk [vmem:[#allocation4 + $0xc0] sm:$0xff] %vm476_vm2, %v5142_v41  ;;  %v5599_v63 = vpop.f32.mrf.mxu3 }
 0x48b   : > { %v5257_v19 = vmax.f32 %v5251_v48, %v5256_v9 }
 0x48d   : > { %v5258_v31 = vadd.f32 %v5257_v19, %v14273_v30 }
 0x48e   : > { %v5110_v51 = vpop.f32.mrf.mxu0 }
 0x48f   : > { %v5259_v38 = vmax.f32 %v5258_v31, 0.0  ;;  %v5143_v54 = vadd.f32 %v5110_v51, %v4935_v1 }
 0x491   : > { %5260 = vst.msk [vmem:[#allocation5 + $0x70] sm:$0x7f] %vm5189_vm3, %v5259_v38 }
 0x492   : > { %5171 = vst.msk [vmem:[#allocation4 + $0xc8] sm:$0xff] %vm476_vm2, %v5143_v54 }
 0x496   : > { %v5113_v53 = vpop.f32.mrf.mxu0 }
 0x497   : > { %v5144_v15 = vadd.f32 %v5113_v53, %v4936_v16 }
 0x498   : > { %v5317_v21 = vld [vmem:[#allocation5 + $0x70] sm:$0xff]  ;;  %v5399_v46 = vpop.f32.mrf.mxu1 }
 0x499   : > { %v5288_v5 = vld [vmem:[#allocation5 + $0x6f] sm:$0xff]  ;;  %v14585_v2 = vpack.c.bf16 %v5318_v6, %v5317_v21  ;;  %5172 = vst.msk [vmem:[#allocation4 + $0xd0] sm:$0xff] %vm476_vm2, %v5144_v15  ;;  %v5262_v13 = vld [vmem:[#allocation4 + $0xc0] ss:$2 sm:$0x7f] }
 0x49a   : > { %v5524_v27 = vld [vmem:[#allocation5 + $0x69] sm:$0xff]  ;;  %v14587_v32 = vpack.c.bf16 %v5289_v17, %v5288_v5  ;;  %v5525_v31 = vld [vmem:[#allocation5 + $0x71] sm:$0xff] }
 0x49b   : > { %v14589_v8 = vpack.c.bf16 %v5524_v27, %v5523_v37  ;;  %8263 = vmatmul.msk.bf16.gmra.mxu1 %vm476_vm2, %v14585_v2  ;;  %v5264_v41 = vld [vmem:[#allocation4 + $0xc1] ss:$2 sm:$0x7f]  ;;  %v9359_v6 = vld [vmem:[%s15801_s5 + $0x110] sm:$0xff] }
 0x49c   : > { %8286 = vmatmul.msk.bf16.gmra.mxu2 %vm476_vm2, %v14587_v32  ;;  %8439 = vmatmul.msk.bf16.gmra.mxu0 %vm476_vm2, %v14587_v32  ;;  %v5265_v61 = vmax.f32 %v5262_v13, %v5264_v41  ;;  %v9355_v37 = vld [vmem:[%s15801_s5 + $0xf0] sm:$0xff]  ;;  %v9358_v21 = vld [vmem:[%s15801_s5 + $0x108] sm:$0xff] }
 0x49d   : > { %8316 = vmatmul.msk.bf16.gmra.mxu3 %vm476_vm2, %v14589_v8  ;;  %6391 = vmatpush.bf16.msra.mxu2 %v9359_v6  ;;  %v6058_v13 = vld [vmem:[#allocation5 + $0x97] sm:$0xff] }
 0x49e   : > { %v5115_v24 = vpop.f32.mrf.mxu0  ;;  %6258 = vmatpush.bf16.msrb.mxu1 %v9355_v37  ;;  %v6065_v41 = vpack.c.bf16 %v6058_v13, %v6057_v55 }
 0x49f   : > { %v5488_v44 = vpop.f32.mrf.mxu2  ;;  %v5145_v29 = vadd.f32 %v5115_v24, %v4937_v52 }
 0x4a0   : > { %v5489_v20 = vadd.f32 %v5488_v44, %v5399_v46  ;;  %v5602_v28 = vpop.f32.mrf.mxu3  ;;  %v5401_v19 = vpop.f32.mrf.mxu1 }
 0x4a1   : > { %v14605_v12 = vadd.f32 %v5602_v28, %v14550_v18  ;;  %5173 = vst.msk [vmem:[#allocation4 + $0xd8] sm:$0xff] %vm476_vm2, %v5145_v29  ;;  %v9345_v18 = vld [vmem:[%s15801_s5 + $0xa0] sm:$0xff]  ;;  %6392 = vmatpush.bf16.msra.mxu2 %v9358_v21  ;;  %v5792_v28 = vld [vmem:[#allocation5 + $0x88] sm:$0xff] }
 0x4a2   : > { %5994 = vmatpush.bf16.msrb.mxu3 %v9345_v18 }
 0x4a5   : > { %6393 = vmatpush.bf16.msra.mxu2 %v9357_v50  ;;  %v8538_v50 = vld [vmem:[%s15803_s7 + $0x40] sm:$0xf] }
 0x4a7   : > { %v5490_v1 = vpop.f32.mrf.mxu2 }
 0x4a8   : > { %v5267_v7 = vld [vmem:[#allocation4 + $0xd0] ss:$2 sm:$0x7f]  ;;  %v5269_v14 = vld [vmem:[#allocation4 + $0xd1] ss:$2 sm:$0x7f]  ;;  %v5604_v34 = vpop.f32.mrf.mxu3 }
 0x4a9   : > { %v5270_v48 = vmax.f32 %v5267_v7, %v5269_v14  ;;  %v5925_v1 = vld [vmem:[#allocation5 + $0x89] sm:$0xff] }
 0x4ab   : > { %v5271_v9 = vmax.f32 %v5265_v61, %v5270_v48  ;;  %8342 = vmatmul.msk.bf16.vlgmr.msra.gmra.mxu1 %vm476_vm2, %v14305_v62 }
 0x4ac   : > { %8373 = vmatmul.msk.bf16.vlgmr.msrb.gmra.mxu2 %vm476_vm2, %v14303_v23 }
 0x4ad   : > { %v5272_v42 = vadd.f32 %v5271_v9, %v14273_v30 }
 0x4af   : > { %v5273_v4 = vmax.f32 %v5272_v42, 0.0 }
 0x4b1   : > { %5274 = vst.msk [vmem:[#allocation5 + $0x80] sm:$0x7f] %vm5189_vm3, %v5273_v4 }
 0x4b8   : > { %v5526_v51 = vld [vmem:[#allocation5 + $0x79] sm:$0xff]  ;;  %v5404_v30 = vpop.f32.mrf.mxu1  ;;  %v5924_v19 = vld [vmem:[#allocation5 + $0x81] sm:$0xff] }
 0x4b9   : > { %v6055_v38 = vld [vmem:[#allocation5 + $0x7f] sm:$0xff]  ;;  %v14623_v54 = vpack.c.bf16 %v5526_v51, %v5525_v31  ;;  %v5932_v31 = vpack.c.bf16 %v5925_v1, %v5924_v19  ;;  %v9407_v1 = vld [vmem:[%s15803_s7 + $0x174] sm:$0xf] }
 0x4ba   : > { %v6064_v11 = vpack.c.bf16 %v6056_v33, %v6055_v38 }
 0x4bb   : > { %8317 = vmatmul.msk.bf16.gmra.mxu3 %vm476_vm2, %v14623_v54  ;;  %8343 = vmatmul.msk.bf16.gmra.mxu1 %vm476_vm2, %v14368_v35 }
 0x4bc   : > { %8374 = vmatmul.msk.bf16.gmra.mxu2 %vm476_vm2, %v14366_v25  ;;  %8440 = vmatmul.msk.bf16.gmra.mxu0 %vm476_vm2, %v6064_v11 }
 0x4bf   : > { %v5493_v23 = vpop.f32.mrf.mxu2 }
 0x4c0   : > { %v5494_v62 = vadd.f32 %v5493_v23, %v5404_v30  ;;  %v5607_v16 = vpop.f32.mrf.mxu3  ;;  %v5406_v35 = vpop.f32.mrf.mxu1 }
 0x4c1   : > { %v14632_v22 = vadd.f32 %v5607_v16, %v5489_v20  ;;  %v5791_v20 = vld [vmem:[#allocation5 + $0x80] sm:$0xff] }
 0x4c2   : > { %v14686_v10 = vpack.c.bf16 %v5792_v28, %v5791_v20  ;;  %v6323_v20 = vld [vmem:[#allocation5 + $0x91] sm:$0xff]  ;;  %v6324_v28 = vld [vmem:[#allocation5 + $0x99] sm:$0xff] }
 0x4c3   : > { %v6331_v13 = vpack.c.bf16 %v6324_v28, %v6323_v20  ;;  %v8690_v20 = vld [vmem:[%s15803_s7 + $0x130] sm:$0xf] }
 0x4c7   : > { %v5495_v39 = vpop.f32.mrf.mxu2 }
 0x4c8   : > { %v5609_v53 = vpop.f32.mrf.mxu3 }
 0x4cb   : > { %8344 = vmatmul.msk.bf16.gmra.mxu1 %vm476_vm2, %v14422_v36  ;;  %8404 = vmatmul.msk.bf16.vlgmr.msrb.gmra.mxu3 %vm476_vm2, %v14370_v59 }
 0x4cc   : > { %8375 = vmatmul.msk.bf16.gmra.mxu2 %vm476_vm2, %v14420_v45  ;;  %8441 = vmatmul.msk.bf16.gmra.mxu0 %vm476_vm2, %v6065_v41 }
 0x4d8   : > { %v5409_v59 = vpop.f32.mrf.mxu1 }
 0x4db   : > { %8345 = vmatmul.msk.bf16.gmra.mxu1 %vm476_vm2, %v14476_v3  ;;  %8405 = vmatmul.msk.bf16.gmra.mxu3 %vm476_vm2, %v14424_v60  ;;  %v9354_v3 = vld [vmem:[%s15801_s5 + $0xe8] sm:$0xff] }
 0x4dc   : > { %8376 = vmatmul.msk.bf16.gmra.mxu2 %vm476_vm2, %v14474_v0  ;;  %6259 = vmatpush.bf16.msrb.mxu1 %v9354_v3 }
 0x4df   : > { %v5498_v36 = vpop.f32.mrf.mxu2 }
 0x4e0   : > { %v5499_v17 = vadd.f32 %v5498_v36, %v5409_v59  ;;  %v5612_v63 = vpop.f32.mrf.mxu3  ;;  %v5411_v5 = vpop.f32.mrf.mxu1  ;;  %v8562_v36 = vld [vmem:[%s15803_s7 + $0x70] sm:$0xf] }
 0x4e1   : > { %v14655_v15 = vadd.f32 %v5612_v63, %v5494_v62 }
 0x4e7   : > { %v5500_v27 = vpop.f32.mrf.mxu2 }
 0x4e8   : > { %v5614_v58 = vpop.f32.mrf.mxu3 }
 0x4e9   : > { %v8546_v58 = vld [vmem:[%s15803_s7 + $0x50] sm:$0xf] }
 0x4eb   : > { %8346 = vmatmul.msk.bf16.gmra.mxu1 %vm476_vm2, %v14531_v57  ;;  %8406 = vmatmul.msk.bf16.gmra.mxu3 %vm476_vm2, %v14478_v40  ;;  %v9353_v57 = vld [vmem:[%s15801_s5 + $0xe0] sm:$0xff] }
 0x4ec   : > { %8377 = vmatmul.msk.bf16.gmra.mxu2 %vm476_vm2, %v14529_v43  ;;  %6260 = vmatpush.bf16.msrb.mxu1 %v9353_v57  ;;  %v9372_v57 = vld [vmem:[%s15803_s7 + $0x54] sm:$0xf0] }
 0x4f8   : > { %v5414_v52 = vpop.f32.mrf.mxu1 }
 0x4fb   : > { %8347 = vmatmul.msk.bf16.gmra.mxu1 %vm476_vm2, %v14587_v32  ;;  %8407 = vmatmul.msk.bf16.gmra.mxu3 %vm476_vm2, %v14533_v26 }
 0x4fc   : > { %8378 = vmatmul.msk.bf16.gmra.mxu2 %vm476_vm2, %v14585_v2 }
 0x4ff   : > { %v5503_v46 = vpop.f32.mrf.mxu2 }
 0x500   : > { %v5504_v24 = vadd.f32 %v5503_v46, %v5414_v52  ;;  %v5617_v44 = vpop.f32.mrf.mxu3  ;;  %v5416_v32 = vpop.f32.mrf.mxu1  ;;  %v8547_v52 = vor.u32 %v9372_v57, %v8546_v58  ;;  %v9370_v46 = vld [vmem:[%s15803_s7 + $0x44] sm:$0xf0]  ;;  %v8700_v58 = vld [vmem:[%s15803_s7 + $0x148] sm:$0xf0]  ;;  %v9373_v57 = vld [vmem:[%s15803_s7 + $0x64] sm:$0xf] }
 0x501   : > { %v14684_v29 = vadd.f32 %v5617_v44, %v5499_v17  ;;  %v9376_v17 = vld [vmem:[%s15803_s7 + $0x74] sm:$0xf0] }
 0x502   : > { %v6191_v44 = vld [vmem:[#allocation5 + $0x98] sm:$0xff] }
 0x507   : > { %v5505_v7 = vpop.f32.mrf.mxu2 }
 0x508   : > { %v5619_v14 = vpop.f32.mrf.mxu3  ;;  %v8530_v7 = vld [vmem:[%s15803_s7 + $0x30] sm:$0xf] }
 0x509   : > { %v9368_v14 = vld [vmem:[%s15803_s7 + $0x34] sm:$0xf0] }
 0x50b   : > { %8348 = vmatmul.msk.bf16.gmra.mxu1 %vm476_vm2, %v6064_v11  ;;  %8408 = vmatmul.msk.bf16.gmra.mxu3 %vm476_vm2, %v14589_v8 }
 0x50c   : > { %8379 = vmatmul.msk.bf16.gmra.mxu2 %vm476_vm2, %v14686_v10 }
 0x518   : > { %v5419_v61 = vpop.f32.mrf.mxu1 }
 0x519   : > { %v8522_v61 = vld [vmem:[%s15803_s7 + $0x20] sm:$0xf] }
 0x51b   : > { %8409 = vmatmul.msk.bf16.gmra.mxu3 %vm476_vm2, %v14623_v54  ;;  %8466 = vmatmul.msk.bf16.vlgmr.msrb.gmra.mxu1 %vm476_vm2, %v14366_v25 }
 0x51c   : > { %8497 = vmatmul.msk.bf16.vlgmr.msra.gmra.mxu2 %vm476_vm2, %v14424_v60 }
 0x51f   : > { %v5508_v48 = vpop.f32.mrf.mxu2 }
 0x520   : > { %v5622_v18 = vpop.f32.mrf.mxu3  ;;  %v5421_v42 = vpop.f32.mrf.mxu1  ;;  %v8531_v48 = vor.u32 %v9368_v14, %v8530_v7  ;;  %v9371_v7 = vld [vmem:[%s15803_s7 + $0x54] sm:$0xf]  ;;  %v8548_v14 = vld [vmem:[%s15803_s7 + $0x58] sm:$0xf0] }
 0x521   : > { %v14700_v9 = vadd.f32 %v5622_v18, %v5504_v24  ;;  %v6190_v24 = vld [vmem:[#allocation5 + $0x90] sm:$0xff]  ;;  %v9366_v18 = vld [vmem:[%s15803_s7 + $0x24] sm:$0xf0]  ;;  %v9408_v42 = vld [vmem:[%s15803_s7 + $0x174] sm:$0xf0] }
 0x522   : > { %v6198_v32 = vpack.c.bf16 %v6191_v44, %v6190_v24  ;;  %v8802_v44 = vld [vmem:[%s15803_s7 + $0x1f0] sm:$0xf] }
 0x527   : > { %v5510_v4 = vpop.f32.mrf.mxu2 }
 0x528   : > { %v5730_v33 = vpop.f32.mrf.mxu1  ;;  %v5624_v38 = vpop.f32.mrf.mxu3 }
 0x529   : > { %v5765_v34 = vadd.f32 %v5730_v33, %v14555_v49  ;;  %v8724_v33 = vld [vmem:[%s15803_s7 + $0x178] sm:$0xf0] }
 0x52b   : > { %8410 = vmatmul.msk.bf16.gmra.mxu3 %vm476_vm2, %v5932_v31  ;;  %8467 = vmatmul.msk.bf16.gmra.mxu1 %vm476_vm2, %v14420_v45 }
 0x52c   : > { %8498 = vmatmul.msk.bf16.gmra.mxu2 %vm476_vm2, %v14478_v40 }
 0x52f   : > { %v5863_v25 = vpop.f32.mrf.mxu2 }
 0x530   : > { %v14708_v60 = vadd.f32 %v5863_v25, %v5765_v34  ;;  %v5732_v51 = vpop.f32.mrf.mxu1  ;;  %v8523_v34 = vor.u32 %v9366_v18, %v8522_v61  ;;  %v8551_v18 = vor.u32 %v9371_v7, %v8548_v14  ;;  %v9363_v7 = vld [vmem:[%s15803_s7 + $0x14] sm:$0xf]  ;;  %v8516_v14 = vld [vmem:[%s15803_s7 + $0x18] sm:$0xf0] }
 0x537   : > { %v5865_v11 = vpop.f32.mrf.mxu2 }
 0x538   : > { %v5735_v30 = vpop.f32.mrf.mxu1  ;;  %v8514_v11 = vld [vmem:[%s15803_s7 + $0x10] sm:$0xf] }
 0x539   : > { %v5767_v23 = vadd.f32 %v5735_v30, %v14605_v12  ;;  %v9364_v30 = vld [vmem:[%s15803_s7 + $0x14] sm:$0xf0] }
 0x53b   : > { %8468 = vmatmul.msk.bf16.gmra.mxu1 %vm476_vm2, %v14474_v0 }
 0x53c   : > { %8499 = vmatmul.msk.bf16.gmra.mxu2 %vm476_vm2, %v14533_v26 }
 0x53e   : > { %v5627_v49 = vpop.f32.mrf.mxu3 }
 0x53f   : > { %v5868_v45 = vpop.f32.mrf.mxu2  ;;  %v8515_v49 = vor.u32 %v9364_v30, %v8514_v11  ;;  %v9369_v11 = vld [vmem:[%s15803_s7 + $0x44] sm:$0xf]  ;;  %v8540_v30 = vld [vmem:[%s15803_s7 + $0x48] sm:$0xf0] }
 0x540   : > { %v14715_v62 = vadd.f32 %v5868_v45, %v5767_v23  ;;  %v5737_v40 = vpop.f32.mrf.mxu1  ;;  %v8714_v23 = vld [vmem:[%s15803_s7 + $0x160] sm:$0xf]  ;;  %v9406_v45 = vld [vmem:[%s15803_s7 + $0x164] sm:$0xf0] }
 0x541   : > { %v9405_v40 = vld [vmem:[%s15803_s7 + $0x164] sm:$0xf] }
 0x546   : > { %v5629_v27 = vpop.f32.mrf.mxu3 }
 0x547   : > { %v5870_v16 = vpop.f32.mrf.mxu2 }
 0x548   : > { %v5740_v56 = vpop.f32.mrf.mxu1  ;;  %v8716_v16 = vld [vmem:[%s15803_s7 + $0x168] sm:$0xf0] }
 0x549   : > { %v5769_v47 = vadd.f32 %v5740_v56, %v14632_v22  ;;  %v8715_v56 = vor.u32 %v9406_v45, %v8714_v23  ;;  %v8786_v45 = vld [vmem:[%s15803_s7 + $0x1d0] sm:$0xf] }
 0x54b   : > { %8469 = vmatmul.msk.bf16.gmra.mxu1 %vm476_vm2, %v14529_v43 }
 0x54c   : > { %8500 = vmatmul.msk.bf16.gmra.mxu2 %vm476_vm2, %v14589_v8 }
 0x54e   : > { %v14780_v4 = vpop.f32.mrf.mxu3 }
 0x54f   : > { %v5873_v12 = vpop.f32.mrf.mxu2 }
 0x550   : > { %v14722_v0 = vadd.f32 %v5873_v12, %v5769_v47  ;;  %v5742_v35 = vpop.f32.mrf.mxu1  ;;  %v8719_v47 = vor.u32 %v9405_v40, %v8716_v16  ;;  %v8506_v12 = vld [vmem:[%s15803_s7] sm:$0xf]  ;;  %v9420_v40 = vld [vmem:[%s15803_s7 + $0x1d4] sm:$0xf0]  ;;  %v8674_v16 = vld [vmem:[%s15803_s7 + $0x110] sm:$0xf] }
 0x551   : > { %v9362_v35 = vld [vmem:[%s15803_s7 + $0x4] sm:$0xf0] }
 0x557   : > { %v5875_v26 = vpop.f32.mrf.mxu2 }
 0x558   : > { %v5745_v39 = vpop.f32.mrf.mxu1  ;;  %v8706_v26 = vld [vmem:[%s15803_s7 + $0x150] sm:$0xf] }
 0x559   : > { %v5771_v53 = vadd.f32 %v5745_v39, %v14655_v15  ;;  %v9374_v15 = vld [vmem:[%s15803_s7 + $0x64] sm:$0xf0]  ;;  %v8507_v39 = vor.u32 %v9362_v35, %v8506_v12  ;;  %v9395_v12 = vld [vmem:[%s15803_s7 + $0x114] sm:$0xf]  ;;  %v8676_v35 = vld [vmem:[%s15803_s7 + $0x118] sm:$0xf0] }
 0x55b   : > { %8470 = vmatmul.msk.bf16.gmra.mxu1 %vm476_vm2, %v14585_v2  ;;  %v8563_v2 = vor.u32 %v9376_v17, %v8562_v36  ;;  %v9375_v17 = vld [vmem:[%s15803_s7 + $0x74] sm:$0xf] }
 0x55c   : > { %8501 = vmatmul.msk.bf16.gmra.mxu2 %vm476_vm2, %v14623_v54  ;;  %v8554_v54 = vld [vmem:[%s15803_s7 + $0x60] sm:$0xf] }
 0x55d   : > { %6597 = vmatpush.bf16.msra.mxu3 %v8563_v2  ;;  %v8555_v37 = vor.u32 %v9374_v15, %v8554_v54 }
 0x55f   : > { %v5878_v22 = vpop.f32.mrf.mxu2 }
 0x560   : > { %v14729_v6 = vadd.f32 %v5878_v22, %v5771_v53  ;;  %v5747_v43 = vpop.f32.mrf.mxu1  ;;  %v9404_v53 = vld [vmem:[%s15803_s7 + $0x154] sm:$0xf0]  ;;  %v9403_v22 = vld [vmem:[%s15803_s7 + $0x154] sm:$0xf] }
 0x561   : > { %6598 = vmatpush.bf16.msra.mxu3 %v8555_v37  ;;  %v8708_v43 = vld [vmem:[%s15803_s7 + $0x158] sm:$0xf0]  ;;  %v8698_v37 = vld [vmem:[%s15803_s7 + $0x140] sm:$0xf] }
 0x562   : > { %v8711_v36 = vor.u32 %v9403_v22, %v8708_v43  ;;  %v9367_v22 = vld [vmem:[%s15803_s7 + $0x34] sm:$0xf]  ;;  %v8532_v43 = vld [vmem:[%s15803_s7 + $0x38] sm:$0xf0] }
 0x565   : > { %6599 = vmatpush.bf16.msra.mxu3 %v8547_v52  ;;  %v14852_v52 = vpop.f32.mrf.mxu0 }
 0x567   : > { %v5880_v59 = vpop.f32.mrf.mxu2 }
 0x568   : > { %v5750_v8 = vpop.f32.mrf.mxu1  ;;  %v5998_v59 = vpop.f32.mrf.mxu3 }
 0x569   : > { %v5773_v63 = vadd.f32 %v5750_v8, %v14684_v29  ;;  %v8539_v29 = vor.u32 %v9370_v46, %v8538_v50  ;;  %v8707_v8 = vor.u32 %v9404_v53, %v8706_v26  ;;  %v8556_v50 = vld [vmem:[%s15803_s7 + $0x68] sm:$0xf0]  ;;  %v8679_v53 = vor.u32 %v9395_v12, %v8676_v35  ;;  %v8868_v35 = vld [vmem:[%s15803_s7 + $0x258] sm:$0xf0] }
 0x56a   : > { %v8559_v24 = vor.u32 %v9373_v57, %v8556_v50 }
 0x56b   : > { %8471 = vmatmul.msk.bf16.gmra.mxu1 %vm476_vm2, %v14686_v10  ;;  %6600 = vmatpush.bf16.msra.mxu3 %v8539_v29  ;;  %v9424_v29 = vld [vmem:[%s15803_s7 + $0x1f4] sm:$0xf0] }
 0x56c   : > { %8502 = vmatmul.msk.bf16.gmra.mxu2 %vm476_vm2, %v5932_v31  ;;  %v8727_v31 = vor.u32 %v9407_v1, %v8724_v33  ;;  %v8803_v28 = vor.u32 %v9424_v29, %v8802_v44  ;;  %v8682_v33 = vld [vmem:[%s15803_s7 + $0x120] sm:$0xf]  ;;  %v9439_v44 = vld [vmem:[%s15803_s7 + $0x274] sm:$0xf] }
 0x56d   : > { %v6131_v26 = vpop.f32.mrf.mxu0 }
 0x56e   : > { %6876 = vmatpush.bf16.msra.mxu1 %v8727_v31  ;;  %6993 = vmatpush.bf16.msrb.mxu2 %v8803_v28  ;;  %v9397_v31 = vld [vmem:[%s15803_s7 + $0x124] sm:$0xf]  ;;  %v8884_v28 = vld [vmem:[%s15803_s7 + $0x278] sm:$0xf0] }
 0x56f   : > { %v5883_v3 = vpop.f32.mrf.mxu2  ;;  %6601 = vmatpush.bf16.msra.mxu3 %v8531_v48 }
 0x570   : > { %v14747_v21 = vadd.f32 %v5883_v3, %v5773_v63  ;;  %v5752_v5 = vpop.f32.mrf.mxu1  ;;  %v8564_v63 = vld [vmem:[%s15803_s7 + $0x78] sm:$0xf0]  ;;  %v9402_v3 = vld [vmem:[%s15803_s7 + $0x144] sm:$0xf0]  ;;  %v14878_v61 = vpop.f32.mrf.mxu3 }
 0x571   : > { %v8567_v54 = vor.u32 %v9375_v17, %v8564_v63  ;;  %v9401_v5 = vld [vmem:[%s15803_s7 + $0x144] sm:$0xf]  ;;  %v8699_v27 = vor.u32 %v9402_v3, %v8698_v37  ;;  %v8778_v63 = vld [vmem:[%s15803_s7 + $0x1c0] sm:$0xf] }
 0x572   : > { %6877 = vmatpush.bf16.msra.mxu1 %v8719_v47  ;;  %v8703_v46 = vor.u32 %v9401_v5, %v8700_v58  ;;  %v9396_v47 = vld [vmem:[%s15803_s7 + $0x114] sm:$0xf0]  ;;  %v8666_v37 = vld [vmem:[%s15803_s7 + $0x100] sm:$0xf]  ;;  %v8668_v5 = vld [vmem:[%s15803_s7 + $0x108] sm:$0xf0] }
 0x573   : > { %6602 = vmatpush.bf16.msra.mxu3 %v8523_v34  ;;  %v9398_v34 = vld [vmem:[%s15803_s7 + $0x124] sm:$0xf0]  ;;  %v8524_v58 = vld [vmem:[%s15803_s7 + $0x28] sm:$0xf0] }
 0x576   : > { %6878 = vmatpush.bf16.msra.mxu1 %v8711_v36  ;;  %v6031_v36 = vadd.f32 %v14780_v4, %v14708_v60  ;;  %v9394_v60 = vld [vmem:[%s15803_s7 + $0x104] sm:$0xf0]  ;;  %v9393_v4 = vld [vmem:[%s15803_s7 + $0x104] sm:$0xf] }
 0x577   : > { %v5885_v10 = vpop.f32.mrf.mxu2  ;;  %6603 = vmatpush.bf16.msra.mxu3 %v8515_v49  ;;  %v8543_v49 = vor.u32 %v9369_v11, %v8540_v30  ;;  %v8667_v3 = vor.u32 %v9394_v60, %v8666_v37  ;;  %v8671_v57 = vor.u32 %v9393_v4, %v8668_v5  ;;  %v9414_v11 = vld [vmem:[%s15803_s7 + $0x1a4] sm:$0xf0]  ;;  %v8746_v60 = vld [vmem:[%s15803_s7 + $0x180] sm:$0xf]  ;;  %v8962_v5 = vld [vmem:[%s15803_s7 + $0x2f0] sm:$0xf] }
 0x578   : > { %v5755_v55 = vpop.f32.mrf.mxu1  ;;  %v9400_v10 = vld [vmem:[%s15803_s7 + $0x134] sm:$0xf0]  ;;  %v6164_v29 = vadd.f32 %v14852_v52, %v6031_v36  ;;  %v9410_v4 = vld [vmem:[%s15803_s7 + $0x184] sm:$0xf0] }
 0x579   : > { %v5775_v41 = vadd.f32 %v5755_v55, %v14700_v9  ;;  %v8722_v9 = vld [vmem:[%s15803_s7 + $0x170] sm:$0xf]  ;;  %v8692_v55 = vld [vmem:[%s15803_s7 + $0x138] sm:$0xf0] }
 0x57a   : > { %v8723_v19 = vor.u32 %v9408_v42, %v8722_v9  ;;  %6879 = vmatpush.bf16.msra.mxu1 %v8703_v46  ;;  %v8794_v42 = vld [vmem:[%s15803_s7 + $0x1e0] sm:$0xf]  ;;  %v8882_v46 = vld [vmem:[%s15803_s7 + $0x270] sm:$0xf] }
 0x57b   : > { %8472 = vmatmul.msk.bf16.gmra.mxu1 %vm476_vm2, %v6198_v32  ;;  %6604 = vmatpush.bf16.msra.mxu3 %v8507_v39  ;;  %v9399_v32 = vld [vmem:[%s15803_s7 + $0x134] sm:$0xf]  ;;  %v8675_v39 = vor.u32 %v9396_v47, %v8674_v16  ;;  %v8866_v16 = vld [vmem:[%s15803_s7 + $0x250] sm:$0xf] }
 0x57c   : > { %8503 = vmatmul.msk.bf16.gmra.mxu2 %vm476_vm2, %v6331_v13  ;;  %6863 = vmatpush.bf16.msra.mxu0 %v8723_v19  ;;  %v8691_v13 = vor.u32 %v9400_v10, %v8690_v20  ;;  %v9422_v19 = vld [vmem:[%s15803_s7 + $0x1e4] sm:$0xf0]  ;;  %v8770_v10 = vld [vmem:[%s15803_s7 + $0x1b0] sm:$0xf]  ;;  %v9435_v47 = vld [vmem:[%s15803_s7 + $0x254] sm:$0xf] }
 0x57d   : > { %v8795_v1 = vor.u32 %v9422_v19, %v8794_v42  ;;  %v9438_v42 = vld [vmem:[%s15803_s7 + $0x264] sm:$0xf0]  ;;  %v9437_v19 = vld [vmem:[%s15803_s7 + $0x264] sm:$0xf]  ;;  %v8871_v26 = vor.u32 %v9435_v47, %v8868_v35 }
 0x57e   : > { %v9426_v47 = vld [vmem:[%s15803_s7 + $0x204] sm:$0xf0] }
 0x57f   : > { %v5888_v25 = vpop.f32.mrf.mxu2  ;;  %6610 = vmatpush.bf16.msrb.mxu3 %v8567_v54  ;;  %6994 = vmatpush.bf16.msrb.mxu2 %v8795_v1  ;;  %v6003_v54 = vpop.f32.mrf.mxu3  ;;  %v8876_v1 = vld [vmem:[%s15803_s7 + $0x268] sm:$0xf0] }
 0x580   : > { %v14790_v51 = vadd.f32 %v5888_v25, %v5775_v41  ;;  %v5757_v38 = vpop.f32.mrf.mxu1  ;;  %6864 = vmatpush.bf16.msra.mxu0 %v8715_v56  ;;  %v8695_v41 = vor.u32 %v9399_v32, %v8692_v55  ;;  %v8683_v25 = vor.u32 %v9398_v34, %v8682_v33  ;;  %v8787_v56 = vor.u32 %v9420_v40, %v8786_v45  ;;  %v9416_v32 = vld [vmem:[%s15803_s7 + $0x1b4] sm:$0xf0]  ;;  %v14973_v55 = vpop.f32.mrf.mxu0 }
 0x581   : > { %v8684_v38 = vld [vmem:[%s15803_s7 + $0x128] sm:$0xf0]  ;;  %v6033_v54 = vadd.f32 %v14878_v61, %v14715_v62  ;;  %v9456_v62 = vld [vmem:[%s15803_s7 + $0x2f4] sm:$0xf0] }
 0x582   : > { %6880 = vmatpush.bf16.msra.mxu1 %v8695_v41  ;;  %v8687_v23 = vor.u32 %v9397_v31, %v8684_v38  ;;  %v8771_v41 = vor.u32 %v9416_v32, %v8770_v10  ;;  %v8762_v38 = vld [vmem:[%s15803_s7 + $0x1a0] sm:$0xf]  ;;  %v8963_v61 = vor.u32 %v9456_v62, %v8962_v5  ;;  %v9446_v5 = vld [vmem:[%s15803_s7 + $0x2a4] sm:$0xf0] }
 0x583   : > { %6611 = vmatpush.bf16.msrb.mxu3 %v8559_v24  ;;  %6995 = vmatpush.bf16.msrb.mxu2 %v8787_v56  ;;  %v9440_v24 = vld [vmem:[%s15803_s7 + $0x274] sm:$0xf0]  ;;  %v8763_v30 = vor.u32 %v9414_v11, %v8762_v38  ;;  %v9427_v38 = vld [vmem:[%s15803_s7 + $0x214] sm:$0xf]  ;;  %v8836_v11 = vld [vmem:[%s15803_s7 + $0x218] sm:$0xf0] }
 0x584   : > { %6865 = vmatpush.bf16.msra.mxu0 %v8707_v8  ;;  %v8535_v8 = vor.u32 %v9367_v22, %v8532_v43  ;;  %v8883_v20 = vor.u32 %v9440_v24, %v8882_v46  ;;  %v9436_v56 = vld [vmem:[%s15803_s7 + $0x254] sm:$0xf0]  ;;  %v8858_v43 = vld [vmem:[%s15803_s7 + $0x240] sm:$0xf]  ;;  %v8852_v24 = vld [vmem:[%s15803_s7 + $0x238] sm:$0xf0] }
 0x585   : > { %v8867_v12 = vor.u32 %v9436_v56, %v8866_v16  ;;  %v8826_v56 = vld [vmem:[%s15803_s7 + $0x200] sm:$0xf] }
 0x586   : > { %6881 = vmatpush.bf16.msra.mxu1 %v8687_v23  ;;  %v9361_v23 = vld [vmem:[%s15803_s7 + $0x4] sm:$0xf] }
 0x587   : > { %v5890_v2 = vpop.f32.mrf.mxu2  ;;  %6612 = vmatpush.bf16.msrb.mxu3 %v8551_v18  ;;  %v15005_v45 = vpop.f32.mrf.mxu3 }
 0x588   : > { %v5760_v15 = vpop.f32.mrf.mxu1  ;;  %6866 = vmatpush.bf16.msra.mxu0 %v8699_v27  ;;  %v9418_v2 = vld [vmem:[%s15803_s7 + $0x1c4] sm:$0xf0]  ;;  %v9365_v27 = vld [vmem:[%s15803_s7 + $0x24] sm:$0xf]  ;;  %v6136_v36 = vpop.f32.mrf.mxu0 }
 0x589   : > { %v8779_v15 = vor.u32 %v9418_v2, %v8778_v63  ;;  %v8527_v50 = vor.u32 %v9365_v27, %v8524_v58  ;;  %v8860_v2 = vld [vmem:[%s15803_s7 + $0x248] sm:$0xf0]  ;;  %v8850_v27 = vld [vmem:[%s15803_s7 + $0x230] sm:$0xf]  ;;  %v9432_v58 = vld [vmem:[%s15803_s7 + $0x234] sm:$0xf0] }
 0x58a   : > { %6882 = vmatpush.bf16.msra.mxu1 %v8679_v53  ;;  %v9412_v53 = vld [vmem:[%s15803_s7 + $0x194] sm:$0xf0]  ;;  %v8851_v46 = vor.u32 %v9432_v58, %v8850_v27  ;;  %v8642_v27 = vld [vmem:[%s15803_s7 + $0xf0] sm:$0xf] }
 0x58b   : > { %6613 = vmatpush.bf16.msrb.mxu3 %v8543_v49  ;;  %6996 = vmatpush.bf16.msrb.mxu2 %v8779_v15  ;;  %v8508_v49 = vld [vmem:[%s15803_s7 + $0x8] sm:$0xf0]  ;;  %v9392_v58 = vld [vmem:[%s15803_s7 + $0xf4] sm:$0xf0] }
 0x58c   : > { %6867 = vmatpush.bf16.msra.mxu0 %v8691_v13  ;;  %v8887_v13 = vor.u32 %v9439_v44, %v8884_v28  ;;  %v8511_v40 = vor.u32 %v9361_v23, %v8508_v49  ;;  %v9454_v28 = vld [vmem:[%s15803_s7 + $0x2e4] sm:$0xf0]  ;;  %v8938_v49 = vld [vmem:[%s15803_s7 + $0x2c0] sm:$0xf] }
 0x58e   : > { %6883 = vmatpush.bf16.msra.mxu1 %v8671_v57  ;;  %v9431_v57 = vld [vmem:[%s15803_s7 + $0x234] sm:$0xf] }
 0x58f   : > { %v5893_v48 = vpop.f32.mrf.mxu2  ;;  %6614 = vmatpush.bf16.msrb.mxu3 %v8535_v8  ;;  %6997 = vmatpush.bf16.msrb.mxu2 %v8771_v41  ;;  %v9433_v8 = vld [vmem:[%s15803_s7 + $0x244] sm:$0xf]  ;;  %v6008_v44 = vpop.f32.mrf.mxu3 }
 0x590   : > { %v5762_v9 = vpop.f32.mrf.mxu1  ;;  %6868 = vmatpush.bf16.msra.mxu0 %v8683_v25  ;;  %v8874_v48 = vld [vmem:[%s15803_s7 + $0x260] sm:$0xf]  ;;  %v8879_v25 = vor.u32 %v9437_v19, %v8876_v1  ;;  %v8863_v37 = vor.u32 %v9433_v8, %v8860_v2  ;;  %v9429_v41 = vld [vmem:[%s15803_s7 + $0x224] sm:$0xf]  ;;  %v8946_v19 = vld [vmem:[%s15803_s7 + $0x2d0] sm:$0xf] }
 0x591   : > { %v8519_v9 = vor.u32 %v9363_v7, %v8516_v14  ;;  %v8875_v31 = vor.u32 %v9438_v42, %v8874_v48  ;;  %v8844_v48 = vld [vmem:[%s15803_s7 + $0x228] sm:$0xf0]  ;;  %v9452_v1 = vld [vmem:[%s15803_s7 + $0x2d4] sm:$0xf0] }
 0x592   : > { %7139 = vmatpush.bf16.msrb.mxu1 %v8887_v13  ;;  %v9430_v13 = vld [vmem:[%s15803_s7 + $0x224] sm:$0xf0]  ;;  %v8847_v42 = vor.u32 %v9429_v41, %v8844_v48  ;;  %v8634_v41 = vld [vmem:[%s15803_s7 + $0xe0] sm:$0xf]  ;;  %v9444_v48 = vld [vmem:[%s15803_s7 + $0x294] sm:$0xf0] }
 0x593   : > { %6615 = vmatpush.bf16.msrb.mxu3 %v8527_v50  ;;  %6998 = vmatpush.bf16.msrb.mxu2 %v8763_v30  ;;  %v6166_v50 = vadd.f32 %v14973_v55, %v6033_v54  ;;  %v8842_v55 = vld [vmem:[%s15803_s7 + $0x220] sm:$0xf]  ;;  %v8839_v30 = vor.u32 %v9427_v38, %v8836_v11  ;;  %v9442_v11 = vld [vmem:[%s15803_s7 + $0x284] sm:$0xf0] }
 0x594   : > { %6869 = vmatpush.bf16.msra.mxu0 %v8675_v39  ;;  %v8754_v39 = vld [vmem:[%s15803_s7 + $0x190] sm:$0xf]  ;;  %v8843_v14 = vor.u32 %v9430_v13, %v8842_v55  ;;  %v8643_v13 = vor.u32 %v9392_v58, %v8642_v27  ;;  %v8906_v38 = vld [vmem:[%s15803_s7 + $0x280] sm:$0xf] }
 0x595   : > { %v8755_v22 = vor.u32 %v9412_v53, %v8754_v39  ;;  %v8827_v53 = vor.u32 %v9426_v47, %v8826_v56  ;;  %v9026_v56 = vld [vmem:[%s15803_s7 + $0x350] sm:$0xf] }
 0x596   : > { %7140 = vmatpush.bf16.msrb.mxu1 %v8879_v25  ;;  %v9010_v27 = vld [vmem:[%s15803_s7 + $0x330] sm:$0xf] }
 0x597   : > { %v5895_v59 = vpop.f32.mrf.mxu2  ;;  %6616 = vmatpush.bf16.msrb.mxu3 %v8519_v9  ;;  %6999 = vmatpush.bf16.msrb.mxu2 %v8755_v22  ;;  %v15115_v35 = vpop.f32.mrf.mxu3  ;;  %v8828_v22 = vld [vmem:[%s15803_s7 + $0x208] sm:$0xf0] }
 0x598   : > { %v6262_v17 = vpop.f32.mrf.mxu1  ;;  %6870 = vmatpush.bf16.msra.mxu0 %v8667_v3  ;;  %v9434_v59 = vld [vmem:[%s15803_s7 + $0x244] sm:$0xf0]  ;;  %v8747_v3 = vor.u32 %v9410_v4, %v8746_v60  ;;  %v6037_v47 = vadd.f32 %v15115_v35, %v14729_v6  ;;  %v8618_v6 = vld [vmem:[%s15803_s7 + $0xc0] sm:$0xf] }
 0x599   : > { %v6297_v52 = vadd.f32 %v6262_v17, %v6164_v29  ;;  %v8859_v63 = vor.u32 %v9434_v59, %v8858_v43  ;;  %v8855_v29 = vor.u32 %v9431_v57, %v8852_v24  ;;  %v6035_v43 = vadd.f32 %v15005_v45, %v14722_v0  ;;  %v9448_v0 = vld [vmem:[%s15803_s7 + $0x2b4] sm:$0xf0]  ;;  %v9386_v35 = vld [vmem:[%s15803_s7 + $0xc4] sm:$0xf0] }
 0x59a   : > { %7141 = vmatpush.bf16.msrb.mxu1 %v8871_v26  ;;  %v9472_v24 = vld [vmem:[%s15803_s7 + $0x374] sm:$0xf0] }
 0x59b   : > { %6617 = vmatpush.bf16.msrb.mxu3 %v8511_v40  ;;  %7000 = vmatpush.bf16.msrb.mxu2 %v8747_v3  ;;  %v9450_v40 = vld [vmem:[%s15803_s7 + $0x2c4] sm:$0xf0]  ;;  %v8922_v3 = vld [vmem:[%s15803_s7 + $0x2a0] sm:$0xf] }
 0x59c   : > { %7126 = vmatpush.bf16.msrb.mxu0 %v8883_v20  ;;  %v8954_v20 = vld [vmem:[%s15803_s7 + $0x2e0] sm:$0xf]  ;;  %v8939_v16 = vor.u32 %v9450_v40, %v8938_v49  ;;  %v8923_v57 = vor.u32 %v9446_v5, %v8922_v3  ;;  %v9384_v3 = vld [vmem:[%s15803_s7 + $0xb4] sm:$0xf0] }
 0x59d   : > { %v8955_v32 = vor.u32 %v9454_v28, %v8954_v20  ;;  %v9471_v28 = vld [vmem:[%s15803_s7 + $0x374] sm:$0xf] }
 0x59e   : > { %7142 = vmatpush.bf16.msrb.mxu1 %v8863_v37  ;;  %v8930_v37 = vld [vmem:[%s15803_s7 + $0x2b0] sm:$0xf] }
 0x59f   : > { %v6395_v18 = vpop.f32.mrf.mxu2  ;;  %7258 = vmatpush.bf16.msra.mxu2 %v8963_v61  ;;  %v8931_v4 = vor.u32 %v9448_v0, %v8930_v37  ;;  %v6013_v55 = vpop.f32.mrf.mxu3  ;;  %v9465_v37 = vld [vmem:[%s15803_s7 + $0x344] sm:$0xf]  ;;  %v9020_v0 = vld [vmem:[%s15803_s7 + $0x348] sm:$0xf0] }
 0x5a0   : > { %v6430_v33 = vadd.f32 %v6395_v18, %v6297_v52  ;;  %v6264_v34 = vpop.f32.mrf.mxu1  ;;  %7127 = vmatpush.bf16.msrb.mxu0 %v8875_v31  ;;  %v6139_v52 = vpop.f32.mrf.mxu0  ;;  %v9428_v31 = vld [vmem:[%s15803_s7 + $0x214] sm:$0xf0]  ;;  %v9002_v55 = vld [vmem:[%s15803_s7 + $0x320] sm:$0xf] }
 0x5a1   : > { %v8834_v34 = vld [vmem:[%s15803_s7 + $0x210] sm:$0xf]  ;;  %v6168_v45 = vadd.f32 %v6139_v52, %v6035_v43  ;;  %v9390_v52 = vld [vmem:[%s15803_s7 + $0xe4] sm:$0xf0] }
 0x5a2   : > { %6444 = vst [vmem:[#allocation6] sm:$0xff] %v6430_v33  ;;  %7143 = vmatpush.bf16.msrb.mxu1 %v8855_v29  ;;  %v8947_v33 = vor.u32 %v9452_v1, %v8946_v19  ;;  %v8835_v25 = vor.u32 %v9428_v31, %v8834_v34  ;;  %v9470_v19 = vld [vmem:[%s15803_s7 + $0x364] sm:$0xf0]  ;;  %v9036_v34 = vld [vmem:[%s15803_s7 + $0x368] sm:$0xf0] }
 0x5a3   : > { %7259 = vmatpush.bf16.msra.mxu2 %v8955_v32 }
 0x5a4   : > { %7128 = vmatpush.bf16.msrb.mxu0 %v8867_v12  ;;  %v9425_v12 = vld [vmem:[%s15803_s7 + $0x204] sm:$0xf] }
 0x5a5   : > { %v8831_v8 = vor.u32 %v9425_v12, %v8828_v22  ;;  %v8907_v22 = vor.u32 %v9442_v11, %v8906_v38  ;;  %v9460_v11 = vld [vmem:[%s15803_s7 + $0x314] sm:$0xf0] }
 0x5a6   : > { %7144 = vmatpush.bf16.msrb.mxu1 %v8847_v42  ;;  %v9034_v42 = vld [vmem:[%s15803_s7 + $0x360] sm:$0xf] }
 0x5a7   : > { %v6397_v17 = vpop.f32.mrf.mxu2  ;;  %7260 = vmatpush.bf16.msra.mxu2 %v8947_v33  ;;  %v9469_v33 = vld [vmem:[%s15803_s7 + $0x364] sm:$0xf]  ;;  %v9035_v40 = vor.u32 %v9470_v19, %v9034_v42 }
 0x5a8   : > { %v6267_v15 = vpop.f32.mrf.mxu1  ;;  %7129 = vmatpush.bf16.msrb.mxu0 %v8859_v63  ;;  %v6141_v36 = vpop.f32.mrf.mxu0 }
 0x5a9   : > { %v6299_v10 = vadd.f32 %v6267_v15, %v6166_v50  ;;  %v6458_v23 = vld [vmem:[#allocation6] ss:$2 sm:$0x7]  ;;  %v6460_v39 = vld [vmem:[#allocation6 + $0x1] ss:$2 sm:$0x7] }
 0x5aa   : > { %7145 = vmatpush.bf16.msrb.mxu1 %v8839_v30  ;;  %v6461_v2 = vmax.f32 %v6458_v23, %v6460_v39  ;;  %v15125_v15 = vld [vmem:[%s15802_s6] ss:$0 sm:$0xff]  ;;  %v8626_v30 = vld [vmem:[%s15803_s7 + $0xd0] sm:$0xf]  ;;  %v9388_v23 = vld [vmem:[%s15803_s7 + $0xd4] sm:$0xf0] }
 0x5ab   : > { %7261 = vmatpush.bf16.msra.mxu2 %v8939_v16  ;;  %v9039_v16 = vor.u32 %v9469_v33, %v9036_v34  ;;  %v9467_v39 = vld [vmem:[%s15803_s7 + $0x354] sm:$0xf]  ;;  %v8627_v43 = vor.u32 %v9388_v23, %v8626_v30  ;;  %v8996_v23 = vld [vmem:[%s15803_s7 + $0x318] sm:$0xf0] }
 0x5ac   : > { %7130 = vmatpush.bf16.msrb.mxu0 %v8851_v46  ;;  %v9042_v46 = vld [vmem:[%s15803_s7 + $0x370] sm:$0xf]  ;;  %v9459_v30 = vld [vmem:[%s15803_s7 + $0x314] sm:$0xf] }
 0x5ae   : > { %7146 = vmatpush.bf16.msrb.mxu1 %v8831_v8  ;;  %v6016_v8 = vpop.f32.mrf.mxu3 }
 0x5af   : > { %v6400_v7 = vpop.f32.mrf.mxu2  ;;  %7262 = vmatpush.bf16.msra.mxu2 %v8931_v4  ;;  %v8610_v4 = vld [vmem:[%s15803_s7 + $0xb0] sm:$0xf] }
 0x5b0   : > { %v6432_v18 = vadd.f32 %v6400_v7, %v6299_v10  ;;  %v6269_v9 = vpop.f32.mrf.mxu1  ;;  %7131 = vmatpush.bf16.msrb.mxu0 %v8843_v14  ;;  %v9044_v10 = vld [vmem:[%s15803_s7 + $0x378] sm:$0xf0]  ;;  %v6144_v32 = vpop.f32.mrf.mxu0  ;;  %v8914_v14 = vld [vmem:[%s15803_s7 + $0x290] sm:$0xf] }
 0x5b1   : > { %v9047_v9 = vor.u32 %v9471_v28, %v9044_v10  ;;  %v8915_v31 = vor.u32 %v9444_v48, %v8914_v14 }
 0x5b2   : > { %6446 = vst [vmem:[#allocation6 + $0x10] sm:$0xff] %v6432_v18  ;;  %v9043_v18 = vor.u32 %v9472_v24, %v9042_v46  ;;  %v9463_v46 = vld [vmem:[%s15803_s7 + $0x334] sm:$0xf]  ;;  %v9012_v24 = vld [vmem:[%s15803_s7 + $0x338] sm:$0xf0] }
 0x5b3   : > { %7263 = vmatpush.bf16.msra.mxu2 %v8923_v57 }
 0x5b4   : > { %7132 = vmatpush.bf16.msrb.mxu0 %v8835_v25  ;;  %v8635_v25 = vor.u32 %v9390_v52, %v8634_v41  ;;  %v9461_v41 = vld [vmem:[%s15803_s7 + $0x324] sm:$0xf]  ;;  %v9004_v52 = vld [vmem:[%s15803_s7 + $0x328] sm:$0xf0] }
 0x5b5   : > { %v9007_v34 = vor.u32 %v9461_v41, %v9004_v52  ;;  %v8628_v41 = vld [vmem:[%s15803_s7 + $0xd8] sm:$0xf0] }
 0x5b6   : > { %v6018_v14 = vpop.f32.mrf.mxu3 }
 0x5b7   : > { %v6402_v26 = vpop.f32.mrf.mxu2  ;;  %7264 = vmatpush.bf16.msra.mxu2 %v8915_v31  ;;  %v8994_v31 = vld [vmem:[%s15803_s7 + $0x310] sm:$0xf] }
 0x5b8   : > { %v6272_v59 = vpop.f32.mrf.mxu1  ;;  %7133 = vmatpush.bf16.msrb.mxu0 %v8827_v53  ;;  %v9468_v26 = vld [vmem:[%s15803_s7 + $0x354] sm:$0xf0]  ;;  %v9028_v53 = vld [vmem:[%s15803_s7 + $0x358] sm:$0xf0] }
 0x5b9   : > { %v6463_v17 = vld [vmem:[#allocation6 + $0x10] ss:$2 sm:$0x7]  ;;  %v6465_v63 = vld [vmem:[#allocation6 + $0x11] ss:$2 sm:$0x7]  ;;  %v6301_v62 = vadd.f32 %v6272_v59, %v6168_v45  ;;  %v6146_v59 = vpop.f32.mrf.mxu0  ;;  %v9027_v36 = vor.u32 %v9468_v26, %v9026_v56  ;;  %v8619_v45 = vor.u32 %v9386_v35, %v8618_v6 }
 0x5ba   : > { %v6466_v54 = vmax.f32 %v6463_v17, %v6465_v63  ;;  %v9031_v17 = vor.u32 %v9467_v39, %v9028_v53  ;;  %v9018_v63 = vld [vmem:[%s15803_s7 + $0x340] sm:$0xf]  ;;  %v9378_v56 = vld [vmem:[%s15803_s7 + $0x84] sm:$0xf0]  ;;  %v9391_v26 = vld [vmem:[%s15803_s7 + $0xf4] sm:$0xf]  ;;  %v8995_v53 = vor.u32 %v9460_v11, %v8994_v31 }
 0x5bb   : > { %7265 = vmatpush.bf16.msra.mxu2 %v8907_v22  ;;  %v8644_v39 = vld [vmem:[%s15803_s7 + $0xf8] sm:$0xf0]  ;;  %v8999_v22 = vor.u32 %v9459_v30, %v8996_v23  ;;  %v9458_v59 = vld [vmem:[%s15803_s7 + $0x304] sm:$0xf0]  ;;  %v9106_v31 = vld [vmem:[%s15803_s7 + $0x3d0] sm:$0xf] }
 0x5bc   : > { %v6467_v60 = vmax.f32 %v6461_v2, %v6466_v54  ;;  %v6170_v2 = vadd.f32 %v6144_v32, %v6037_v47  ;;  %v9466_v54 = vld [vmem:[%s15803_s7 + $0x344] sm:$0xf0]  ;;  %v9015_v32 = vor.u32 %v9463_v46, %v9012_v24  ;;  %v9504_v46 = vld [vmem:[%s15803_s7 + $0x474] sm:$0xf0]  ;;  %v9385_v11 = vld [vmem:[%s15803_s7 + $0xc4] sm:$0xf] }
 0x5bd   : > { %v8620_v30 = vld [vmem:[%s15803_s7 + $0xc8] sm:$0xf0] }
 0x5be   : > { %v6471_v61 = vadd.f32 %v15125_v15, %v6467_v60 }
 0x5bf   : > { %v6405_v50 = vpop.f32.mrf.mxu2 }
 0x5c0   : > { %v6434_v44 = vadd.f32 %v6405_v50, %v6301_v62  ;;  %v6274_v29 = vpop.f32.mrf.mxu1  ;;  %v6472_v20 = vmax.f32 %v6471_v61, 0.0  ;;  %v9019_v62 = vor.u32 %v9466_v54, %v9018_v63  ;;  %v9023_v61 = vor.u32 %v9465_v37, %v9020_v0  ;;  %v9464_v50 = vld [vmem:[%s15803_s7 + $0x334] sm:$0xf0]  ;;  %v9122_v0 = vld [vmem:[%s15803_s7 + $0x3f0] sm:$0xf] }
 0x5c1   : > { %v8602_v29 = vld [vmem:[%s15803_s7 + $0xa0] sm:$0xf]  ;;  %v6149_v28 = vpop.f32.mrf.mxu0  ;;  %v9011_v10 = vor.u32 %v9464_v50, %v9010_v27  ;;  %v8647_v54 = vor.u32 %v9391_v26, %v8644_v39  ;;  %v9202_v50 = vld [vmem:[%s15803_s7 + $0x470] sm:$0xf]  ;;  %v9499_v26 = vld [vmem:[%s15803_s7 + $0x454] sm:$0xf]  ;;  %v8623_v39 = vor.u32 %v9385_v11, %v8620_v30 }
 0x5c2   : > { %6448 = vst [vmem:[#allocation6 + $0x20] sm:$0xff] %v6434_v44  ;;  %v15164_v7 = vpack.c.bf16 %v6472_v20, %v6472_v20  ;;  %v8611_v44 = vor.u32 %v9384_v3, %v8610_v4  ;;  %v9382_v20 = vld [vmem:[%s15803_s7 + $0xa4] sm:$0xf0]  ;;  %v9389_v3 = vld [vmem:[%s15803_s7 + $0xe4] sm:$0xf]  ;;  %v9203_v52 = vor.u32 %v9504_v46, %v9202_v50 }
 0x5c3   : > { %v8603_v48 = vor.u32 %v9382_v20, %v8602_v29  ;;  %v9204_v29 = vld [vmem:[%s15803_s7 + $0x478] sm:$0xf0]  ;;  %v9170_v50 = vld [vmem:[%s15803_s7 + $0x430] sm:$0xf]  ;;  %v9496_v46 = vld [vmem:[%s15803_s7 + $0x434] sm:$0xf0] }
 0x5c4   : > { %6605 = vmatmul.bf16.vlgmr.msra.gmra.mxu3 %v15164_v7  ;;  %v6781_v1 = vrot.slane %v15164_v7, 1  ;;  %v6648_v20 = vshrl.u32 %v15164_v7, 16  ;;  %v9423_v11 = vld [vmem:[%s15803_s7 + $0x1f4] sm:$0xf]  ;;  %v8804_v30 = vld [vmem:[%s15803_s7 + $0x1f8] sm:$0xf0] }
 0x5c5   : > { %6731 = vmatpush.bf16.msra.mxu3 %v8643_v13  ;;  %v9462_v13 = vld [vmem:[%s15803_s7 + $0x324] sm:$0xf0] }
 0x5c6   : > { %6871 = vmatmul.bf16.vlgmr.msra.gmra.mxu0 %v6781_v1  ;;  %6884 = vmatmul.bf16.vlgmr.msra.gmra.mxu1 %v6781_v1  ;;  %v9003_v33 = vor.u32 %v9462_v13, %v9002_v55  ;;  %v9486_v55 = vld [vmem:[%s15803_s7 + $0x3e4] sm:$0xf0]  ;;  %v9387_v13 = vld [vmem:[%s15803_s7 + $0xd4] sm:$0xf] }
 0x5c7   : > { %v6407_v49 = vpop.f32.mrf.mxu2  ;;  %7388 = vmatpush.bf16.msra.mxu0 %v9043_v18  ;;  %7401 = vmatpush.bf16.msra.mxu1 %v9047_v9  ;;  %v8594_v18 = vld [vmem:[%s15803_s7 + $0x90] sm:$0xf]  ;;  %v9380_v9 = vld [vmem:[%s15803_s7 + $0x94] sm:$0xf0] }
 0x5c8   : > { %v6277_v12 = vpop.f32.mrf.mxu1  ;;  %v8595_v49 = vor.u32 %v9380_v9, %v8594_v18  ;;  %v9194_v18 = vld [vmem:[%s15803_s7 + $0x460] sm:$0xf]  ;;  %v9502_v9 = vld [vmem:[%s15803_s7 + $0x464] sm:$0xf0] }
 0x5c9   : > { %6732 = vmatpush.bf16.msra.mxu3 %v8635_v25  ;;  %v6303_v60 = vadd.f32 %v6277_v12, %v6170_v2  ;;  %v6474_v42 = vld [vmem:[#allocation6 + $0x20] ss:$2 sm:$0x7]  ;;  %v6476_v1 = vld [vmem:[#allocation6 + $0x21] ss:$2 sm:$0x7]  ;;  %v6039_v25 = vadd.f32 %v6016_v8, %v14747_v21  ;;  %v9195_v23 = vor.u32 %v9502_v9, %v9194_v18 }
 0x5ca   : > { %v8586_v21 = vld [vmem:[%s15803_s7 + $0x80] sm:$0xf]  ;;  %v6477_v47 = vmax.f32 %v6474_v42, %v6476_v1  ;;  %v9457_v8 = vld [vmem:[%s15803_s7 + $0x304] sm:$0xf] }
 0x5cb   : > { %7389 = vmatpush.bf16.msra.mxu0 %v9035_v40  ;;  %7402 = vmatpush.bf16.msra.mxu1 %v9039_v16  ;;  %v6172_v6 = vadd.f32 %v6149_v28, %v6039_v25  ;;  %v8587_v63 = vor.u32 %v9378_v56, %v8586_v21  ;;  %v9501_v1 = vld [vmem:[%s15803_s7 + $0x464] sm:$0xf]  ;;  %v9484_v25 = vld [vmem:[%s15803_s7 + $0x3d4] sm:$0xf0]  ;;  %v9186_v21 = vld [vmem:[%s15803_s7 + $0x450] sm:$0xf] }
 0x5cc   : > { %v9500_v56 = vld [vmem:[%s15803_s7 + $0x454] sm:$0xf0]  ;;  %v9162_v9 = vld [vmem:[%s15803_s7 + $0x420] sm:$0xf] }
 0x5cd   : > { %6733 = vmatpush.bf16.msra.mxu3 %v8627_v43  ;;  %v8986_v43 = vld [vmem:[%s15803_s7 + $0x300] sm:$0xf] }
 0x5cf   : > { %v6410_v5 = vpop.f32.mrf.mxu2  ;;  %7390 = vmatpush.bf16.msra.mxu0 %v9027_v36  ;;  %7403 = vmatpush.bf16.msra.mxu1 %v9031_v17  ;;  %v8988_v36 = vld [vmem:[%s15803_s7 + $0x308] sm:$0xf0]  ;;  %v6151_v17 = vpop.f32.mrf.mxu0 }
 0x5d0   : > { %v6436_v58 = vadd.f32 %v6410_v5, %v6303_v60  ;;  %v6279_v57 = vpop.f32.mrf.mxu1  ;;  %v6021_v60 = vpop.f32.mrf.mxu3  ;;  %v8636_v5 = vld [vmem:[%s15803_s7 + $0xe8] sm:$0xf0]  ;;  %v9498_v17 = vld [vmem:[%s15803_s7 + $0x444] sm:$0xf0] }
 0x5d1   : > { %6734 = vmatpush.bf16.msra.mxu3 %v8619_v45  ;;  %v9488_v45 = vld [vmem:[%s15803_s7 + $0x3f4] sm:$0xf0] }
 0x5d2   : > { %6450 = vst [vmem:[#allocation6 + $0x30] sm:$0xff] %v6436_v58  ;;  %v9123_v24 = vor.u32 %v9488_v45, %v9122_v0  ;;  %v9090_v45 = vld [vmem:[%s15803_s7 + $0x3b0] sm:$0xf] }
 0x5d3   : > { %7391 = vmatpush.bf16.msra.mxu0 %v9019_v62  ;;  %7404 = vmatpush.bf16.msra.mxu1 %v9023_v61  ;;  %v8987_v62 = vor.u32 %v9458_v59, %v8986_v43  ;;  %v8991_v61 = vor.u32 %v9457_v8, %v8988_v36  ;;  %v9383_v43 = vld [vmem:[%s15803_s7 + $0xb4] sm:$0xf]  ;;  %v9178_v36 = vld [vmem:[%s15803_s7 + $0x440] sm:$0xf] }
 0x5d4   : > { %6618 = vmatmul.bf16.vlgmr.msrb.gmra.mxu3 %v15164_v7  ;;  %v8780_v7 = vld [vmem:[%s15803_s7 + $0x1c8] sm:$0xf0] }
 0x5d5   : > { %6735 = vmatpush.bf16.msra.mxu3 %v8611_v44  ;;  %v9503_v44 = vld [vmem:[%s15803_s7 + $0x474] sm:$0xf] }
 0x5d7   : > { %v6412_v19 = vpop.f32.mrf.mxu2  ;;  %7392 = vmatpush.bf16.msra.mxu0 %v9011_v10  ;;  %7405 = vmatpush.bf16.msra.mxu1 %v9015_v32  ;;  %v8639_v10 = vor.u32 %v9389_v3, %v8636_v5  ;;  %v9114_v32 = vld [vmem:[%s15803_s7 + $0x3e0] sm:$0xf]  ;;  %v6154_v42 = vpop.f32.mrf.mxu0  ;;  %v9381_v5 = vld [vmem:[%s15803_s7 + $0xa4] sm:$0xf] }
 0x5d8   : > { %v6282_v38 = vpop.f32.mrf.mxu1  ;;  %v9115_v19 = vor.u32 %v9486_v55, %v9114_v32  ;;  %v9082_v55 = vld [vmem:[%s15803_s7 + $0x3a0] sm:$0xf] }
 0x5d9   : > { %6736 = vmatpush.bf16.msra.mxu3 %v8603_v48  ;;  %v6479_v40 = vld [vmem:[#allocation6 + $0x30] ss:$2 sm:$0x7]  ;;  %v6481_v16 = vld [vmem:[#allocation6 + $0x31] ss:$2 sm:$0x7]  ;;  %v6305_v2 = vadd.f32 %v6282_v38, %v6172_v6  ;;  %v9207_v48 = vor.u32 %v9503_v44, %v9204_v29 }
 0x5da   : > { %v6482_v12 = vmax.f32 %v6479_v40, %v6481_v16  ;;  %v8612_v6 = vld [vmem:[%s15803_s7 + $0xb8] sm:$0xf0]  ;;  %v9495_v44 = vld [vmem:[%s15803_s7 + $0x434] sm:$0xf] }
 0x5db   : > { %7393 = vmatpush.bf16.msra.mxu0 %v9003_v33  ;;  %7406 = vmatpush.bf16.msra.mxu1 %v9007_v34  ;;  %v9196_v33 = vld [vmem:[%s15803_s7 + $0x468] sm:$0xf0]  ;;  %v8631_v34 = vor.u32 %v9387_v13, %v8628_v41  ;;  %v8615_v0 = vor.u32 %v9383_v43, %v8612_v6  ;;  %v9172_v29 = vld [vmem:[%s15803_s7 + $0x438] sm:$0xf0]  ;;  %v9478_v13 = vld [vmem:[%s15803_s7 + $0x3a4] sm:$0xf0] }
 0x5dc   : > { %v6483_v35 = vmax.f32 %v6477_v47, %v6482_v12  ;;  %v9199_v16 = vor.u32 %v9501_v1, %v9196_v33  ;;  %v6023_v47 = vpop.f32.mrf.mxu3  ;;  %v9107_v12 = vor.u32 %v9484_v25, %v9106_v31  ;;  %v9175_v18 = vor.u32 %v9495_v44, %v9172_v29  ;;  %v9377_v1 = vld [vmem:[%s15803_s7 + $0x84] sm:$0xf]  ;;  %v8588_v33 = vld [vmem:[%s15803_s7 + $0x88] sm:$0xf0] }
 0x5dd   : > { %6737 = vmatpush.bf16.msra.mxu3 %v8595_v49  ;;  %v6041_v49 = vadd.f32 %v6021_v60, %v14790_v51  ;;  %v9188_v51 = vld [vmem:[%s15803_s7 + $0x458] sm:$0xf0]  ;;  %v9480_v60 = vld [vmem:[%s15803_s7 + $0x3b4] sm:$0xf0]  ;;  %v9493_v31 = vld [vmem:[%s15803_s7 + $0x424] sm:$0xf] }
 0x5de   : > { %v6484_v37 = vadd.f32 %v15125_v15, %v6483_v35  ;;  %v9187_v35 = vor.u32 %v9500_v56, %v9186_v21  ;;  %v9191_v8 = vor.u32 %v9499_v26, %v9188_v51  ;;  %v9164_v25 = vld [vmem:[%s15803_s7 + $0x428] sm:$0xf0]  ;;  %v9154_v47 = vld [vmem:[%s15803_s7 + $0x410] sm:$0xf]  ;;  %v9492_v26 = vld [vmem:[%s15803_s7 + $0x414] sm:$0xf0] }
 0x5df   : > { %v6415_v4 = vpop.f32.mrf.mxu2  ;;  %7394 = vmatpush.bf16.msra.mxu0 %v8995_v53  ;;  %7407 = vmatpush.bf16.msra.mxu1 %v8999_v22  ;;  %v9098_v53 = vld [vmem:[%s15803_s7 + $0x3c0] sm:$0xf]  ;;  %v9482_v22 = vld [vmem:[%s15803_s7 + $0x3c4] sm:$0xf0]  ;;  %v6174_v59 = vadd.f32 %v6154_v42, %v6041_v49  ;;  %v9491_v51 = vld [vmem:[%s15803_s7 + $0x414] sm:$0xf] }
 0x5e0   : > { %v6438_v27 = vadd.f32 %v6415_v4, %v6305_v2  ;;  %v6284_v58 = vpop.f32.mrf.mxu1  ;;  %v6485_v57 = vmax.f32 %v6484_v37, 0.0  ;;  %v9497_v2 = vld [vmem:[%s15803_s7 + $0x444] sm:$0xf]  ;;  %v6156_v4 = vpop.f32.mrf.mxu0  ;;  %v9494_v42 = vld [vmem:[%s15803_s7 + $0x424] sm:$0xf0] }
 0x5e1   : > { %6738 = vmatpush.bf16.msra.mxu3 %v8587_v63  ;;  %v9099_v63 = vor.u32 %v9482_v22, %v9098_v53  ;;  %v9163_v56 = vor.u32 %v9494_v42, %v9162_v9  ;;  %v9490_v4 = vld [vmem:[%s15803_s7 + $0x404] sm:$0xf0]  ;;  %v9413_v42 = vld [vmem:[%s15803_s7 + $0x1a4] sm:$0xf] }
 0x5e2   : > { %6452 = vst [vmem:[#allocation6 + $0x40] sm:$0xff] %v6438_v27  ;;  %v15336_v28 = vpack.c.bf16 %v6485_v57, %v6485_v57 }
 0x5e3   : > { %7395 = vmatpush.bf16.msra.mxu0 %v8987_v62  ;;  %7408 = vmatpush.bf16.msra.mxu1 %v8991_v61  ;;  %v8604_v62 = vld [vmem:[%s15803_s7 + $0xa8] sm:$0xf0]  ;;  %v9179_v61 = vor.u32 %v9498_v17, %v9178_v36 }
 0x5e4   : > { %6739 = vmatmul.bf16.vlgmr.msra.gmra.mxu3 %v6648_v20  ;;  %7001 = vmatmul.bf16.vlgmr.msrb.gmra.mxu2 %v15336_v28  ;;  %v7043_v14 = vshrl.u32 %v15336_v28, 16  ;;  %v8607_v32 = vor.u32 %v9381_v5, %v8604_v62  ;;  %v6026_v41 = vpop.f32.mrf.mxu3 }
 0x5e5   : > { %6744 = vmatpush.bf16.msrb.mxu3 %v8647_v54  ;;  %7521 = vmatpush.bf16.msrb.mxu2 %v9123_v24  ;;  %v9180_v54 = vld [vmem:[%s15803_s7 + $0x448] sm:$0xf0]  ;;  %v9091_v24 = vor.u32 %v9480_v60, %v9090_v45  ;;  %v9146_v60 = vld [vmem:[%s15803_s7 + $0x400] sm:$0xf] }
 0x5e6   : > { %7134 = vmatmul.bf16.vlgmr.msrb.gmra.mxu0 %v7043_v14  ;;  %7147 = vmatmul.bf16.vlgmr.msrb.gmra.mxu1 %v7043_v14  ;;  %v9183_v57 = vor.u32 %v9497_v2, %v9180_v54  ;;  %v8596_v14 = vld [vmem:[%s15803_s7 + $0x98] sm:$0xf0]  ;;  %v9421_v2 = vld [vmem:[%s15803_s7 + $0x1e4] sm:$0xf]  ;;  %v9155_v54 = vor.u32 %v9492_v26, %v9154_v47  ;;  %v9451_v47 = vld [vmem:[%s15803_s7 + $0x2d4] sm:$0xf] }
 0x5e7   : > { %v6417_v38 = vpop.f32.mrf.mxu2  ;;  %7653 = vmatpush.bf16.msrb.mxu0 %v9203_v52  ;;  %7666 = vmatpush.bf16.msrb.mxu1 %v9207_v48  ;;  %v9379_v52 = vld [vmem:[%s15803_s7 + $0x94] sm:$0xf]  ;;  %v9171_v48 = vor.u32 %v9496_v46, %v9170_v50  ;;  %v9147_v50 = vor.u32 %v9490_v4, %v9146_v60  ;;  %v9485_v4 = vld [vmem:[%s15803_s7 + $0x3e4] sm:$0xf] }
 0x5e8   : > { %v6287_v40 = vpop.f32.mrf.mxu1  ;;  %v8599_v38 = vor.u32 %v9379_v52, %v8596_v14  ;;  %v9417_v52 = vld [vmem:[%s15803_s7 + $0x1c4] sm:$0xf] }
 0x5e9   : > { %6745 = vmatpush.bf16.msrb.mxu3 %v8639_v10  ;;  %7522 = vmatpush.bf16.msrb.mxu2 %v9115_v19  ;;  %v6307_v37 = vadd.f32 %v6287_v40, %v6174_v59  ;;  %v7176_v10 = vrot.slane %v15336_v28, 1  ;;  %v9083_v19 = vor.u32 %v9478_v13, %v9082_v55  ;;  %v6487_v49 = vld [vmem:[#allocation6 + $0x40] ss:$2 sm:$0x7]  ;;  %v6159_v40 = vpop.f32.mrf.mxu0  ;;  %v9066_v59 = vld [vmem:[%s15803_s7 + $0x380] sm:$0xf]  ;;  %v8783_v14 = vor.u32 %v9417_v52, %v8780_v7 }
 0x5ea   : > { %v6489_v21 = vld [vmem:[#allocation6 + $0x41] ss:$2 sm:$0x7] }
 0x5eb   : > { %7654 = vmatpush.bf16.msrb.mxu0 %v9195_v23  ;;  %7667 = vmatpush.bf16.msrb.mxu1 %v9199_v16  ;;  %v9476_v23 = vld [vmem:[%s15803_s7 + $0x394] sm:$0xf0]  ;;  %v6490_v36 = vmax.f32 %v6487_v49, %v6489_v21  ;;  %v8956_v21 = vld [vmem:[%s15803_s7 + $0x2e8] sm:$0xf0] }
 0x5ed   : > { %6746 = vmatpush.bf16.msrb.mxu3 %v8631_v34  ;;  %7523 = vmatpush.bf16.msrb.mxu2 %v9107_v12  ;;  %v9074_v34 = vld [vmem:[%s15803_s7 + $0x390] sm:$0xf]  ;;  %v9167_v12 = vor.u32 %v9493_v31, %v9164_v25 }
 0x5ee   : > { %v9075_v22 = vor.u32 %v9476_v23, %v9074_v34  ;;  %v8756_v34 = vld [vmem:[%s15803_s7 + $0x198] sm:$0xf0] }
 0x5ef   : > { %v6420_v3 = vpop.f32.mrf.mxu2  ;;  %7655 = vmatpush.bf16.msrb.mxu0 %v9187_v35  ;;  %7668 = vmatpush.bf16.msrb.mxu1 %v9191_v8  ;;  %v8591_v35 = vor.u32 %v9377_v1, %v8588_v33  ;;  %v9474_v8 = vld [vmem:[%s15803_s7 + $0x384] sm:$0xf0]  ;;  %v9411_v33 = vld [vmem:[%s15803_s7 + $0x194] sm:$0xf]  ;;  %v8964_v23 = vld [vmem:[%s15803_s7 + $0x2f8] sm:$0xf0] }
 0x5f0   : > { %v6440_v27 = vadd.f32 %v6420_v3, %v6307_v37  ;;  %v6289_v58 = vpop.f32.mrf.mxu1  ;;  %v8796_v37 = vld [vmem:[%s15803_s7 + $0x1e8] sm:$0xf0]  ;;  %v6028_v3 = vpop.f32.mrf.mxu3  ;;  %v9067_v5 = vor.u32 %v9474_v8, %v9066_v59  ;;  %v8759_v25 = vor.u32 %v9411_v33, %v8756_v34 }
 0x5f1   : > { %6747 = vmatpush.bf16.msrb.mxu3 %v8623_v39  ;;  %7524 = vmatpush.bf16.msrb.mxu2 %v9099_v63  ;;  %v9156_v39 = vld [vmem:[%s15803_s7 + $0x418] sm:$0xf0]  ;;  %v8807_v63 = vor.u32 %v9423_v11, %v8804_v30  ;;  %v6161_v44 = vpop.f32.mrf.mxu0  ;;  %v8748_v11 = vld [vmem:[%s15803_s7 + $0x188] sm:$0xf0]  ;;  %v9455_v30 = vld [vmem:[%s15803_s7 + $0x2f4] sm:$0xf] }
 0x5f2   : > { %6454 = vst [vmem:[#allocation6 + $0x50] sm:$0xff] %v6440_v27  ;;  %v9159_v45 = vor.u32 %v9491_v51, %v9156_v39  ;;  %v9148_v27 = vld [vmem:[%s15803_s7 + $0x408] sm:$0xf0]  ;;  %v8967_v40 = vor.u32 %v9455_v30, %v8964_v23  ;;  %v9449_v51 = vld [vmem:[%s15803_s7 + $0x2c4] sm:$0xf] }
 0x5f3   : > { %7656 = vmatpush.bf16.msrb.mxu0 %v9179_v61  ;;  %7669 = vmatpush.bf16.msrb.mxu1 %v9183_v57  ;;  %v9489_v61 = vld [vmem:[%s15803_s7 + $0x404] sm:$0xf]  ;;  %v8799_v57 = vor.u32 %v9421_v2, %v8796_v37  ;;  %v8940_v39 = vld [vmem:[%s15803_s7 + $0x2c8] sm:$0xf0]  ;;  %v9487_v37 = vld [vmem:[%s15803_s7 + $0x3f4] sm:$0xf] }
 0x5f4   : > { %7266 = vmatmul.bf16.vlgmr.msra.gmra.mxu2 %v7176_v10  ;;  %v9151_v29 = vor.u32 %v9489_v61, %v9148_v27  ;;  %v8924_v59 = vld [vmem:[%s15803_s7 + $0x2a8] sm:$0xf0]  ;;  %v9441_v2 = vld [vmem:[%s15803_s7 + $0x284] sm:$0xf]  ;;  %v9108_v61 = vld [vmem:[%s15803_s7 + $0x3d8] sm:$0xf0] }
 0x5f5   : > { %6748 = vmatpush.bf16.msrb.mxu3 %v8615_v0  ;;  %7525 = vmatpush.bf16.msrb.mxu2 %v9091_v24  ;;  %v9419_v24 = vld [vmem:[%s15803_s7 + $0x1d4] sm:$0xf]  ;;  %v9116_v3 = vld [vmem:[%s15803_s7 + $0x3e8] sm:$0xf0] }
 0x5f7   : > { %v6422_v16 = vpop.f32.mrf.mxu2  ;;  %7657 = vmatpush.bf16.msrb.mxu0 %v9171_v48  ;;  %7670 = vmatpush.bf16.msrb.mxu1 %v9175_v18  ;;  %v9415_v48 = vld [vmem:[%s15803_s7 + $0x1b4] sm:$0xf]  ;;  %v8772_v18 = vld [vmem:[%s15803_s7 + $0x1b8] sm:$0xf0] }
 0x5f8   : > { %v6292_v53 = vpop.f32.mrf.mxu1  ;;  %v8775_v9 = vor.u32 %v9415_v48, %v8772_v18  ;;  %v9453_v16 = vld [vmem:[%s15803_s7 + $0x2e4] sm:$0xf] }
 0x5f9   : > { %6749 = vmatpush.bf16.msrb.mxu3 %v8607_v32  ;;  %7526 = vmatpush.bf16.msrb.mxu2 %v9083_v19  ;;  %v6492_v43 = vld [vmem:[#allocation6 + $0x50] ss:$2 sm:$0x7]  ;;  %v6494_v6 = vld [vmem:[#allocation6 + $0x51] ss:$2 sm:$0x7]  ;;  %v8943_v53 = vor.u32 %v9449_v51, %v8940_v39 }
 0x5fa   : > { %v6495_v17 = vmax.f32 %v6492_v43, %v6494_v6  ;;  %v8764_v19 = vld [vmem:[%s15803_s7 + $0x1a8] sm:$0xf0]  ;;  %v8932_v43 = vld [vmem:[%s15803_s7 + $0x2b8] sm:$0xf0] }
 0x5fb   : > { %7658 = vmatpush.bf16.msrb.mxu0 %v9163_v56  ;;  %7671 = vmatpush.bf16.msrb.mxu1 %v9167_v12  ;;  %v8767_v1 = vor.u32 %v9413_v42, %v8764_v19  ;;  %v8959_v56 = vor.u32 %v9453_v16, %v8956_v21  ;;  %v8948_v12 = vld [vmem:[%s15803_s7 + $0x2d8] sm:$0xf0]  ;;  %v9473_v42 = vld [vmem:[%s15803_s7 + $0x384] sm:$0xf]  ;;  %v9068_v19 = vld [vmem:[%s15803_s7 + $0x388] sm:$0xf0] }
 0x5fc   : > { %v6496_v0 = vmax.f32 %v6490_v36, %v6495_v17  ;;  %v8951_v26 = vor.u32 %v9451_v47, %v8948_v12  ;;  %v9443_v36 = vld [vmem:[%s15803_s7 + $0x294] sm:$0xf]  ;;  %v8916_v17 = vld [vmem:[%s15803_s7 + $0x298] sm:$0xf0]  ;;  %v9071_v33 = vor.u32 %v9473_v42, %v9068_v19  ;;  %v9514_v42 = vld [vmem:[%s15805_s9 + $0x48] sm:$0xff] }
 0x5fd   : > { %6750 = vmatpush.bf16.msrb.mxu3 %v8599_v38  ;;  %7527 = vmatpush.bf16.msrb.mxu2 %v9075_v22  ;;  %v9409_v38 = vld [vmem:[%s15803_s7 + $0x184] sm:$0xf]  ;;  %v9447_v22 = vld [vmem:[%s15803_s7 + $0x2b4] sm:$0xf] }
 0x5fe   : > { %v6497_v62 = vadd.f32 %v15125_v15, %v6496_v0  ;;  %v8788_v15 = vld [vmem:[%s15803_s7 + $0x1d8] sm:$0xf0]  ;;  %v8751_v49 = vor.u32 %v9409_v38, %v8748_v11  ;;  %v8935_v6 = vor.u32 %v9447_v22, %v8932_v43 }
 0x5ff   : > { %v6425_v58 = vpop.f32.mrf.mxu2  ;;  %7659 = vmatpush.bf16.msrb.mxu0 %v9155_v54  ;;  %7672 = vmatpush.bf16.msrb.mxu1 %v9159_v45  ;;  %v8791_v13 = vor.u32 %v9419_v24, %v8788_v15  ;;  %v8908_v54 = vld [vmem:[%s15803_s7 + $0x288] sm:$0xf0]  ;;  %v9124_v0 = vld [vmem:[%s15803_s7 + $0x3f8] sm:$0xf0] }
 0x600   : > { %v6498_v46 = vmax.f32 %v6497_v62, 0.0  ;;  %v6294_v55 = vpop.f32.mrf.mxu1  ;;  %v8911_v45 = vor.u32 %v9441_v2, %v8908_v54  ;;  %v9127_v60 = vor.u32 %v9487_v37, %v9124_v0  ;;  %v9483_v62 = vld [vmem:[%s15803_s7 + $0x3d4] sm:$0xf]  ;;  %v9481_v58 = vld [vmem:[%s15803_s7 + $0x3c4] sm:$0xf] }
 0x601   : > { %6751 = vmatpush.bf16.msrb.mxu3 %v8591_v35  ;;  %7528 = vmatpush.bf16.msrb.mxu2 %v9067_v5  ;;  %v9445_v35 = vld [vmem:[%s15803_s7 + $0x2a4] sm:$0xf]  ;;  %v9119_v5 = vor.u32 %v9485_v4, %v9116_v3  ;;  %v9111_v27 = vor.u32 %v9483_v62, %v9108_v61 }
 0x602   : > { %v15529_v32 = vpack.c.bf16 %v6498_v46, %v6498_v46  ;;  %v8927_v8 = vor.u32 %v9445_v35, %v8924_v59  ;;  %v9479_v46 = vld [vmem:[%s15803_s7 + $0x3b4] sm:$0xf]  ;;  %v9477_v55 = vld [vmem:[%s15803_s7 + $0x3a4] sm:$0xf] }
 0x603   : > { %7660 = vmatpush.bf16.msrb.mxu0 %v9147_v50  ;;  %7673 = vmatpush.bf16.msrb.mxu1 %v9151_v29 }
 0x604   : > { %6752 = vmatmul.bf16.vlgmr.msrb.gmra.mxu3 %v6648_v20  ;;  %7396 = vmatmul.bf16.vlgmr.msra.gmra.mxu0 %v15529_v32  ;;  %v7438_v41 = vshrl.u32 %v15529_v32, 16  ;;  %v7571_v31 = vrot.slane %v15529_v32, 1 }
 0x605   : > { %7006 = vmatpush.bf16.msra.mxu3 %v8807_v63  ;;  %7409 = vmatmul.bf16.vlgmr.msra.gmra.mxu1 %v15529_v32  ;;  %v8919_v63 = vor.u32 %v9443_v36, %v8916_v17 }
 0x606   : > { %7529 = vmatmul.bf16.vlgmr.msrb.gmra.mxu2 %v7438_v41 }
 0x607   : > { %v6427_v20 = vpop.f32.mrf.mxu2 }
 0x608   : > { %v9475_v20 = vld [vmem:[%s15803_s7 + $0x394] sm:$0xf] }
 0x609   : > { %7007 = vmatpush.bf16.msra.mxu3 %v8799_v57  ;;  %v9100_v57 = vld [vmem:[%s15803_s7 + $0x3c8] sm:$0xf0] }
 0x60a   : > { %v9103_v50 = vor.u32 %v9481_v58, %v9100_v57  ;;  %v9512_v57 = vld [vmem:[%s15805_s9 + $0x38] sm:$0xff] }
 0x60b   : > { %7822 = vmatpush.bf16.msra.mxu2 %v9512_v57 }
 0x60d   : > { %7008 = vmatpush.bf16.msra.mxu3 %v8791_v13  ;;  %v9084_v13 = vld [vmem:[%s15803_s7 + $0x3a8] sm:$0xf0] }
 0x60e   : > { %v9087_v7 = vor.u32 %v9477_v55, %v9084_v13  ;;  %v9517_v55 = vld [vmem:[%s15805_s9 + $0x60] sm:$0xff]  ;;  %v9508_v13 = vld [vmem:[%s15805_s9 + $0x18] sm:$0xff] }
 0x611   : > { %7009 = vmatpush.bf16.msra.mxu3 %v8783_v14  ;;  %v9076_v14 = vld [vmem:[%s15803_s7 + $0x398] sm:$0xf0] }
 0x614   : > { %7661 = vmatmul.bf16.vlgmr.msrb.gmra.mxu0 %v7571_v31 }
 0x615   : > { %7010 = vmatpush.bf16.msra.mxu3 %v8775_v9  ;;  %7674 = vmatmul.bf16.vlgmr.msrb.gmra.mxu1 %v7571_v31  ;;  %v9079_v9 = vor.u32 %v9475_v20, %v9076_v14  ;;  %v9515_v20 = vld [vmem:[%s15805_s9 + $0x50] sm:$0xff] }
 0x619   : > { %7011 = vmatpush.bf16.msra.mxu3 %v8767_v1 }
 0x61d   : > { %7012 = vmatpush.bf16.msra.mxu3 %v8759_v25 }
 0x621   : > { %7013 = vmatpush.bf16.msra.mxu3 %v8751_v49 }
 0x624   : > { %7014 = vmatmul.bf16.vlgmr.msra.gmra.mxu3 %v15336_v28  ;;  %v9092_v28 = vld [vmem:[%s15803_s7 + $0x3b8] sm:$0xf0] }
 0x625   : > { %7271 = vmatpush.bf16.msrb.mxu3 %v8967_v40  ;;  %v9095_v44 = vor.u32 %v9479_v46, %v9092_v28  ;;  %v9511_v28 = vld [vmem:[%s15805_s9 + $0x30] sm:$0xff] }
 0x626   : > { %7823 = vmatpush.bf16.msra.mxu2 %v9511_v28 }
 0x629   : > { %7272 = vmatpush.bf16.msrb.mxu3 %v8959_v56 }
 0x62d   : > { %7273 = vmatpush.bf16.msrb.mxu3 %v8951_v26 }
 0x631   : > { %7274 = vmatpush.bf16.msrb.mxu3 %v8943_v53 }
 0x635   : > { %7275 = vmatpush.bf16.msrb.mxu3 %v8935_v6 }
 0x639   : > { %7276 = vmatpush.bf16.msrb.mxu3 %v8927_v8 }
 0x63d   : > { %7277 = vmatpush.bf16.msrb.mxu3 %v8919_v63 }
 0x641   : > { %7278 = vmatpush.bf16.msrb.mxu3 %v8911_v45 }
 0x643   : > { %v6885_v24 = vpop.f32.mrf.mxu1 }
 0x644   : > { %7279 = vmatmul.bf16.vlgmr.msrb.gmra.mxu3 %v7176_v10  ;;  %v6872_v10 = vpop.f32.mrf.mxu0  ;;  %v6891_v15 = vrot.slane %v6885_v24, 7 }
 0x645   : > { %7534 = vmatpush.bf16.msra.mxu3 %v9127_v60 }
 0x646   : > { %v6892_v29 = vsel %vm6626_vm4, %v6872_v10, %v6891_v15  ;;  %v9519_v10 = vld [vmem:[%s15805_s9 + $0x70] sm:$0xff]  ;;  %v9510_v15 = vld [vmem:[%s15805_s9 + $0x28] sm:$0xff] }
 0x647   : > { %v6606_v52 = vpop.f32.mrf.mxu3  ;;  %7824 = vmatpush.bf16.msra.mxu2 %v9510_v15 }
 0x649   : > { %7535 = vmatpush.bf16.msra.mxu3 %v9119_v5 }
 0x64b   : > { %v6887_v18 = vpop.f32.mrf.mxu1 }
 0x64c   : > { %v6874_v48 = vpop.f32.mrf.mxu0 }
 0x64d   : > { %7536 = vmatpush.bf16.msra.mxu3 %v9111_v27 }
 0x64f   : > { %v6608_v1 = vpop.f32.mrf.mxu3 }
 0x651   : > { %7537 = vmatpush.bf16.msra.mxu3 %v9103_v50  ;;  %v9520_v50 = vld [vmem:[%s15805_s9 + $0x78] sm:$0xff] }
 0x655   : > { %7538 = vmatpush.bf16.msra.mxu3 %v9095_v44  ;;  %v9518_v44 = vld [vmem:[%s15805_s9 + $0x68] sm:$0xff] }
 0x657   : > { %v6619_v34 = vpop.f32.mrf.mxu3 }
 0x658   : > { %v6625_v31 = vrot.slane %v6619_v34, 7  ;;  %v9513_v34 = vld [vmem:[%s15805_s9 + $0x40] sm:$0xff] }
 0x659   : > { %7539 = vmatpush.bf16.msra.mxu3 %v9087_v7  ;;  %v9507_v7 = vld [vmem:[%s15805_s9 + $0x10] sm:$0xff] }
 0x65a   : > { %v6627_v25 = vsel %vm6626_vm4, %v6606_v52, %v6625_v31  ;;  %v9516_v52 = vld [vmem:[%s15805_s9 + $0x58] sm:$0xff] }
 0x65d   : > { %7540 = vmatpush.bf16.msra.mxu3 %v9079_v9  ;;  %v9506_v9 = vld [vmem:[%s15805_s9 + $0x8] sm:$0xff] }
 0x65f   : > { %v6621_v38 = vpop.f32.mrf.mxu3 }
 0x660   : > { %v9527_v38 = vld [vmem:[%s15807_s11 + $0x30] sm:$0xff] }
 0x661   : > { %7541 = vmatpush.bf16.msra.mxu3 %v9071_v33  ;;  %v9505_v33 = vld [vmem:[%s15805_s9] sm:$0xff] }
 0x663   : > { %v7135_v11 = vpop.f32.mrf.mxu0  ;;  %v7148_v30 = vpop.f32.mrf.mxu1 }
 0x664   : > { %7542 = vmatmul.bf16.vlgmr.msra.gmra.mxu3 %v7438_v41  ;;  %v7154_v23 = vrot.slane %v7148_v30, 7  ;;  %v6499_v41 = vld [vmem:[%s15804_s8] sm:$0x3] }
 0x665   : > { %v6629_v35 = vadd.f32 %v6627_v25, %v6499_v41  ;;  %7835 = vmatpush.bf16.msrb.mxu3 %v9520_v50  ;;  %v9528_v25 = vld [vmem:[%s15807_s11 + $0x38] sm:$0xff]  ;;  %v9525_v30 = vld [vmem:[%s15807_s11 + $0x20] sm:$0xff]  ;;  %v9522_v41 = vld [vmem:[%s15807_s11 + $0x8] sm:$0xff] }
 0x666   : > { %v7155_v49 = vsel %vm6626_vm4, %v7135_v11, %v7154_v23  ;;  %7915 = vmatpush.bf16.msra.mxu0 %v9528_v25  ;;  %v9526_v11 = vld [vmem:[%s15807_s11 + $0x28] sm:$0xff]  ;;  %v9524_v23 = vld [vmem:[%s15807_s11 + $0x18] sm:$0xff] }
 0x667   : > { %v6740_v40 = vpop.f32.mrf.mxu3  ;;  %v7002_v16 = vpop.f32.mrf.mxu2 }
 0x669   : > { %7836 = vmatpush.bf16.msrb.mxu3 %v9519_v10 }
 0x66a   : > { %7916 = vmatpush.bf16.msra.mxu0 %v9527_v38 }
 0x66b   : > { %v7137_v21 = vpop.f32.mrf.mxu0  ;;  %v7150_v56 = vpop.f32.mrf.mxu1 }
 0x66d   : > { %7837 = vmatpush.bf16.msrb.mxu3 %v9518_v44 }
 0x66e   : > { %7917 = vmatpush.bf16.msra.mxu0 %v9526_v11 }
 0x66f   : > { %v6742_v47 = vpop.f32.mrf.mxu3  ;;  %v7004_v12 = vpop.f32.mrf.mxu2 }
 0x671   : > { %7838 = vmatpush.bf16.msrb.mxu3 %v9517_v55 }
 0x672   : > { %7918 = vmatpush.bf16.msra.mxu0 %v9525_v30 }
 0x675   : > { %7839 = vmatpush.bf16.msrb.mxu3 %v9516_v52 }
 0x676   : > { %7919 = vmatpush.bf16.msra.mxu0 %v9524_v23 }
 0x677   : > { %v7267_v26 = vpop.f32.mrf.mxu2 }
 0x679   : > { %7840 = vmatpush.bf16.msrb.mxu3 %v9515_v20 }
 0x67d   : > { %7841 = vmatpush.bf16.msrb.mxu3 %v9514_v42 }
 0x67f   : > { %v7269_v51 = vpop.f32.mrf.mxu2 }
 0x681   : > { %v7397_v39 = vpop.f32.mrf.mxu0  ;;  %7842 = vmatpush.bf16.msrb.mxu3 %v9513_v34 }
 0x682   : > { %v7410_v53 = vpop.f32.mrf.mxu1 }
 0x683   : > { %v7416_v32 = vrot.slane %v7410_v53, 7 }
 0x685   : > { %v7417_v22 = vsel %vm6626_vm4, %v7397_v39, %v7416_v32 }
 0x687   : > { %v6753_v43 = vpop.f32.mrf.mxu3 }
 0x688   : > { %v6759_v6 = vrot.slane %v6753_v43, 7  ;;  %v7725_v43 = vld [vmem:[%s15806_s10] sm:$0x1] }
 0x689   : > { %v7399_v36 = vpop.f32.mrf.mxu0  ;;  %v15676_v63 = vpop.f32.mrf.mxu2 }
 0x68a   : > { %v6760_v59 = vsel %vm6626_vm4, %v6740_v40, %v6759_v6  ;;  %v7412_v17 = vpop.f32.mrf.mxu1  ;;  %v9523_v40 = vld [vmem:[%s15807_s11 + $0x10] sm:$0xff] }
 0x68b   : > { %v6762_v8 = vadd.f32 %v6760_v59, %v6629_v35  ;;  %7920 = vmatpush.bf16.msra.mxu0 %v9523_v40 }
 0x68d   : > { %v6894_v2 = vadd.f32 %v6892_v29, %v6762_v8  ;;  %v9509_v29 = vld [vmem:[%s15805_s9 + $0x20] sm:$0xff] }
 0x68e   : > { %7825 = vmatpush.bf16.msra.mxu2 %v9509_v29 }
 0x68f   : > { %v6755_v54 = vpop.f32.mrf.mxu3  ;;  %7921 = vmatpush.bf16.msra.mxu0 %v9522_v41 }
 0x690   : > { %v7866_v54 = vld [vmem:[%s15808_s12] sm:$0x1] }
 0x691   : > { %v7662_v37 = vpop.f32.mrf.mxu0  ;;  %v7532_v45 = vpop.f32.mrf.mxu2 }
 0x692   : > { %v7675_v0 = vpop.f32.mrf.mxu1  ;;  %7826 = vmatpush.bf16.msra.mxu2 %v9508_v13 }
 0x693   : > { %v7681_v60 = vrot.slane %v7675_v0, 7 }
 0x695   : > { %v15679_v4 = vsel %vm6626_vm4, %v7662_v37, %v7681_v60 }
 0x696   : > { %7827 = vmatpush.bf16.msra.mxu2 %v9507_v7 }
 0x699   : > { %v7664_v3 = vpop.f32.mrf.mxu0 }
 0x69a   : > { %v7677_v5 = vpop.f32.mrf.mxu1  ;;  %7828 = vmatpush.bf16.msra.mxu2 %v9506_v9 }
 0x69e   : > { %7829 = vmatpush.bf16.msra.mxu2 %v9505_v33 }
 0x6a7   : > { %v7015_v62 = vpop.f32.mrf.mxu3 }
 0x6a8   : > { %v7021_v61 = vrot.slane %v7015_v62, 7 }
 0x6aa   : > { %v7022_v27 = vsel %vm6626_vm4, %v7002_v16, %v7021_v61 }
 0x6ab   : > { %v7024_v58 = vadd.f32 %v7022_v27, %v6894_v2 }
 0x6ad   : > { %v7157_v46 = vadd.f32 %v7155_v49, %v7024_v58 }
 0x6af   : > { %v7017_v24 = vpop.f32.mrf.mxu3 }
 0x6c7   : > { %v7280_v14 = vpop.f32.mrf.mxu3 }
 0x6c8   : > { %v7286_v48 = vrot.slane %v7280_v14, 7 }
 0x6ca   : > { %v7287_v18 = vsel %vm6626_vm4, %v7267_v26, %v7286_v48 }
 0x6cb   : > { %v7289_v19 = vadd.f32 %v7287_v18, %v7157_v46 }
 0x6cd   : > { %v7419_v1 = vadd.f32 %v7417_v22, %v7289_v19  ;;  %v9521_v22 = vld [vmem:[%s15807_s11] sm:$0xff] }
 0x6ce   : > { %7922 = vmatpush.bf16.msra.mxu0 %v9521_v22 }
 0x6cf   : > { %v7282_v31 = vpop.f32.mrf.mxu3 }
 0x6e7   : > { %v7543_v49 = vpop.f32.mrf.mxu3 }
 0x6e8   : > { %v7549_v16 = vrot.slane %v7543_v49, 7 }
 0x6ea   : > { %v7550_v21 = vsel %vm6626_vm4, %v15676_v63, %v7549_v16 }
 0x6eb   : > { %v7552_v56 = vadd.f32 %v7550_v21, %v7419_v1 }
 0x6ed   : > { %v7684_v47 = vadd.f32 %v15679_v4, %v7552_v56 }
 0x6ef   : > { %v7685_v12 = vmax.f32 %v7684_v47, 0.0  ;;  %v7545_v26 = vpop.f32.mrf.mxu3 }
 0x6f1   : > { %v7687_v51 = vperm.slane %v7685_v12, 0  ;;  %v7688_v39 = vperm.slane %v7685_v12, 1 }
 0x6f3   : > { %v7691_v53 = vpack.c.bf16 %v7687_v51, %v7687_v51  ;;  %v7692_v32 = vpack.c.bf16 %v7688_v39, %v7688_v39 }
 0x6f5   : > { %7830 = vmatmul.bf16.vlgmr.msra.gmra.mxu2 %v7691_v53  ;;  %7843 = vmatmul.bf16.vlgmr.msrb.gmra.mxu3 %v7692_v32 }
 0x778   : > { %v7831_v6 = vpop.f32.mrf.mxu2  ;;  %v7844_v35 = vpop.f32.mrf.mxu3 }
 0x779   : > { %v7832_v59 = vadd.f32 %v7831_v6, %v7725_v43 }
 0x77b   : > { %v7845_v8 = vadd.f32 %v7844_v35, %v7832_v59 }
 0x77d   : > { %v7848_v36 = vmax.f32 %v7845_v8, 0.0 }
 0x77f   : > { %v7849_v17 = vpack.c.bf16 %v7848_v36, %v7848_v36 }
 0x780   : > { %v7833_v63 = vpop.f32.mrf.mxu2  ;;  %v7846_v2 = vpop.f32.mrf.mxu3 }
 0x781   : > { %7923 = vmatmul.bf16.vlgmr.msra.gmra.mxu0 %v7849_v17 }
 0x7fe   : > { %v7924_v37 = vpop.f32.mrf.mxu0 }
 0x7ff   : > { %v7925_v0 = vadd.f32 %v7924_v37, %v7866_v54 }
 0x801   : > { %7928 = vst [vmem:[%s432_s21] sm:$0x1] %v7925_v0 }
 0x802   : > { %9700 = shalt.err (!%p9697_p3)
}
 0x803   : > { %9531 = dma.vmem_to_hbm [thread:$0]  (%p9846_p5), %s7941_s0, 16, %s7943_s1, %s7930_s2  }
 0x806   : > { %v7926_v45 = vpop.f32.mrf.mxu0 }
 0x807 PF: > { %p9537_p4 = scmp.ge.s32.totalorder %s9735_s28, 2  ;;  %s7954_s22 = sand.u32 1, %s9723_s25  }
 0x808   : > { %s7955_s15 = scalar_lea.sflag [#allocation8], %s7954_s22 }
 0x809   : > { %p9534_p7 = pnand %p9537_p4, %p9850_p6 }
 0x80b   : > { %p9535_p8 = pneg %p9534_p7 }
 0x80d   : > { %9718 = dma.done.wait (%p9535_p8), %s7955_s15, 16  }
 0x80e   : > { %9720 = vsyncadd (%p9535_p8), %s7955_s15, 4294967280  ;;  %p23_p9 = scmp.ge.s32.totalorder %s9833_s14, 4   ;;  %s16278_s25 = smov %s9727_s26 }
 0x80f   : > { %s16279_s26 = smov %s9731_s27  ;;  %s16280_s27 = smov %s9844_s17 }
 0x810   : > { %s16281_s28 = smov %s9833_s14  ;;  %25 = sbr.rel (!%p23_p9) target bundleno = 8 (0x8), region = 184 }
 0x815   :  { %7960 = vsyncpa [#allocation8], 1 }
 0x816   :  { %7962 = vsyncpa [#allocation8 + $0x1], 1 }

</bundles_post_ra>
